<compile_context>
chip_gen: v7x
topology: tpu7x:2x2x1
jax: 0.10.0
libtpu: 0.0.40
codegen_flags: <defaults>
</compile_context>

<pallas_src>
import functools

import jax
import jax.numpy as jnp
from jax.experimental import pallas as pl
from jax.experimental.pallas import tpu as pltpu


# ---------------------------------------------------------------------------
# Glue: knn + graph feature construction (data-dependent gather -> plain JAX)
# ---------------------------------------------------------------------------
def knn(x, k):
    # x: (B, D, N)
    inner = -2.0 * jnp.einsum("bdn,bdm->bnm", x, x)
    xx = jnp.sum(x * x, axis=1)                           # (B, N)
    pairwise = -xx[:, :, None] - inner - xx[:, None, :]   # (B, N, N) = -dist^2
    idx = jax.lax.top_k(pairwise, k)[1]                   # (B, N, K)
    return idx


def get_graph_feature(x, k):
    # x: (B, D, N) -> (B, N, K, 2*D); feature = concat(x_j - x_i, x_i)
    B, D, N = x.shape
    idx = knn(x, k)                                       # (B, N, K)
    pts = jnp.transpose(x, (0, 2, 1))                     # (B, N, D)
    neighbors = jax.vmap(lambda p, i: p[i])(pts, idx)     # (B, N, K, D)
    center = jnp.broadcast_to(pts[:, :, None, :], neighbors.shape)
    return jnp.concatenate([neighbors - center, center], axis=-1)


# ---------------------------------------------------------------------------
# Pallas kernel: conv1..conv5 + folded-BN + relu + per-point max over neighbors
# ---------------------------------------------------------------------------
def dgcnn_kernel(x_ref,
                 w1, s1, b1, w2, s2, b2, w3, s3, b3, w4, s4, b4,
                 w5a, w5b, w5c, w5d, s5, b5,
                 o_ref, *, P, K):
    bf16 = jnp.bfloat16
    x = x_ref[...]                                        # (K*P, C_pad) bf16

    def conv_bn_relu(h_bf16, w_r, s_r, b_r):
        # bf16 x bf16 MXU matmul, f32 accumulation; BN/ReLU epilogue in f32.
        y = jnp.dot(h_bf16, w_r[...], preferred_element_type=jnp.float32)
        return jnp.maximum(y * s_r[...] + b_r[...], 0.0)

    def kmax(h):
        # max over neighbor axis: rows [j*P, (j+1)*P) hold neighbor j.
        # Tree reduction: depth ceil(log2(K)) instead of a K-1 serial chain.
        parts = [h[j * P:(j + 1) * P, :] for j in range(K)]
        while len(parts) > 1:
            nxt = [jnp.maximum(parts[i], parts[i + 1])
                   for i in range(0, len(parts) - 1, 2)]
            if len(parts) % 2:
                nxt.append(parts[-1])
            parts = nxt
        return parts[0]

    h1 = conv_bn_relu(x, w1, s1, b1)                      # (K*P, 64)  f32
    m1 = kmax(h1)                                         # (P, 64)
    h2 = conv_bn_relu(h1.astype(bf16), w2, s2, b2)        # (K*P, 64)
    m2 = kmax(h2)
    h3 = conv_bn_relu(h2.astype(bf16), w3, s3, b3)        # (K*P, 128)
    m3 = kmax(h3)
    h4 = conv_bn_relu(h3.astype(bf16), w4, s4, b4)        # (K*P, 256)
    m4 = kmax(h4)

    # conv5 on concat(m1..m4, lane axis) replaced by split-weight accumulation:
    # no cross-lane concat / (P,512) materialization, MXU fed directly.
    acc = jnp.dot(m1.astype(bf16), w5a[...], preferred_element_type=jnp.float32)
    acc = acc + jnp.dot(m2.astype(bf16), w5b[...],
                        preferred_element_type=jnp.float32)
    acc = acc + jnp.dot(m3.astype(bf16), w5c[...],
                        preferred_element_type=jnp.float32)
    acc = acc + jnp.dot(m4.astype(bf16), w5d[...],
                        preferred_element_type=jnp.float32)
    out = jnp.maximum(acc * s5[...] + b5[...], 0.0)       # (P, E_pad) f32
    o_ref[...] = out.astype(o_ref.dtype)


def _const_index_map(ndim):
    # Weight/scale/bias blocks are grid-invariant: block index never changes,
    # so the pipeline fetches them once and keeps them resident.
    return lambda i: (0,) * ndim


def dgcnn_forward(x, params, *, k=8, points_per_block=128):
    """x: (B, D, N) -> (B, emb_dims, N), matching the torch module output.

    points_per_block (P): 128 is a good default; 256-512 is fine on v5e/v6e,
    keep 128-256 on v7x (64 MiB VMEM) since live intermediates scale with P.
    """
    B, D, N = x.shape
    K = k
    P = points_per_block
    M = B * N
    nblk = (M + P - 1) // P
    M_pad = nblk * P

    (w1, s1, b1, w2, s2, b2, w3, s3, b3, w4, s4, b4, w5, s5, b5) = params
    E = w5.shape[1]
    C_IN = 2 * D
    C_PAD = max(8, ((C_IN + 7) // 8) * 8)        # sublane-clean K-dim for conv1
    E_PAD = max(128, ((E + 127) // 128) * 128)   # lane-dense output writeback

    # ---- graph feature: (B,N,K,2D) -> (nblk*K*P, C_PAD), neighbor-major rows
    feat = get_graph_feature(x, K)                        # (B, N, K, 2D) f32
    feat = feat.reshape(M, K, C_IN)
    if M_pad > M:
        feat = jnp.pad(feat, ((0, M_pad - M), (0, 0), (0, 0)))
    if C_PAD > C_IN:
        feat = jnp.pad(feat, ((0, 0), (0, 0), (0, C_PAD - C_IN)))
    feat = (feat.reshape(nblk, P, K, C_PAD)
                .transpose(0, 2, 1, 3)
                .reshape(nblk * K * P, C_PAD)
                .astype(jnp.bfloat16))

    # ---- parameters: pad conv1 rows / conv5 cols, split conv5 rows, cast bf16
    bf = lambda a: a.astype(jnp.bfloat16)
    w1p = jnp.pad(w1, ((0, C_PAD - C_IN), (0, 0)))
    w5p = jnp.pad(w5, ((0, 0), (0, E_PAD - E)))
    s5p = jnp.pad(s5, ((0, 0), (0, E_PAD - E)))
    b5p = jnp.pad(b5, ((0, 0), (0, E_PAD - E)))
    w5a, w5b, w5c, w5d = w5p[:64], w5p[64:128], w5p[128:256], w5p[256:512]
    kparams = (bf(w1p), s1, b1, bf(w2), s2, b2, bf(w3), s3, b3, bf(w4), s4, b4,
               bf(w5a), bf(w5b), bf(w5c), bf(w5d), s5p, b5p)

    in_specs = [pl.BlockSpec((K * P, C_PAD), lambda i: (i, 0))]
    for p in kparams:
        in_specs.append(pl.BlockSpec(p.shape, _const_index_map(p.ndim)))

    out = pl.pallas_call(
        functools.partial(dgcnn_kernel, P=P, K=K),
        out_shape=jax.ShapeDtypeStruct((M_pad, E_PAD), jnp.float32),
        grid=(nblk,),
        in_specs=in_specs,
        out_specs=pl.BlockSpec((P, E_PAD), lambda i: (i, 0)),
        compiler_params=pltpu.CompilerParams(
            dimension_semantics=("parallel",),
            vmem_limit_bytes=32 * 1024 * 1024),
    )(feat, *kparams)

    out = out[:M, :E]
    # (M, E) -> (B, N, E) -> (B, E, N)  (== torch .view(B, -1, N))
    return jnp.transpose(out.reshape(B, N, E), (0, 2, 1))


# ---------------------------------------------------------------------------
# Deterministic parameter construction (conv weights + folded eval-mode BN)
# ---------------------------------------------------------------------------
def make_params(key, input_dims=3, emb_dims=64, dtype=jnp.float32):
    channels = [(input_dims * 2, 64), (64, 64), (64, 128), (128, 256),
                (512, emb_dims)]
    params = []
    for (cin, cout) in channels:
        key, kw, kg, kb, km, kv = jax.random.split(key, 6)
        w = (jax.random.normal(kw, (cin, cout), dtype) * 0.1)       # (C_in, C_out)
        gamma = 1.0 + 0.1 * jax.random.normal(kg, (cout,), dtype)   # BN weight
        beta = 0.1 * jax.random.normal(kb, (cout,), dtype)          # BN bias
        rmean = 0.1 * jax.random.normal(km, (cout,), dtype)         # running_mean
        rvar = jax.random.uniform(kv, (cout,), dtype, 0.5, 1.5)     # running_var
        scale = gamma / jnp.sqrt(rvar + 1e-5)
        bias = beta - rmean * scale
        params += [w, scale.reshape(1, cout), bias.reshape(1, cout)]
    return tuple(params)


# ---------------------------------------------------------------------------
# Pure-JAX reference (same bf16-operand / f32-accumulate numerics as the kernel)
# ---------------------------------------------------------------------------
def dgcnn_ref(x, params, *, k=8):
    (w1, s1, b1, w2, s2, b2, w3, s3, b3, w4, s4, b4, w5, s5, b5) = params
    feat = get_graph_feature(x, k)                        # (B, N, K, 2D) f32
    bf16 = jnp.bfloat16

    def cbr(h, w, s, b):
        y = jnp.einsum("...c,cd->...d", h.astype(bf16), w.astype(bf16),
                       preferred_element_type=jnp.float32)
        return jnp.maximum(y * s + b, 0.0)

    h1 = cbr(feat, w1, s1, b1); m1 = h1.max(axis=2)
    h2 = cbr(h1, w2, s2, b2);   m2 = h2.max(axis=2)
    h3 = cbr(h2, w3, s3, b3);   m3 = h3.max(axis=2)
    h4 = cbr(h3, w4, s4, b4);   m4 = h4.max(axis=2)
    cat = jnp.concatenate([m1, m2, m3, m4], axis=-1)      # (B, N, 512)
    out = cbr(cat, w5, s5, b5)                            # (B, N, E)
    return jnp.transpose(out, (0, 2, 1))                  # (B, E, N)


if __name__ == "__main__":
    key = jax.random.PRNGKey(0)
    kx, kp = jax.random.split(key)

    B, D, N, K = 2, 3, 128, 8
    EMB = 128  # small emb_dims for this synthetic run (module default is 512)

    x = jax.random.normal(kx, (B, D, N), jnp.float32)
    params = make_params(kp, input_dims=D, emb_dims=EMB)

    out = dgcnn_forward(x, params, k=K, points_per_block=128)
    out = jax.block_until_ready(out)

    ref = dgcnn_ref(x, params, k=K)
    assert out.shape == (B, EMB, N), out.shape
    max_err = float(jnp.max(jnp.abs(out - ref)))
    assert jnp.allclose(out, ref, atol=1e-2, rtol=1e-2), max_err

    print("KERNEL_OK")
</pallas_src>

<mosaic_0001>
module attributes {stable_mosaic.version = 11 : i64} {
  func.func @dgcnn_kernel(%arg0: i32, %arg1: memref<1024x8xbf16, #tpu.memory_space<vmem>>, %arg2: memref<8x64xbf16, #tpu.memory_space<vmem>>, %arg3: memref<1x64xf32, #tpu.memory_space<vmem>>, %arg4: memref<1x64xf32, #tpu.memory_space<vmem>>, %arg5: memref<64x64xbf16, #tpu.memory_space<vmem>>, %arg6: memref<1x64xf32, #tpu.memory_space<vmem>>, %arg7: memref<1x64xf32, #tpu.memory_space<vmem>>, %arg8: memref<64x128xbf16, #tpu.memory_space<vmem>>, %arg9: memref<1x128xf32, #tpu.memory_space<vmem>>, %arg10: memref<1x128xf32, #tpu.memory_space<vmem>>, %arg11: memref<128x256xbf16, #tpu.memory_space<vmem>>, %arg12: memref<1x256xf32, #tpu.memory_space<vmem>>, %arg13: memref<1x256xf32, #tpu.memory_space<vmem>>, %arg14: memref<64x128xbf16, #tpu.memory_space<vmem>>, %arg15: memref<64x128xbf16, #tpu.memory_space<vmem>>, %arg16: memref<128x128xbf16, #tpu.memory_space<vmem>>, %arg17: memref<256x128xbf16, #tpu.memory_space<vmem>>, %arg18: memref<1x128xf32, #tpu.memory_space<vmem>>, %arg19: memref<1x128xf32, #tpu.memory_space<vmem>>, %arg20: memref<128x128xf32, #tpu.memory_space<vmem>>) attributes {dimension_semantics = [#tpu.dimension_semantics<parallel>], iteration_bounds = array<i64: 2>, scalar_prefetch = 0 : i64, scratch_operands = 0 : i64, tpu.core_type = #tpu.core_type<tc>, window_params = [{transform_indices = @transform_0, window_bounds = array<i64: 1024, 8>}, {pipeline_mode = #tpu.pipeline_mode<synchronous>, transform_indices = @transform_1, window_bounds = array<i64: 8, 64>}, {pipeline_mode = #tpu.pipeline_mode<synchronous>, transform_indices = @transform_2, window_bounds = array<i64: 1, 64>}, {pipeline_mode = #tpu.pipeline_mode<synchronous>, transform_indices = @transform_3, window_bounds = array<i64: 1, 64>}, {pipeline_mode = #tpu.pipeline_mode<synchronous>, transform_indices = @transform_4, window_bounds = array<i64: 64, 64>}, {pipeline_mode = #tpu.pipeline_mode<synchronous>, transform_indices = @transform_5, window_bounds = array<i64: 1, 64>}, {pipeline_mode = #tpu.pipeline_mode<synchronous>, transform_indices = @transform_6, window_bounds = array<i64: 1, 64>}, {pipeline_mode = #tpu.pipeline_mode<synchronous>, transform_indices = @transform_7, window_bounds = array<i64: 64, 128>}, {pipeline_mode = #tpu.pipeline_mode<synchronous>, transform_indices = @transform_8, window_bounds = array<i64: 1, 128>}, {pipeline_mode = #tpu.pipeline_mode<synchronous>, transform_indices = @transform_9, window_bounds = array<i64: 1, 128>}, {pipeline_mode = #tpu.pipeline_mode<synchronous>, transform_indices = @transform_10, window_bounds = array<i64: 128, 256>}, {pipeline_mode = #tpu.pipeline_mode<synchronous>, transform_indices = @transform_11, window_bounds = array<i64: 1, 256>}, {pipeline_mode = #tpu.pipeline_mode<synchronous>, transform_indices = @transform_12, window_bounds = array<i64: 1, 256>}, {pipeline_mode = #tpu.pipeline_mode<synchronous>, transform_indices = @transform_13, window_bounds = array<i64: 64, 128>}, {pipeline_mode = #tpu.pipeline_mode<synchronous>, transform_indices = @transform_14, window_bounds = array<i64: 64, 128>}, {pipeline_mode = #tpu.pipeline_mode<synchronous>, transform_indices = @transform_15, window_bounds = array<i64: 128, 128>}, {pipeline_mode = #tpu.pipeline_mode<synchronous>, transform_indices = @transform_16, window_bounds = array<i64: 256, 128>}, {pipeline_mode = #tpu.pipeline_mode<synchronous>, transform_indices = @transform_17, window_bounds = array<i64: 1, 128>}, {pipeline_mode = #tpu.pipeline_mode<synchronous>, transform_indices = @transform_18, window_bounds = array<i64: 1, 128>}, {transform_indices = @transform_19, window_bounds = array<i64: 128, 128>}]} {
    %c0 = arith.constant 0 : index
    %c0_0 = arith.constant 0 : index
    %0 = vector.load %arg1[%c0, %c0_0] : memref<1024x8xbf16, #tpu.memory_space<vmem>>, vector<1024x8xbf16>
    %c0_1 = arith.constant 0 : index
    %c0_2 = arith.constant 0 : index
    %1 = vector.load %arg2[%c0_1, %c0_2] : memref<8x64xbf16, #tpu.memory_space<vmem>>, vector<8x64xbf16>
    %cst = arith.constant dense<0.000000e+00> : vector<1024x64xf32>
    %2 = tpu.matmul %0, %1, %cst {dimension_numbers = #tpu.dot_dimension_numbers<[1], [0], [0], [1], [0, 0, 1, 1], [], []>} : vector<1024x8xbf16>, vector<8x64xbf16>, vector<1024x64xf32> -> vector<1024x64xf32>
    %c0_3 = arith.constant 0 : index
    %c0_4 = arith.constant 0 : index
    %3 = vector.load %arg3[%c0_3, %c0_4] : memref<1x64xf32, #tpu.memory_space<vmem>>, vector<1x64xf32>
    %4 = vector.broadcast %3 : vector<1x64xf32> to vector<1024x64xf32>
    %5 = arith.mulf %2, %4 : vector<1024x64xf32>
    %c0_5 = arith.constant 0 : index
    %c0_6 = arith.constant 0 : index
    %6 = vector.load %arg4[%c0_5, %c0_6] : memref<1x64xf32, #tpu.memory_space<vmem>>, vector<1x64xf32>
    %7 = vector.broadcast %6 : vector<1x64xf32> to vector<1024x64xf32>
    %8 = arith.addf %5, %7 : vector<1024x64xf32>
    %cst_7 = arith.constant 0.000000e+00 : f32
    %9 = vector.broadcast %cst_7 : f32 to vector<1024x64xf32>
    %10 = arith.maximumf %8, %9 : vector<1024x64xf32>
    %11 = vector.extract_strided_slice %10 {offsets = [0, 0], sizes = [128, 64], strides = [1, 1]} : vector<1024x64xf32> to vector<128x64xf32>
    %12 = vector.extract_strided_slice %10 {offsets = [128, 0], sizes = [128, 64], strides = [1, 1]} : vector<1024x64xf32> to vector<128x64xf32>
    %13 = vector.extract_strided_slice %10 {offsets = [256, 0], sizes = [128, 64], strides = [1, 1]} : vector<1024x64xf32> to vector<128x64xf32>
    %14 = vector.extract_strided_slice %10 {offsets = [384, 0], sizes = [128, 64], strides = [1, 1]} : vector<1024x64xf32> to vector<128x64xf32>
    %15 = vector.extract_strided_slice %10 {offsets = [512, 0], sizes = [128, 64], strides = [1, 1]} : vector<1024x64xf32> to vector<128x64xf32>
    %16 = vector.extract_strided_slice %10 {offsets = [640, 0], sizes = [128, 64], strides = [1, 1]} : vector<1024x64xf32> to vector<128x64xf32>
    %17 = vector.extract_strided_slice %10 {offsets = [768, 0], sizes = [128, 64], strides = [1, 1]} : vector<1024x64xf32> to vector<128x64xf32>
    %18 = vector.extract_strided_slice %10 {offsets = [896, 0], sizes = [128, 64], strides = [1, 1]} : vector<1024x64xf32> to vector<128x64xf32>
    %19 = arith.maximumf %11, %12 : vector<128x64xf32>
    %20 = arith.maximumf %13, %14 : vector<128x64xf32>
    %21 = arith.maximumf %15, %16 : vector<128x64xf32>
    %22 = arith.maximumf %17, %18 : vector<128x64xf32>
    %23 = arith.maximumf %19, %20 : vector<128x64xf32>
    %24 = arith.maximumf %21, %22 : vector<128x64xf32>
    %25 = arith.maximumf %23, %24 : vector<128x64xf32>
    %26 = arith.truncf %10 : vector<1024x64xf32> to vector<1024x64xbf16>
    %c0_8 = arith.constant 0 : index
    %c0_9 = arith.constant 0 : index
    %27 = vector.load %arg5[%c0_8, %c0_9] : memref<64x64xbf16, #tpu.memory_space<vmem>>, vector<64x64xbf16>
    %cst_10 = arith.constant dense<0.000000e+00> : vector<1024x64xf32>
    %28 = tpu.matmul %26, %27, %cst_10 {dimension_numbers = #tpu.dot_dimension_numbers<[1], [0], [0], [1], [0, 0, 1, 1], [], []>} : vector<1024x64xbf16>, vector<64x64xbf16>, vector<1024x64xf32> -> vector<1024x64xf32>
    %c0_11 = arith.constant 0 : index
    %c0_12 = arith.constant 0 : index
    %29 = vector.load %arg6[%c0_11, %c0_12] : memref<1x64xf32, #tpu.memory_space<vmem>>, vector<1x64xf32>
    %30 = vector.broadcast %29 : vector<1x64xf32> to vector<1024x64xf32>
    %31 = arith.mulf %28, %30 : vector<1024x64xf32>
    %c0_13 = arith.constant 0 : index
    %c0_14 = arith.constant 0 : index
    %32 = vector.load %arg7[%c0_13, %c0_14] : memref<1x64xf32, #tpu.memory_space<vmem>>, vector<1x64xf32>
    %33 = vector.broadcast %32 : vector<1x64xf32> to vector<1024x64xf32>
    %34 = arith.addf %31, %33 : vector<1024x64xf32>
    %cst_15 = arith.constant 0.000000e+00 : f32
    %35 = vector.broadcast %cst_15 : f32 to vector<1024x64xf32>
    %36 = arith.maximumf %34, %35 : vector<1024x64xf32>
    %37 = vector.extract_strided_slice %36 {offsets = [0, 0], sizes = [128, 64], strides = [1, 1]} : vector<1024x64xf32> to vector<128x64xf32>
    %38 = vector.extract_strided_slice %36 {offsets = [128, 0], sizes = [128, 64], strides = [1, 1]} : vector<1024x64xf32> to vector<128x64xf32>
    %39 = vector.extract_strided_slice %36 {offsets = [256, 0], sizes = [128, 64], strides = [1, 1]} : vector<1024x64xf32> to vector<128x64xf32>
    %40 = vector.extract_strided_slice %36 {offsets = [384, 0], sizes = [128, 64], strides = [1, 1]} : vector<1024x64xf32> to vector<128x64xf32>
    %41 = vector.extract_strided_slice %36 {offsets = [512, 0], sizes = [128, 64], strides = [1, 1]} : vector<1024x64xf32> to vector<128x64xf32>
    %42 = vector.extract_strided_slice %36 {offsets = [640, 0], sizes = [128, 64], strides = [1, 1]} : vector<1024x64xf32> to vector<128x64xf32>
    %43 = vector.extract_strided_slice %36 {offsets = [768, 0], sizes = [128, 64], strides = [1, 1]} : vector<1024x64xf32> to vector<128x64xf32>
    %44 = vector.extract_strided_slice %36 {offsets = [896, 0], sizes = [128, 64], strides = [1, 1]} : vector<1024x64xf32> to vector<128x64xf32>
    %45 = arith.maximumf %37, %38 : vector<128x64xf32>
    %46 = arith.maximumf %39, %40 : vector<128x64xf32>
    %47 = arith.maximumf %41, %42 : vector<128x64xf32>
    %48 = arith.maximumf %43, %44 : vector<128x64xf32>
    %49 = arith.maximumf %45, %46 : vector<128x64xf32>
    %50 = arith.maximumf %47, %48 : vector<128x64xf32>
    %51 = arith.maximumf %49, %50 : vector<128x64xf32>
    %52 = arith.truncf %36 : vector<1024x64xf32> to vector<1024x64xbf16>
    %c0_16 = arith.constant 0 : index
    %c0_17 = arith.constant 0 : index
    %53 = vector.load %arg8[%c0_16, %c0_17] : memref<64x128xbf16, #tpu.memory_space<vmem>>, vector<64x128xbf16>
    %cst_18 = arith.constant dense<0.000000e+00> : vector<1024x128xf32>
    %54 = tpu.matmul %52, %53, %cst_18 {dimension_numbers = #tpu.dot_dimension_numbers<[1], [0], [0], [1], [0, 0, 1, 1], [], []>} : vector<1024x64xbf16>, vector<64x128xbf16>, vector<1024x128xf32> -> vector<1024x128xf32>
    %c0_19 = arith.constant 0 : index
    %c0_20 = arith.constant 0 : index
    %55 = vector.load %arg9[%c0_19, %c0_20] : memref<1x128xf32, #tpu.memory_space<vmem>>, vector<1x128xf32>
    %56 = vector.broadcast %55 : vector<1x128xf32> to vector<1024x128xf32>
    %57 = arith.mulf %54, %56 : vector<1024x128xf32>
    %c0_21 = arith.constant 0 : index
    %c0_22 = arith.constant 0 : index
    %58 = vector.load %arg10[%c0_21, %c0_22] : memref<1x128xf32, #tpu.memory_space<vmem>>, vector<1x128xf32>
    %59 = vector.broadcast %58 : vector<1x128xf32> to vector<1024x128xf32>
    %60 = arith.addf %57, %59 : vector<1024x128xf32>
    %cst_23 = arith.constant 0.000000e+00 : f32
    %61 = vector.broadcast %cst_23 : f32 to vector<1024x128xf32>
    %62 = arith.maximumf %60, %61 : vector<1024x128xf32>
    %63 = vector.extract_strided_slice %62 {offsets = [0, 0], sizes = [128, 128], strides = [1, 1]} : vector<1024x128xf32> to vector<128x128xf32>
    %64 = vector.extract_strided_slice %62 {offsets = [128, 0], sizes = [128, 128], strides = [1, 1]} : vector<1024x128xf32> to vector<128x128xf32>
    %65 = vector.extract_strided_slice %62 {offsets = [256, 0], sizes = [128, 128], strides = [1, 1]} : vector<1024x128xf32> to vector<128x128xf32>
    %66 = vector.extract_strided_slice %62 {offsets = [384, 0], sizes = [128, 128], strides = [1, 1]} : vector<1024x128xf32> to vector<128x128xf32>
    %67 = vector.extract_strided_slice %62 {offsets = [512, 0], sizes = [128, 128], strides = [1, 1]} : vector<1024x128xf32> to vector<128x128xf32>
    %68 = vector.extract_strided_slice %62 {offsets = [640, 0], sizes = [128, 128], strides = [1, 1]} : vector<1024x128xf32> to vector<128x128xf32>
    %69 = vector.extract_strided_slice %62 {offsets = [768, 0], sizes = [128, 128], strides = [1, 1]} : vector<1024x128xf32> to vector<128x128xf32>
    %70 = vector.extract_strided_slice %62 {offsets = [896, 0], sizes = [128, 128], strides = [1, 1]} : vector<1024x128xf32> to vector<128x128xf32>
    %71 = arith.maximumf %63, %64 : vector<128x128xf32>
    %72 = arith.maximumf %65, %66 : vector<128x128xf32>
    %73 = arith.maximumf %67, %68 : vector<128x128xf32>
    %74 = arith.maximumf %69, %70 : vector<128x128xf32>
    %75 = arith.maximumf %71, %72 : vector<128x128xf32>
    %76 = arith.maximumf %73, %74 : vector<128x128xf32>
    %77 = arith.maximumf %75, %76 : vector<128x128xf32>
    %78 = arith.truncf %62 : vector<1024x128xf32> to vector<1024x128xbf16>
    %c0_24 = arith.constant 0 : index
    %c0_25 = arith.constant 0 : index
    %79 = vector.load %arg11[%c0_24, %c0_25] : memref<128x256xbf16, #tpu.memory_space<vmem>>, vector<128x256xbf16>
    %cst_26 = arith.constant dense<0.000000e+00> : vector<1024x256xf32>
    %80 = tpu.matmul %78, %79, %cst_26 {dimension_numbers = #tpu.dot_dimension_numbers<[1], [0], [0], [1], [0, 0, 1, 1], [], []>} : vector<1024x128xbf16>, vector<128x256xbf16>, vector<1024x256xf32> -> vector<1024x256xf32>
    %c0_27 = arith.constant 0 : index
    %c0_28 = arith.constant 0 : index
    %81 = vector.load %arg12[%c0_27, %c0_28] : memref<1x256xf32, #tpu.memory_space<vmem>>, vector<1x256xf32>
    %82 = vector.broadcast %81 : vector<1x256xf32> to vector<1024x256xf32>
    %83 = arith.mulf %80, %82 : vector<1024x256xf32>
    %c0_29 = arith.constant 0 : index
    %c0_30 = arith.constant 0 : index
    %84 = vector.load %arg13[%c0_29, %c0_30] : memref<1x256xf32, #tpu.memory_space<vmem>>, vector<1x256xf32>
    %85 = vector.broadcast %84 : vector<1x256xf32> to vector<1024x256xf32>
    %86 = arith.addf %83, %85 : vector<1024x256xf32>
    %cst_31 = arith.constant 0.000000e+00 : f32
    %87 = vector.broadcast %cst_31 : f32 to vector<1024x256xf32>
    %88 = arith.maximumf %86, %87 : vector<1024x256xf32>
    %89 = vector.extract_strided_slice %88 {offsets = [0, 0], sizes = [128, 256], strides = [1, 1]} : vector<1024x256xf32> to vector<128x256xf32>
    %90 = vector.extract_strided_slice %88 {offsets = [128, 0], sizes = [128, 256], strides = [1, 1]} : vector<1024x256xf32> to vector<128x256xf32>
    %91 = vector.extract_strided_slice %88 {offsets = [256, 0], sizes = [128, 256], strides = [1, 1]} : vector<1024x256xf32> to vector<128x256xf32>
    %92 = vector.extract_strided_slice %88 {offsets = [384, 0], sizes = [128, 256], strides = [1, 1]} : vector<1024x256xf32> to vector<128x256xf32>
    %93 = vector.extract_strided_slice %88 {offsets = [512, 0], sizes = [128, 256], strides = [1, 1]} : vector<1024x256xf32> to vector<128x256xf32>
    %94 = vector.extract_strided_slice %88 {offsets = [640, 0], sizes = [128, 256], strides = [1, 1]} : vector<1024x256xf32> to vector<128x256xf32>
    %95 = vector.extract_strided_slice %88 {offsets = [768, 0], sizes = [128, 256], strides = [1, 1]} : vector<1024x256xf32> to vector<128x256xf32>
    %96 = vector.extract_strided_slice %88 {offsets = [896, 0], sizes = [128, 256], strides = [1, 1]} : vector<1024x256xf32> to vector<128x256xf32>
    %97 = arith.maximumf %89, %90 : vector<128x256xf32>
    %98 = arith.maximumf %91, %92 : vector<128x256xf32>
    %99 = arith.maximumf %93, %94 : vector<128x256xf32>
    %100 = arith.maximumf %95, %96 : vector<128x256xf32>
    %101 = arith.maximumf %97, %98 : vector<128x256xf32>
    %102 = arith.maximumf %99, %100 : vector<128x256xf32>
    %103 = arith.maximumf %101, %102 : vector<128x256xf32>
    %104 = arith.truncf %25 : vector<128x64xf32> to vector<128x64xbf16>
    %c0_32 = arith.constant 0 : index
    %c0_33 = arith.constant 0 : index
    %105 = vector.load %arg14[%c0_32, %c0_33] : memref<64x128xbf16, #tpu.memory_space<vmem>>, vector<64x128xbf16>
    %cst_34 = arith.constant dense<0.000000e+00> : vector<128x128xf32>
    %106 = tpu.matmul %104, %105, %cst_34 {dimension_numbers = #tpu.dot_dimension_numbers<[1], [0], [0], [1], [0, 0, 1, 1], [], []>} : vector<128x64xbf16>, vector<64x128xbf16>, vector<128x128xf32> -> vector<128x128xf32>
    %107 = arith.truncf %51 : vector<128x64xf32> to vector<128x64xbf16>
    %c0_35 = arith.constant 0 : index
    %c0_36 = arith.constant 0 : index
    %108 = vector.load %arg15[%c0_35, %c0_36] : memref<64x128xbf16, #tpu.memory_space<vmem>>, vector<64x128xbf16>
    %cst_37 = arith.constant dense<0.000000e+00> : vector<128x128xf32>
    %109 = tpu.matmul %107, %108, %cst_37 {dimension_numbers = #tpu.dot_dimension_numbers<[1], [0], [0], [1], [0, 0, 1, 1], [], []>} : vector<128x64xbf16>, vector<64x128xbf16>, vector<128x128xf32> -> vector<128x128xf32>
    %110 = arith.addf %106, %109 : vector<128x128xf32>
    %111 = arith.truncf %77 : vector<128x128xf32> to vector<128x128xbf16>
    %c0_38 = arith.constant 0 : index
    %c0_39 = arith.constant 0 : index
    %112 = vector.load %arg16[%c0_38, %c0_39] : memref<128x128xbf16, #tpu.memory_space<vmem>>, vector<128x128xbf16>
    %cst_40 = arith.constant dense<0.000000e+00> : vector<128x128xf32>
    %113 = tpu.matmul %111, %112, %cst_40 {dimension_numbers = #tpu.dot_dimension_numbers<[1], [0], [0], [1], [0, 0, 1, 1], [], []>} : vector<128x128xbf16>, vector<128x128xbf16>, vector<128x128xf32> -> vector<128x128xf32>
    %114 = arith.addf %110, %113 : vector<128x128xf32>
    %115 = arith.truncf %103 : vector<128x256xf32> to vector<128x256xbf16>
    %c0_41 = arith.constant 0 : index
    %c0_42 = arith.constant 0 : index
    %116 = vector.load %arg17[%c0_41, %c0_42] : memref<256x128xbf16, #tpu.memory_space<vmem>>, vector<256x128xbf16>
    %cst_43 = arith.constant dense<0.000000e+00> : vector<128x128xf32>
    %117 = tpu.matmul %115, %116, %cst_43 {dimension_numbers = #tpu.dot_dimension_numbers<[1], [0], [0], [1], [0, 0, 1, 1], [], []>} : vector<128x256xbf16>, vector<256x128xbf16>, vector<128x128xf32> -> vector<128x128xf32>
    %118 = arith.addf %114, %117 : vector<128x128xf32>
    %c0_44 = arith.constant 0 : index
    %c0_45 = arith.constant 0 : index
    %119 = vector.load %arg18[%c0_44, %c0_45] : memref<1x128xf32, #tpu.memory_space<vmem>>, vector<1x128xf32>
    %120 = vector.broadcast %119 : vector<1x128xf32> to vector<128x128xf32>
    %121 = arith.mulf %118, %120 : vector<128x128xf32>
    %c0_46 = arith.constant 0 : index
    %c0_47 = arith.constant 0 : index
    %122 = vector.load %arg19[%c0_46, %c0_47] : memref<1x128xf32, #tpu.memory_space<vmem>>, vector<1x128xf32>
    %123 = vector.broadcast %122 : vector<1x128xf32> to vector<128x128xf32>
    %124 = arith.addf %121, %123 : vector<128x128xf32>
    %cst_48 = arith.constant 0.000000e+00 : f32
    %125 = vector.broadcast %cst_48 : f32 to vector<128x128xf32>
    %126 = arith.maximumf %124, %125 : vector<128x128xf32>
    %c0_49 = arith.constant 0 : index
    %c0_50 = arith.constant 0 : index
    %127 = vector.load %arg20[%c0_49, %c0_50] : memref<128x128xf32, #tpu.memory_space<vmem>>, vector<128x128xf32>
    tpu.vector_store %arg20[%c0_49, %c0_50], %126 {strides = array<i32>} : memref<128x128xf32, #tpu.memory_space<vmem>>, vector<128x128xf32>,
    return
  }
  func.func @transform_0(%arg0: i32) -> (i32, i32) {
    %c0_i32 = arith.constant 0 : i32
    %c0_i32_0 = arith.constant 0 : i32
    return %arg0, %c0_i32 : i32, i32
  }
  func.func @transform_1(%arg0: i32) -> (i32, i32) {
    %c0_i32 = arith.constant 0 : i32
    %c0_i32_0 = arith.constant 0 : i32
    %c0_i32_1 = arith.constant 0 : i32
    return %c0_i32, %c0_i32_0 : i32, i32
  }
  func.func @transform_2(%arg0: i32) -> (i32, i32) {
    %c0_i32 = arith.constant 0 : i32
    %c0_i32_0 = arith.constant 0 : i32
    %c0_i32_1 = arith.constant 0 : i32
    return %c0_i32, %c0_i32_0 : i32, i32
  }
  func.func @transform_3(%arg0: i32) -> (i32, i32) {
    %c0_i32 = arith.constant 0 : i32
    %c0_i32_0 = arith.constant 0 : i32
    %c0_i32_1 = arith.constant 0 : i32
    return %c0_i32, %c0_i32_0 : i32, i32
  }
  func.func @transform_4(%arg0: i32) -> (i32, i32) {
    %c0_i32 = arith.constant 0 : i32
    %c0_i32_0 = arith.constant 0 : i32
    %c0_i32_1 = arith.constant 0 : i32
    return %c0_i32, %c0_i32_0 : i32, i32
  }
  func.func @transform_5(%arg0: i32) -> (i32, i32) {
    %c0_i32 = arith.constant 0 : i32
    %c0_i32_0 = arith.constant 0 : i32
    %c0_i32_1 = arith.constant 0 : i32
    return %c0_i32, %c0_i32_0 : i32, i32
  }
  func.func @transform_6(%arg0: i32) -> (i32, i32) {
    %c0_i32 = arith.constant 0 : i32
    %c0_i32_0 = arith.constant 0 : i32
    %c0_i32_1 = arith.constant 0 : i32
    return %c0_i32, %c0_i32_0 : i32, i32
  }
  func.func @transform_7(%arg0: i32) -> (i32, i32) {
    %c0_i32 = arith.constant 0 : i32
    %c0_i32_0 = arith.constant 0 : i32
    %c0_i32_1 = arith.constant 0 : i32
    return %c0_i32, %c0_i32_0 : i32, i32
  }
  func.func @transform_8(%arg0: i32) -> (i32, i32) {
    %c0_i32 = arith.constant 0 : i32
    %c0_i32_0 = arith.constant 0 : i32
    %c0_i32_1 = arith.constant 0 : i32
    return %c0_i32, %c0_i32_0 : i32, i32
  }
  func.func @transform_9(%arg0: i32) -> (i32, i32) {
    %c0_i32 = arith.constant 0 : i32
    %c0_i32_0 = arith.constant 0 : i32
    %c0_i32_1 = arith.constant 0 : i32
    return %c0_i32, %c0_i32_0 : i32, i32
  }
  func.func @transform_10(%arg0: i32) -> (i32, i32) {
    %c0_i32 = arith.constant 0 : i32
    %c0_i32_0 = arith.constant 0 : i32
    %c0_i32_1 = arith.constant 0 : i32
    return %c0_i32, %c0_i32_0 : i32, i32
  }
  func.func @transform_11(%arg0: i32) -> (i32, i32) {
    %c0_i32 = arith.constant 0 : i32
    %c0_i32_0 = arith.constant 0 : i32
    %c0_i32_1 = arith.constant 0 : i32
    return %c0_i32, %c0_i32_0 : i32, i32
  }
  func.func @transform_12(%arg0: i32) -> (i32, i32) {
    %c0_i32 = arith.constant 0 : i32
    %c0_i32_0 = arith.constant 0 : i32
    %c0_i32_1 = arith.constant 0 : i32
    return %c0_i32, %c0_i32_0 : i32, i32
  }
  func.func @transform_13(%arg0: i32) -> (i32, i32) {
    %c0_i32 = arith.constant 0 : i32
    %c0_i32_0 = arith.constant 0 : i32
    %c0_i32_1 = arith.constant 0 : i32
    return %c0_i32, %c0_i32_0 : i32, i32
  }
  func.func @transform_14(%arg0: i32) -> (i32, i32) {
    %c0_i32 = arith.constant 0 : i32
    %c0_i32_0 = arith.constant 0 : i32
    %c0_i32_1 = arith.constant 0 : i32
    return %c0_i32, %c0_i32_0 : i32, i32
  }
  func.func @transform_15(%arg0: i32) -> (i32, i32) {
    %c0_i32 = arith.constant 0 : i32
    %c0_i32_0 = arith.constant 0 : i32
    %c0_i32_1 = arith.constant 0 : i32
    return %c0_i32, %c0_i32_0 : i32, i32
  }
  func.func @transform_16(%arg0: i32) -> (i32, i32) {
    %c0_i32 = arith.constant 0 : i32
    %c0_i32_0 = arith.constant 0 : i32
    %c0_i32_1 = arith.constant 0 : i32
    return %c0_i32, %c0_i32_0 : i32, i32
  }
  func.func @transform_17(%arg0: i32) -> (i32, i32) {
    %c0_i32 = arith.constant 0 : i32
    %c0_i32_0 = arith.constant 0 : i32
    %c0_i32_1 = arith.constant 0 : i32
    return %c0_i32, %c0_i32_0 : i32, i32
  }
  func.func @transform_18(%arg0: i32) -> (i32, i32) {
    %c0_i32 = arith.constant 0 : i32
    %c0_i32_0 = arith.constant 0 : i32
    %c0_i32_1 = arith.constant 0 : i32
    return %c0_i32, %c0_i32_0 : i32, i32
  }
  func.func @transform_19(%arg0: i32) -> (i32, i32) {
    %c0_i32 = arith.constant 0 : i32
    %c0_i32_0 = arith.constant 0 : i32
    return %arg0, %c0_i32 : i32, i32
  }
}

</mosaic_0001>

<bundles_post_ra>
// kernel: tpu_custom_call.1
= control target key start
LH: loop header
LB: loop body
LE: loop exit
PB: predicated region body
PF: predicated region fallthrough
CT: control target
= control target key end

     0   :  { %s14591_s0 = inlined_call_operand.vmem [shape: bf16[2048,8], index: 0, kind: input, shape index: {}]   ;;  %s14592_s1 = inlined_call_operand.vmem [shape: bf16[8,64], index: 1, kind: input, shape index: {}]   ;;  %s14593_s2 = inlined_call_operand.vmem [shape: f32[1,64], index: 2, kind: input, shape index: {}]   ;;  %s14594_s3 = inlined_call_operand.vmem [shape: f32[1,64], index: 3, kind: input, shape index: {}]   ;;  %s14595_s4 = inlined_call_operand.vmem [shape: bf16[64,64], index: 4, kind: input, shape index: {}]   ;;  %s14596_s5 = inlined_call_operand.vmem [shape: f32[1,64], index: 5, kind: input, shape index: {}]   ;;  %s14597_s6 = inlined_call_operand.vmem [shape: f32[1,64], index: 6, kind: input, shape index: {}]   ;;  %s14598_s7 = inlined_call_operand.vmem [shape: bf16[64,128], index: 7, kind: input, shape index: {}]   ;;  %s14599_s8 = inlined_call_operand.vmem [shape: f32[1,128], index: 8, kind: input, shape index: {}]   ;;  %s14600_s9 = inlined_call_operand.vmem [shape: f32[1,128], index: 9, kind: input, shape index: {}]   ;;  %s14601_s10 = inlined_call_operand.vmem [shape: bf16[128,256], index: 10, kind: input, shape index: {}]   ;;  %s14602_s11 = inlined_call_operand.vmem [shape: f32[1,256], index: 11, kind: input, shape index: {}]   ;;  %s14603_s12 = inlined_call_operand.vmem [shape: f32[1,256], index: 12, kind: input, shape index: {}]   ;;  %s14604_s13 = inlined_call_operand.vmem [shape: bf16[64,128], index: 13, kind: input, shape index: {}]   ;;  %s14605_s14 = inlined_call_operand.vmem [shape: bf16[64,128], index: 14, kind: input, shape index: {}]   ;;  %s14606_s15 = inlined_call_operand.vmem [shape: bf16[128,128], index: 15, kind: input, shape index: {}]   ;;  %s14607_s16 = inlined_call_operand.vmem [shape: bf16[256,128], index: 16, kind: input, shape index: {}]   ;;  %s14608_s17 = inlined_call_operand.vmem [shape: f32[1,128], index: 17, kind: input, shape index: {}]   ;;  %s14609_s18 = inlined_call_operand.vmem [shape: f32[1,128], index: 18, kind: input, shape index: {}]   ;;  %s14610_s19 = inlined_call_operand.hbm [shape: f32[256,128], index: 19, kind: output, shape index: {}]  }
   0x1   :  { %14881 = sst [smem:[#allocation109_spill]] %s14591_s0 }
   0x2   :  { %14882 = sst [smem:[#allocation110_spill]] %s14592_s1 }
   0x3   :  { %14883 = sst [smem:[#allocation111_spill]] %s14593_s2 }
   0x4   :  { %14884 = sst [smem:[#allocation112_spill]] %s14594_s3 }
   0x5   :  { %14885 = sst [smem:[#allocation113_spill]] %s14595_s4 }
   0x6   :  { %14886 = sst [smem:[#allocation114_spill]] %s14596_s5 }
   0x7   :  { %24 = vsyncpa [#allocation3], 0 }
   0x8   :  { %26 = vsyncpa [#allocation3 + $0x1], 0  ;;  %s9281_s0 = smov 0   ;;  %s9283_s30 = smov 0  }
   0x9   :  { %s9285_s20 = smov 0   ;;  %s9287_s21 = smov 0  }
   0xa LB: > { %14887 = sst [smem:[#allocation5_spill]] %s9171_s20  ;;  %s9302_s1 = sadd.s32 4294967295, %s9175_s21   ;;  %s9175_s21 = sphi %s9287_s21, %s15631_s21   ;;  %s9171_s20 = sphi %s9285_s20, %s15633_s20   ;;  %s9167_s30 = sphi %s9283_s30, %s15635_s30   ;;  %s9163_s0 = sphi %s9281_s0, %s15634_s0  }
   0xb   : > { %s7760_s22 = sadd.s32 4294967294, %s9175_s21   ;;  %s9306_s2 = sadd.s32 1, %s9175_s21  }
   0xc   : > { %14888 = sst [smem:[#allocation6_spill]] %s9306_s2  ;;  %s443_s23 = sadd.s32 1, %s9171_s20 }
   0xd   : > { %s440_s24 = ssub.s32 %s9175_s21, %s9306_s2  ;;  %p453_p0 = scmp.ne.s32.totalorder %s9171_s20, %s9167_s30 }
   0xe   : > { %p441_p1 = scmp.eq.s32.totalorder %s440_s24, 0  ;;  %p454_p2 = scmp.eq.s32.totalorder %s9302_s1, 1 }
   0xf   : > { %p459_p3 = scmp.ne.s32.totalorder %s9167_s30, %s9163_s0  ;;  %p460_p4 = scmp.eq.s32.totalorder %s7760_s22, 1 }
  0x10   : > { %s9317_s25 = scalar_select %p441_p1, %s9171_s20, %s443_s23  }
  0x11   : > { %p9319_p5 = por %p454_p2, %p453_p0  ;;  %p9323_p6 = por %p460_p4, %p459_p3 }
  0x12   : > { %14889 = sst [smem:[#allocation7_spill]] %s9317_s25  ;;  %p7763_p7 = scmp.ge.s32.totalorder %s9175_s21, 1 }
  0x13   : > { %s14891_s26 = scalar_select %p9323_p6, 1, 0 }
  0x14   : > { %p541_p8 = scmp.lt.s32.totalorder %s9175_s21, 3 }
  0x15   : > { %14892 = sst [smem:[#allocation8_spill]] %s14891_s26 }
  0x16   : > { %p542_p9 = pnand %p7763_p7, %p541_p8 }
  0x18   : > { %545 = sbr.rel (%p542_p9) target bundleno = 1732 (0x6c4), region = 96 }
  0x1f   : > { %s14893_s29 = sld [smem:[#allocation110_spill]]  ;;  %vm1247_vm0 = vcmask 1043456   ;;  %s7765_s22 = sshll.u32 %s9302_s1, 7  ;;  %vm1054_vm1 = vcmask 64512   ;;  %vm2402_vm2 = vcmask 523264  }
  0x20   : > { %s14894_s4 = sld [smem:[#allocation113_spill]]  ;;  %p598_p10 = scmp.lt.s32.totalorder %s7765_s22, 255 }
  0x21   : > { %s14895_s2 = sld [smem:[#allocation109_spill]]  ;;  %s14896_s27 = sld [smem:[#allocation111_spill]] }
  0x22   : > { %s15637_s22 = smov (!%p598_p10, %s7765_s22), 255  ;;  %s14897_s23 = sld [smem:[#allocation112_spill]] }
  0x23   : > { %s14975_s5 = sld [smem:[#allocation114_spill]] }
  0x25   : > { %v733_v0 = vld [vmem:[%s14893_s29] sm:$0xf]  ;;  %s7766_s29 = sshll.u32 %s15637_s22, 2 }
  0x26   : > { %v8980_v1 = vld [vmem:[%s14894_s4] sm:$0xff]   ;;  %8936 = vmatprep.subr.msk.bf16.mxu0 %vm1247_vm0, %v733_v0  ;;  %v1249_v2 = vsel %vm1247_vm0, %v733_v0, 0  ;;  %v8997_v3 = vld [vmem:[%s14894_s4 + $0x8] sm:$0xff]   ;;  %v9014_v4 = vld [vmem:[%s14894_s4 + $0x10] sm:$0xff]  }
  0x27   : > { %8415 = vmatpush3.bf16.msra.mxu0 %v1249_v2  ;;  %8896 = vmatprep.subr.bf16.mxu1 %v8980_v1  ;;  %s9345_s26 = scalar_lea.vmem %s14895_s2, %s7766_s29  ;;  %v9031_v22 = vld [vmem:[%s14894_s4 + $0x18] sm:$0xff]   ;;  %v9462_v61 = vld [vmem:[%s14896_s27] ss:$0 sm:$0xff]  ;;  %s8108_s29 = sshll.u32 %s9302_s1, 11 }
  0x28   : > { %8544 = vmatprep.subr.bf16.mxu0 %v8980_v1  ;;  %8900 = vmatpush3.bf16.msra.mxu1 %v8980_v1  ;;  %v8979_v5 = vld [vmem:[%s9345_s26] sm:$0xff]   ;;  %v8981_v6 = vld [vmem:[%s9345_s26 + $0x8] sm:$0xff]   ;;  %v8982_v7 = vld [vmem:[%s9345_s26 + $0x10] sm:$0xff]   ;;  %s14542_s25 = scalar_lea.hbm %s14610_s19, %s8108_s29  ;;  %s9178_s4 = smov [#allocation2]  }
  0x29   : > { %8897 = vmatprep.subr.bf16.mxu1 %v8997_v3  ;;  %8416 = vmatprep.mubr.msk.bf16.mxu0 %vm1054_vm1, %v8979_v5  ;;  %v8983_v8 = vld [vmem:[%s9345_s26 + $0x18] sm:$0xff]   ;;  %v8984_v9 = vld [vmem:[%s9345_s26 + $0x20] sm:$0xff]   ;;  %v8985_v10 = vld [vmem:[%s9345_s26 + $0x28] sm:$0xff]   ;;  %s9117_s20 = sshll.u32 %s9178_s4, 4  ;;  %s9118_s20 = int_to_ptr.vmem [resolvable:$false] %s9117_s20 }
  0x2a   : > { %8417 = vmatmul.mubr.msk.bf16.vlgmr.msra.gmra.mrb[0].mxu0 %vm1054_vm1, %v8981_v6  ;;  %v8986_v11 = vld [vmem:[%s9345_s26 + $0x30] sm:$0xff]   ;;  %v8987_v12 = vld [vmem:[%s9345_s26 + $0x38] sm:$0xff]   ;;  %v8988_v13 = vld [vmem:[%s9345_s26 + $0x40] sm:$0xff]   ;;  %s9119_s29 = scalar_lea.vmem %s9118_s20, 4096 }
  0x2b   : > { %8545 = vmatpush3.bf16.msra.mxu0 %v8980_v1  ;;  %8420 = vmatprep.mubr.msk.bf16.mxu0 %vm1054_vm1, %v8982_v7  ;;  %v8989_v14 = vld [vmem:[%s9345_s26 + $0x48] sm:$0xff]   ;;  %v8990_v15 = vld [vmem:[%s9345_s26 + $0x50] sm:$0xff]   ;;  %v8991_v16 = vld [vmem:[%s9345_s26 + $0x58] sm:$0xff]  }
  0x2c   : > { %8901 = vmatpush3.bf16.msra.mxu1 %v8997_v3  ;;  %8546 = vmatprep.subr.bf16.mxu0 %v8997_v3  ;;  %v8992_v17 = vld [vmem:[%s9345_s26 + $0x60] sm:$0xff]   ;;  %v8993_v18 = vld [vmem:[%s9345_s26 + $0x68] sm:$0xff]   ;;  %v8994_v19 = vld [vmem:[%s9345_s26 + $0x70] sm:$0xff]  }
  0x2d   : > { %8898 = vmatprep.subr.bf16.mxu1 %v9014_v4  ;;  %v8995_v20 = vld [vmem:[%s9345_s26 + $0x78] sm:$0xff]   ;;  %v8996_v21 = vld [vmem:[%s9345_s26 + $0x80] sm:$0xff]   ;;  %v8998_v23 = vld [vmem:[%s9345_s26 + $0x88] sm:$0xff]  }
  0x2e   : > { %v8999_v24 = vld [vmem:[%s9345_s26 + $0x90] sm:$0xff]   ;;  %v9000_v25 = vld [vmem:[%s9345_s26 + $0x98] sm:$0xff]   ;;  %v9001_v26 = vld [vmem:[%s9345_s26 + $0xa0] sm:$0xff]  }
  0x2f   : > { %8547 = vmatpush3.bf16.msra.mxu0 %v8997_v3  ;;  %v9002_v27 = vld [vmem:[%s9345_s26 + $0xa8] sm:$0xff]   ;;  %v9003_v28 = vld [vmem:[%s9345_s26 + $0xb0] sm:$0xff]   ;;  %v9004_v29 = vld [vmem:[%s9345_s26 + $0xb8] sm:$0xff]  }
  0x30   : > { %8902 = vmatpush3.bf16.msra.mxu1 %v9014_v4  ;;  %8548 = vmatprep.subr.bf16.mxu0 %v9014_v4  ;;  %v9005_v30 = vld [vmem:[%s9345_s26 + $0xc0] sm:$0xff]   ;;  %v9006_v31 = vld [vmem:[%s9345_s26 + $0xc8] sm:$0xff]   ;;  %v9007_v32 = vld [vmem:[%s9345_s26 + $0xd0] sm:$0xff]  }
  0x31   : > { %8899 = vmatprep.subr.bf16.mxu1 %v9031_v22  ;;  %v9008_v33 = vld [vmem:[%s9345_s26 + $0xd8] sm:$0xff]   ;;  %v9009_v34 = vld [vmem:[%s9345_s26 + $0xe0] sm:$0xff]   ;;  %v9010_v35 = vld [vmem:[%s9345_s26 + $0xe8] sm:$0xff]  }
  0x32   : > { %8421 = vmatmul.mubr.msk.bf16.gmra.mrb[4].mxu0 %vm1054_vm1, %v8983_v8  ;;  %v9011_v36 = vld [vmem:[%s9345_s26 + $0xf0] sm:$0xff]   ;;  %v9012_v37 = vld [vmem:[%s9345_s26 + $0xf8] sm:$0xff]   ;;  %v9013_v38 = vld [vmem:[%s9345_s26 + $0x100] sm:$0xff]  }
  0x33   : > { %8424 = vmatprep.mubr.msk.bf16.mxu0 %vm1054_vm1, %v8984_v9  ;;  %8549 = vmatpush3.bf16.msra.mxu0 %v9014_v4  ;;  %v9015_v39 = vld [vmem:[%s9345_s26 + $0x108] sm:$0xff]   ;;  %v9016_v40 = vld [vmem:[%s9345_s26 + $0x110] sm:$0xff]   ;;  %v9017_v41 = vld [vmem:[%s9345_s26 + $0x118] sm:$0xff]  }
  0x34   : > { %8550 = vmatprep.subr.bf16.mxu0 %v9031_v22  ;;  %8903 = vmatpush3.bf16.msra.mxu1 %v9031_v22  ;;  %v9018_v42 = vld [vmem:[%s9345_s26 + $0x120] sm:$0xff]   ;;  %v9019_v43 = vld [vmem:[%s9345_s26 + $0x128] sm:$0xff]   ;;  %v9020_v44 = vld [vmem:[%s9345_s26 + $0x130] sm:$0xff]  }
  0x35   : > { %v9021_v45 = vld [vmem:[%s9345_s26 + $0x138] sm:$0xff]   ;;  %v9022_v46 = vld [vmem:[%s9345_s26 + $0x140] sm:$0xff]   ;;  %v9023_v47 = vld [vmem:[%s9345_s26 + $0x148] sm:$0xff]  }
  0x36   : > { %v9024_v48 = vld [vmem:[%s9345_s26 + $0x150] sm:$0xff]   ;;  %v9025_v49 = vld [vmem:[%s9345_s26 + $0x158] sm:$0xff]   ;;  %v9026_v50 = vld [vmem:[%s9345_s26 + $0x160] sm:$0xff]  }
  0x37   : > { %8551 = vmatpush3.bf16.msra.mxu0 %v9031_v22  ;;  %v9027_v51 = vld [vmem:[%s9345_s26 + $0x168] sm:$0xff]   ;;  %v9028_v52 = vld [vmem:[%s9345_s26 + $0x170] sm:$0xff]   ;;  %v9029_v53 = vld [vmem:[%s9345_s26 + $0x178] sm:$0xff]  }
  0x38   : > { %v9030_v54 = vld [vmem:[%s9345_s26 + $0x180] sm:$0xff]   ;;  %v9032_v55 = vld [vmem:[%s9345_s26 + $0x188] sm:$0xff]   ;;  %v9033_v56 = vld [vmem:[%s9345_s26 + $0x190] sm:$0xff]  }
  0x39   : > { %v9034_v57 = vld [vmem:[%s9345_s26 + $0x198] sm:$0xff]   ;;  %v9035_v58 = vld [vmem:[%s9345_s26 + $0x1a0] sm:$0xff]   ;;  %v9036_v59 = vld [vmem:[%s9345_s26 + $0x1a8] sm:$0xff]  }
  0x3a   : > { %8425 = vmatmul.mubr.msk.bf16.gmra.mrb[8].mxu0 %vm1054_vm1, %v8985_v10  ;;  %v9037_v60 = vld [vmem:[%s9345_s26 + $0x1b0] sm:$0xff]   ;;  %v9468_v63 = vld [vmem:[%s14897_s23] ss:$0 sm:$0xff]  ;;  %v9038_v2 = vld [vmem:[%s9345_s26 + $0x1b8] sm:$0xff]  }
  0x3b   : > { %8428 = vmatprep.mubr.msk.bf16.mxu0 %vm1054_vm1, %v8986_v11  ;;  %v9039_v5 = vld [vmem:[%s9345_s26 + $0x1c0] sm:$0xff]  }
  0x42   : > { %8429 = vmatmul.mubr.msk.bf16.gmra.mrb[12].mxu0 %vm1054_vm1, %v8987_v12 }
  0x43   : > { %8432 = vmatprep.mubr.msk.bf16.mxu0 %vm1054_vm1, %v8988_v13 }
  0x4a   : > { %8433 = vmatmul.mubr.msk.bf16.gmra.mrb[16].mxu0 %vm1054_vm1, %v8989_v14 }
  0x4b   : > { %8436 = vmatprep.mubr.msk.bf16.mxu0 %vm1054_vm1, %v8990_v15 }
  0x52   : > { %8437 = vmatmul.mubr.msk.bf16.gmra.mrb[20].mxu0 %vm1054_vm1, %v8991_v16 }
  0x53   : > { %8440 = vmatprep.mubr.msk.bf16.mxu0 %vm1054_vm1, %v8992_v17 }
  0x5a   : > { %8441 = vmatmul.mubr.msk.bf16.gmra.mrb[24].mxu0 %vm1054_vm1, %v8993_v18 }
  0x5b   : > { %8444 = vmatprep.mubr.msk.bf16.mxu0 %vm1054_vm1, %v8994_v19 }
  0x62   : > { %8445 = vmatmul.mubr.msk.bf16.gmra.mrb[28].mxu0 %vm1054_vm1, %v8995_v20 }
  0x63   : > { %8448 = vmatprep.mubr.msk.bf16.mxu0 %vm1054_vm1, %v8996_v21  ;;  %v9040_v21 = vld [vmem:[%s9345_s26 + $0x1c8] sm:$0xff]  }
  0x6a   : > { %8449 = vmatmul.mubr.msk.bf16.gmra.mrb[32].mxu0 %vm1054_vm1, %v8998_v23 }
  0x6b   : > { %8452 = vmatprep.mubr.msk.bf16.mxu0 %vm1054_vm1, %v8999_v24  ;;  %v9041_v24 = vld [vmem:[%s9345_s26 + $0x1d0] sm:$0xff]  }
  0x72   : > { %8453 = vmatmul.mubr.msk.bf16.gmra.mrb[36].mxu0 %vm1054_vm1, %v9000_v25 }
  0x73   : > { %8456 = vmatprep.mubr.msk.bf16.mxu0 %vm1054_vm1, %v9001_v26 }
  0x7a   : > { %8457 = vmatmul.mubr.msk.bf16.gmra.mrb[40].mxu0 %vm1054_vm1, %v9002_v27 }
  0x7b   : > { %8460 = vmatprep.mubr.msk.bf16.mxu0 %vm1054_vm1, %v9003_v28 }
  0x82   : > { %8461 = vmatmul.mubr.msk.bf16.gmra.mrb[44].mxu0 %vm1054_vm1, %v9004_v29 }
  0x83   : > { %8464 = vmatprep.mubr.msk.bf16.mxu0 %vm1054_vm1, %v9005_v30 }
  0x8a   : > { %8465 = vmatmul.mubr.msk.bf16.gmra.mrb[48].mxu0 %vm1054_vm1, %v9006_v31 }
  0x8b   : > { %8468 = vmatprep.mubr.msk.bf16.mxu0 %vm1054_vm1, %v9007_v32 }
  0x92   : > { %8469 = vmatmul.mubr.msk.bf16.gmra.mrb[52].mxu0 %vm1054_vm1, %v9008_v33 }
  0x93   : > { %8472 = vmatprep.mubr.msk.bf16.mxu0 %vm1054_vm1, %v9009_v34 }
  0x9a   : > { %8473 = vmatmul.mubr.msk.bf16.gmra.mrb[56].mxu0 %vm1054_vm1, %v9010_v35 }
  0x9b   : > { %8476 = vmatprep.mubr.msk.bf16.mxu0 %vm1054_vm1, %v9011_v36 }
  0xa2   : > { %8477 = vmatmul.mubr.msk.bf16.gmra.mrb[60].mxu0 %vm1054_vm1, %v9012_v37 }
  0xa3   : > { %8480 = vmatprep.mubr.msk.bf16.mxu0 %vm1054_vm1, %v9013_v38 }
  0xaa   : > { %8481 = vmatmul.mubr.msk.bf16.gmra.mrb[64].mxu0 %vm1054_vm1, %v9015_v39 }
  0xab   : > { %8484 = vmatprep.mubr.msk.bf16.mxu0 %vm1054_vm1, %v9016_v40  ;;  %v9042_v40 = vld [vmem:[%s9345_s26 + $0x1d8] sm:$0xff]  }
  0xb2   : > { %8485 = vmatmul.mubr.msk.bf16.gmra.mrb[68].mxu0 %vm1054_vm1, %v9017_v41 }
  0xb3   : > { %8488 = vmatprep.mubr.msk.bf16.mxu0 %vm1054_vm1, %v9018_v42 }
  0xba   : > { %8489 = vmatmul.mubr.msk.bf16.gmra.mrb[72].mxu0 %vm1054_vm1, %v9019_v43 }
  0xbb   : > { %8492 = vmatprep.mubr.msk.bf16.mxu0 %vm1054_vm1, %v9020_v44  ;;  %v9043_v44 = vld [vmem:[%s9345_s26 + $0x1e0] sm:$0xff]  }
  0xc2   : > { %8493 = vmatmul.mubr.msk.bf16.gmra.mrb[76].mxu0 %vm1054_vm1, %v9021_v45 }
  0xc3   : > { %8496 = vmatprep.mubr.msk.bf16.mxu0 %vm1054_vm1, %v9022_v46 }
  0xca   : > { %8497 = vmatmul.mubr.msk.bf16.gmra.mrb[80].mxu0 %vm1054_vm1, %v9023_v47 }
  0xcb   : > { %8500 = vmatprep.mubr.msk.bf16.mxu0 %vm1054_vm1, %v9024_v48 }
  0xd2   : > { %8501 = vmatmul.mubr.msk.bf16.gmra.mrb[84].mxu0 %vm1054_vm1, %v9025_v49 }
  0xd3   : > { %8504 = vmatprep.mubr.msk.bf16.mxu0 %vm1054_vm1, %v9026_v50 }
  0xda   : > { %8505 = vmatmul.mubr.msk.bf16.gmra.mrb[88].mxu0 %vm1054_vm1, %v9027_v51 }
  0xdb   : > { %8508 = vmatprep.mubr.msk.bf16.mxu0 %vm1054_vm1, %v9028_v52 }
  0xe2   : > { %8509 = vmatmul.mubr.msk.bf16.gmra.mrb[92].mxu0 %vm1054_vm1, %v9029_v53 }
  0xe3   : > { %8512 = vmatprep.mubr.msk.bf16.mxu0 %vm1054_vm1, %v9030_v54 }
  0xea   : > { %8513 = vmatmul.mubr.msk.bf16.gmra.mrb[96].mxu0 %vm1054_vm1, %v9032_v55 }
  0xeb   : > { %8516 = vmatprep.mubr.msk.bf16.mxu0 %vm1054_vm1, %v9033_v56 }
  0xf2   : > { %8517 = vmatmul.mubr.msk.bf16.gmra.mrb[100].mxu0 %vm1054_vm1, %v9034_v57 }
  0xf3   : > { %8520 = vmatprep.mubr.msk.bf16.mxu0 %vm1054_vm1, %v9035_v58 }
  0xfa   : > { %8521 = vmatmul.mubr.msk.bf16.gmra.mrb[104].mxu0 %vm1054_vm1, %v9036_v59 }
  0xfb   : > { %8524 = vmatprep.mubr.msk.bf16.mxu0 %vm1054_vm1, %v9037_v60  ;;  %v9044_v60 = vld [vmem:[%s9345_s26 + $0x1e8] sm:$0xff]  }
  0xfd   : > { %v8418_v62 = vpop.f32.mrb[0].mxu0 }
  0xfe   : > { %v1805_v0 = vmul.f32 %v8418_v62, %v9462_v61  ;;  %v1285_v1 = vpop.f32.mrb[1].mxu0 }
  0xff   : > { %v1803_v3 = vmul.f32 %v9462_v61, %v1285_v1  ;;  %v8419_v4 = vpop.f32.mrb[2].mxu0 }
 0x100   : > { %v9475_v6 = vadd.f32 %v9468_v63, %v1805_v0  ;;  %v1806_v7 = vmul.f32 %v8419_v4, %v9462_v61  ;;  %v1288_v8 = vpop.f32.mrb[3].mxu0 }
 0x101   : > { %v9479_v9 = vadd.f32 %v9468_v63, %v1803_v3  ;;  %v1804_v10 = vmul.f32 %v9462_v61, %v1288_v8 }
 0x102   : > { %v9483_v11 = vadd.f32 %v9468_v63, %v1806_v7  ;;  %8525 = vmatmul.mubr.msk.bf16.gmra.mrb[108].mxu0 %vm1054_vm1, %v9038_v2  ;;  %v2068_v13 = vmax.f32 %v9475_v6, 0.0  ;;  %v9045_v2 = vld [vmem:[%s9345_s26 + $0x1f0] sm:$0xff]  }
 0x103   : > { %v9487_v12 = vadd.f32 %v9468_v63, %v1804_v10  ;;  %8528 = vmatprep.mubr.msk.bf16.mxu0 %vm1054_vm1, %v9039_v5  ;;  %v2066_v15 = vmax.f32 %v9479_v9, 0.0 }
 0x104   : > { %v2069_v14 = vmax.f32 %v9483_v11, 0.0 }
 0x105   : > { %v2067_v16 = vmax.f32 %v9487_v12, 0.0  ;;  %v8422_v17 = vpop.f32.mrb[4].mxu0 }
 0x106   : > { %v9498_v18 = vpack.c.bf16 %v2069_v14, %v2068_v13  ;;  %v1809_v19 = vmul.f32 %v8422_v17, %v9462_v61  ;;  %v1301_v20 = vpop.f32.mrb[5].mxu0 }
 0x107   : > { %v1807_v22 = vmul.f32 %v9462_v61, %v1301_v20  ;;  %v8423_v23 = vpop.f32.mrb[6].mxu0  ;;  %v9508_v25 = vpack.c.bf16 %v2067_v16, %v2066_v15 }
 0x108   : > { %v9511_v26 = vadd.f32 %v9468_v63, %v1809_v19  ;;  %v1810_v27 = vmul.f32 %v8423_v23, %v9462_v61  ;;  %v1304_v28 = vpop.f32.mrb[7].mxu0 }
 0x109   : > { %v9515_v29 = vadd.f32 %v9468_v63, %v1807_v22  ;;  %v1808_v30 = vmul.f32 %v9462_v61, %v1304_v28 }
 0x10a   : > { %v9519_v31 = vadd.f32 %v9468_v63, %v1810_v27  ;;  %8529 = vmatmul.mubr.msk.bf16.gmra.mrb[112].mxu0 %vm1054_vm1, %v9040_v21  ;;  %v2072_v33 = vmax.f32 %v9511_v26, 0.0 }
 0x10b   : > { %v9523_v32 = vadd.f32 %v9468_v63, %v1808_v30  ;;  %8532 = vmatprep.mubr.msk.bf16.mxu0 %vm1054_vm1, %v9041_v24  ;;  %v2070_v35 = vmax.f32 %v9515_v29, 0.0  ;;  %v9046_v30 = vld [vmem:[%s9345_s26 + $0x1f8] sm:$0xff]   ;;  %s594_s26 = sand.u32 1, %s9167_s30  }
 0x10c   : > { %v2073_v34 = vmax.f32 %v9519_v31, 0.0  ;;  %s7764_s22 = sshll.u32 %s594_s26, 7 }
 0x10d   : > { %v2071_v36 = vmax.f32 %v9523_v32, 0.0  ;;  %v8426_v37 = vpop.f32.mrb[8].mxu0  ;;  %s14479_s28 = scalar_lea.vmem [#allocation2], %s7764_s22  ;;  %s14550_s22 = scalar_lea.sflag [#allocation3], %s594_s26 }
 0x10e   : > { %v1813_v38 = vmul.f32 %v8426_v37, %v9462_v61  ;;  %v1317_v39 = vpop.f32.mrb[9].mxu0  ;;  %v9536_v41 = vpack.c.bf16 %v2073_v34, %v2072_v33  ;;  %s7698_s24 = sshll.u32 %s14479_s28, 4  ;;  %s14544_s24 = int_to_ptr.vmem [resolvable:$true] %s7698_s24 }
 0x10f   : > { %v1811_v42 = vmul.f32 %v9462_v61, %v1317_v39  ;;  %v8427_v43 = vpop.f32.mrb[10].mxu0  ;;  %v9544_v45 = vpack.c.bf16 %v2071_v36, %v2070_v35  ;;  %s9113_s1 = scalar_lea.vmem %s14544_s24, 2048  ;;  %p9120_p0 = scmp.lt.s32.totalorder %s14544_s24, %s9118_s20 }
 0x110   : > { %v9547_v46 = vadd.f32 %v9468_v63, %v1813_v38  ;;  %v1814_v47 = vmul.f32 %v8427_v43, %v9462_v61  ;;  %v1320_v48 = vpop.f32.mrb[11].mxu0  ;;  %p9114_p11 = scmp.ne.s32.totalorder %s14544_s24, %s9113_s1  ;;  %p9121_p1 = scmp.lt.s32.totalorder %s9119_s29, %s9113_s1 }
 0x111   : > { %v9551_v49 = vadd.f32 %v9468_v63, %v1811_v42  ;;  %v1812_v50 = vmul.f32 %v9462_v61, %v1320_v48 }
 0x112   : > { %v9555_v51 = vadd.f32 %v9468_v63, %v1814_v47  ;;  %8533 = vmatmul.mubr.msk.bf16.gmra.mrb[116].mxu0 %vm1054_vm1, %v9042_v40  ;;  %v2076_v53 = vmax.f32 %v9547_v46, 0.0  ;;  %p9115_p12 = pnand %p9114_p11, %p9319_p5  ;;  %p9122_p2 = por %p9121_p1, %p9120_p0 }
 0x113   : > { %v9559_v52 = vadd.f32 %v9468_v63, %v1812_v50  ;;  %8536 = vmatprep.mubr.msk.bf16.mxu0 %vm1054_vm1, %v9043_v44  ;;  %v2074_v55 = vmax.f32 %v9551_v49, 0.0 }
 0x114   : > { %v2077_v54 = vmax.f32 %v9555_v51, 0.0  ;;  %p9116_p13 = pneg %p9115_p12 }
 0x115   : > { %v2075_v56 = vmax.f32 %v9559_v52, 0.0  ;;  %v8430_v57 = vpop.f32.mrb[12].mxu0 }
 0x116   : > { %v1817_v58 = vmul.f32 %v8430_v57, %v9462_v61  ;;  %v1333_v59 = vpop.f32.mrb[13].mxu0  ;;  %v9572_v62 = vpack.c.bf16 %v2077_v54, %v2076_v53  ;;  %p9123_p3 = pnand %p9122_p2, %p9116_p13 }
 0x117   : > { %v1815_v0 = vmul.f32 %v9462_v61, %v1333_v59  ;;  %v8431_v1 = vpop.f32.mrb[14].mxu0  ;;  %v9580_v3 = vpack.c.bf16 %v2075_v56, %v2074_v55 }
 0x118   : > { %v9583_v4 = vadd.f32 %v9468_v63, %v1817_v58  ;;  %v1818_v5 = vmul.f32 %v8431_v1, %v9462_v61  ;;  %v1336_v7 = vpop.f32.mrb[15].mxu0 }
 0x119   : > { %v9587_v8 = vadd.f32 %v9468_v63, %v1815_v0  ;;  %v1816_v10 = vmul.f32 %v9462_v61, %v1336_v7 }
 0x11a   : > { %v9591_v17 = vadd.f32 %v9468_v63, %v1818_v5  ;;  %8537 = vmatmul.mubr.msk.bf16.gmra.mrb[120].mxu0 %vm1054_vm1, %v9044_v60  ;;  %v2080_v20 = vmax.f32 %v9583_v4, 0.0 }
 0x11b   : > { %v9595_v19 = vadd.f32 %v9468_v63, %v1816_v10  ;;  %8540 = vmatprep.mubr.msk.bf16.mxu0 %vm1054_vm1, %v9045_v2  ;;  %v2078_v22 = vmax.f32 %v9587_v8, 0.0 }
 0x11c   : > { %v2081_v21 = vmax.f32 %v9591_v17, 0.0 }
 0x11d   : > { %v2079_v23 = vmax.f32 %v9595_v19, 0.0  ;;  %v8434_v24 = vpop.f32.mrb[16].mxu0 }
 0x11e   : > { %v1821_v27 = vmul.f32 %v8434_v24, %v9462_v61  ;;  %v1349_v28 = vpop.f32.mrb[17].mxu0  ;;  %v9608_v37 = vpack.c.bf16 %v2081_v21, %v2080_v20 }
 0x11f   : > { %v1819_v38 = vmul.f32 %v9462_v61, %v1349_v28  ;;  %v8435_v39 = vpop.f32.mrb[18].mxu0  ;;  %v9615_v40 = vpack.c.bf16 %v2079_v23, %v2078_v22 }
 0x120   : > { %v1956_v42 = vadd.f32 %v9468_v63, %v1821_v27  ;;  %v1822_v43 = vmul.f32 %v8435_v39, %v9462_v61  ;;  %v1352_v44 = vpop.f32.mrb[19].mxu0 }
 0x121   : > { %v1954_v47 = vadd.f32 %v9468_v63, %v1819_v38  ;;  %v1820_v48 = vmul.f32 %v9462_v61, %v1352_v44 }
 0x122   : > { %v2084_v50 = vmax.f32 %v1956_v42, 0.0  ;;  %v1957_v57 = vadd.f32 %v9468_v63, %v1822_v43  ;;  %8541 = vmatmul.mubr.msk.bf16.gmra.mrb[124].mxu0 %vm1054_vm1, %v9046_v30 }
 0x123   : > { %v2082_v58 = vmax.f32 %v1954_v47, 0.0  ;;  %v1955_v59 = vadd.f32 %v9468_v63, %v1820_v48  ;;  %8552 = vmatprep.mubr.msk.bf16.mxu0 %vm2402_vm2, %v9508_v25 }
 0x124   : > { %v9628_v60 = vmax.f32 %v2068_v13, %v2084_v50  ;;  %v2085_v0 = vmax.f32 %v1957_v57, 0.0 }
 0x125   : > { %v9632_v1 = vmax.f32 %v2066_v15, %v2082_v58  ;;  %v2083_v2 = vmax.f32 %v1955_v59, 0.0  ;;  %v8438_v5 = vpop.f32.mrb[20].mxu0 }
 0x126   : > { %v9636_v7 = vmax.f32 %v2069_v14, %v2085_v0  ;;  %v1825_v10 = vmul.f32 %v8438_v5, %v9462_v61  ;;  %v1365_v24 = vpop.f32.mrb[21].mxu0  ;;  %v9639_v27 = vpack.c.bf16 %v2085_v0, %v2084_v50 }
 0x127   : > { %v9643_v6 = vmax.f32 %v2067_v16, %v2083_v2  ;;  %v1823_v13 = vmul.f32 %v9462_v61, %v1365_v24  ;;  %v8439_v9 = vpop.f32.mrb[22].mxu0  ;;  %v9646_v15 = vpack.c.bf16 %v2083_v2, %v2082_v58 }
 0x128   : > { %v1960_v25 = vadd.f32 %v9468_v63, %v1825_v10  ;;  %v1826_v11 = vmul.f32 %v8439_v9, %v9462_v61  ;;  %v1368_v14 = vpop.f32.mrb[23].mxu0 }
 0x129   : > { %v1958_v28 = vadd.f32 %v9468_v63, %v1823_v13  ;;  %v1824_v30 = vmul.f32 %v9462_v61, %v1368_v14 }
 0x12a   : > { %v2088_v38 = vmax.f32 %v1960_v25, 0.0  ;;  %v1961_v39 = vadd.f32 %v9468_v63, %v1826_v11  ;;  %8553 = vmatmul.mubr.msk.bf16.vlgmr.msra.gmra.mrb[128].mxu0 %vm2402_vm2, %v9498_v18 }
 0x12b   : > { %v2086_v12 = vmax.f32 %v1958_v28, 0.0  ;;  %v1959_v16 = vadd.f32 %v9468_v63, %v1824_v30  ;;  %8556 = vmatprep.mubr.msk.bf16.mxu0 %vm2402_vm2, %v9544_v45 }
 0x12c   : > { %v9660_v42 = vmax.f32 %v2072_v33, %v2088_v38  ;;  %v2089_v43 = vmax.f32 %v1961_v39, 0.0 }
 0x12d   : > { %v9664_v44 = vmax.f32 %v2070_v35, %v2086_v12  ;;  %v2087_v47 = vmax.f32 %v1959_v16, 0.0  ;;  %v8442_v48 = vpop.f32.mrb[24].mxu0 }
 0x12e   : > { %v9668_v18 = vmax.f32 %v2073_v34, %v2089_v43  ;;  %v1829_v50 = vmul.f32 %v8442_v48, %v9462_v61  ;;  %v1381_v57 = vpop.f32.mrb[25].mxu0  ;;  %v9671_v58 = vpack.c.bf16 %v2089_v43, %v2088_v38 }
 0x12f   : > { %v9675_v26 = vmax.f32 %v2071_v36, %v2087_v47  ;;  %v8443_v33 = vpop.f32.mrb[26].mxu0  ;;  %v1827_v29 = vmul.f32 %v9462_v61, %v1381_v57  ;;  %v9678_v35 = vpack.c.bf16 %v2087_v47, %v2086_v12 }
 0x130   : > { %v1830_v45 = vmul.f32 %v8443_v33, %v9462_v61  ;;  %v1384_v59 = vpop.f32.mrb[27].mxu0  ;;  %v1964_v31 = vadd.f32 %v9468_v63, %v1829_v50 }
 0x131   : > { %v1828_v34 = vmul.f32 %v9462_v61, %v1384_v59  ;;  %v1962_v0 = vadd.f32 %v9468_v63, %v1827_v29 }
 0x132   : > { %8557 = vmatmul.mubr.msk.bf16.gmra.mrb[132].mxu0 %vm2402_vm2, %v9536_v41  ;;  %v1965_v32 = vadd.f32 %v9468_v63, %v1830_v45  ;;  %v2092_v36 = vmax.f32 %v1964_v31, 0.0 }
 0x133   : > { %8560 = vmatprep.mubr.msk.bf16.mxu0 %vm2402_vm2, %v9580_v3  ;;  %v1963_v2 = vadd.f32 %v9468_v63, %v1828_v34  ;;  %v2090_v5 = vmax.f32 %v1962_v0, 0.0 }
 0x134   : > { %v2093_v10 = vmax.f32 %v1965_v32, 0.0  ;;  %v9692_v24 = vmax.f32 %v2076_v53, %v2092_v36 }
 0x135   : > { %v8446_v13 = vpop.f32.mrb[28].mxu0  ;;  %v2091_v9 = vmax.f32 %v1963_v2, 0.0  ;;  %v9696_v25 = vmax.f32 %v2074_v55, %v2090_v5 }
 0x136   : > { %v1833_v41 = vmul.f32 %v8446_v13, %v9462_v61  ;;  %v1397_v11 = vpop.f32.mrb[29].mxu0  ;;  %v9701_v3 = vmax.f32 %v2077_v54, %v2093_v10  ;;  %v2319_v14 = vpack.c.bf16 %v2093_v10, %v2092_v36 }
 0x137   : > { %v1831_v28 = vmul.f32 %v9462_v61, %v1397_v11  ;;  %v8447_v30 = vpop.f32.mrb[30].mxu0  ;;  %v9706_v46 = vmax.f32 %v2075_v56, %v2091_v9  ;;  %v2318_v53 = vpack.c.bf16 %v2091_v9, %v2090_v5 }
 0x138   : > { %14898 = vst [vmem:[#allocation9_spill] sm:$0xff] %v9701_v3  ;;  %v1834_v49 = vmul.f32 %v8447_v30, %v9462_v61  ;;  %v1400_v55 = vpop.f32.mrb[31].mxu0  ;;  %v1968_v38 = vadd.f32 %v9468_v63, %v1833_v41 }
 0x139   : > { %14899 = vst [vmem:[#allocation10_spill] sm:$0xff] %v9706_v46  ;;  %v1832_v39 = vmul.f32 %v9462_v61, %v1400_v55  ;;  %8576 = vmatprep.mubr.msk.bf16.mxu1 %vm2402_vm2, %v2318_v53  ;;  %v1966_v51 = vadd.f32 %v9468_v63, %v1831_v28 }
 0x13a   : > { %8561 = vmatmul.mubr.msk.bf16.gmra.mrb[136].mxu0 %vm2402_vm2, %v9572_v62  ;;  %8577 = vmatmul.mubr.msk.bf16.vlgmr.msra.gmra.mrb[0].mxu1 %vm2402_vm2, %v2319_v14  ;;  %v1969_v52 = vadd.f32 %v9468_v63, %v1834_v49  ;;  %v2096_v54 = vmax.f32 %v1968_v38, 0.0 }
 0x13b   : > { %8564 = vmatprep.mubr.msk.bf16.mxu0 %vm2402_vm2, %v9615_v40  ;;  %v1967_v56 = vadd.f32 %v9468_v63, %v1832_v39  ;;  %v2094_v12 = vmax.f32 %v1966_v51, 0.0 }
 0x13c   : > { %v2097_v16 = vmax.f32 %v1969_v52, 0.0  ;;  %v9722_v43 = vmax.f32 %v2080_v20, %v2096_v54 }
 0x13d   : > { %v8450_v47 = vpop.f32.mrb[32].mxu0  ;;  %v2095_v48 = vmax.f32 %v1967_v56, 0.0  ;;  %v9726_v62 = vmax.f32 %v2078_v22, %v2094_v12 }
 0x13e   : > { %14900 = vst [vmem:[#allocation11_spill] sm:$0xff] %v9722_v43  ;;  %v1837_v50 = vmul.f32 %v8450_v47, %v9462_v61  ;;  %v1413_v57 = vpop.f32.mrb[33].mxu0  ;;  %v9731_v40 = vmax.f32 %v2081_v21, %v2097_v16  ;;  %v2321_v33 = vpack.c.bf16 %v2097_v16, %v2096_v54 }
 0x13f   : > { %14901 = vst [vmem:[#allocation12_spill] sm:$0xff] %v9726_v62  ;;  %v1835_v29 = vmul.f32 %v9462_v61, %v1413_v57  ;;  %v8451_v45 = vpop.f32.mrb[34].mxu0  ;;  %v9736_v4 = vmax.f32 %v2079_v23, %v2095_v48  ;;  %v2320_v20 = vpack.c.bf16 %v2095_v48, %v2094_v12 }
 0x140   : > { %14902 = vst [vmem:[#allocation13_spill] sm:$0xff] %v9731_v40  ;;  %v1838_v8 = vmul.f32 %v8451_v45, %v9462_v61  ;;  %v1416_v22 = vpop.f32.mrb[35].mxu0  ;;  %v9740_v59 = vadd.f32 %v9468_v63, %v1837_v50 }
 0x141   : > { %14903 = vst [vmem:[#allocation14_spill] sm:$0xff] %v9736_v4  ;;  %v1836_v31 = vmul.f32 %v9462_v61, %v1416_v22  ;;  %8580 = vmatprep.mubr.msk.bf16.mxu1 %vm2402_vm2, %v2320_v20  ;;  %v9745_v17 = vadd.f32 %v9468_v63, %v1835_v29 }
 0x142   : > { %8565 = vmatmul.mubr.msk.bf16.gmra.mrb[140].mxu0 %vm2402_vm2, %v9608_v37  ;;  %8581 = vmatmul.mubr.msk.bf16.gmra.mrb[4].mxu1 %vm2402_vm2, %v2321_v33  ;;  %v9751_v19 = vadd.f32 %v9468_v63, %v1838_v8  ;;  %v2100_v23 = vmax.f32 %v9740_v59, 0.0 }
 0x143   : > { %8568 = vmatprep.mubr.msk.bf16.mxu0 %vm2402_vm2, %v9646_v15  ;;  %v9756_v21 = vadd.f32 %v9468_v63, %v1836_v31  ;;  %v2098_v32 = vmax.f32 %v9745_v17, 0.0 }
 0x144   : > { %v2101_v34 = vmax.f32 %v9751_v19, 0.0 }
 0x145   : > { %v8454_v0 = vpop.f32.mrb[36].mxu0  ;;  %v2099_v37 = vmax.f32 %v9756_v21, 0.0 }
 0x146   : > { %v1841_v36 = vmul.f32 %v8454_v0, %v9462_v61  ;;  %v1429_v2 = vpop.f32.mrb[37].mxu0  ;;  %v2323_v15 = vpack.c.bf16 %v2101_v34, %v2100_v23 }
 0x147   : > { %v1839_v5 = vmul.f32 %v9462_v61, %v1429_v2  ;;  %v8455_v10 = vpop.f32.mrb[38].mxu0  ;;  %v2322_v13 = vpack.c.bf16 %v2099_v37, %v2098_v32 }
 0x148   : > { %v1842_v9 = vmul.f32 %v8455_v10, %v9462_v61  ;;  %v1432_v41 = vpop.f32.mrb[39].mxu0  ;;  %v9774_v11 = vadd.f32 %v9468_v63, %v1841_v36 }
 0x149   : > { %v1840_v14 = vmul.f32 %v9462_v61, %v1432_v41  ;;  %8584 = vmatprep.mubr.msk.bf16.mxu1 %vm2402_vm2, %v2322_v13  ;;  %v9779_v28 = vadd.f32 %v9468_v63, %v1839_v5 }
 0x14a   : > { %8569 = vmatmul.mubr.msk.bf16.gmra.mrb[144].mxu0 %vm2402_vm2, %v9639_v27  ;;  %8585 = vmatmul.mubr.msk.bf16.gmra.mrb[8].mxu1 %vm2402_vm2, %v2323_v15  ;;  %v9785_v30 = vadd.f32 %v9468_v63, %v1842_v9  ;;  %v2104_v49 = vmax.f32 %v9774_v11, 0.0 }
 0x14b   : > { %8572 = vmatprep.mubr.msk.bf16.mxu0 %vm2402_vm2, %v9678_v35  ;;  %v9790_v53 = vadd.f32 %v9468_v63, %v1840_v14  ;;  %v2102_v39 = vmax.f32 %v9779_v28, 0.0 }
 0x14c   : > { %v2105_v55 = vmax.f32 %v9785_v30, 0.0 }
 0x14d   : > { %v8458_v38 = vpop.f32.mrb[40].mxu0  ;;  %v2103_v27 = vmax.f32 %v9790_v53, 0.0 }
 0x14e   : > { %v1845_v51 = vmul.f32 %v8458_v38, %v9462_v61  ;;  %v1445_v52 = vpop.f32.mrb[41].mxu0  ;;  %v2325_v35 = vpack.c.bf16 %v2105_v55, %v2104_v49 }
 0x14f   : > { %v1843_v54 = vmul.f32 %v9462_v61, %v1445_v52  ;;  %v8459_v56 = vpop.f32.mrb[42].mxu0  ;;  %v2324_v12 = vpack.c.bf16 %v2103_v27, %v2102_v39 }
 0x150   : > { %v9807_v16 = vadd.f32 %v9468_v63, %v1845_v51  ;;  %v1846_v47 = vmul.f32 %v8459_v56, %v9462_v61  ;;  %v1448_v48 = vpop.f32.mrb[43].mxu0 }
 0x151   : > { %v9811_v50 = vadd.f32 %v9468_v63, %v1843_v54  ;;  %v1844_v57 = vmul.f32 %v9462_v61, %v1448_v48  ;;  %8588 = vmatprep.mubr.msk.bf16.mxu1 %vm2402_vm2, %v2324_v12 }
 0x152   : > { %v9816_v33 = vadd.f32 %v9468_v63, %v1846_v47  ;;  %8573 = vmatmul.mubr.msk.bf16.gmra.mrb[148].mxu0 %vm2402_vm2, %v9671_v58  ;;  %8589 = vmatmul.mubr.msk.bf16.gmra.mrb[12].mxu1 %vm2402_vm2, %v2325_v35  ;;  %v2108_v45 = vmax.f32 %v9807_v16, 0.0 }
 0x153   : > { %v9822_v29 = vadd.f32 %v9468_v63, %v1844_v57  ;;  %v2106_v8 = vmax.f32 %v9811_v50, 0.0 }
 0x154   : > { %v2109_v20 = vmax.f32 %v9816_v33, 0.0 }
 0x155   : > { %v2107_v22 = vmax.f32 %v9822_v29, 0.0  ;;  %v8462_v31 = vpop.f32.mrb[44].mxu0 }
 0x156   : > { %v1849_v0 = vmul.f32 %v8462_v31, %v9462_v61  ;;  %v1461_v36 = vpop.f32.mrb[45].mxu0  ;;  %v2327_v58 = vpack.c.bf16 %v2109_v20, %v2108_v45 }
 0x157   : > { %v1847_v2 = vmul.f32 %v9462_v61, %v1461_v36  ;;  %v8463_v15 = vpop.f32.mrb[46].mxu0  ;;  %v2326_v5 = vpack.c.bf16 %v2107_v22, %v2106_v8 }
 0x158   : > { %v9839_v10 = vadd.f32 %v9468_v63, %v1849_v0  ;;  %v1850_v13 = vmul.f32 %v8463_v15, %v9462_v61  ;;  %v1464_v9 = vpop.f32.mrb[47].mxu0 }
 0x159   : > { %v9843_v41 = vadd.f32 %v9468_v63, %v1847_v2  ;;  %v1848_v14 = vmul.f32 %v9462_v61, %v1464_v9  ;;  %8592 = vmatprep.mubr.msk.bf16.mxu1 %vm2402_vm2, %v2326_v5 }
 0x15a   : > { %v9848_v38 = vadd.f32 %v9468_v63, %v1850_v13  ;;  %8593 = vmatmul.mubr.msk.bf16.gmra.mrb[16].mxu1 %vm2402_vm2, %v2327_v58  ;;  %v2112_v52 = vmax.f32 %v9839_v10, 0.0  ;;  %v9047_v58 = vld [vmem:[%s14598_s7] sm:$0xff]  }
 0x15b   : > { %v9852_v51 = vadd.f32 %v9468_v63, %v1848_v14  ;;  %v2110_v54 = vmax.f32 %v9843_v41, 0.0  ;;  %8680 = vmatprep.subr.bf16.mxu0 %v9047_v58 }
 0x15c   : > { %v2113_v35 = vmax.f32 %v9848_v38, 0.0  ;;  %8681 = vmatpush3.bf16.msra.mxu0 %v9047_v58 }
 0x15d   : > { %v14617_v56 = vmax.f32 %v9852_v51, 0.0  ;;  %v8466_v12 = vpop.f32.mrb[48].mxu0  ;;  %v14909_v41 = vmax.f32 %v9852_v51, 0.0 }
 0x15e   : > { %v1853_v47 = vmul.f32 %v8466_v12, %v9462_v61  ;;  %v1477_v48 = vpop.f32.mrb[49].mxu0  ;;  %v2329_v57 = vpack.c.bf16 %v2113_v35, %v2112_v52 }
 0x15f   : > { %v1851_v31 = vmul.f32 %v9462_v61, %v1477_v48  ;;  %v8467_v0 = vpop.f32.mrb[50].mxu0  ;;  %v2328_v36 = vpack.c.bf16 %v14617_v56, %v2110_v54 }
 0x160   : > { %v1988_v2 = vadd.f32 %v9468_v63, %v1853_v47  ;;  %v1854_v15 = vmul.f32 %v8467_v0, %v9462_v61  ;;  %v1480_v5 = vpop.f32.mrb[51].mxu0 }
 0x161   : > { %v1986_v13 = vadd.f32 %v9468_v63, %v1851_v31  ;;  %v1852_v9 = vmul.f32 %v9462_v61, %v1480_v5  ;;  %8596 = vmatprep.mubr.msk.bf16.mxu1 %vm2402_vm2, %v2328_v36 }
 0x162   : > { %v2116_v14 = vmax.f32 %v1988_v2, 0.0  ;;  %v1989_v12 = vadd.f32 %v9468_v63, %v1854_v15  ;;  %8597 = vmatmul.mubr.msk.bf16.gmra.mrb[20].mxu1 %vm2402_vm2, %v2329_v57 }
 0x163   : > { %v2114_v48 = vmax.f32 %v1986_v13, 0.0  ;;  %v1987_v56 = vadd.f32 %v9468_v63, %v1852_v9 }
 0x164   : > { %v9881_v47 = vmax.f32 %v2100_v23, %v2116_v14  ;;  %v2117_v0 = vmax.f32 %v1989_v12, 0.0 }
 0x165   : > { %v9885_v31 = vmax.f32 %v2098_v32, %v2114_v48  ;;  %v2115_v36 = vmax.f32 %v1987_v56, 0.0  ;;  %v8470_v5 = vpop.f32.mrb[52].mxu0 }
 0x166   : > { %v9891_v57 = vmax.f32 %v2101_v34, %v2117_v0  ;;  %v1857_v58 = vmul.f32 %v8470_v5, %v9462_v61  ;;  %v1493_v15 = vpop.f32.mrb[53].mxu0  ;;  %v2331_v59 = vpack.c.bf16 %v2117_v0, %v2116_v14 }
 0x167   : > { %v9898_v17 = vmax.f32 %v2099_v37, %v2115_v36  ;;  %v1855_v32 = vmul.f32 %v9462_v61, %v1493_v15  ;;  %v8471_v56 = vpop.f32.mrb[54].mxu0  ;;  %v2330_v13 = vpack.c.bf16 %v2115_v36, %v2114_v48 }
 0x168   : > { %v1992_v34 = vadd.f32 %v9468_v63, %v1857_v58  ;;  %v1858_v9 = vmul.f32 %v8471_v56, %v9462_v61  ;;  %v1496_v12 = vpop.f32.mrb[55].mxu0 }
 0x169   : > { %v1990_v0 = vadd.f32 %v9468_v63, %v1855_v32  ;;  %v1856_v21 = vmul.f32 %v9462_v61, %v1496_v12  ;;  %8600 = vmatprep.mubr.msk.bf16.mxu1 %vm2402_vm2, %v2330_v13 }
 0x16a   : > { %v2120_v37 = vmax.f32 %v1992_v34, 0.0  ;;  %v1993_v48 = vadd.f32 %v9468_v63, %v1858_v9  ;;  %8601 = vmatmul.mubr.msk.bf16.gmra.mrb[24].mxu1 %vm2402_vm2, %v2331_v59 }
 0x16b   : > { %v2118_v36 = vmax.f32 %v1990_v0, 0.0  ;;  %v1991_v5 = vadd.f32 %v9468_v63, %v1856_v21 }
 0x16c   : > { %v9915_v58 = vmax.f32 %v2104_v49, %v2120_v37  ;;  %v2121_v15 = vmax.f32 %v1993_v48, 0.0 }
 0x16d   : > { %v9919_v32 = vmax.f32 %v2102_v39, %v2118_v36  ;;  %v2119_v56 = vmax.f32 %v1991_v5, 0.0  ;;  %v8474_v12 = vpop.f32.mrb[56].mxu0 }
 0x16e   : > { %v9925_v59 = vmax.f32 %v2105_v55, %v2121_v15  ;;  %v1861_v34 = vmul.f32 %v8474_v12, %v9462_v61  ;;  %v1509_v9 = vpop.f32.mrb[57].mxu0  ;;  %v2333_v11 = vpack.c.bf16 %v2121_v15, %v2120_v37  ;;  %v9048_v37 = vld [vmem:[%s14598_s7 + $0x8] sm:$0xff]  }
 0x16f   : > { %v9932_v28 = vmax.f32 %v2103_v27, %v2119_v56  ;;  %v1859_v39 = vmul.f32 %v9462_v61, %v1509_v9  ;;  %v8475_v0 = vpop.f32.mrb[58].mxu0  ;;  %v2332_v21 = vpack.c.bf16 %v2119_v56, %v2118_v36  ;;  %8682 = vmatprep.subr.bf16.mxu0 %v9048_v37 }
 0x170   : > { %v1996_v55 = vadd.f32 %v9468_v63, %v1861_v34  ;;  %v1862_v48 = vmul.f32 %v8475_v0, %v9462_v61  ;;  %v1512_v5 = vpop.f32.mrb[59].mxu0  ;;  %8683 = vmatpush3.bf16.msra.mxu0 %v9048_v37 }
 0x171   : > { %v1994_v27 = vadd.f32 %v9468_v63, %v1859_v39  ;;  %v1860_v15 = vmul.f32 %v9462_v61, %v1512_v5  ;;  %8604 = vmatprep.mubr.msk.bf16.mxu1 %vm2402_vm2, %v2332_v21 }
 0x172   : > { %v2124_v36 = vmax.f32 %v1996_v55, 0.0  ;;  %v1997_v56 = vadd.f32 %v9468_v63, %v1862_v48  ;;  %8605 = vmatmul.mubr.msk.bf16.gmra.mrb[28].mxu1 %vm2402_vm2, %v2333_v11 }
 0x173   : > { %v2122_v12 = vmax.f32 %v1994_v27, 0.0  ;;  %v1995_v34 = vadd.f32 %v9468_v63, %v1860_v15 }
 0x174   : > { %v9952_v9 = vmax.f32 %v2108_v45, %v2124_v36  ;;  %v2125_v0 = vmax.f32 %v1997_v56, 0.0 }
 0x175   : > { %v9956_v39 = vmax.f32 %v2106_v8, %v2122_v12  ;;  %v2123_v21 = vmax.f32 %v1995_v34, 0.0  ;;  %v8478_v55 = vpop.f32.mrb[60].mxu0 }
 0x176   : > { %v9962_v11 = vmax.f32 %v2109_v20, %v2125_v0  ;;  %v1865_v5 = vmul.f32 %v8478_v55, %v9462_v61  ;;  %v1525_v37 = vpop.f32.mrb[61].mxu0  ;;  %v2335_v16 = vpack.c.bf16 %v2125_v0, %v2124_v36 }
 0x177   : > { %v9969_v50 = vmax.f32 %v2107_v22, %v2123_v21  ;;  %v1863_v8 = vmul.f32 %v9462_v61, %v1525_v37  ;;  %v8479_v27 = vpop.f32.mrb[62].mxu0  ;;  %v2334_v15 = vpack.c.bf16 %v2123_v21, %v2122_v12 }
 0x178   : > { %14904 = vst [vmem:[#allocation15_spill] sm:$0xff] %v9962_v11  ;;  %v2000_v20 = vadd.f32 %v9468_v63, %v1865_v5  ;;  %v1866_v56 = vmul.f32 %v8479_v27, %v9462_v61  ;;  %v1528_v34 = vpop.f32.mrb[63].mxu0 }
 0x179   : > { %14905 = vst [vmem:[#allocation16_spill] sm:$0xff] %v9969_v50  ;;  %v1998_v0 = vadd.f32 %v9468_v63, %v1863_v8  ;;  %v1864_v29 = vmul.f32 %v9462_v61, %v1528_v34  ;;  %8608 = vmatprep.mubr.msk.bf16.mxu1 %vm2402_vm2, %v2334_v15  ;;  %v9049_v8 = vld [vmem:[%s14598_s7 + $0x10] sm:$0xff]  }
 0x17a   : > { %v2128_v22 = vmax.f32 %v2000_v20, 0.0  ;;  %v2001_v12 = vadd.f32 %v9468_v63, %v1866_v56  ;;  %8609 = vmatmul.mubr.msk.bf16.gmra.mrb[32].mxu1 %vm2402_vm2, %v2335_v16  ;;  %8684 = vmatprep.subr.bf16.mxu0 %v9049_v8 }
 0x17b   : > { %v2126_v21 = vmax.f32 %v1998_v0, 0.0  ;;  %v1999_v55 = vadd.f32 %v9468_v63, %v1864_v29  ;;  %8685 = vmatpush3.bf16.msra.mxu0 %v9049_v8 }
 0x17c   : > { %v9986_v5 = vmax.f32 %v2112_v52, %v2128_v22  ;;  %v2129_v37 = vmax.f32 %v2001_v12, 0.0 }
 0x17d   : > { %v9993_v27 = vmax.f32 %v2110_v54, %v2126_v21  ;;  %v2127_v15 = vmax.f32 %v1999_v55, 0.0  ;;  %v8482_v20 = vpop.f32.mrb[64].mxu0 }
 0x17e   : > { %14906 = vst [vmem:[#allocation17_spill] sm:$0xff] %v9986_v5  ;;  %v9999_v56 = vmax.f32 %v2113_v35, %v2129_v37  ;;  %v1869_v10 = vmul.f32 %v8482_v20, %v9462_v61  ;;  %v1541_v52 = vpop.f32.mrb[65].mxu0  ;;  %v2337_v34 = vpack.c.bf16 %v2129_v37, %v2128_v22 }
 0x17f   : > { %14907 = vst [vmem:[#allocation18_spill] sm:$0xff] %v9993_v27  ;;  %v10006_v54 = vmax.f32 %v14909_v41, %v2127_v15  ;;  %v1867_v29 = vmul.f32 %v9462_v61, %v1541_v52  ;;  %v8483_v12 = vpop.f32.mrb[66].mxu0  ;;  %v2336_v55 = vpack.c.bf16 %v2127_v15, %v2126_v21  ;;  %v9050_v41 = vld [vmem:[%s14598_s7 + $0x18] sm:$0xff]  }
 0x180   : > { %14908 = vst [vmem:[#allocation19_spill] sm:$0xff] %v9999_v56  ;;  %v10012_v35 = vadd.f32 %v9468_v63, %v1869_v10  ;;  %v1870_v22 = vmul.f32 %v8483_v12, %v9462_v61  ;;  %v1544_v37 = vpop.f32.mrb[67].mxu0  ;;  %8686 = vmatprep.subr.bf16.mxu0 %v9050_v41 }
 0x181   : > { %14910 = vst [vmem:[#allocation20_spill] sm:$0xff] %v10006_v54  ;;  %v10018_v51 = vadd.f32 %v9468_v63, %v1867_v29  ;;  %v1868_v52 = vmul.f32 %v9462_v61, %v1544_v37  ;;  %8612 = vmatprep.mubr.msk.bf16.mxu1 %vm2402_vm2, %v2336_v55  ;;  %8687 = vmatpush3.bf16.msra.mxu0 %v9050_v41 }
 0x182   : > { %v10023_v21 = vadd.f32 %v9468_v63, %v1870_v22  ;;  %8613 = vmatmul.mubr.msk.bf16.gmra.mrb[36].mxu1 %vm2402_vm2, %v2337_v34  ;;  %v14631_v15 = vmax.f32 %v10012_v35, 0.0 }
 0x183   : > { %v10027_v8 = vadd.f32 %v9468_v63, %v1868_v52  ;;  %v14628_v29 = vmax.f32 %v10018_v51, 0.0 }
 0x184   : > { %v14627_v10 = vmax.f32 %v10023_v21, 0.0 }
 0x185   : > { %v14622_v12 = vmax.f32 %v10027_v8, 0.0  ;;  %v8486_v55 = vpop.f32.mrb[68].mxu0 }
 0x186   : > { %v1873_v22 = vmul.f32 %v8486_v55, %v9462_v61  ;;  %v1557_v37 = vpop.f32.mrb[69].mxu0  ;;  %v2339_v34 = vpack.c.bf16 %v14627_v10, %v14631_v15  ;;  %v9051_v10 = vld [vmem:[%s14601_s10] ss:$8 sps:$4 sm:$0xff]  }
 0x187   : > { %v1871_v52 = vmul.f32 %v9462_v61, %v1557_v37  ;;  %v8487_v20 = vpop.f32.mrb[70].mxu0  ;;  %v2338_v38 = vpack.c.bf16 %v14622_v12, %v14628_v29  ;;  %v9053_v29 = vld [vmem:[%s14601_s10 + $0x4] ss:$8 sps:$4 sm:$0xff]  }
 0x188   : > { %v10047_v0 = vadd.f32 %v9468_v63, %v1873_v22  ;;  %v1874_v55 = vmul.f32 %v8487_v20, %v9462_v61  ;;  %v1560_v16 = vpop.f32.mrb[71].mxu0  ;;  %5153 = vmatprep.subr.bf16.mxu1 %v9053_v29 }
 0x189   : > { %v10051_v36 = vadd.f32 %v9468_v63, %v1871_v52  ;;  %v1872_v33 = vmul.f32 %v9462_v61, %v1560_v16  ;;  %8616 = vmatprep.mubr.msk.bf16.mxu1 %vm2402_vm2, %v2338_v38  ;;  %5154 = vmatpush1.bf16.msra.mxu1 %v9051_v10  ;;  %v14914_v10 = vmax.f32 %v10027_v8, 0.0  ;;  %v10178_v8 = vld [vmem:[%s14897_s23] ss:$0 sm:$0xff] }
 0x18a   : > { %v10056_v37 = vadd.f32 %v9468_v63, %v1874_v55  ;;  %8617 = vmatmul.mubr.msk.bf16.gmra.mrb[40].mxu1 %vm2402_vm2, %v2339_v34  ;;  %v14621_v22 = vmax.f32 %v10047_v0, 0.0 }
 0x18b   : > { %v10060_v41 = vadd.f32 %v9468_v63, %v1872_v33  ;;  %v14620_v45 = vmax.f32 %v10051_v36, 0.0 }
 0x18c   : > { %v14619_v20 = vmax.f32 %v10056_v37, 0.0 }
 0x18d   : > { %v14618_v52 = vmax.f32 %v10060_v41, 0.0  ;;  %v8490_v48 = vpop.f32.mrb[72].mxu0 }
 0x18e   : > { %v1877_v16 = vmul.f32 %v8490_v48, %v9462_v61  ;;  %v1573_v38 = vpop.f32.mrb[73].mxu0  ;;  %v2341_v34 = vpack.c.bf16 %v14619_v20, %v14621_v22 }
 0x18f   : > { %v1875_v33 = vmul.f32 %v9462_v61, %v1573_v38  ;;  %v8491_v55 = vpop.f32.mrb[74].mxu0  ;;  %v2340_v53 = vpack.c.bf16 %v14618_v52, %v14620_v45 }
 0x190   : > { %v10077_v30 = vadd.f32 %v9468_v63, %v1877_v16  ;;  %v1878_v49 = vmul.f32 %v8491_v55, %v9462_v61  ;;  %v1576_v48 = vpop.f32.mrb[75].mxu0 }
 0x191   : > { %v10081_v13 = vadd.f32 %v9468_v63, %v1875_v33  ;;  %v1876_v14 = vmul.f32 %v9462_v61, %v1576_v48  ;;  %8620 = vmatprep.mubr.msk.bf16.mxu1 %vm2402_vm2, %v2340_v53 }
 0x192   : > { %v10086_v38 = vadd.f32 %v9468_v63, %v1878_v49  ;;  %8621 = vmatmul.mubr.msk.bf16.gmra.mrb[44].mxu1 %vm2402_vm2, %v2341_v34  ;;  %v14626_v16 = vmax.f32 %v10077_v30, 0.0 }
 0x193   : > { %v10090_v19 = vadd.f32 %v9468_v63, %v1876_v14  ;;  %v14625_v23 = vmax.f32 %v10081_v13, 0.0 }
 0x194   : > { %v14623_v55 = vmax.f32 %v10086_v38, 0.0 }
 0x195   : > { %v14624_v33 = vmax.f32 %v10090_v19, 0.0  ;;  %v8494_v2 = vpop.f32.mrb[76].mxu0 }
 0x196   : > { %v2343_v49 = vpack.c.bf16 %v14623_v55, %v14626_v16  ;;  %v1881_v53 = vmul.f32 %v8494_v2, %v9462_v61  ;;  %v1589_v34 = vpop.f32.mrb[77].mxu0 }
 0x197   : > { %v2342_v14 = vpack.c.bf16 %v14624_v33, %v14625_v23  ;;  %v1879_v48 = vmul.f32 %v9462_v61, %v1589_v34  ;;  %v8495_v52 = vpop.f32.mrb[78].mxu0 }
 0x198   : > { %v10107_v20 = vadd.f32 %v9468_v63, %v1881_v53  ;;  %v1882_v45 = vmul.f32 %v8495_v52, %v9462_v61  ;;  %v1592_v22 = vpop.f32.mrb[79].mxu0 }
 0x199   : > { %v10111_v12 = vadd.f32 %v9468_v63, %v1879_v48  ;;  %v1880_v2 = vmul.f32 %v9462_v61, %v1592_v22  ;;  %8624 = vmatprep.mubr.msk.bf16.mxu1 %vm2402_vm2, %v2342_v14 }
 0x19a   : > { %v10116_v55 = vadd.f32 %v9468_v63, %v1882_v45  ;;  %8625 = vmatmul.mubr.msk.bf16.gmra.mrb[48].mxu1 %vm2402_vm2, %v2343_v49  ;;  %v14630_v53 = vmax.f32 %v10107_v20, 0.0 }
 0x19b   : > { %v10120_v34 = vadd.f32 %v9468_v63, %v1880_v2  ;;  %v14633_v33 = vmax.f32 %v10111_v12, 0.0 }
 0x19c   : > { %v14629_v52 = vmax.f32 %v10116_v55, 0.0 }
 0x19d   : > { %v14632_v48 = vmax.f32 %v10120_v34, 0.0  ;;  %v8498_v23 = vpop.f32.mrb[80].mxu0 }
 0x19e   : > { %v2345_v45 = vpack.c.bf16 %v14629_v52, %v14630_v53  ;;  %v1885_v22 = vmul.f32 %v8498_v23, %v9462_v61  ;;  %v1605_v49 = vpop.f32.mrb[81].mxu0 }
 0x19f   : > { %v2344_v14 = vpack.c.bf16 %v14632_v48, %v14633_v33  ;;  %v1883_v2 = vmul.f32 %v9462_v61, %v1605_v49  ;;  %v8499_v16 = vpop.f32.mrb[82].mxu0 }
 0x1a0   : > { %v2020_v52 = vadd.f32 %v9468_v63, %v1885_v22  ;;  %v1886_v23 = vmul.f32 %v8499_v16, %v9462_v61  ;;  %v1608_v53 = vpop.f32.mrb[83].mxu0  ;;  %v14911_v22 = vmax.f32 %v10012_v35, 0.0 }
 0x1a1   : > { %v2018_v15 = vadd.f32 %v9468_v63, %v1883_v2  ;;  %v1884_v48 = vmul.f32 %v9462_v61, %v1608_v53  ;;  %8628 = vmatprep.mubr.msk.bf16.mxu1 %vm2402_vm2, %v2344_v14  ;;  %v14912_v2 = vmax.f32 %v10018_v51, 0.0 }
 0x1a2   : > { %v2148_v49 = vmax.f32 %v2020_v52, 0.0  ;;  %v2021_v33 = vadd.f32 %v9468_v63, %v1886_v23  ;;  %8629 = vmatmul.mubr.msk.bf16.gmra.mrb[52].mxu1 %vm2402_vm2, %v2345_v45  ;;  %v14913_v52 = vmax.f32 %v10023_v21, 0.0 }
 0x1a3   : > { %v2146_v54 = vmax.f32 %v2018_v15, 0.0  ;;  %v2019_v4 = vadd.f32 %v9468_v63, %v1884_v48 }
 0x1a4   : > { %v10152_v16 = vmax.f32 %v14911_v22, %v2148_v49  ;;  %v2149_v56 = vmax.f32 %v2021_v33, 0.0 }
 0x1a5   : > { %v10156_v53 = vmax.f32 %v14912_v2, %v2146_v54  ;;  %v2147_v14 = vmax.f32 %v2019_v4, 0.0  ;;  %v8502_v29 = vpop.f32.mrb[84].mxu0  ;;  %v10172_v4 = vld [vmem:[%s14896_s27] ss:$0 sm:$0xff] }
 0x1a6   : > { %v10160_v23 = vmax.f32 %v14913_v52, %v2149_v56  ;;  %v2347_v45 = vpack.c.bf16 %v2149_v56, %v2148_v49  ;;  %v1889_v15 = vmul.f32 %v8502_v29, %v9462_v61  ;;  %v1621_v48 = vpop.f32.mrb[85].mxu0  ;;  %v14915_v52 = vmax.f32 %v10047_v0, 0.0 }
 0x1a7   : > { %v10165_v35 = vmax.f32 %v14914_v10, %v2147_v14  ;;  %v2346_v22 = vpack.c.bf16 %v2147_v14, %v2146_v54  ;;  %v1887_v33 = vmul.f32 %v9462_v61, %v1621_v48  ;;  %v8503_v51 = vpop.f32.mrb[86].mxu0  ;;  %v14916_v10 = vmax.f32 %v10051_v36, 0.0 }
 0x1a8   : > { %v2024_v2 = vadd.f32 %v9468_v63, %v1889_v15  ;;  %v1890_v56 = vmul.f32 %v10172_v4, %v8503_v51  ;;  %v1624_v21 = vpop.f32.mrb[87].mxu0 }
 0x1a9   : > { %v2022_v54 = vadd.f32 %v10178_v8, %v1887_v33  ;;  %v1888_v61 = vmul.f32 %v10172_v4, %v1624_v21  ;;  %8632 = vmatprep.mubr.msk.bf16.mxu1 %vm2402_vm2, %v2346_v22  ;;  %v14917_v22 = vmax.f32 %v10056_v37, 0.0 }
 0x1aa   : > { %v2152_v63 = vmax.f32 %v2024_v2, 0.0  ;;  %v2025_v49 = vadd.f32 %v10178_v8, %v1890_v56  ;;  %8633 = vmatmul.mubr.msk.bf16.gmra.mrb[56].mxu1 %vm2402_vm2, %v2347_v45 }
 0x1ab   : > { %v2150_v14 = vmax.f32 %v2022_v54, 0.0  ;;  %v2023_v29 = vadd.f32 %v10178_v8, %v1888_v61  ;;  %v14918_v61 = vmax.f32 %v10060_v41, 0.0 }
 0x1ac   : > { %v10188_v15 = vmax.f32 %v14915_v52, %v2152_v63  ;;  %v2153_v48 = vmax.f32 %v2025_v49, 0.0 }
 0x1ad   : > { %v10192_v33 = vmax.f32 %v14916_v10, %v2150_v14  ;;  %v2151_v51 = vmax.f32 %v2023_v29, 0.0  ;;  %v8506_v21 = vpop.f32.mrb[88].mxu0 }
 0x1ae   : > { %v10196_v2 = vmax.f32 %v14917_v22, %v2153_v48  ;;  %v2349_v56 = vpack.c.bf16 %v2153_v48, %v2152_v63  ;;  %v1893_v45 = vmul.f32 %v10172_v4, %v8506_v21  ;;  %v1637_v54 = vpop.f32.mrb[89].mxu0  ;;  %v14919_v21 = vmax.f32 %v10077_v30, 0.0 }
 0x1af   : > { %v10201_v0 = vmax.f32 %v14918_v61, %v2151_v51  ;;  %v2348_v52 = vpack.c.bf16 %v2151_v51, %v2150_v14  ;;  %v1891_v49 = vmul.f32 %v10172_v4, %v1637_v54  ;;  %v8507_v36 = vpop.f32.mrb[90].mxu0  ;;  %v14920_v54 = vmax.f32 %v10081_v13, 0.0 }
 0x1b0   : > { %v2028_v10 = vadd.f32 %v10178_v8, %v1893_v45  ;;  %v1894_v29 = vmul.f32 %v10172_v4, %v8507_v36  ;;  %v1640_v40 = vpop.f32.mrb[91].mxu0  ;;  %v14921_v36 = vmax.f32 %v10086_v38, 0.0 }
 0x1b1   : > { %v2026_v37 = vadd.f32 %v10178_v8, %v1891_v49  ;;  %v1892_v63 = vmul.f32 %v10172_v4, %v1640_v40  ;;  %8636 = vmatprep.mubr.msk.bf16.mxu1 %vm2402_vm2, %v2348_v52  ;;  %v9054_v52 = vld [vmem:[%s14601_s10 + $0x10] ss:$8 sps:$4 sm:$0xff]  }
 0x1b2   : > { %v2156_v48 = vmax.f32 %v2028_v10, 0.0  ;;  %v2029_v41 = vadd.f32 %v10178_v8, %v1894_v29  ;;  %8637 = vmatmul.mubr.msk.bf16.gmra.mrb[60].mxu1 %vm2402_vm2, %v2349_v56  ;;  %v9056_v56 = vld [vmem:[%s14601_s10 + $0x14] ss:$8 sps:$4 sm:$0xff]  }
 0x1b3   : > { %v2154_v14 = vmax.f32 %v2026_v37, 0.0  ;;  %v2027_v51 = vadd.f32 %v10178_v8, %v1892_v63  ;;  %v14922_v37 = vmax.f32 %v10090_v19, 0.0  ;;  %5155 = vmatprep.subr.bf16.mxu1 %v9056_v56  ;;  %v14923_v56 = vmax.f32 %v10107_v20, 0.0 }
 0x1b4   : > { %v10214_v22 = vmax.f32 %v14919_v21, %v2156_v48  ;;  %v2157_v45 = vmax.f32 %v2029_v41, 0.0  ;;  %5156 = vmatpush1.bf16.msra.mxu1 %v9054_v52  ;;  %v14925_v52 = vmax.f32 %v10111_v12, 0.0 }
 0x1b5   : > { %v10218_v61 = vmax.f32 %v14920_v54, %v2154_v14  ;;  %v2155_v40 = vmax.f32 %v2027_v51, 0.0  ;;  %v8510_v49 = vpop.f32.mrb[92].mxu0 }
 0x1b6   : > { %v10228_v30 = vmax.f32 %v14921_v36, %v2157_v45  ;;  %v2351_v10 = vpack.c.bf16 %v2157_v45, %v2156_v48  ;;  %v1897_v29 = vmul.f32 %v10172_v4, %v8510_v49  ;;  %v1653_v13 = vpop.f32.mrb[93].mxu0 }
 0x1b7   : > { %v10233_v63 = vmax.f32 %v14922_v37, %v2155_v40  ;;  %v2350_v41 = vpack.c.bf16 %v2155_v40, %v2154_v14  ;;  %v1895_v51 = vmul.f32 %v10172_v4, %v1653_v13  ;;  %v8511_v21 = vpop.f32.mrb[94].mxu0 }
 0x1b8   : > { %v2032_v54 = vadd.f32 %v10178_v8, %v1897_v29  ;;  %v1898_v27 = vmul.f32 %v10172_v4, %v8511_v21  ;;  %v1656_v38 = vpop.f32.mrb[95].mxu0 }
 0x1b9   : > { %v2030_v48 = vadd.f32 %v10178_v8, %v1895_v51  ;;  %v1896_v45 = vmul.f32 %v10172_v4, %v1656_v38  ;;  %8640 = vmatprep.mubr.msk.bf16.mxu1 %vm2402_vm2, %v2350_v41  ;;  %v14927_v41 = vmax.f32 %v10116_v55, 0.0  ;;  %v14929_v38 = vmax.f32 %v10120_v34, 0.0 }
 0x1ba   : > { %v2160_v19 = vmax.f32 %v2032_v54, 0.0  ;;  %v2033_v49 = vadd.f32 %v10178_v8, %v1898_v27  ;;  %8641 = vmatmul.mubr.msk.bf16.gmra.mrb[64].mxu1 %vm2402_vm2, %v2351_v10 }
 0x1bb   : > { %v2158_v14 = vmax.f32 %v2030_v48, 0.0  ;;  %v2031_v40 = vadd.f32 %v10178_v8, %v1896_v45 }
 0x1bc   : > { %v10246_v36 = vmax.f32 %v14923_v56, %v2160_v19  ;;  %v2161_v29 = vmax.f32 %v2033_v49, 0.0 }
 0x1bd   : > { %v10250_v13 = vmax.f32 %v14925_v52, %v2158_v14  ;;  %v2159_v37 = vmax.f32 %v2031_v40, 0.0  ;;  %v8514_v51 = vpop.f32.mrb[96].mxu0 }
 0x1be   : > { %14924 = vst [vmem:[#allocation21_spill] sm:$0xff] %v10246_v36  ;;  %v10254_v21 = vmax.f32 %v14927_v41, %v2161_v29  ;;  %v2353_v27 = vpack.c.bf16 %v2161_v29, %v2160_v19  ;;  %v1901_v10 = vmul.f32 %v10172_v4, %v8514_v51  ;;  %v1669_v54 = vpop.f32.mrb[97].mxu0 }
 0x1bf   : > { %14926 = vst [vmem:[#allocation22_spill] sm:$0xff] %v10250_v13  ;;  %v10259_v20 = vmax.f32 %v14929_v38, %v2159_v37  ;;  %v2352_v48 = vpack.c.bf16 %v2159_v37, %v2158_v14  ;;  %v1899_v45 = vmul.f32 %v10172_v4, %v1669_v54  ;;  %v8515_v12 = vpop.f32.mrb[98].mxu0 }
 0x1c0   : > { %14928 = vst [vmem:[#allocation23_spill] sm:$0xff] %v10254_v21  ;;  %v10263_v49 = vadd.f32 %v10178_v8, %v1901_v10  ;;  %v1902_v40 = vmul.f32 %v10172_v4, %v8515_v12  ;;  %v1672_v55 = vpop.f32.mrb[99].mxu0 }
 0x1c1   : > { %14930 = vst [vmem:[#allocation24_spill] sm:$0xff] %v10259_v20  ;;  %v10267_v56 = vadd.f32 %v10178_v8, %v1899_v45  ;;  %v1900_v19 = vmul.f32 %v10172_v4, %v1672_v55  ;;  %8644 = vmatprep.mubr.msk.bf16.mxu1 %vm2402_vm2, %v2352_v48 }
 0x1c2   : > { %v10272_v34 = vadd.f32 %v10178_v8, %v1902_v40  ;;  %8645 = vmatmul.mubr.msk.bf16.gmra.mrb[68].mxu1 %vm2402_vm2, %v2353_v27  ;;  %v14642_v29 = vmax.f32 %v10263_v49, 0.0 }
 0x1c3   : > { %v10276_v14 = vadd.f32 %v10178_v8, %v1900_v19  ;;  %v14641_v37 = vmax.f32 %v10267_v56, 0.0 }
 0x1c4   : > { %v14639_v52 = vmax.f32 %v10272_v34, 0.0 }
 0x1c5   : > { %v14640_v51 = vmax.f32 %v10276_v14, 0.0  ;;  %v8518_v41 = vpop.f32.mrb[100].mxu0 }
 0x1c6   : > { %v2355_v10 = vpack.c.bf16 %v14639_v52, %v14642_v29  ;;  %v1905_v54 = vmul.f32 %v10172_v4, %v8518_v41  ;;  %v1685_v27 = vpop.f32.mrb[101].mxu0 }
 0x1c7   : > { %v2354_v38 = vpack.c.bf16 %v14640_v51, %v14641_v37  ;;  %v1903_v48 = vmul.f32 %v10172_v4, %v1685_v27  ;;  %v8519_v45 = vpop.f32.mrb[102].mxu0 }
 0x1c8   : > { %v10293_v12 = vadd.f32 %v10178_v8, %v1905_v54  ;;  %v1906_v40 = vmul.f32 %v10172_v4, %v8519_v45  ;;  %v1688_v55 = vpop.f32.mrb[103].mxu0 }
 0x1c9   : > { %v10297_v19 = vadd.f32 %v10178_v8, %v1903_v48  ;;  %v1904_v41 = vmul.f32 %v10172_v4, %v1688_v55  ;;  %8648 = vmatprep.mubr.msk.bf16.mxu1 %vm2402_vm2, %v2354_v38 }
 0x1ca   : > { %v10302_v52 = vadd.f32 %v10178_v8, %v1906_v40  ;;  %8649 = vmatmul.mubr.msk.bf16.gmra.mrb[72].mxu1 %vm2402_vm2, %v2355_v10  ;;  %v14648_v54 = vmax.f32 %v10293_v12, 0.0 }
 0x1cb   : > { %v10306_v27 = vadd.f32 %v10178_v8, %v1904_v41  ;;  %v14647_v51 = vmax.f32 %v10297_v19, 0.0 }
 0x1cc   : > { %v14646_v45 = vmax.f32 %v10302_v52, 0.0 }
 0x1cd   : > { %v14645_v48 = vmax.f32 %v10306_v27, 0.0  ;;  %v8522_v37 = vpop.f32.mrb[104].mxu0 }
 0x1ce   : > { %v2357_v38 = vpack.c.bf16 %v14646_v45, %v14648_v54  ;;  %v1909_v40 = vmul.f32 %v10172_v4, %v8522_v37  ;;  %v1701_v10 = vpop.f32.mrb[105].mxu0 }
 0x1cf   : > { %v2356_v55 = vpack.c.bf16 %v14645_v48, %v14647_v51  ;;  %v1907_v41 = vmul.f32 %v10172_v4, %v1701_v10  ;;  %v8523_v29 = vpop.f32.mrb[106].mxu0  ;;  %v9057_v48 = vld [vmem:[%s14601_s10 + $0x20] ss:$8 sps:$4 sm:$0xff]   ;;  %v9059_v10 = vld [vmem:[%s14601_s10 + $0x24] ss:$8 sps:$4 sm:$0xff]  }
 0x1d0   : > { %v10323_v20 = vadd.f32 %v10178_v8, %v1909_v40  ;;  %v1910_v62 = vmul.f32 %v10172_v4, %v8523_v29  ;;  %v1704_v21 = vpop.f32.mrb[107].mxu0  ;;  %5157 = vmatprep.subr.bf16.mxu1 %v9059_v10 }
 0x1d1   : > { %v10327_v5 = vadd.f32 %v10178_v8, %v1907_v41  ;;  %v1908_v37 = vmul.f32 %v10172_v4, %v1704_v21  ;;  %8652 = vmatprep.mubr.msk.bf16.mxu1 %vm2402_vm2, %v2356_v55  ;;  %5158 = vmatpush1.bf16.msra.mxu1 %v9057_v48 }
 0x1d2   : > { %v10338_v40 = vadd.f32 %v10178_v8, %v1910_v62  ;;  %8653 = vmatmul.mubr.msk.bf16.gmra.mrb[76].mxu1 %vm2402_vm2, %v2357_v38  ;;  %v14654_v21 = vmax.f32 %v10323_v20, 0.0 }
 0x1d3   : > { %v10342_v29 = vadd.f32 %v10178_v8, %v1908_v37  ;;  %v14653_v41 = vmax.f32 %v10327_v5, 0.0 }
 0x1d4   : > { %v14651_v55 = vmax.f32 %v10338_v40, 0.0 }
 0x1d5   : > { %v14652_v45 = vmax.f32 %v10342_v29, 0.0  ;;  %v8526_v51 = vpop.f32.mrb[108].mxu0 }
 0x1d6   : > { %v2359_v62 = vpack.c.bf16 %v14651_v55, %v14654_v21  ;;  %v1913_v38 = vmul.f32 %v10172_v4, %v8526_v51  ;;  %v1717_v37 = vpop.f32.mrb[109].mxu0 }
 0x1d7   : > { %v2358_v10 = vpack.c.bf16 %v14652_v45, %v14653_v41  ;;  %v1911_v48 = vmul.f32 %v10172_v4, %v1717_v37  ;;  %v8527_v54 = vpop.f32.mrb[110].mxu0 }
 0x1d8   : > { %v10359_v43 = vadd.f32 %v10178_v8, %v1913_v38  ;;  %v1914_v13 = vmul.f32 %v10172_v4, %v8527_v54  ;;  %v1720_v36 = vpop.f32.mrb[111].mxu0 }
 0x1d9   : > { %v10363_v50 = vadd.f32 %v10178_v8, %v1911_v48  ;;  %v1912_v51 = vmul.f32 %v10172_v4, %v1720_v36  ;;  %8656 = vmatprep.mubr.msk.bf16.mxu1 %vm2402_vm2, %v2358_v10 }
 0x1da   : > { %14931 = vst [vmem:[#allocation25_spill] sm:$0xff] %v10359_v43  ;;  %v10368_v55 = vadd.f32 %v10178_v8, %v1914_v13  ;;  %8657 = vmatmul.mubr.msk.bf16.gmra.mrb[80].mxu1 %vm2402_vm2, %v2359_v62  ;;  %v14660_v38 = vmax.f32 %v10359_v43, 0.0 }
 0x1db   : > { %14932 = vst [vmem:[#allocation26_spill] sm:$0xff] %v10363_v50  ;;  %v10372_v37 = vadd.f32 %v10178_v8, %v1912_v51  ;;  %v14662_v45 = vmax.f32 %v10363_v50, 0.0 }
 0x1dc   : > { %14933 = vst [vmem:[#allocation27_spill] sm:$0xff] %v10368_v55  ;;  %v14659_v54 = vmax.f32 %v10368_v55, 0.0 }
 0x1dd   : > { %14934 = vst [vmem:[#allocation28_spill] sm:$0xff] %v10372_v37  ;;  %v14661_v48 = vmax.f32 %v10372_v37, 0.0  ;;  %v8530_v41 = vpop.f32.mrb[112].mxu0 }
 0x1de   : > { %v2361_v36 = vpack.c.bf16 %v14659_v54, %v14660_v38  ;;  %v1917_v13 = vmul.f32 %v10172_v4, %v8530_v41  ;;  %v1733_v62 = vpop.f32.mrb[113].mxu0 }
 0x1df   : > { %v2360_v10 = vpack.c.bf16 %v14661_v48, %v14662_v45  ;;  %v1915_v51 = vmul.f32 %v10172_v4, %v1733_v62  ;;  %v8531_v21 = vpop.f32.mrb[114].mxu0  ;;  %v14935_v45 = vmax.f32 %v10263_v49, 0.0  ;;  %v14938_v49 = vmax.f32 %v10276_v14, 0.0 }
 0x1e0   : > { %v2052_v46 = vadd.f32 %v10178_v8, %v1917_v13  ;;  %v1918_v11 = vmul.f32 %v10172_v4, %v8531_v21  ;;  %v1736_v3 = vpop.f32.mrb[115].mxu0  ;;  %v14936_v21 = vmax.f32 %v10267_v56, 0.0 }
 0x1e1   : > { %v2050_v43 = vadd.f32 %v10178_v8, %v1915_v51  ;;  %v1916_v54 = vmul.f32 %v10172_v4, %v1736_v3  ;;  %8660 = vmatprep.mubr.msk.bf16.mxu1 %vm2402_vm2, %v2360_v10 }
 0x1e2   : > { %v2180_v41 = vmax.f32 %v2052_v46, 0.0  ;;  %v2053_v38 = vadd.f32 %v10178_v8, %v1918_v11  ;;  %8661 = vmatmul.mubr.msk.bf16.gmra.mrb[84].mxu1 %vm2402_vm2, %v2361_v36  ;;  %v14937_v46 = vmax.f32 %v10272_v34, 0.0 }
 0x1e3   : > { %v2178_v48 = vmax.f32 %v2050_v43, 0.0  ;;  %v2051_v62 = vadd.f32 %v10178_v8, %v1916_v54 }
 0x1e4   : > { %v2244_v13 = vmax.f32 %v14935_v45, %v2180_v41  ;;  %v2181_v37 = vmax.f32 %v2053_v38, 0.0 }
 0x1e5   : > { %v2242_v55 = vmax.f32 %v14936_v21, %v2178_v48  ;;  %v2179_v51 = vmax.f32 %v2051_v62, 0.0  ;;  %v8534_v50 = vpop.f32.mrb[116].mxu0  ;;  %v14939_v62 = vmax.f32 %v9628_v60, %v9881_v47  ;;  %v14943_v47 = vmax.f32 %v9636_v7, %v9891_v57  ;;  %v9062_v7 = vld [vmem:[%s14601_s10 + $0x34] ss:$8 sps:$4 sm:$0xff]  }
 0x1e6   : > { %v2276_v3 = vmax.f32 %v10152_v16, %v2244_v13  ;;  %v2245_v10 = vmax.f32 %v14937_v46, %v2181_v37  ;;  %v2363_v11 = vpack.c.bf16 %v2181_v37, %v2180_v41  ;;  %v1921_v36 = vmul.f32 %v10172_v4, %v8534_v50  ;;  %v1749_v43 = vpop.f32.mrb[117].mxu0  ;;  %v9060_v46 = vld [vmem:[%s14601_s10 + $0x30] ss:$8 sps:$4 sm:$0xff]   ;;  %5159 = vmatprep.subr.bf16.mxu1 %v9062_v7 }
 0x1e7   : > { %v2274_v54 = vmax.f32 %v10156_v53, %v2242_v55  ;;  %v2243_v45 = vmax.f32 %v14938_v49, %v2179_v51  ;;  %v2362_v38 = vpack.c.bf16 %v2179_v51, %v2178_v48  ;;  %v1919_v56 = vmul.f32 %v10172_v4, %v1749_v43  ;;  %v8535_v21 = vpop.f32.mrb[118].mxu0  ;;  %5160 = vmatpush1.bf16.msra.mxu1 %v9060_v46 }
 0x1e8   : > { %v10411_v16 = vmax.f32 %v14939_v62, %v2276_v3  ;;  %v2277_v34 = vmax.f32 %v10160_v23, %v2245_v10  ;;  %v2056_v37 = vadd.f32 %v10178_v8, %v1921_v36  ;;  %v1922_v50 = vmul.f32 %v10172_v4, %v8535_v21  ;;  %v1752_v41 = vpop.f32.mrb[119].mxu0 }
 0x1e9   : > { %v14941_v53 = vmax.f32 %v9632_v1, %v9885_v31  ;;  %v2275_v55 = vmax.f32 %v10165_v35, %v2243_v45  ;;  %v2054_v48 = vadd.f32 %v10178_v8, %v1919_v56  ;;  %v1920_v60 = vmul.f32 %v10172_v4, %v1752_v41  ;;  %8664 = vmatprep.mubr.msk.bf16.mxu1 %vm2402_vm2, %v2362_v38 }
 0x1ea   : > { %14940 = vst [vmem:[#allocation29_spill] sm:$0xff] %v10411_v16  ;;  %v10428_v23 = vmax.f32 %v14943_v47, %v2277_v34  ;;  %v2184_v13 = vmax.f32 %v2056_v37, 0.0  ;;  %v2057_v51 = vadd.f32 %v10178_v8, %v1922_v50  ;;  %8665 = vmatmul.mubr.msk.bf16.gmra.mrb[88].mxu1 %vm2402_vm2, %v2363_v11  ;;  %v14945_v1 = vmax.f32 %v9643_v6, %v9898_v17 }
 0x1eb   : > { %v10419_v14 = vmax.f32 %v14941_v53, %v2274_v54  ;;  %v2182_v35 = vmax.f32 %v2054_v48, 0.0  ;;  %v2055_v3 = vadd.f32 %v10178_v8, %v1920_v60  ;;  %v14947_v10 = vmax.f32 %v10293_v12, 0.0 }
 0x1ec   : > { %14944 = vst [vmem:[#allocation31_spill] sm:$0xff] %v10428_v23  ;;  %v10435_v31 = vmax.f32 %v14945_v1, %v2275_v55  ;;  %v2185_v6 = vmax.f32 %v2057_v51, 0.0  ;;  %v14948_v17 = vmax.f32 %v10297_v19, 0.0  ;;  %v14949_v38 = vmax.f32 %v10302_v52, 0.0 }
 0x1ed   : > { %14942 = vst [vmem:[#allocation30_spill] sm:$0xff] %v10419_v14  ;;  %v2248_v11 = vmax.f32 %v14947_v10, %v2184_v13  ;;  %v2183_v43 = vmax.f32 %v2055_v3, 0.0  ;;  %v8538_v54 = vpop.f32.mrb[120].mxu0  ;;  %v14950_v19 = vmax.f32 %v10306_v27, 0.0  ;;  %v14960_v10 = vmax.f32 %v10327_v5, 0.0 }
 0x1ee   : > { %14946 = vst [vmem:[#allocation32_spill] sm:$0xff] %v10435_v31  ;;  %v2246_v36 = vmax.f32 %v14948_v17, %v2182_v35  ;;  %v2249_v56 = vmax.f32 %v14949_v38, %v2185_v6  ;;  %v2365_v21 = vpack.c.bf16 %v2185_v6, %v2184_v13  ;;  %v1925_v62 = vmul.f32 %v10172_v4, %v8538_v54  ;;  %v1765_v12 = vpop.f32.mrb[121].mxu0 }
 0x1ef   : > { %v2280_v45 = vmax.f32 %v10188_v15, %v2248_v11  ;;  %v2247_v37 = vmax.f32 %v14950_v19, %v2183_v43  ;;  %v2364_v50 = vpack.c.bf16 %v2183_v43, %v2182_v35  ;;  %v1923_v41 = vmul.f32 %v10172_v4, %v1765_v12  ;;  %v8539_v53 = vpop.f32.mrb[122].mxu0 }
 0x1f0   : > { %v2278_v34 = vmax.f32 %v10192_v33, %v2246_v36  ;;  %v14951_v15 = vmax.f32 %v9660_v42, %v9915_v58  ;;  %v2281_v52 = vmax.f32 %v10196_v2, %v2249_v56  ;;  %v2060_v48 = vadd.f32 %v10178_v8, %v1925_v62  ;;  %v1768_v47 = vpop.f32.mrb[123].mxu0 }
 0x1f1   : > { %v1926_v60 = vmul.f32 %v10172_v4, %v8539_v53  ;;  %v14953_v33 = vmax.f32 %v9664_v44, %v9919_v32  ;;  %v2279_v13 = vmax.f32 %v10201_v0, %v2247_v37  ;;  %v2058_v51 = vadd.f32 %v10178_v8, %v1923_v41  ;;  %8668 = vmatprep.mubr.msk.bf16.mxu1 %vm2402_vm2, %v2364_v50 }
 0x1f2   : > { %v10463_v55 = vmax.f32 %v14951_v15, %v2280_v45  ;;  %v1924_v42 = vmul.f32 %v10172_v4, %v1768_v47  ;;  %v14955_v58 = vmax.f32 %v9668_v18, %v9925_v59  ;;  %v2188_v1 = vmax.f32 %v2060_v48, 0.0  ;;  %8669 = vmatmul.mubr.msk.bf16.gmra.mrb[92].mxu1 %vm2402_vm2, %v2365_v21 }
 0x1f3   : > { %v10471_v27 = vmax.f32 %v14953_v33, %v2278_v34  ;;  %v2061_v35 = vadd.f32 %v10178_v8, %v1926_v60  ;;  %v14957_v44 = vmax.f32 %v9675_v26, %v9932_v28  ;;  %v2186_v0 = vmax.f32 %v2058_v51, 0.0 }
 0x1f4   : > { %14952 = vst [vmem:[#allocation33_spill] sm:$0xff] %v10463_v55  ;;  %v10480_v2 = vmax.f32 %v14955_v58, %v2281_v52  ;;  %v2059_v3 = vadd.f32 %v10178_v8, %v1924_v42  ;;  %v14959_v18 = vmax.f32 %v10323_v20, 0.0  ;;  %v14961_v36 = vmax.f32 %v10338_v40, 0.0  ;;  %v14976_v42 = vld [vmem:[#allocation25_spill] sm:$0xff] }
 0x1f5   : > { %14954 = vst [vmem:[#allocation34_spill] sm:$0xff] %v10471_v27  ;;  %v10487_v32 = vmax.f32 %v14957_v44, %v2279_v13  ;;  %v2189_v7 = vmax.f32 %v2061_v35, 0.0  ;;  %v2250_v11 = vmax.f32 %v14960_v10, %v2186_v0  ;;  %v8542_v17 = vpop.f32.mrb[124].mxu0  ;;  %v14962_v56 = vmax.f32 %v10342_v29, 0.0  ;;  %v10539_v13 = vld [vmem:[%s14975_s5] ss:$0 sm:$0xff] }
 0x1f6   : > { %14956 = vst [vmem:[#allocation35_spill] sm:$0xff] %v10480_v2  ;;  %v2252_v59 = vmax.f32 %v14959_v18, %v2188_v1  ;;  %v2187_v6 = vmax.f32 %v2059_v3, 0.0  ;;  %v1929_v45 = vmul.f32 %v10172_v4, %v8542_v17  ;;  %v1781_v38 = vpop.f32.mrb[125].mxu0  ;;  %v14963_v34 = vmax.f32 %v9692_v24, %v9952_v9  ;;  %v14967_v9 = vld [vmem:[#allocation9_spill] sm:$0xff]  ;;  %v14978_v44 = vld [vmem:[#allocation26_spill] sm:$0xff] }
 0x1f7   : > { %14958 = vst [vmem:[#allocation36_spill] sm:$0xff] %v10487_v32  ;;  %v2253_v43 = vmax.f32 %v14961_v36, %v2189_v7  ;;  %v2367_v54 = vpack.c.bf16 %v2189_v7, %v2188_v1  ;;  %v2282_v20 = vmax.f32 %v10218_v61, %v2250_v11  ;;  %v1927_v62 = vmul.f32 %v10172_v4, %v1781_v38  ;;  %v8543_v12 = vpop.f32.mrb[126].mxu0  ;;  %v14980_v10 = vld [vmem:[#allocation21_spill] sm:$0xff] }
 0x1f8   : > { %v2284_v28 = vmax.f32 %v10214_v22, %v2252_v59  ;;  %v2251_v5 = vmax.f32 %v14962_v56, %v2187_v6  ;;  %v2366_v21 = vpack.c.bf16 %v2187_v6, %v2186_v0  ;;  %v2064_v19 = vadd.f32 %v10178_v8, %v1929_v45  ;;  %v1784_v50 = vpop.f32.mrb[127].mxu0  ;;  %v14981_v6 = vld [vmem:[#allocation27_spill] sm:$0xff]  ;;  %v14983_v45 = vld [vmem:[#allocation22_spill] sm:$0xff] }
 0x1f9   : > { %v2285_v40 = vmax.f32 %v10228_v30, %v2253_v43  ;;  %v1930_v37 = vmul.f32 %v10172_v4, %v8543_v12  ;;  %v14965_v61 = vmax.f32 %v9696_v25, %v9956_v39  ;;  %v2062_v53 = vadd.f32 %v10178_v8, %v1927_v62  ;;  %v14968_v30 = vld [vmem:[#allocation15_spill] sm:$0xff]  ;;  %v14971_v25 = vld [vmem:[#allocation10_spill] sm:$0xff]  ;;  %v14972_v39 = vld [vmem:[#allocation16_spill] sm:$0xff] }
 0x1fa   : > { %v10509_v22 = vmax.f32 %v14963_v34, %v2284_v28  ;;  %v2283_v41 = vmax.f32 %v10233_v63, %v2251_v5  ;;  %v1928_v24 = vmul.f32 %v10172_v4, %v1784_v50  ;;  %8672 = vmatprep.mubr.msk.bf16.mxu1 %vm2402_vm2, %v2366_v21  ;;  %v14969_v15 = vmax.f32 %v14967_v9, %v14968_v30  ;;  %v14986_v34 = vld [vmem:[#allocation11_spill] sm:$0xff]  ;;  %v14991_v9 = vld [vmem:[#allocation12_spill] sm:$0xff]  ;;  %v14992_v30 = vld [vmem:[#allocation18_spill] sm:$0xff] }
 0x1fb   : > { %v10517_v29 = vmax.f32 %v14965_v61, %v2282_v20  ;;  %v2192_v48 = vmax.f32 %v2064_v19, 0.0  ;;  %v2065_v60 = vadd.f32 %v10178_v8, %v1930_v37  ;;  %8673 = vmatmul.mubr.msk.bf16.gmra.mrb[96].mxu1 %vm2402_vm2, %v2367_v54  ;;  %v14973_v47 = vmax.f32 %v14971_v25, %v14972_v39  ;;  %v14984_v20 = vld [vmem:[#allocation28_spill] sm:$0xff]  ;;  %v14990_v50 = vld [vmem:[#allocation23_spill] sm:$0xff] }
 0x1fc   : > { %14964 = vst [vmem:[#allocation37_spill] sm:$0xff] %v10509_v22  ;;  %v10526_v52 = vmax.f32 %v14969_v15, %v2285_v40  ;;  %v2190_v33 = vmax.f32 %v2062_v53, 0.0  ;;  %v2063_v4 = vadd.f32 %v10178_v8, %v1928_v24  ;;  %v14977_v58 = vmax.f32 %v14976_v42, 0.0  ;;  %v10550_v8 = vld [vmem:[%s14597_s6] ss:$0 sm:$0xff] }
 0x1fd   : > { %14966 = vst [vmem:[#allocation38_spill] sm:$0xff] %v10517_v29  ;;  %v10533_v63 = vmax.f32 %v14973_v47, %v2283_v41  ;;  %v2193_v35 = vmax.f32 %v2065_v60, 0.0  ;;  %v14979_v0 = vmax.f32 %v14978_v44, 0.0  ;;  %v8554_v59 = vpop.f32.mrb[128].mxu0  ;;  %v14982_v17 = vmax.f32 %v14981_v6, 0.0  ;;  %v14987_v40 = vld [vmem:[#allocation17_spill] sm:$0xff] }
 0x1fe   : > { %14970 = vst [vmem:[#allocation9_spill] sm:$0xff] %v10526_v52  ;;  %v2256_v1 = vmax.f32 %v14977_v58, %v2192_v48  ;;  %v2191_v18 = vmax.f32 %v2063_v4, 0.0  ;;  %v3149_v43 = vmul.f32 %v8554_v59, %v10539_v13  ;;  %v2629_v54 = vpop.f32.mrb[129].mxu0  ;;  %v14985_v56 = vmax.f32 %v14984_v20, 0.0  ;;  %v14995_v60 = vld [vmem:[#allocation24_spill] sm:$0xff]  ;;  %v14997_v4 = vld [vmem:[#allocation19_spill] sm:$0xff] }
 0x1ff   : > { %14974 = vst [vmem:[#allocation15_spill] sm:$0xff] %v10533_v63  ;;  %v2254_v3 = vmax.f32 %v14979_v0, %v2190_v33  ;;  %v2257_v28 = vmax.f32 %v14982_v17, %v2193_v35  ;;  %v2369_v36 = vpack.c.bf16 %v2193_v35, %v2192_v48  ;;  %v3147_v62 = vmul.f32 %v10539_v13, %v2629_v54  ;;  %v8555_v12 = vpop.f32.mrb[130].mxu0  ;;  %v15000_v35 = vld [vmem:[#allocation14_spill] sm:$0xff]  ;;  %v15001_v44 = vld [vmem:[#allocation20_spill] sm:$0xff] }
 0x200   : > { %v2288_v11 = vmax.f32 %v14980_v10, %v2256_v1  ;;  %v2255_v5 = vmax.f32 %v14985_v56, %v2191_v18  ;;  %v2368_v21 = vpack.c.bf16 %v2191_v18, %v2190_v33  ;;  %v14988_v19 = vmax.f32 %v14986_v34, %v14987_v40  ;;  %v2632_v24 = vpop.f32.mrb[131].mxu0  ;;  %v14996_v33 = vld [vmem:[#allocation13_spill] sm:$0xff] }
 0x201   : > { %v2286_v38 = vmax.f32 %v14983_v45, %v2254_v3  ;;  %v2289_v61 = vmax.f32 %v14990_v50, %v2257_v28  ;;  %v10569_v41 = vadd.f32 %v10550_v8, %v3149_v43  ;;  %v3150_v53 = vmul.f32 %v8555_v12, %v10539_v13 }
 0x202   : > { %v10565_v37 = vmax.f32 %v14988_v19, %v2288_v11  ;;  %v14993_v15 = vmax.f32 %v14991_v9, %v14992_v30  ;;  %v2287_v25 = vmax.f32 %v14995_v60, %v2255_v5  ;;  %v10579_v39 = vadd.f32 %v10550_v8, %v3147_v62  ;;  %8676 = vmatprep.mubr.msk.bf16.mxu1 %vm2402_vm2, %v2368_v21  ;;  %v9063_v5 = vld [vmem:[%s14601_s10 + $0x40] ss:$8 sps:$4 sm:$0xff]   ;;  %v9065_v21 = vld [vmem:[%s14601_s10 + $0x44] ss:$8 sps:$4 sm:$0xff]  }
 0x203   : > { %v3148_v47 = vmul.f32 %v10539_v13, %v2632_v24  ;;  %v14998_v42 = vmax.f32 %v14996_v33, %v14997_v4  ;;  %v10589_v1 = vadd.f32 %v10550_v8, %v3150_v53  ;;  %8677 = vmatmul.mubr.msk.bf16.gmra.mrb[100].mxu1 %vm2402_vm2, %v2369_v36  ;;  %v15002_v0 = vmax.f32 %v15000_v35, %v15001_v44 }
 0x204   : > { %14989 = vst [vmem:[#allocation10_spill] sm:$0xff] %v10565_v37  ;;  %v10575_v48 = vmax.f32 %v14993_v15, %v2286_v38  ;;  %v3412_v10 = vmax.f32 %v10569_v41, 0.0  ;;  %v3410_v6 = vmax.f32 %v10579_v39, 0.0  ;;  %5161 = vmatprep.subr.bf16.mxu1 %v9065_v21 }
 0x205   : > { %v10586_v58 = vmax.f32 %v14998_v42, %v2289_v61  ;;  %v10595_v3 = vmax.f32 %v15002_v0, %v2287_v25  ;;  %v10598_v18 = vadd.f32 %v10550_v8, %v3148_v47  ;;  %v3413_v11 = vmax.f32 %v10589_v1, 0.0  ;;  %v8558_v28 = vpop.f32.mrb[132].mxu0  ;;  %5162 = vmatpush1.bf16.msra.mxu1 %v9063_v5 }
 0x206   : > { %14994 = vst [vmem:[#allocation16_spill] sm:$0xff] %v10575_v48  ;;  %v3153_v54 = vmul.f32 %v8558_v28, %v10539_v13  ;;  %v2645_v45 = vpop.f32.mrb[133].mxu0 }
 0x207   : > { %14999 = vst [vmem:[#allocation25_spill] sm:$0xff] %v10586_v58  ;;  %15003 = vst [vmem:[#allocation26_spill] sm:$0xff] %v10595_v3  ;;  %v14670_v17 = vmax.f32 %v10598_v18, 0.0  ;;  %v3651_v43 = vpack.c.bf16 %v3413_v11, %v3412_v10  ;;  %v3151_v20 = vmul.f32 %v10539_v13, %v2645_v45  ;;  %v8559_v56 = vpop.f32.mrb[134].mxu0 }
 0x208   : > { %v10625_v62 = vadd.f32 %v10550_v8, %v3153_v54  ;;  %v3154_v12 = vmul.f32 %v8559_v56, %v10539_v13  ;;  %v2648_v34 = vpop.f32.mrb[135].mxu0 }
 0x209   : > { %v3650_v38 = vpack.c.bf16 %v14670_v17, %v3410_v6  ;;  %v10629_v40 = vadd.f32 %v10550_v8, %v3151_v20  ;;  %v3152_v19 = vmul.f32 %v10539_v13, %v2648_v34 }
 0x20a   : > { %v10634_v50 = vadd.f32 %v10550_v8, %v3154_v12  ;;  %v14669_v53 = vmax.f32 %v10625_v62, 0.0 }
 0x20b   : > { %8688 = vmatprep.mubr.msk.bf16.mxu0 %vm2402_vm2, %v3650_v38  ;;  %v10638_v61 = vadd.f32 %v10550_v8, %v3152_v19  ;;  %v14668_v9 = vmax.f32 %v10629_v40, 0.0 }
 0x20c   : > { %8689 = vmatmul.mubr.msk.bf16.vlgmr.msra.gmra.mrb[152].mxu0 %vm2402_vm2, %v3651_v43  ;;  %v14667_v24 = vmax.f32 %v10634_v50, 0.0 }
 0x20d   : > { %v14666_v30 = vmax.f32 %v10638_v61, 0.0  ;;  %v8562_v15 = vpop.f32.mrb[136].mxu0  ;;  %v8578_v60 = vpop.f32.mrb[0].mxu1 }
 0x20e   : > { %v3653_v25 = vpack.c.bf16 %v14667_v24, %v14669_v53  ;;  %v3157_v47 = vmul.f32 %v8562_v15, %v10539_v13  ;;  %v3173_v33 = vmul.f32 %v8578_v60, %v10539_v13  ;;  %v2661_v4 = vpop.f32.mrb[137].mxu0  ;;  %v2725_v42 = vpop.f32.mrb[1].mxu1 }
 0x20f   : > { %v3652_v35 = vpack.c.bf16 %v14666_v30, %v14668_v9  ;;  %v3155_v44 = vmul.f32 %v10539_v13, %v2661_v4  ;;  %v3171_v0 = vmul.f32 %v10539_v13, %v2725_v42  ;;  %v8563_v28 = vpop.f32.mrb[138].mxu0  ;;  %v8579_v43 = vpop.f32.mrb[2].mxu1 }
 0x210   : > { %v3292_v54 = vadd.f32 %v10550_v8, %v3157_v47  ;;  %v10658_v45 = vadd.f32 %v10550_v8, %v3173_v33  ;;  %v3158_v38 = vmul.f32 %v8563_v28, %v10539_v13  ;;  %v3174_v20 = vmul.f32 %v8579_v43, %v10539_v13  ;;  %v2664_v56 = vpop.f32.mrb[139].mxu0  ;;  %v2728_v5 = vpop.f32.mrb[3].mxu1 }
 0x211   : > { %v3290_v21 = vadd.f32 %v10550_v8, %v3155_v44  ;;  %v3306_v12 = vadd.f32 %v10550_v8, %v3171_v0  ;;  %v3156_v34 = vmul.f32 %v10539_v13, %v2664_v56  ;;  %v3172_v19 = vmul.f32 %v10539_v13, %v2728_v5  ;;  %8692 = vmatprep.mubr.msk.bf16.mxu0 %vm2402_vm2, %v3652_v35 }
 0x212   : > { %v3420_v15 = vmax.f32 %v3292_v54, 0.0  ;;  %v3436_v60 = vmax.f32 %v10658_v45, 0.0  ;;  %v3293_v47 = vadd.f32 %v10550_v8, %v3158_v38  ;;  %v3309_v33 = vadd.f32 %v10550_v8, %v3174_v20 }
 0x213   : > { %v3418_v4 = vmax.f32 %v3290_v21, 0.0  ;;  %v3434_v42 = vmax.f32 %v3306_v12, 0.0  ;;  %v3291_v44 = vadd.f32 %v10550_v8, %v3156_v34  ;;  %v3307_v0 = vadd.f32 %v10550_v8, %v3172_v19 }
 0x214   : > { %8693 = vmatmul.mubr.msk.bf16.gmra.mrb[156].mxu0 %vm2402_vm2, %v3653_v25  ;;  %v10673_v28 = vmax.f32 %v3420_v15, %v3436_v60  ;;  %v3421_v43 = vmax.f32 %v3293_v47, 0.0  ;;  %v3437_v56 = vmax.f32 %v3309_v33, 0.0 }
 0x215   : > { %v10675_v35 = vmax.f32 %v3418_v4, %v3434_v42  ;;  %v3419_v54 = vmax.f32 %v3291_v44, 0.0  ;;  %v3435_v45 = vmax.f32 %v3307_v0, 0.0  ;;  %v8566_v5 = vpop.f32.mrb[140].mxu0  ;;  %v8582_v38 = vpop.f32.mrb[4].mxu1 }
 0x216   : > { %v3655_v59 = vpack.c.bf16 %v3421_v43, %v3420_v15  ;;  %v10677_v20 = vmax.f32 %v3421_v43, %v3437_v56  ;;  %v3161_v25 = vmul.f32 %v8566_v5, %v10539_v13  ;;  %v3177_v21 = vmul.f32 %v8582_v38, %v10539_v13  ;;  %v2677_v12 = vpop.f32.mrb[141].mxu0  ;;  %v2741_v34 = vpop.f32.mrb[5].mxu1 }
 0x217   : > { %15004 = vst [vmem:[#allocation21_spill] sm:$0xff] %v10675_v35  ;;  %v3654_v19 = vpack.c.bf16 %v3419_v54, %v3418_v4  ;;  %v10681_v36 = vmax.f32 %v3419_v54, %v3435_v45  ;;  %v3159_v47 = vmul.f32 %v10539_v13, %v2677_v12  ;;  %v3175_v33 = vmul.f32 %v10539_v13, %v2741_v34  ;;  %v8567_v44 = vpop.f32.mrb[142].mxu0  ;;  %v8583_v0 = vpop.f32.mrb[6].mxu1 }
 0x218   : > { %15005 = vst [vmem:[#allocation27_spill] sm:$0xff] %v10677_v20  ;;  %v3296_v51 = vadd.f32 %v10550_v8, %v3161_v25  ;;  %v10687_v15 = vadd.f32 %v10550_v8, %v3177_v21  ;;  %v3162_v43 = vmul.f32 %v8567_v44, %v10539_v13  ;;  %v3178_v5 = vmul.f32 %v8583_v0, %v10539_v13  ;;  %v2680_v38 = vpop.f32.mrb[143].mxu0  ;;  %v2744_v7 = vpop.f32.mrb[7].mxu1 }
 0x219   : > { %15006 = vst [vmem:[#allocation22_spill] sm:$0xff] %v10681_v36  ;;  %v3294_v4 = vadd.f32 %v10550_v8, %v3159_v47  ;;  %v10693_v54 = vadd.f32 %v10550_v8, %v3175_v33  ;;  %v3160_v12 = vmul.f32 %v10539_v13, %v2680_v38  ;;  %v3176_v34 = vmul.f32 %v10539_v13, %v2744_v7 }
 0x21a   : > { %8696 = vmatprep.mubr.msk.bf16.mxu0 %vm2402_vm2, %v3654_v19  ;;  %v3424_v25 = vmax.f32 %v3296_v51, 0.0  ;;  %v3440_v21 = vmax.f32 %v10687_v15, 0.0  ;;  %v3297_v44 = vadd.f32 %v10550_v8, %v3162_v43  ;;  %v3313_v0 = vadd.f32 %v10550_v8, %v3178_v5 }
 0x21b   : > { %v3422_v46 = vmax.f32 %v3294_v4, 0.0  ;;  %v3438_v47 = vmax.f32 %v10693_v54, 0.0  ;;  %v3295_v33 = vadd.f32 %v10550_v8, %v3160_v12  ;;  %v3311_v38 = vadd.f32 %v10550_v8, %v3176_v34 }
 0x21c   : > { %8697 = vmatmul.mubr.msk.bf16.gmra.mrb[160].mxu0 %vm2402_vm2, %v3655_v59  ;;  %v10707_v7 = vmax.f32 %v3424_v25, %v3440_v21  ;;  %v3425_v51 = vmax.f32 %v3297_v44, 0.0  ;;  %v3441_v19 = vmax.f32 %v3313_v0, 0.0  ;;  %v10709_v26 = vpack.c.bf16 %v3435_v45, %v3434_v42 }
 0x21d   : > { %v10711_v43 = vmax.f32 %v3422_v46, %v3438_v47  ;;  %v3423_v5 = vmax.f32 %v3295_v33, 0.0  ;;  %v3439_v57 = vmax.f32 %v3311_v38, 0.0  ;;  %v8570_v59 = vpop.f32.mrb[144].mxu0  ;;  %v8586_v4 = vpop.f32.mrb[8].mxu1  ;;  %v10713_v49 = vpack.c.bf16 %v3437_v56, %v3436_v60  ;;  %v9066_v60 = vld [vmem:[%s14601_s10 + $0x50] ss:$8 sps:$4 sm:$0xff]  }
 0x21e   : > { %15007 = vst [vmem:[#allocation28_spill] sm:$0xff] %v10707_v7  ;;  %v3657_v54 = vpack.c.bf16 %v3425_v51, %v3424_v25  ;;  %v10715_v12 = vmax.f32 %v3425_v51, %v3441_v19  ;;  %v3165_v34 = vmul.f32 %v8570_v59, %v10539_v13  ;;  %v3181_v30 = vmul.f32 %v8586_v4, %v10539_v13  ;;  %v2693_v24 = vpop.f32.mrb[145].mxu0  ;;  %v2757_v44 = vpop.f32.mrb[9].mxu1  ;;  %v9068_v56 = vld [vmem:[%s14601_s10 + $0x54] ss:$8 sps:$4 sm:$0xff]  }
 0x21f   : > { %15008 = vst [vmem:[#allocation11_spill] sm:$0xff] %v10711_v43  ;;  %v3656_v0 = vpack.c.bf16 %v3423_v5, %v3422_v46  ;;  %v10719_v42 = vmax.f32 %v3423_v5, %v3439_v57  ;;  %v3163_v45 = vmul.f32 %v10539_v13, %v2693_v24  ;;  %v3179_v33 = vmul.f32 %v10539_v13, %v2757_v44  ;;  %v8571_v38 = vpop.f32.mrb[146].mxu0  ;;  %v8587_v9 = vpop.f32.mrb[10].mxu1 }
 0x220   : > { %15009 = vst [vmem:[#allocation17_spill] sm:$0xff] %v10715_v12  ;;  %v3300_v25 = vadd.f32 %v10550_v8, %v3165_v34  ;;  %v10731_v46 = vadd.f32 %v10550_v8, %v3181_v30  ;;  %v3166_v51 = vmul.f32 %v8571_v38, %v10539_v13  ;;  %v3182_v24 = vmul.f32 %v8587_v9, %v10539_v13  ;;  %v2696_v5 = vpop.f32.mrb[147].mxu0  ;;  %v2760_v59 = vpop.f32.mrb[11].mxu1 }
 0x221   : > { %15010 = vst [vmem:[#allocation23_spill] sm:$0xff] %v10719_v42  ;;  %v3298_v4 = vadd.f32 %v10550_v8, %v3163_v45  ;;  %v10737_v44 = vadd.f32 %v10550_v8, %v3179_v33  ;;  %v3164_v53 = vmul.f32 %v10539_v13, %v2696_v5  ;;  %v3180_v17 = vmul.f32 %v10539_v13, %v2760_v59 }
 0x222   : > { %8700 = vmatprep.mubr.msk.bf16.mxu0 %vm2402_vm2, %v3656_v0  ;;  %v3428_v34 = vmax.f32 %v3300_v25, 0.0  ;;  %v14674_v30 = vmax.f32 %v10731_v46, 0.0  ;;  %v3301_v38 = vadd.f32 %v10550_v8, %v3166_v51  ;;  %v10745_v9 = vadd.f32 %v10550_v8, %v3182_v24  ;;  %5163 = vmatprep.subr.bf16.mxu1 %v9068_v56 }
 0x223   : > { %v3426_v45 = vmax.f32 %v3298_v4, 0.0  ;;  %v14672_v33 = vmax.f32 %v10737_v44, 0.0  ;;  %v3299_v5 = vadd.f32 %v10550_v8, %v3164_v53  ;;  %v10751_v59 = vadd.f32 %v10550_v8, %v3180_v17  ;;  %5164 = vmatpush1.bf16.msra.mxu1 %v9066_v60 }
 0x224   : > { %8701 = vmatmul.mubr.msk.bf16.gmra.mrb[164].mxu0 %vm2402_vm2, %v3657_v54  ;;  %v10755_v0 = vmax.f32 %v3412_v10, %v3428_v34  ;;  %v3429_v25 = vmax.f32 %v3301_v38, 0.0  ;;  %v10758_v24 = vpack.c.bf16 %v3439_v57, %v3438_v47  ;;  %v10767_v60 = vpack.c.bf16 %v3441_v19, %v3440_v21 }
 0x225   : > { %v10762_v54 = vmax.f32 %v3410_v6, %v3426_v45  ;;  %v3427_v56 = vmax.f32 %v3299_v5, 0.0  ;;  %v14671_v53 = vmax.f32 %v10751_v59, 0.0  ;;  %v8574_v4 = vpop.f32.mrb[148].mxu0  ;;  %v8590_v17 = vpop.f32.mrb[12].mxu1  ;;  %v15011_v38 = vmax.f32 %v10598_v18, 0.0 }
 0x226   : > { %v10771_v41 = vmax.f32 %v3413_v11, %v3429_v25  ;;  %v3659_v10 = vpack.c.bf16 %v3429_v25, %v3428_v34  ;;  %v3169_v57 = vmul.f32 %v8574_v4, %v10539_v13  ;;  %v3185_v39 = vmul.f32 %v8590_v17, %v10539_v13  ;;  %v2709_v6 = vpop.f32.mrb[149].mxu0  ;;  %v2773_v47 = vpop.f32.mrb[13].mxu1 }
 0x227   : > { %v10777_v5 = vmax.f32 %v15011_v38, %v3427_v56  ;;  %v3658_v51 = vpack.c.bf16 %v3427_v56, %v3426_v45  ;;  %v3167_v15 = vmul.f32 %v10539_v13, %v2709_v6  ;;  %v3183_v21 = vmul.f32 %v10539_v13, %v2773_v47  ;;  %v8575_v19 = vpop.f32.mrb[150].mxu0  ;;  %v8591_v1 = vpop.f32.mrb[14].mxu1 }
 0x228   : > { %v3304_v11 = vadd.f32 %v10550_v8, %v3169_v57  ;;  %v10783_v34 = vadd.f32 %v10550_v8, %v3185_v39  ;;  %v3170_v25 = vmul.f32 %v8575_v19, %v10539_v13  ;;  %v3186_v4 = vmul.f32 %v8591_v1, %v10539_v13  ;;  %v2712_v17 = vpop.f32.mrb[151].mxu0  ;;  %v2776_v18 = vpop.f32.mrb[15].mxu1 }
 0x229   : > { %v3302_v38 = vadd.f32 %v10550_v8, %v3167_v15  ;;  %v10789_v45 = vadd.f32 %v10550_v8, %v3183_v21  ;;  %v3168_v56 = vmul.f32 %v10539_v13, %v2712_v17  ;;  %v3184_v6 = vmul.f32 %v10539_v13, %v2776_v18  ;;  %8704 = vmatprep.mubr.msk.bf16.mxu0 %vm2402_vm2, %v3658_v51 }
 0x22a   : > { %v3432_v57 = vmax.f32 %v3304_v11, 0.0  ;;  %v14675_v39 = vmax.f32 %v10783_v34, 0.0  ;;  %v3305_v47 = vadd.f32 %v10550_v8, %v3170_v25  ;;  %v10797_v19 = vadd.f32 %v10550_v8, %v3186_v4 }
 0x22b   : > { %v3430_v15 = vmax.f32 %v3302_v38, 0.0  ;;  %v3303_v1 = vadd.f32 %v10550_v8, %v3168_v56  ;;  %v10803_v17 = vadd.f32 %v10550_v8, %v3184_v6  ;;  %v15012_v51 = vmax.f32 %v10625_v62, 0.0 }
 0x22c   : > { %8705 = vmatmul.mubr.msk.bf16.gmra.mrb[168].mxu0 %vm2402_vm2, %v3659_v10  ;;  %v3433_v18 = vmax.f32 %v3305_v47, 0.0  ;;  %v10814_v10 = vpack.c.bf16 %v14671_v53, %v14672_v33  ;;  %v15013_v4 = vmax.f32 %v10629_v40, 0.0  ;;  %v15014_v62 = vmax.f32 %v10745_v9, 0.0 }
 0x22d   : > { %v10807_v11 = vmax.f32 %v15012_v51, %v3432_v57  ;;  %v3431_v56 = vmax.f32 %v3303_v1, 0.0  ;;  %v8594_v21 = vpop.f32.mrb[16].mxu1  ;;  %v15015_v51 = vmax.f32 %v10634_v50, 0.0  ;;  %v15016_v1 = vmax.f32 %v10797_v19, 0.0 }
 0x22e   : > { %v10818_v38 = vmax.f32 %v15013_v4, %v3430_v15  ;;  %v10825_v47 = vpack.c.bf16 %v15014_v62, %v14674_v30  ;;  %v3661_v53 = vpack.c.bf16 %v3433_v18, %v3432_v57  ;;  %v3189_v33 = vmul.f32 %v8594_v21, %v10539_v13  ;;  %v2789_v40 = vpop.f32.mrb[17].mxu1 }
 0x22f   : > { %v10829_v25 = vmax.f32 %v15015_v51, %v3433_v18  ;;  %v10836_v4 = vpack.c.bf16 %v15016_v1, %v14675_v39  ;;  %v15017_v6 = vmax.f32 %v10638_v61, 0.0  ;;  %v3660_v62 = vpack.c.bf16 %v3431_v56, %v3430_v15  ;;  %v8595_v50 = vpop.f32.mrb[18].mxu1 }
 0x230   : > { %v3187_v30 = vmul.f32 %v10539_v13, %v2789_v40  ;;  %v15018_v51 = vmax.f32 %v10789_v45, 0.0  ;;  %v15019_v57 = vmax.f32 %v10803_v17, 0.0  ;;  %v10850_v18 = vadd.f32 %v10550_v8, %v3189_v33  ;;  %v2792_v39 = vpop.f32.mrb[19].mxu1 }
 0x231   : > { %v10840_v37 = vmax.f32 %v15017_v6, %v3431_v56  ;;  %v3190_v1 = vmul.f32 %v8595_v50, %v10539_v13  ;;  %v3188_v15 = vmul.f32 %v10539_v13, %v2792_v39  ;;  %8708 = vmatprep.mubr.msk.bf16.mxu0 %vm2402_vm2, %v3660_v62 }
 0x232   : > { %v10847_v21 = vpack.c.bf16 %v15019_v57, %v15018_v51  ;;  %v10854_v61 = vadd.f32 %v10550_v8, %v3187_v30  ;;  %v14677_v33 = vmax.f32 %v10850_v18, 0.0  ;;  %v9071_v57 = vld [vmem:[%s14601_s10 + $0x64] ss:$8 sps:$4 sm:$0xff]  }
 0x233   : > { %v10859_v56 = vadd.f32 %v10550_v8, %v3190_v1  ;;  %v10863_v6 = vadd.f32 %v10550_v8, %v3188_v15  ;;  %5165 = vmatprep.subr.bf16.mxu1 %v9071_v57 }
 0x234   : > { %8709 = vmatmul.mubr.msk.bf16.gmra.mrb[172].mxu0 %vm2402_vm2, %v3661_v53  ;;  %v14682_v40 = vmax.f32 %v10854_v61, 0.0 }
 0x235   : > { %8712 = vmatprep.mubr.msk.bf16.mxu0 %vm2402_vm2, %v10709_v26  ;;  %v14676_v30 = vmax.f32 %v10859_v56, 0.0  ;;  %v14681_v39 = vmax.f32 %v10863_v6, 0.0  ;;  %v8598_v62 = vpop.f32.mrb[20].mxu1  ;;  %v9069_v26 = vld [vmem:[%s14601_s10 + $0x60] ss:$8 sps:$4 sm:$0xff]  }
 0x236   : > { %v3193_v50 = vmul.f32 %v8598_v62, %v10539_v13  ;;  %v2805_v51 = vpop.f32.mrb[21].mxu1  ;;  %5166 = vmatpush1.bf16.msra.mxu1 %v9069_v26 }
 0x237   : > { %v10876_v53 = vpack.c.bf16 %v14676_v30, %v14677_v33  ;;  %v3191_v1 = vmul.f32 %v10539_v13, %v2805_v51  ;;  %v8599_v15 = vpop.f32.mrb[22].mxu1  ;;  %v10889_v62 = vpack.c.bf16 %v14681_v39, %v14682_v40 }
 0x238   : > { %v10892_v30 = vadd.f32 %v10550_v8, %v3193_v50  ;;  %v3194_v33 = vmul.f32 %v8599_v15, %v10539_v13  ;;  %v2808_v58 = vpop.f32.mrb[23].mxu1 }
 0x239   : > { %v10896_v48 = vadd.f32 %v10550_v8, %v3191_v1  ;;  %v3192_v3 = vmul.f32 %v10539_v13, %v2808_v58 }
 0x23a   : > { %v10900_v51 = vadd.f32 %v10550_v8, %v3194_v33  ;;  %v14688_v50 = vmax.f32 %v10892_v30, 0.0 }
 0x23b   : > { %v10905_v39 = vadd.f32 %v10550_v8, %v3192_v3  ;;  %v14691_v1 = vmax.f32 %v10896_v48, 0.0 }
 0x23c   : > { %8713 = vmatmul.mubr.msk.bf16.gmra.mrb[176].mxu0 %vm2402_vm2, %v10713_v49  ;;  %v14687_v57 = vmax.f32 %v10900_v51, 0.0 }
 0x23d   : > { %8716 = vmatprep.mubr.msk.bf16.mxu0 %vm2402_vm2, %v10758_v24  ;;  %v14690_v58 = vmax.f32 %v10905_v39, 0.0  ;;  %v8602_v26 = vpop.f32.mrb[24].mxu1 }
 0x23e   : > { %v3197_v33 = vmul.f32 %v8602_v26, %v10539_v13  ;;  %v2821_v15 = vpop.f32.mrb[25].mxu1  ;;  %v10918_v49 = vpack.c.bf16 %v14687_v57, %v14688_v50 }
 0x23f   : > { %v3195_v3 = vmul.f32 %v10539_v13, %v2821_v15  ;;  %v8603_v24 = vpop.f32.mrb[26].mxu1  ;;  %v10925_v40 = vpack.c.bf16 %v14690_v58, %v14691_v1 }
 0x240   : > { %v3332_v22 = vadd.f32 %v10550_v8, %v3197_v33  ;;  %v3198_v26 = vmul.f32 %v8603_v24, %v10539_v13  ;;  %v2824_v52 = vpop.f32.mrb[27].mxu1  ;;  %v15020_v33 = vmax.f32 %v10731_v46, 0.0 }
 0x241   : > { %v3330_v29 = vadd.f32 %v10550_v8, %v3195_v3  ;;  %v3196_v63 = vmul.f32 %v10539_v13, %v2824_v52  ;;  %v15021_v3 = vmax.f32 %v10737_v44, 0.0  ;;  %v15023_v44 = vmax.f32 %v10751_v59, 0.0 }
 0x242   : > { %v3460_v57 = vmax.f32 %v3332_v22, 0.0  ;;  %v3333_v50 = vadd.f32 %v10550_v8, %v3198_v26 }
 0x243   : > { %v3458_v15 = vmax.f32 %v3330_v29, 0.0  ;;  %v3331_v55 = vadd.f32 %v10550_v8, %v3196_v63  ;;  %v15022_v29 = vmax.f32 %v10745_v9, 0.0 }
 0x244   : > { %8717 = vmatmul.mubr.msk.bf16.gmra.mrb[180].mxu0 %vm2402_vm2, %v10767_v60  ;;  %v10939_v24 = vmax.f32 %v15020_v33, %v3460_v57  ;;  %v3461_v58 = vmax.f32 %v3333_v50, 0.0 }
 0x245   : > { %8720 = vmatprep.mubr.msk.bf16.mxu0 %vm2402_vm2, %v10814_v10  ;;  %v10943_v52 = vmax.f32 %v15021_v3, %v3458_v15  ;;  %v3459_v22 = vmax.f32 %v3331_v55, 0.0  ;;  %v8606_v26 = vpop.f32.mrb[28].mxu1 }
 0x246   : > { %v10949_v63 = vmax.f32 %v15022_v29, %v3461_v58  ;;  %v3201_v10 = vmul.f32 %v8606_v26, %v10539_v13  ;;  %v2837_v1 = vpop.f32.mrb[29].mxu1  ;;  %v10952_v46 = vpack.c.bf16 %v3461_v58, %v3460_v57 }
 0x247   : > { %v10958_v33 = vmax.f32 %v15023_v44, %v3459_v22  ;;  %v3199_v55 = vmul.f32 %v10539_v13, %v2837_v1  ;;  %v8607_v3 = vpop.f32.mrb[30].mxu1  ;;  %v10961_v60 = vpack.c.bf16 %v3459_v22, %v3458_v15 }
 0x248   : > { %v3336_v26 = vadd.f32 %v10550_v8, %v3201_v10  ;;  %v3202_v57 = vmul.f32 %v8607_v3, %v10539_v13  ;;  %v2840_v58 = vpop.f32.mrb[31].mxu1  ;;  %v15024_v10 = vmax.f32 %v10783_v34, 0.0 }
 0x249   : > { %v3334_v59 = vadd.f32 %v10550_v8, %v3199_v55  ;;  %v3200_v44 = vmul.f32 %v10539_v13, %v2840_v58  ;;  %v15025_v55 = vmax.f32 %v10789_v45, 0.0  ;;  %v15027_v45 = vmax.f32 %v10803_v17, 0.0 }
 0x24a   : > { %v3464_v50 = vmax.f32 %v3336_v26, 0.0  ;;  %v3337_v1 = vadd.f32 %v10550_v8, %v3202_v57 }
 0x24b   : > { %v3462_v15 = vmax.f32 %v3334_v59, 0.0  ;;  %v3335_v22 = vadd.f32 %v10550_v8, %v3200_v44  ;;  %v15026_v59 = vmax.f32 %v10797_v19, 0.0 }
 0x24c   : > { %8721 = vmatmul.mubr.msk.bf16.gmra.mrb[184].mxu0 %vm2402_vm2, %v10825_v47  ;;  %v10979_v3 = vmax.f32 %v15024_v10, %v3464_v50  ;;  %v3465_v29 = vmax.f32 %v3337_v1, 0.0 }
 0x24d   : > { %8724 = vmatprep.mubr.msk.bf16.mxu0 %vm2402_vm2, %v10847_v21  ;;  %v10983_v58 = vmax.f32 %v15025_v55, %v3462_v15  ;;  %v3463_v26 = vmax.f32 %v3335_v22, 0.0  ;;  %v8610_v57 = vpop.f32.mrb[32].mxu1 }
 0x24e   : > { %v10989_v44 = vmax.f32 %v15026_v59, %v3465_v29  ;;  %v3205_v21 = vmul.f32 %v8610_v57, %v10539_v13  ;;  %v2853_v9 = vpop.f32.mrb[33].mxu1  ;;  %v10992_v34 = vpack.c.bf16 %v3465_v29, %v3464_v50 }
 0x24f   : > { %v10998_v10 = vmax.f32 %v15027_v45, %v3463_v26  ;;  %v3203_v22 = vmul.f32 %v10539_v13, %v2853_v9  ;;  %v8611_v55 = vpop.f32.mrb[34].mxu1  ;;  %v11001_v47 = vpack.c.bf16 %v3463_v26, %v3462_v15 }
 0x250   : > { %v3340_v57 = vadd.f32 %v10550_v8, %v3205_v21  ;;  %v3206_v50 = vmul.f32 %v8611_v55, %v10539_v13  ;;  %v2856_v29 = vpop.f32.mrb[35].mxu1  ;;  %v15028_v21 = vmax.f32 %v10850_v18, 0.0 }
 0x251   : > { %v3338_v17 = vadd.f32 %v10550_v8, %v3203_v22  ;;  %v3204_v45 = vmul.f32 %v10539_v13, %v2856_v29  ;;  %v15030_v22 = vmax.f32 %v10854_v61, 0.0  ;;  %v15034_v61 = vmax.f32 %v10863_v6, 0.0  ;;  %v9074_v6 = vld [vmem:[%s14601_s10 + $0x74] ss:$8 sps:$4 sm:$0xff]  }
 0x252   : > { %v3468_v1 = vmax.f32 %v3340_v57, 0.0  ;;  %v3341_v9 = vadd.f32 %v10550_v8, %v3206_v50  ;;  %5167 = vmatprep.subr.bf16.mxu1 %v9074_v6  ;;  %v15040_v6 = vmax.f32 %v10900_v51, 0.0 }
 0x253   : > { %v3466_v15 = vmax.f32 %v3338_v17, 0.0  ;;  %v3339_v26 = vadd.f32 %v10550_v8, %v3204_v45  ;;  %v15032_v17 = vmax.f32 %v10859_v56, 0.0 }
 0x254   : > { %8725 = vmatmul.mubr.msk.bf16.gmra.mrb[188].mxu0 %vm2402_vm2, %v10836_v4  ;;  %v11019_v55 = vmax.f32 %v15028_v21, %v3468_v1  ;;  %v3469_v59 = vmax.f32 %v3341_v9, 0.0 }
 0x255   : > { %8728 = vmatprep.mubr.msk.bf16.mxu0 %vm2402_vm2, %v10889_v62  ;;  %v11023_v29 = vmax.f32 %v15030_v22, %v3466_v15  ;;  %v3467_v57 = vmax.f32 %v3339_v26, 0.0  ;;  %v8614_v50 = vpop.f32.mrb[36].mxu1 }
 0x256   : > { %15029 = vst [vmem:[#allocation12_spill] sm:$0xff] %v11019_v55  ;;  %v11029_v45 = vmax.f32 %v15032_v17, %v3469_v59  ;;  %v3209_v62 = vmul.f32 %v8614_v50, %v10539_v13  ;;  %v2869_v19 = vpop.f32.mrb[37].mxu1  ;;  %v11032_v18 = vpack.c.bf16 %v3469_v59, %v3468_v1  ;;  %v9072_v17 = vld [vmem:[%s14601_s10 + $0x70] ss:$8 sps:$4 sm:$0xff]  }
 0x257   : > { %15031 = vst [vmem:[#allocation18_spill] sm:$0xff] %v11023_v29  ;;  %v11038_v21 = vmax.f32 %v15034_v61, %v3467_v57  ;;  %v3207_v26 = vmul.f32 %v10539_v13, %v2869_v19  ;;  %v8615_v22 = vpop.f32.mrb[38].mxu1  ;;  %v11041_v4 = vpack.c.bf16 %v3467_v57, %v3466_v15  ;;  %5168 = vmatpush1.bf16.msra.mxu1 %v9072_v17  ;;  %v15036_v19 = vmax.f32 %v10892_v30, 0.0 }
 0x258   : > { %15033 = vst [vmem:[#allocation24_spill] sm:$0xff] %v11029_v45  ;;  %v3344_v50 = vadd.f32 %v10550_v8, %v3209_v62  ;;  %v3210_v1 = vmul.f32 %v8615_v22, %v10539_v13  ;;  %v2872_v59 = vpop.f32.mrb[39].mxu1 }
 0x259   : > { %15035 = vst [vmem:[#allocation13_spill] sm:$0xff] %v11038_v21  ;;  %v3342_v15 = vadd.f32 %v10550_v8, %v3207_v26  ;;  %v3208_v57 = vmul.f32 %v10539_v13, %v2872_v59 }
 0x25a   : > { %v3472_v61 = vmax.f32 %v3344_v50, 0.0  ;;  %v3345_v62 = vadd.f32 %v10550_v8, %v3210_v1  ;;  %v15038_v50 = vmax.f32 %v10896_v48, 0.0  ;;  %v15042_v48 = vmax.f32 %v10905_v39, 0.0 }
 0x25b   : > { %v3470_v22 = vmax.f32 %v3342_v15, 0.0  ;;  %v3343_v56 = vadd.f32 %v10550_v8, %v3208_v57 }
 0x25c   : > { %8729 = vmatmul.mubr.msk.bf16.gmra.mrb[192].mxu0 %vm2402_vm2, %v10876_v53  ;;  %v11065_v9 = vmax.f32 %v15036_v19, %v3472_v61  ;;  %v3473_v26 = vmax.f32 %v3345_v62, 0.0 }
 0x25d   : > { %8732 = vmatprep.mubr.msk.bf16.mxu0 %vm2402_vm2, %v10925_v40  ;;  %v11069_v59 = vmax.f32 %v15038_v50, %v3470_v22  ;;  %v3471_v1 = vmax.f32 %v3343_v56, 0.0  ;;  %v8618_v2 = vpop.f32.mrb[40].mxu1 }
 0x25e   : > { %15037 = vst [vmem:[#allocation19_spill] sm:$0xff] %v11065_v9  ;;  %v11075_v15 = vmax.f32 %v15040_v6, %v3473_v26  ;;  %v3213_v40 = vmul.f32 %v8618_v2, %v10539_v13  ;;  %v2885_v17 = vpop.f32.mrb[41].mxu1  ;;  %v11078_v30 = vpack.c.bf16 %v3473_v26, %v3472_v61 }
 0x25f   : > { %15039 = vst [vmem:[#allocation14_spill] sm:$0xff] %v11069_v59  ;;  %v11084_v57 = vmax.f32 %v15042_v48, %v3471_v1  ;;  %v3211_v56 = vmul.f32 %v10539_v13, %v2885_v17  ;;  %v8619_v62 = vpop.f32.mrb[42].mxu1  ;;  %v11087_v50 = vpack.c.bf16 %v3471_v1, %v3470_v22 }
 0x260   : > { %15041 = vst [vmem:[#allocation20_spill] sm:$0xff] %v11075_v15  ;;  %v11092_v2 = vadd.f32 %v10550_v8, %v3213_v40  ;;  %v3214_v61 = vmul.f32 %v8619_v62, %v10539_v13  ;;  %v2888_v26 = vpop.f32.mrb[43].mxu1 }
 0x261   : > { %15043 = vst [vmem:[#allocation39_spill] sm:$0xff] %v11084_v57  ;;  %v11098_v39 = vadd.f32 %v10550_v8, %v3211_v56  ;;  %v3212_v17 = vmul.f32 %v10539_v13, %v2888_v26 }
 0x262   : > { %v11102_v22 = vadd.f32 %v10550_v8, %v3214_v61  ;;  %v14697_v40 = vmax.f32 %v11092_v2, 0.0 }
 0x263   : > { %v11107_v1 = vadd.f32 %v10550_v8, %v3212_v17  ;;  %v14696_v56 = vmax.f32 %v11098_v39, 0.0 }
 0x264   : > { %8733 = vmatmul.mubr.msk.bf16.gmra.mrb[196].mxu0 %vm2402_vm2, %v10918_v49  ;;  %v14694_v48 = vmax.f32 %v11102_v22, 0.0 }
 0x265   : > { %8736 = vmatprep.mubr.msk.bf16.mxu0 %vm2402_vm2, %v10961_v60  ;;  %v14695_v62 = vmax.f32 %v11107_v1, 0.0  ;;  %v8622_v26 = vpop.f32.mrb[44].mxu1 }
 0x266   : > { %v3217_v61 = vmul.f32 %v8622_v26, %v10539_v13  ;;  %v2901_v6 = vpop.f32.mrb[45].mxu1  ;;  %v11120_v49 = vpack.c.bf16 %v14694_v48, %v14697_v40 }
 0x267   : > { %v3215_v60 = vmul.f32 %v10539_v13, %v2901_v6  ;;  %v8623_v17 = vpop.f32.mrb[46].mxu1  ;;  %v11127_v51 = vpack.c.bf16 %v14695_v62, %v14696_v56 }
 0x268   : > { %v11130_v19 = vadd.f32 %v10550_v8, %v3217_v61  ;;  %v3218_v26 = vmul.f32 %v8623_v17, %v10539_v13  ;;  %v2904_v53 = vpop.f32.mrb[47].mxu1 }
 0x269   : > { %v11134_v27 = vadd.f32 %v10550_v8, %v3215_v60  ;;  %v3216_v48 = vmul.f32 %v10539_v13, %v2904_v53 }
 0x26a   : > { %v11138_v6 = vadd.f32 %v10550_v8, %v3218_v26  ;;  %v14707_v61 = vmax.f32 %v11130_v19, 0.0 }
 0x26b   : > { %v11143_v62 = vadd.f32 %v10550_v8, %v3216_v48  ;;  %v14706_v60 = vmax.f32 %v11134_v27, 0.0  ;;  %v14703_v48 = vmov 0  }
 0x26c   : > { %8737 = vmatmul.mubr.msk.bf16.gmra.mrb[200].mxu0 %vm2402_vm2, %v10952_v46  ;;  %v14702_v17 = vmax.f32 %v11138_v6, 0.0  ;;  %5185 = vmatprep.mubr.bf16.mxu1 %v14703_v48 }
 0x26d   : > { %8740 = vmatprep.mubr.msk.bf16.mxu0 %vm2402_vm2, %v11001_v47  ;;  %v14705_v53 = vmax.f32 %v11143_v62, 0.0  ;;  %v8626_v56 = vpop.f32.mrb[48].mxu1 }
 0x26e   : > { %v3221_v26 = vmul.f32 %v8626_v56, %v10539_v13  ;;  %v2917_v40 = vpop.f32.mrb[49].mxu1  ;;  %v11156_v46 = vpack.c.bf16 %v14702_v17, %v14707_v61 }
 0x26f   : > { %v3219_v47 = vmul.f32 %v10539_v13, %v2917_v40  ;;  %v8627_v32 = vpop.f32.mrb[50].mxu1  ;;  %v11164_v16 = vpack.c.bf16 %v14705_v53, %v14706_v60 }
 0x270   : > { %v11167_v56 = vadd.f32 %v10550_v8, %v3221_v26  ;;  %v3222_v23 = vmul.f32 %v8627_v32, %v10539_v13  ;;  %v2920_v14 = vpop.f32.mrb[51].mxu1 }
 0x271   : > { %v11171_v17 = vadd.f32 %v10550_v8, %v3219_v47  ;;  %v3220_v48 = vmul.f32 %v10539_v13, %v2920_v14 }
 0x272   : > { %v11175_v40 = vadd.f32 %v10550_v8, %v3222_v23  ;;  %v14715_v32 = vmax.f32 %v11167_v56, 0.0 }
 0x273   : > { %v11180_v53 = vadd.f32 %v10550_v8, %v3220_v48  ;;  %v14714_v47 = vmax.f32 %v11171_v17, 0.0 }
 0x274   : > { %8741 = vmatmul.mubr.msk.bf16.gmra.mrb[204].mxu0 %vm2402_vm2, %v10992_v34  ;;  %v14712_v26 = vmax.f32 %v11175_v40, 0.0 }
 0x275   : > { %8744 = vmatprep.mubr.msk.bf16.mxu0 %vm2402_vm2, %v11041_v4  ;;  %v14713_v14 = vmax.f32 %v11180_v53, 0.0  ;;  %v8630_v60 = vpop.f32.mrb[52].mxu1 }
 0x276   : > { %v3225_v23 = vmul.f32 %v8630_v60, %v10539_v13  ;;  %v2933_v61 = vpop.f32.mrb[53].mxu1  ;;  %v11193_v34 = vpack.c.bf16 %v14712_v26, %v14715_v32 }
 0x277   : > { %v3223_v4 = vmul.f32 %v10539_v13, %v2933_v61  ;;  %v8631_v48 = vpop.f32.mrb[54].mxu1  ;;  %v11200_v31 = vpack.c.bf16 %v14713_v14, %v14714_v47 }
 0x278   : > { %v11203_v57 = vadd.f32 %v10550_v8, %v3225_v23  ;;  %v3226_v60 = vmul.f32 %v8631_v48, %v10539_v13  ;;  %v2936_v42 = vpop.f32.mrb[55].mxu1 }
 0x279   : > { %v11207_v15 = vadd.f32 %v10550_v8, %v3223_v4  ;;  %v3224_v26 = vmul.f32 %v10539_v13, %v2936_v42 }
 0x27a   : > { %v11211_v61 = vadd.f32 %v10550_v8, %v3226_v60  ;;  %v14722_v23 = vmax.f32 %v11203_v57, 0.0  ;;  %v9075_v60 = vld [vmem:[%s14605_s14] sm:$0xff]  }
 0x27b   : > { %v11216_v14 = vadd.f32 %v10550_v8, %v3224_v26  ;;  %v14725_v4 = vmax.f32 %v11207_v15, 0.0  ;;  %8816 = vmatprep.subr.bf16.mxu0 %v9075_v60 }
 0x27c   : > { %8745 = vmatmul.mubr.msk.bf16.gmra.mrb[208].mxu0 %vm2402_vm2, %v11032_v18  ;;  %v14721_v48 = vmax.f32 %v11211_v61, 0.0 }
 0x27d   : > { %8748 = vmatprep.mubr.msk.bf16.mxu0 %vm2402_vm2, %v11087_v50  ;;  %v14724_v42 = vmax.f32 %v11216_v14, 0.0  ;;  %v8634_v47 = vpop.f32.mrb[56].mxu1  ;;  %8817 = vmatpush3.bf16.msra.mxu0 %v9075_v60 }
 0x27e   : > { %v3229_v18 = vmul.f32 %v8634_v47, %v10539_v13  ;;  %v2949_v26 = vpop.f32.mrb[57].mxu1  ;;  %v11232_v50 = vpack.c.bf16 %v14721_v48, %v14722_v23 }
 0x27f   : > { %v3227_v32 = vmul.f32 %v10539_v13, %v2949_v26  ;;  %v8635_v12 = vpop.f32.mrb[58].mxu1  ;;  %v11239_v59 = vpack.c.bf16 %v14724_v42, %v14725_v4 }
 0x280   : > { %v3364_v43 = vadd.f32 %v10550_v8, %v3229_v18  ;;  %v3230_v47 = vmul.f32 %v8635_v12, %v10539_v13  ;;  %v2952_v9 = vpop.f32.mrb[59].mxu1  ;;  %v9076_v12 = vld [vmem:[%s14605_s14 + $0x8] sm:$0xff]  }
 0x281   : > { %v3362_v7 = vadd.f32 %v10550_v8, %v3227_v32  ;;  %v3228_v48 = vmul.f32 %v10539_v13, %v2952_v9  ;;  %v15044_v32 = vmax.f32 %v11092_v2, 0.0  ;;  %v15045_v9 = vmax.f32 %v11098_v39, 0.0  ;;  %8818 = vmatprep.subr.bf16.mxu0 %v9076_v12  ;;  %v11276_v39 = vld [vmem:[%s14975_s5] ss:$0 sm:$0xff] }
 0x282   : > { %v3492_v23 = vmax.f32 %v3364_v43, 0.0  ;;  %v3365_v26 = vadd.f32 %v10550_v8, %v3230_v47  ;;  %8819 = vmatpush3.bf16.msra.mxu0 %v9076_v12  ;;  %v15047_v2 = vmax.f32 %v11107_v1, 0.0 }
 0x283   : > { %v3490_v21 = vmax.f32 %v3362_v7, 0.0  ;;  %v3363_v42 = vadd.f32 %v10550_v8, %v3228_v48  ;;  %v15046_v48 = vmax.f32 %v11102_v22, 0.0 }
 0x284   : > { %8749 = vmatmul.mubr.msk.bf16.gmra.mrb[212].mxu0 %vm2402_vm2, %v11078_v30  ;;  %v11256_v60 = vmax.f32 %v15044_v32, %v3492_v23  ;;  %v3493_v43 = vmax.f32 %v3365_v26, 0.0 }
 0x285   : > { %8752 = vmatprep.mubr.msk.bf16.mxu0 %vm2402_vm2, %v11127_v51  ;;  %v11260_v18 = vmax.f32 %v15045_v9, %v3490_v21  ;;  %v3491_v30 = vmax.f32 %v3363_v42, 0.0  ;;  %v8638_v7 = vpop.f32.mrb[60].mxu1 }
 0x286   : > { %v11264_v47 = vmax.f32 %v15046_v48, %v3493_v43  ;;  %v3233_v51 = vmul.f32 %v8638_v7, %v10539_v13  ;;  %v2965_v4 = vpop.f32.mrb[61].mxu1  ;;  %v11267_v36 = vpack.c.bf16 %v3493_v43, %v3492_v23  ;;  %v9077_v13 = vld [vmem:[%s14605_s14 + $0x10] sm:$0xff]   ;;  %v11289_v43 = vld [vmem:[%s14597_s6] ss:$0 sm:$0xff]  ;;  %v9078_v48 = vld [vmem:[%s14605_s14 + $0x18] sm:$0xff]  }
 0x287   : > { %v11271_v26 = vmax.f32 %v15047_v2, %v3491_v30  ;;  %v3231_v42 = vmul.f32 %v11276_v39, %v2965_v4  ;;  %v8639_v22 = vpop.f32.mrb[62].mxu1  ;;  %v11279_v32 = vpack.c.bf16 %v3491_v30, %v3490_v21  ;;  %8820 = vmatprep.subr.bf16.mxu0 %v9077_v13 }
 0x288   : > { %v3368_v23 = vadd.f32 %v10550_v8, %v3233_v51  ;;  %v3234_v1 = vmul.f32 %v11276_v39, %v8639_v22  ;;  %v2968_v12 = vpop.f32.mrb[63].mxu1  ;;  %8821 = vmatpush3.bf16.msra.mxu0 %v9077_v13  ;;  %v15048_v51 = vmax.f32 %v11130_v19, 0.0  ;;  %v15049_v22 = vmax.f32 %v11134_v27, 0.0 }
 0x289   : > { %v3366_v9 = vadd.f32 %v11289_v43, %v3231_v42  ;;  %v3232_v4 = vmul.f32 %v11276_v39, %v2968_v12  ;;  %8822 = vmatprep.subr.bf16.mxu0 %v9078_v48  ;;  %v15050_v12 = vmax.f32 %v11138_v6, 0.0  ;;  %v15051_v19 = vmax.f32 %v11143_v62, 0.0 }
 0x28a   : > { %v3496_v21 = vmax.f32 %v3368_v23, 0.0  ;;  %v3369_v30 = vadd.f32 %v11289_v43, %v3234_v1 }
 0x28b   : > { %v3494_v8 = vmax.f32 %v3366_v9, 0.0  ;;  %v3367_v7 = vadd.f32 %v11289_v43, %v3232_v4 }
 0x28c   : > { %8753 = vmatmul.mubr.msk.bf16.gmra.mrb[216].mxu0 %vm2402_vm2, %v11120_v49  ;;  %v11304_v2 = vmax.f32 %v15048_v51, %v3496_v21  ;;  %v3497_v42 = vmax.f32 %v3369_v30, 0.0 }
 0x28d   : > { %8756 = vmatprep.mubr.msk.bf16.mxu0 %vm2402_vm2, %v11164_v16  ;;  %v11308_v23 = vmax.f32 %v15049_v22, %v3494_v8  ;;  %v3495_v49 = vmax.f32 %v3367_v7, 0.0  ;;  %v8642_v1 = vpop.f32.mrb[64].mxu1  ;;  %8823 = vmatpush3.bf16.msra.mxu0 %v9078_v48  ;;  %v15052_v48 = vmax.f32 %v11167_v56, 0.0 }
 0x28e   : > { %v11312_v16 = vmax.f32 %v15050_v12, %v3497_v42  ;;  %v3237_v13 = vmul.f32 %v11276_v39, %v8642_v1  ;;  %v2981_v9 = vpop.f32.mrb[65].mxu1  ;;  %v11315_v4 = vpack.c.bf16 %v3497_v42, %v3496_v21 }
 0x28f   : > { %v11319_v51 = vmax.f32 %v15051_v19, %v3495_v49  ;;  %v3235_v27 = vmul.f32 %v11276_v39, %v2981_v9  ;;  %v8643_v30 = vpop.f32.mrb[66].mxu1  ;;  %v11322_v22 = vpack.c.bf16 %v3495_v49, %v3494_v8  ;;  %v15053_v19 = vmax.f32 %v11171_v17, 0.0 }
 0x290   : > { %v3372_v7 = vadd.f32 %v11289_v43, %v3237_v13  ;;  %v3238_v6 = vmul.f32 %v11276_v39, %v8643_v30  ;;  %v2984_v12 = vpop.f32.mrb[67].mxu1 }
 0x291   : > { %v3370_v1 = vadd.f32 %v11289_v43, %v3235_v27  ;;  %v3236_v21 = vmul.f32 %v11276_v39, %v2984_v12 }
 0x292   : > { %v3500_v42 = vmax.f32 %v3372_v7, 0.0  ;;  %v3373_v62 = vadd.f32 %v11289_v43, %v3238_v6  ;;  %v15054_v6 = vmax.f32 %v11175_v40, 0.0 }
 0x293   : > { %v3498_v9 = vmax.f32 %v3370_v1, 0.0  ;;  %v3371_v8 = vadd.f32 %v11289_v43, %v3236_v21 }
 0x294   : > { %8757 = vmatmul.mubr.msk.bf16.gmra.mrb[220].mxu0 %vm2402_vm2, %v11156_v46  ;;  %v11336_v49 = vmax.f32 %v15052_v48, %v3500_v42  ;;  %v3501_v13 = vmax.f32 %v3373_v62, 0.0 }
 0x295   : > { %8760 = vmatprep.mubr.msk.bf16.mxu0 %vm2402_vm2, %v11200_v31  ;;  %v11340_v27 = vmax.f32 %v15053_v19, %v3498_v9  ;;  %v3499_v30 = vmax.f32 %v3371_v8, 0.0  ;;  %v8646_v7 = vpop.f32.mrb[68].mxu1  ;;  %v15056_v31 = vmax.f32 %v11180_v53, 0.0 }
 0x296   : > { %v11344_v46 = vmax.f32 %v15054_v6, %v3501_v13  ;;  %v3241_v12 = vmul.f32 %v11276_v39, %v8646_v7  ;;  %v2997_v1 = vpop.f32.mrb[69].mxu1  ;;  %v11347_v21 = vpack.c.bf16 %v3501_v13, %v3500_v42 }
 0x297   : > { %v11351_v56 = vmax.f32 %v15056_v31, %v3499_v30  ;;  %v3239_v62 = vmul.f32 %v11276_v39, %v2997_v1  ;;  %v8647_v17 = vpop.f32.mrb[70].mxu1  ;;  %v11354_v48 = vpack.c.bf16 %v3499_v30, %v3498_v9  ;;  %v15058_v9 = vmax.f32 %v11203_v57, 0.0 }
 0x298   : > { %15055 = vst [vmem:[#allocation40_spill] sm:$0xff] %v11344_v46  ;;  %v3376_v8 = vadd.f32 %v11289_v43, %v3241_v12  ;;  %v3242_v40 = vmul.f32 %v11276_v39, %v8647_v17  ;;  %v3000_v19 = vpop.f32.mrb[71].mxu1  ;;  %v15060_v31 = vmax.f32 %v11207_v15, 0.0 }
 0x299   : > { %15057 = vst [vmem:[#allocation41_spill] sm:$0xff] %v11351_v56  ;;  %v3374_v6 = vadd.f32 %v11289_v43, %v3239_v62  ;;  %v3240_v7 = vmul.f32 %v11276_v39, %v3000_v19 }
 0x29a   : > { %v3504_v42 = vmax.f32 %v3376_v8, 0.0  ;;  %v3377_v13 = vadd.f32 %v11289_v43, %v3242_v40  ;;  %v15062_v40 = vmax.f32 %v11211_v61, 0.0  ;;  %v11391_v61 = vld [vmem:[%s14604_s13] sm:$0xff]  }
 0x29b   : > { %v3502_v53 = vmax.f32 %v3374_v6, 0.0  ;;  %v3375_v1 = vadd.f32 %v11289_v43, %v3240_v7  ;;  %15066 = vst [vmem:[#allocation46_spill] sm:$0xff] %v11391_v61  ;;  %8840 = vmatprep.subr.bf16.mxu0 %v11391_v61 }
 0x29c   : > { %8761 = vmatmul.mubr.msk.bf16.gmra.mrb[224].mxu0 %vm2402_vm2, %v11193_v34  ;;  %v11368_v30 = vmax.f32 %v15058_v9, %v3504_v42  ;;  %v3505_v12 = vmax.f32 %v3377_v13, 0.0 }
 0x29d   : > { %8764 = vmatprep.mubr.msk.bf16.mxu0 %vm2402_vm2, %v11239_v59  ;;  %v11372_v62 = vmax.f32 %v15060_v31, %v3502_v53  ;;  %v3503_v17 = vmax.f32 %v3375_v1, 0.0  ;;  %v8650_v8 = vpop.f32.mrb[72].mxu1  ;;  %v15064_v59 = vmax.f32 %v11216_v14, 0.0 }
 0x29e   : > { %15059 = vst [vmem:[#allocation42_spill] sm:$0xff] %v11368_v30  ;;  %v11376_v34 = vmax.f32 %v15062_v40, %v3505_v12  ;;  %v3245_v19 = vmul.f32 %v11276_v39, %v8650_v8  ;;  %v3013_v6 = vpop.f32.mrb[73].mxu1  ;;  %v11379_v7 = vpack.c.bf16 %v3505_v12, %v3504_v42 }
 0x29f   : > { %15061 = vst [vmem:[#allocation43_spill] sm:$0xff] %v11372_v62  ;;  %v11383_v57 = vmax.f32 %v15064_v59, %v3503_v17  ;;  %v3243_v13 = vmul.f32 %v11276_v39, %v3013_v6  ;;  %v8651_v15 = vpop.f32.mrb[74].mxu1  ;;  %v11386_v9 = vpack.c.bf16 %v3503_v17, %v3502_v53 }
 0x2a0   : > { %15063 = vst [vmem:[#allocation44_spill] sm:$0xff] %v11376_v34  ;;  %v11394_v1 = vadd.f32 %v11289_v43, %v3245_v19  ;;  %v3246_v42 = vmul.f32 %v11276_v39, %v8651_v15  ;;  %v3016_v12 = vpop.f32.mrb[75].mxu1 }
 0x2a1   : > { %15065 = vst [vmem:[#allocation45_spill] sm:$0xff] %v11383_v57  ;;  %v11398_v14 = vadd.f32 %v11289_v43, %v3243_v13  ;;  %v3244_v31 = vmul.f32 %v11276_v39, %v3016_v12 }
 0x2a2   : > { %v11403_v53 = vadd.f32 %v11289_v43, %v3246_v42  ;;  %v14731_v8 = vmax.f32 %v11394_v1, 0.0 }
 0x2a3   : > { %v11408_v17 = vadd.f32 %v11289_v43, %v3244_v31  ;;  %v14730_v19 = vmax.f32 %v11398_v14, 0.0 }
 0x2a4   : > { %8765 = vmatmul.mubr.msk.bf16.gmra.mrb[228].mxu0 %vm2402_vm2, %v11232_v50  ;;  %v14728_v40 = vmax.f32 %v11403_v53, 0.0 }
 0x2a5   : > { %8768 = vmatprep.mubr.msk.bf16.mxu0 %vm2402_vm2, %v11279_v32  ;;  %v14729_v6 = vmax.f32 %v11408_v17, 0.0  ;;  %v8654_v59 = vpop.f32.mrb[76].mxu1 }
 0x2a6   : > { %v3249_v13 = vmul.f32 %v11276_v39, %v8654_v59  ;;  %v3029_v15 = vpop.f32.mrb[77].mxu1  ;;  %v11421_v50 = vpack.c.bf16 %v14728_v40, %v14731_v8 }
 0x2a7   : > { %v3247_v32 = vmul.f32 %v11276_v39, %v3029_v15  ;;  %v8655_v42 = vpop.f32.mrb[78].mxu1  ;;  %v11428_v12 = vpack.c.bf16 %v14729_v6, %v14730_v19 }
 0x2a8   : > { %v11431_v31 = vadd.f32 %v11289_v43, %v3249_v13  ;;  %v3250_v59 = vmul.f32 %v11276_v39, %v8655_v42  ;;  %v3032_v61 = vpop.f32.mrb[79].mxu1 }
 0x2a9   : > { %v11435_v57 = vadd.f32 %v11289_v43, %v3247_v32  ;;  %v3248_v40 = vmul.f32 %v11276_v39, %v3032_v61 }
 0x2aa   : > { %v11439_v15 = vadd.f32 %v11289_v43, %v3250_v59  ;;  %v14736_v13 = vmax.f32 %v11431_v31, 0.0 }
 0x2ab   : > { %v11444_v6 = vadd.f32 %v11289_v43, %v3248_v40  ;;  %v14735_v32 = vmax.f32 %v11435_v57, 0.0 }
 0x2ac   : > { %8769 = vmatmul.mubr.msk.bf16.gmra.mrb[232].mxu0 %vm2402_vm2, %v11267_v36  ;;  %v14733_v42 = vmax.f32 %v11439_v15, 0.0 }
 0x2ad   : > { %8772 = vmatprep.mubr.msk.bf16.mxu0 %vm2402_vm2, %v11322_v22  ;;  %v14734_v61 = vmax.f32 %v11444_v6, 0.0  ;;  %v8658_v19 = vpop.f32.mrb[80].mxu1 }
 0x2ae   : > { %v3253_v59 = vmul.f32 %v11276_v39, %v8658_v19  ;;  %v3045_v8 = vpop.f32.mrb[81].mxu1  ;;  %v11457_v36 = vpack.c.bf16 %v14733_v42, %v14736_v13 }
 0x2af   : > { %v3251_v22 = vmul.f32 %v11276_v39, %v3045_v8  ;;  %v8659_v40 = vpop.f32.mrb[82].mxu1  ;;  %v11464_v34 = vpack.c.bf16 %v14734_v61, %v14735_v32 }
 0x2b0   : > { %v11467_v62 = vadd.f32 %v11289_v43, %v3253_v59  ;;  %v3254_v19 = vmul.f32 %v11276_v39, %v8659_v40  ;;  %v3048_v30 = vpop.f32.mrb[83].mxu1 }
 0x2b1   : > { %v11471_v45 = vadd.f32 %v11289_v43, %v3251_v22  ;;  %v3252_v42 = vmul.f32 %v11276_v39, %v3048_v30 }
 0x2b2   : > { %v11475_v8 = vadd.f32 %v11289_v43, %v3254_v19  ;;  %v14743_v59 = vmax.f32 %v11467_v62, 0.0 }
 0x2b3   : > { %v11480_v61 = vadd.f32 %v11289_v43, %v3252_v42  ;;  %v14742_v22 = vmax.f32 %v11471_v45, 0.0 }
 0x2b4   : > { %8773 = vmatmul.mubr.msk.bf16.gmra.mrb[236].mxu0 %vm2402_vm2, %v11315_v4  ;;  %v14740_v40 = vmax.f32 %v11475_v8, 0.0 }
 0x2b5   : > { %8776 = vmatprep.mubr.msk.bf16.mxu0 %vm2402_vm2, %v11354_v48  ;;  %v14741_v30 = vmax.f32 %v11480_v61, 0.0  ;;  %v8662_v32 = vpop.f32.mrb[84].mxu1 }
 0x2b6   : > { %v11492_v4 = vpack.c.bf16 %v14740_v40, %v14743_v59  ;;  %v3257_v42 = vmul.f32 %v11276_v39, %v8662_v32  ;;  %v3061_v19 = vpop.f32.mrb[85].mxu1 }
 0x2b7   : > { %v3255_v48 = vmul.f32 %v11276_v39, %v3061_v19  ;;  %v8663_v13 = vpop.f32.mrb[86].mxu1  ;;  %v11500_v20 = vpack.c.bf16 %v14741_v30, %v14742_v22 }
 0x2b8   : > { %15067 = vst [vmem:[#allocation47_spill] sm:$0xff] %v11492_v4  ;;  %v11503_v29 = vadd.f32 %v11289_v43, %v3257_v42  ;;  %v3258_v35 = vmul.f32 %v11276_v39, %v8663_v13  ;;  %v3064_v56 = vpop.f32.mrb[87].mxu1 }
 0x2b9   : > { %v11507_v40 = vadd.f32 %v11289_v43, %v3255_v48  ;;  %v3256_v32 = vmul.f32 %v11276_v39, %v3064_v56 }
 0x2ba   : > { %15068 = vst [vmem:[#allocation48_spill] sm:$0xff] %v11503_v29  ;;  %v11511_v19 = vadd.f32 %v11289_v43, %v3258_v35  ;;  %v14747_v13 = vmax.f32 %v11503_v29, 0.0 }
 0x2bb   : > { %15069 = vst [vmem:[#allocation49_spill] sm:$0xff] %v11507_v40  ;;  %v11516_v30 = vadd.f32 %v11289_v43, %v3256_v32  ;;  %v14750_v48 = vmax.f32 %v11507_v40, 0.0 }
 0x2bc   : > { %15070 = vst [vmem:[#allocation50_spill] sm:$0xff] %v11511_v19  ;;  %8777 = vmatmul.mubr.msk.bf16.gmra.mrb[240].mxu0 %vm2402_vm2, %v11347_v21  ;;  %v14746_v42 = vmax.f32 %v11511_v19, 0.0  ;;  %v15075_v19 = vmax.f32 %v11403_v53, 0.0 }
 0x2bd   : > { %15071 = vst [vmem:[#allocation51_spill] sm:$0xff] %v11516_v30  ;;  %8780 = vmatprep.mubr.msk.bf16.mxu0 %vm2402_vm2, %v11386_v9  ;;  %v14749_v56 = vmax.f32 %v11516_v30, 0.0  ;;  %v8666_v22 = vpop.f32.mrb[88].mxu1 }
 0x2be   : > { %v11528_v35 = vpack.c.bf16 %v14746_v42, %v14747_v13  ;;  %v3261_v21 = vmul.f32 %v11276_v39, %v8666_v22  ;;  %v3077_v32 = vpop.f32.mrb[89].mxu1 }
 0x2bf   : > { %v3259_v9 = vmul.f32 %v11276_v39, %v3077_v32  ;;  %v8667_v59 = vpop.f32.mrb[90].mxu1  ;;  %v11536_v4 = vpack.c.bf16 %v14749_v56, %v14750_v48 }
 0x2c0   : > { %15072 = vst [vmem:[#allocation52_spill] sm:$0xff] %v11528_v35  ;;  %v3396_v46 = vadd.f32 %v11289_v43, %v3261_v21  ;;  %v3262_v29 = vmul.f32 %v11276_v39, %v8667_v59  ;;  %v3080_v55 = vpop.f32.mrb[91].mxu1  ;;  %v15073_v21 = vmax.f32 %v11394_v1, 0.0  ;;  %v15076_v1 = vmax.f32 %v11408_v17, 0.0 }
 0x2c1   : > { %v3394_v42 = vadd.f32 %v11289_v43, %v3259_v9  ;;  %v3260_v13 = vmul.f32 %v11276_v39, %v3080_v55  ;;  %v15074_v9 = vmax.f32 %v11398_v14, 0.0 }
 0x2c2   : > { %v3524_v22 = vmax.f32 %v3396_v46, 0.0  ;;  %v3397_v35 = vadd.f32 %v11289_v43, %v3262_v29 }
 0x2c3   : > { %v3522_v32 = vmax.f32 %v3394_v42, 0.0  ;;  %v3395_v30 = vadd.f32 %v11289_v43, %v3260_v13 }
 0x2c4   : > { %8781 = vmatmul.mubr.msk.bf16.gmra.mrb[244].mxu0 %vm2402_vm2, %v11379_v7  ;;  %v3588_v59 = vmax.f32 %v15073_v21, %v3524_v22  ;;  %v3525_v56 = vmax.f32 %v3397_v35, 0.0 }
 0x2c5   : > { %8784 = vmatprep.mubr.msk.bf16.mxu0 %vm2402_vm2, %v11428_v12  ;;  %v3586_v48 = vmax.f32 %v15074_v9, %v3522_v32  ;;  %v3523_v55 = vmax.f32 %v3395_v30, 0.0  ;;  %v8670_v46 = vpop.f32.mrb[92].mxu1 }
 0x2c6   : > { %v3620_v29 = vmax.f32 %v11256_v60, %v3588_v59  ;;  %v3589_v7 = vmax.f32 %v15075_v19, %v3525_v56  ;;  %v11555_v42 = vpack.c.bf16 %v3525_v56, %v3524_v22  ;;  %v3265_v13 = vmul.f32 %v11276_v39, %v8670_v46  ;;  %v3093_v40 = vpop.f32.mrb[93].mxu1 }
 0x2c7   : > { %v3618_v12 = vmax.f32 %v11260_v18, %v3586_v48  ;;  %v3587_v35 = vmax.f32 %v15076_v1, %v3523_v55  ;;  %v3263_v14 = vmul.f32 %v11276_v39, %v3093_v40  ;;  %v8671_v21 = vpop.f32.mrb[94].mxu1  ;;  %v11562_v30 = vpack.c.bf16 %v3523_v55, %v3522_v32 }
 0x2c8   : > { %v15077_v60 = vmax.f32 %v10755_v0, %v10939_v24  ;;  %v3621_v19 = vmax.f32 %v11264_v47, %v3589_v7  ;;  %v3400_v56 = vadd.f32 %v11289_v43, %v3265_v13  ;;  %v3266_v22 = vmul.f32 %v11276_v39, %v8671_v21  ;;  %v3096_v18 = vpop.f32.mrb[95].mxu1 }
 0x2c9   : > { %v3619_v17 = vmax.f32 %v11271_v26, %v3587_v35  ;;  %v3398_v48 = vadd.f32 %v11289_v43, %v3263_v14  ;;  %v3264_v40 = vmul.f32 %v11276_v39, %v3096_v18  ;;  %v15078_v32 = vmax.f32 %v10762_v54, %v10943_v52 }
 0x2ca   : > { %v11567_v53 = vmax.f32 %v15077_v60, %v3620_v29  ;;  %v15079_v0 = vmax.f32 %v10771_v41, %v10949_v63  ;;  %v3528_v47 = vmax.f32 %v3400_v56, 0.0  ;;  %v3401_v9 = vadd.f32 %v11289_v43, %v3266_v22 }
 0x2cb   : > { %v11578_v59 = vmax.f32 %v15078_v32, %v3618_v12  ;;  %v3526_v26 = vmax.f32 %v3398_v48, 0.0  ;;  %v3399_v55 = vadd.f32 %v11289_v43, %v3264_v40  ;;  %v15080_v54 = vmax.f32 %v10777_v5, %v10958_v33 }
 0x2cc   : > { %v11583_v24 = vmax.f32 %v15079_v0, %v3621_v19  ;;  %8785 = vmatmul.mubr.msk.bf16.gmra.mrb[248].mxu0 %vm2402_vm2, %v11421_v50  ;;  %v15081_v63 = vmax.f32 %v11431_v31, 0.0  ;;  %v3529_v29 = vmax.f32 %v3401_v9, 0.0  ;;  %v15082_v50 = vmax.f32 %v11435_v57, 0.0 }
 0x2cd   : > { %8788 = vmatprep.mubr.msk.bf16.mxu0 %vm2402_vm2, %v11464_v34  ;;  %v11594_v52 = vmax.f32 %v15080_v54, %v3619_v17  ;;  %v3527_v13 = vmax.f32 %v3399_v55, 0.0  ;;  %v15083_v5 = vmax.f32 %v11439_v15, 0.0  ;;  %v15084_v57 = vmax.f32 %v11444_v6, 0.0 }
 0x2ce   : > { %v6859_v41 = vpack.c.bf16 %v11583_v24, %v11567_v53  ;;  %v3592_v46 = vmax.f32 %v15081_v63, %v3528_v47  ;;  %v3590_v7 = vmax.f32 %v15082_v50, %v3526_v26  ;;  %v8674_v12 = vpop.f32.mrb[96].mxu1  ;;  %v11607_v35 = vpack.c.bf16 %v3529_v29, %v3528_v47  ;;  %v9081_v53 = vld [vmem:[%s14604_s13 + $0x10] sm:$0xff]  }
 0x2cf   : > { %v6858_v34 = vpack.c.bf16 %v11594_v52, %v11578_v59  ;;  %v3593_v33 = vmax.f32 %v15083_v5, %v3529_v29  ;;  %v3269_v14 = vmul.f32 %v11276_v39, %v8674_v12  ;;  %v3109_v31 = vpop.f32.mrb[97].mxu1  ;;  %v3591_v60 = vmax.f32 %v15084_v57, %v3527_v13 }
 0x2d0   : > { %v3624_v1 = vmax.f32 %v11304_v2, %v3592_v46  ;;  %v3622_v21 = vmax.f32 %v11308_v23, %v3590_v7  ;;  %v3267_v19 = vmul.f32 %v11276_v39, %v3109_v31  ;;  %v8675_v56 = vpop.f32.mrb[98].mxu1  ;;  %v11614_v22 = vpack.c.bf16 %v3527_v13, %v3526_v26 }
 0x2d1   : > { %v15085_v2 = vmax.f32 %v10807_v11, %v10979_v3  ;;  %v3625_v18 = vmax.f32 %v11312_v16, %v3593_v33  ;;  %v3404_v17 = vadd.f32 %v11289_v43, %v3269_v14  ;;  %v3270_v48 = vmul.f32 %v11276_v39, %v8675_v56  ;;  %v3112_v23 = vpop.f32.mrb[99].mxu1  ;;  %v15096_v56 = vld [vmem:[#allocation41_spill] sm:$0xff] }
 0x2d2   : > { %v3623_v6 = vmax.f32 %v11319_v51, %v3591_v60  ;;  %v3402_v40 = vadd.f32 %v11289_v43, %v3267_v19  ;;  %v3268_v32 = vmul.f32 %v11276_v39, %v3112_v23  ;;  %v15086_v0 = vmax.f32 %v10818_v38, %v10983_v58 }
 0x2d3   : > { %v11619_v15 = vmax.f32 %v15085_v2, %v3624_v1  ;;  %v15087_v11 = vmax.f32 %v10829_v25, %v10989_v44  ;;  %v3532_v16 = vmax.f32 %v3404_v17, 0.0  ;;  %v3405_v9 = vadd.f32 %v11289_v43, %v3270_v48  ;;  %v15097_v17 = vld [vmem:[#allocation21_spill] sm:$0xff]  ;;  %v15098_v48 = vld [vmem:[#allocation18_spill] sm:$0xff] }
 0x2d4   : > { %v11630_v47 = vmax.f32 %v15086_v0, %v3622_v21  ;;  %8789 = vmatmul.mubr.msk.bf16.gmra.mrb[252].mxu0 %vm2402_vm2, %v11457_v36  ;;  %v3530_v51 = vmax.f32 %v3402_v40, 0.0  ;;  %v3403_v26 = vadd.f32 %v11289_v43, %v3268_v32  ;;  %v15088_v38 = vmax.f32 %v10840_v37, %v10998_v10  ;;  %v15095_v21 = vld [vmem:[#allocation40_spill] sm:$0xff] }
 0x2d5   : > { %v11635_v3 = vmax.f32 %v15087_v11, %v3625_v18  ;;  %8792 = vmatprep.mubr.msk.bf16.mxu0 %vm2402_vm2, %v11500_v20  ;;  %v15089_v44 = vmax.f32 %v11467_v62, 0.0  ;;  %v3533_v54 = vmax.f32 %v3405_v9, 0.0  ;;  %v15090_v36 = vmax.f32 %v11471_v45, 0.0  ;;  %v15101_v40 = vld [vmem:[#allocation24_spill] sm:$0xff]  ;;  %v15103_v9 = vld [vmem:[#allocation47_spill] sm:$0xff] }
 0x2d6   : > { %v11646_v58 = vmax.f32 %v15088_v38, %v3623_v6  ;;  %v3531_v46 = vmax.f32 %v3403_v26, 0.0  ;;  %v8678_v29 = vpop.f32.mrb[100].mxu1  ;;  %v15091_v37 = vmax.f32 %v11475_v8, 0.0  ;;  %v15092_v45 = vmax.f32 %v11480_v61, 0.0  ;;  %v15104_v38 = vld [vmem:[#allocation22_spill] sm:$0xff] }
 0x2d7   : > { %v3596_v55 = vmax.f32 %v15089_v44, %v3532_v16  ;;  %v3594_v63 = vmax.f32 %v15090_v36, %v3530_v51  ;;  %v11659_v7 = vpack.c.bf16 %v3533_v54, %v3532_v16  ;;  %v3273_v13 = vmul.f32 %v11276_v39, %v8678_v29  ;;  %v3125_v62 = vpop.f32.mrb[101].mxu1  ;;  %v15105_v44 = vld [vmem:[#allocation13_spill] sm:$0xff] }
 0x2d8   : > { %v6860_v20 = vpack.c.bf16 %v11646_v58, %v11630_v47  ;;  %v3597_v10 = vmax.f32 %v15091_v37, %v3533_v54  ;;  %v3595_v1 = vmax.f32 %v15092_v45, %v3531_v46  ;;  %v3271_v5 = vmul.f32 %v11276_v39, %v3125_v62  ;;  %v8679_v33 = vpop.f32.mrb[102].mxu1  ;;  %v11714_v62 = vld [vmem:[%s14600_s9] ss:$0 sm:$0xff]  ;;  %v15111_v45 = vld [vmem:[#allocation42_spill] sm:$0xff] }
 0x2d9   : > { %v3628_v50 = vmax.f32 %v11336_v49, %v3596_v55  ;;  %v3626_v12 = vmax.f32 %v11340_v27, %v3594_v63  ;;  %v11666_v14 = vpack.c.bf16 %v3531_v46, %v3530_v51  ;;  %v15093_v49 = vld [vmem:[#allocation12_spill] sm:$0xff]  ;;  %v3408_v60 = vadd.f32 %v11289_v43, %v3273_v13  ;;  %v3128_v27 = vpop.f32.mrb[103].mxu1 }
 0x2da   : > { %v15094_v31 = vmax.f32 %v10673_v28, %v15093_v49  ;;  %v3629_v57 = vmax.f32 %v15095_v21, %v3597_v10  ;;  %v3274_v19 = vmul.f32 %v11276_v39, %v8679_v33  ;;  %v3627_v61 = vmax.f32 %v15096_v56, %v3595_v1  ;;  %v15100_v28 = vld [vmem:[#allocation27_spill] sm:$0xff]  ;;  %v15107_v63 = vld [vmem:[#allocation48_spill] sm:$0xff] }
 0x2db   : > { %v3406_v2 = vadd.f32 %v11289_v43, %v3271_v5  ;;  %v3272_v18 = vmul.f32 %v11276_v39, %v3128_v27  ;;  %v15099_v23 = vmax.f32 %v15097_v17, %v15098_v48  ;;  %v15102_v32 = vmax.f32 %v15100_v28, %v15101_v40  ;;  %v11698_v39 = vld [vmem:[%s14599_s8] ss:$0 sm:$0xff]  ;;  %v15112_v5 = vld [vmem:[#allocation50_spill] sm:$0xff]  ;;  %v15115_v27 = vld [vmem:[#allocation51_spill] sm:$0xff] }
 0x2dc   : > { %v11671_v8 = vmax.f32 %v15094_v31, %v3628_v50  ;;  %v3536_v11 = vmax.f32 %v3408_v60, 0.0  ;;  %v3409_v16 = vadd.f32 %v11289_v43, %v3274_v19  ;;  %8793 = vmatmul.mubr.msk.bf16.gmra.mrb[0].mxu0 %vm2402_vm2, %v15103_v9  ;;  %v15106_v55 = vmax.f32 %v15104_v38, %v15105_v44  ;;  %v15109_v50 = vld [vmem:[#allocation49_spill] sm:$0xff]  ;;  %v15114_v60 = vld [vmem:[#allocation43_spill] sm:$0xff]  ;;  %v15117_v48 = vld [vmem:[#allocation28_spill] sm:$0xff] }
 0x2dd   : > { %v11682_v6 = vmax.f32 %v15099_v23, %v3626_v12  ;;  %v11687_v0 = vmax.f32 %v15102_v32, %v3629_v57  ;;  %v3534_v51 = vmax.f32 %v3406_v2, 0.0  ;;  %v3407_v26 = vadd.f32 %v11289_v43, %v3272_v18  ;;  %8796 = vmatprep.mubr.msk.bf16.mxu0 %vm2402_vm2, %v11536_v4  ;;  %v15118_v23 = vld [vmem:[#allocation19_spill] sm:$0xff]  ;;  %v15120_v32 = vld [vmem:[#allocation44_spill] sm:$0xff]  ;;  %v15121_v38 = vld [vmem:[#allocation45_spill] sm:$0xff] }
 0x2de   : > { %v11703_v54 = vmax.f32 %v15106_v55, %v3627_v61  ;;  %v15108_v46 = vmax.f32 %v15107_v63, 0.0  ;;  %v3537_v43 = vmax.f32 %v3409_v16, 0.0  ;;  %v15110_v37 = vmax.f32 %v15109_v50, 0.0  ;;  %v15122_v63 = vld [vmem:[#allocation11_spill] sm:$0xff]  ;;  %v15125_v50 = vld [vmem:[#allocation17_spill] sm:$0xff] }
 0x2df   : > { %v3535_v10 = vmax.f32 %v3407_v26, 0.0  ;;  %v8690_v13 = vpop.f32.mrb[152].mxu0  ;;  %v15113_v33 = vmax.f32 %v15112_v5, 0.0  ;;  %v15116_v56 = vmax.f32 %v15115_v27, 0.0  ;;  %v15119_v28 = vmax.f32 %v15117_v48, %v15118_v23  ;;  %v15129_v5 = vld [vmem:[#allocation23_spill] sm:$0xff] }
 0x2e0   : > { %v3600_v29 = vmax.f32 %v15108_v46, %v3536_v11  ;;  %v3598_v4 = vmax.f32 %v15110_v37, %v3534_v51  ;;  %v11721_v31 = vpack.c.bf16 %v3537_v43, %v3536_v11  ;;  %v4492_v21 = vmul.f32 %v8690_v13, %v11698_v39  ;;  %v3972_v57 = vpop.f32.mrb[153].mxu0  ;;  %v15123_v46 = vld [vmem:[#allocation14_spill] sm:$0xff]  ;;  %v15126_v37 = vld [vmem:[#allocation20_spill] sm:$0xff] }
 0x2e1   : > { %v3601_v49 = vmax.f32 %v15113_v33, %v3537_v43  ;;  %v3599_v61 = vmax.f32 %v15116_v56, %v3535_v10  ;;  %v4490_v2 = vmul.f32 %v11698_v39, %v3972_v57  ;;  %v8691_v18 = vpop.f32.mrb[154].mxu0  ;;  %v11728_v17 = vpack.c.bf16 %v3535_v10, %v3534_v51  ;;  %v15130_v33 = vld [vmem:[#allocation39_spill] sm:$0xff] }
 0x2e2   : > { %v3632_v1 = vmax.f32 %v15111_v45, %v3600_v29  ;;  %v3630_v19 = vmax.f32 %v15114_v60, %v3598_v4  ;;  %v11737_v16 = vadd.f32 %v11714_v62, %v4492_v21  ;;  %v4493_v9 = vmul.f32 %v8691_v18, %v11698_v39  ;;  %v3975_v26 = vpop.f32.mrb[155].mxu0  ;;  %v15128_v45 = vld [vmem:[#allocation52_spill] sm:$0xff] }
 0x2e3   : > { %v3633_v11 = vmax.f32 %v15120_v32, %v3601_v49  ;;  %v3631_v44 = vmax.f32 %v15121_v38, %v3599_v61  ;;  %v11742_v55 = vadd.f32 %v11714_v62, %v4490_v2  ;;  %v4491_v51 = vmul.f32 %v11698_v39, %v3975_v26 }
 0x2e4   : > { %v11733_v40 = vmax.f32 %v15119_v28, %v3632_v1  ;;  %v15124_v29 = vmax.f32 %v15122_v63, %v15123_v46  ;;  %v15127_v4 = vmax.f32 %v15125_v50, %v15126_v37  ;;  %v11756_v13 = vadd.f32 %v11714_v62, %v4493_v9  ;;  %8797 = vmatmul.mubr.msk.bf16.gmra.mrb[4].mxu0 %vm2402_vm2, %v15128_v45 }
 0x2e5   : > { %v11761_v1 = vadd.f32 %v11714_v62, %v4491_v51  ;;  %8800 = vmatprep.mubr.msk.bf16.mxu0 %vm2402_vm2, %v11562_v30  ;;  %v15131_v49 = vmax.f32 %v15129_v5, %v15130_v33  ;;  %v4755_v60 = vmax.f32 %v11737_v16, 0.0  ;;  %v4753_v27 = vmax.f32 %v11742_v55, 0.0 }
 0x2e6   : > { %v11748_v43 = vmax.f32 %v15124_v29, %v3630_v19  ;;  %v11753_v10 = vmax.f32 %v15127_v4, %v3633_v11  ;;  %v4756_v19 = vmax.f32 %v11756_v13, 0.0  ;;  %v15132_v63 = vmov 0  }
 0x2e7   : > { %v11768_v21 = vmax.f32 %v15131_v49, %v3631_v44  ;;  %v4754_v56 = vmax.f32 %v11761_v1, 0.0  ;;  %v8694_v61 = vpop.f32.mrb[156].mxu0 }
 0x2e8   : > { %v4496_v2 = vmul.f32 %v8694_v61, %v11698_v39  ;;  %v3988_v18 = vpop.f32.mrb[157].mxu0  ;;  %v4994_v48 = vpack.c.bf16 %v4756_v19, %v4755_v60 }
 0x2e9   : > { %v4993_v23 = vpack.c.bf16 %v4754_v56, %v4753_v27  ;;  %v4494_v28 = vmul.f32 %v11698_v39, %v3988_v18  ;;  %v8695_v32 = vpop.f32.mrb[158].mxu0 }
 0x2ea   : > { %v11789_v11 = vadd.f32 %v11714_v62, %v4496_v2  ;;  %v4497_v9 = vmul.f32 %v8695_v32, %v11698_v39  ;;  %v3991_v26 = vpop.f32.mrb[159].mxu0 }
 0x2eb   : > { %v11793_v38 = vadd.f32 %v11714_v62, %v4494_v28  ;;  %v4495_v44 = vmul.f32 %v11698_v39, %v3991_v26  ;;  %5186 = vmatmul.mubr.bf16.vlgmr.msra.gmra.mrb[104].mxu1 %v4993_v23 }
 0x2ec   : > { %v11797_v51 = vadd.f32 %v11714_v62, %v4497_v9  ;;  %8801 = vmatmul.mubr.msk.bf16.gmra.mrb[8].mxu0 %vm2402_vm2, %v11555_v42  ;;  %5195 = vmatprep.mubr.bf16.mxu1 %v15132_v63  ;;  %v4759_v29 = vmax.f32 %v11789_v11, 0.0 }
 0x2ed   : > { %v11803_v46 = vadd.f32 %v11714_v62, %v4495_v44  ;;  %8804 = vmatprep.mubr.msk.bf16.mxu0 %vm2402_vm2, %v11614_v22  ;;  %v4757_v37 = vmax.f32 %v11793_v38, 0.0 }
 0x2ee   : > { %v4760_v50 = vmax.f32 %v11797_v51, 0.0 }
 0x2ef   : > { %v14757_v4 = vmax.f32 %v11803_v46, 0.0  ;;  %v8698_v45 = vpop.f32.mrb[160].mxu0 }
 0x2f0   : > { %v4500_v5 = vmul.f32 %v8698_v45, %v11698_v39  ;;  %v4004_v42 = vpop.f32.mrb[161].mxu0  ;;  %v4996_v33 = vpack.c.bf16 %v4760_v50, %v4759_v29 }
 0x2f1   : > { %v4498_v49 = vmul.f32 %v11698_v39, %v4004_v42  ;;  %v8699_v22 = vpop.f32.mrb[162].mxu0  ;;  %v4995_v61 = vpack.c.bf16 %v14757_v4, %v4757_v37 }
 0x2f2   : > { %v11822_v2 = vadd.f32 %v11714_v62, %v4500_v5  ;;  %v4501_v18 = vmul.f32 %v8699_v22, %v11698_v39  ;;  %v4007_v23 = vpop.f32.mrb[163].mxu0 }
 0x2f3   : > { %v11826_v28 = vadd.f32 %v11714_v62, %v4498_v49  ;;  %v4499_v32 = vmul.f32 %v11698_v39, %v4007_v23  ;;  %5196 = vmatmul.mubr.bf16.gmra.mrb[108].mxu1 %v4994_v48 }
 0x2f4   : > { %v11830_v9 = vadd.f32 %v11714_v62, %v4501_v18  ;;  %8805 = vmatmul.mubr.msk.bf16.gmra.mrb[12].mxu0 %vm2402_vm2, %v11607_v35  ;;  %5205 = vmatprep.mubr.bf16.mxu1 %v15132_v63  ;;  %v14756_v44 = vmax.f32 %v11822_v2, 0.0 }
 0x2f5   : > { %v11836_v26 = vadd.f32 %v11714_v62, %v4499_v32  ;;  %8808 = vmatprep.mubr.msk.bf16.mxu0 %vm2402_vm2, %v11666_v14  ;;  %v14755_v48 = vmax.f32 %v11826_v28, 0.0 }
 0x2f6   : > { %v14754_v45 = vmax.f32 %v11830_v9, 0.0 }
 0x2f7   : > { %v14753_v5 = vmax.f32 %v11836_v26, 0.0  ;;  %v8702_v42 = vpop.f32.mrb[164].mxu0 }
 0x2f8   : > { %v4504_v49 = vmul.f32 %v8702_v42, %v11698_v39  ;;  %v4020_v35 = vpop.f32.mrb[165].mxu0  ;;  %v11849_v22 = vpack.c.bf16 %v14754_v45, %v14756_v44 }
 0x2f9   : > { %v4502_v14 = vmul.f32 %v11698_v39, %v4020_v35  ;;  %v8703_v18 = vpop.f32.mrb[166].mxu0  ;;  %v4997_v23 = vpack.c.bf16 %v14753_v5, %v14755_v48 }
 0x2fa   : > { %v11857_v32 = vadd.f32 %v11714_v62, %v4504_v49  ;;  %v4505_v42 = vmul.f32 %v8703_v18, %v11698_v39  ;;  %v4023_v57 = vpop.f32.mrb[167].mxu0 }
 0x2fb   : > { %v11861_v30 = vadd.f32 %v11714_v62, %v4502_v14  ;;  %v4503_v36 = vmul.f32 %v11698_v39, %v4023_v57  ;;  %5206 = vmatmul.mubr.bf16.gmra.mrb[112].mxu1 %v4995_v61 }
 0x2fc   : > { %v11865_v35 = vadd.f32 %v11714_v62, %v4505_v42  ;;  %8809 = vmatmul.mubr.msk.bf16.gmra.mrb[16].mxu0 %vm2402_vm2, %v11659_v7  ;;  %5215 = vmatprep.mubr.bf16.mxu1 %v15132_v63  ;;  %v4767_v14 = vmax.f32 %v11857_v32, 0.0 }
 0x2fd   : > { %v11871_v49 = vadd.f32 %v11714_v62, %v4503_v36  ;;  %8812 = vmatprep.mubr.msk.bf16.mxu0 %vm2402_vm2, %v11728_v17  ;;  %v14760_v57 = vmax.f32 %v11861_v30, 0.0 }
 0x2fe   : > { %v14758_v18 = vmax.f32 %v11865_v35, 0.0 }
 0x2ff   : > { %v14759_v61 = vmax.f32 %v11871_v49, 0.0  ;;  %v8706_v42 = vpop.f32.mrb[168].mxu0  ;;  %v15151_v32 = vmax.f32 %v11871_v49, 0.0 }
 0x300   : > { %v4508_v5 = vmul.f32 %v8706_v42, %v11698_v39  ;;  %v4036_v7 = vpop.f32.mrb[169].mxu0  ;;  %v11884_v36 = vpack.c.bf16 %v14758_v18, %v4767_v14 }
 0x301   : > { %v4506_v17 = vmul.f32 %v11698_v39, %v4036_v7  ;;  %v8707_v45 = vpop.f32.mrb[170].mxu0  ;;  %v11891_v48 = vpack.c.bf16 %v14759_v61, %v14760_v57 }
 0x302   : > { %v4643_v44 = vadd.f32 %v11714_v62, %v4508_v5  ;;  %v4509_v42 = vmul.f32 %v8707_v45, %v11698_v39  ;;  %v4039_v12 = vpop.f32.mrb[171].mxu0  ;;  %v9080_v5 = vld [vmem:[%s14604_s13 + $0x8] sm:$0xff]  }
 0x303   : > { %v4641_v25 = vadd.f32 %v11714_v62, %v4506_v17  ;;  %v4507_v4 = vmul.f32 %v11698_v39, %v4039_v12  ;;  %5216 = vmatmul.mubr.bf16.gmra.mrb[116].mxu1 %v4996_v33 }
 0x304   : > { %v4771_v18 = vmax.f32 %v4643_v44, 0.0  ;;  %v4644_v7 = vadd.f32 %v11714_v62, %v4509_v42  ;;  %8813 = vmatmul.mubr.msk.bf16.gmra.mrb[20].mxu0 %vm2402_vm2, %v11721_v31  ;;  %5225 = vmatprep.mubr.bf16.mxu1 %v15132_v63  ;;  %v15133_v42 = vld [vmem:[#allocation46_spill] sm:$0xff] }
 0x305   : > { %v4769_v61 = vmax.f32 %v4641_v25, 0.0  ;;  %v4642_v57 = vadd.f32 %v11714_v62, %v4507_v4  ;;  %8824 = vmatprep.mubr.msk.bf16.mxu0 %vm2402_vm2, %v6858_v34 }
 0x306   : > { %v11908_v12 = vmax.f32 %v4755_v60, %v4771_v18  ;;  %v4772_v33 = vmax.f32 %v4644_v7, 0.0 }
 0x307   : > { %v11912_v44 = vmax.f32 %v4753_v27, %v4769_v61  ;;  %v4770_v31 = vmax.f32 %v4642_v57, 0.0  ;;  %v8710_v45 = vpop.f32.mrb[172].mxu0 }
 0x308   : > { %v11916_v25 = vmax.f32 %v4756_v19, %v4772_v33  ;;  %v4512_v4 = vmul.f32 %v8710_v45, %v11698_v39  ;;  %v4052_v59 = vpop.f32.mrb[173].mxu0  ;;  %v11919_v52 = vpack.c.bf16 %v4772_v33, %v4771_v18  ;;  %v15134_v33 = vmax.f32 %v11803_v46, 0.0 }
 0x309   : > { %v11923_v34 = vmax.f32 %v4754_v56, %v4770_v31  ;;  %v4510_v16 = vmul.f32 %v11698_v39, %v4052_v59  ;;  %v8711_v55 = vpop.f32.mrb[174].mxu0  ;;  %v11926_v60 = vpack.c.bf16 %v4770_v31, %v4769_v61  ;;  %v9082_v59 = vld [vmem:[%s14604_s13 + $0x18] sm:$0xff]  }
 0x30a   : > { %v4647_v27 = vadd.f32 %v11714_v62, %v4512_v4  ;;  %v4513_v13 = vmul.f32 %v8711_v55, %v11698_v39  ;;  %v4055_v19 = vpop.f32.mrb[175].mxu0 }
 0x30b   : > { %v4645_v18 = vadd.f32 %v11714_v62, %v4510_v16  ;;  %v4511_v1 = vmul.f32 %v11698_v39, %v4055_v19  ;;  %5226 = vmatmul.mubr.bf16.gmra.mrb[120].mxu1 %v4997_v23 }
 0x30c   : > { %v4775_v56 = vmax.f32 %v4647_v27, 0.0  ;;  %v4648_v57 = vadd.f32 %v11714_v62, %v4513_v13  ;;  %8825 = vmatmul.mubr.msk.bf16.vlgmr.msra.gmra.mrb[24].mxu0 %vm2402_vm2, %v6859_v41  ;;  %5235 = vmatprep.mubr.bf16.mxu1 %v15132_v63  ;;  %v15136_v13 = vpack.c.bf16 %v11635_v3, %v11619_v15  ;;  %v15139_v15 = vmax.f32 %v11826_v28, 0.0 }
 0x30d   : > { %v4773_v61 = vmax.f32 %v4645_v18, 0.0  ;;  %v4646_v17 = vadd.f32 %v11714_v62, %v4511_v1  ;;  %8828 = vmatprep.mubr.msk.bf16.mxu0 %vm2402_vm2, %v6860_v20  ;;  %8841 = vmatpush3.bf16.msra.mxu0 %v15133_v42  ;;  %v15137_v18 = vpack.c.bf16 %v11703_v54, %v11682_v6 }
 0x30e   : > { %v11949_v23 = vmax.f32 %v4759_v29, %v4775_v56  ;;  %v4776_v7 = vmax.f32 %v4648_v57, 0.0  ;;  %8842 = vmatprep.subr.bf16.mxu0 %v9080_v5 }
 0x30f   : > { %v11956_v24 = vmax.f32 %v4757_v37, %v4773_v61  ;;  %v4774_v41 = vmax.f32 %v4646_v17, 0.0  ;;  %v8714_v47 = vpop.f32.mrb[176].mxu0  ;;  %v15141_v17 = vmax.f32 %v11830_v9, 0.0 }
 0x310   : > { %v11960_v58 = vmax.f32 %v4760_v50, %v4776_v7  ;;  %v4516_v20 = vmul.f32 %v8714_v47, %v11698_v39  ;;  %v4068_v11 = vpop.f32.mrb[177].mxu0  ;;  %v11963_v29 = vpack.c.bf16 %v4776_v7, %v4775_v56 }
 0x311   : > { %v11967_v31 = vmax.f32 %v15134_v33, %v4774_v41  ;;  %v4514_v45 = vmul.f32 %v11698_v39, %v4068_v11  ;;  %v8715_v38 = vpop.f32.mrb[178].mxu0  ;;  %8843 = vmatpush3.bf16.msra.mxu0 %v9080_v5  ;;  %v11970_v37 = vpack.c.bf16 %v4774_v41, %v4773_v61 }
 0x312   : > { %v4651_v4 = vadd.f32 %v11714_v62, %v4516_v20  ;;  %v4517_v51 = vmul.f32 %v8715_v38, %v11698_v39  ;;  %v4071_v50 = vpop.f32.mrb[179].mxu0  ;;  %8844 = vmatprep.subr.bf16.mxu0 %v9081_v53 }
 0x313   : > { %15135 = vst [vmem:[#allocation12_spill] sm:$0xff] %v11967_v31  ;;  %v4649_v46 = vadd.f32 %v11714_v62, %v4514_v45  ;;  %v4515_v16 = vmul.f32 %v11698_v39, %v4071_v50  ;;  %5236 = vmatmul.mubr.bf16.gmra.mrb[124].mxu1 %v11849_v22  ;;  %v15138_v22 = vmax.f32 %v11822_v2, 0.0  ;;  %v15142_v2 = vmax.f32 %v11836_v26, 0.0 }
 0x314   : > { %v4779_v55 = vmax.f32 %v4651_v4, 0.0  ;;  %v4652_v27 = vadd.f32 %v11714_v62, %v4517_v51  ;;  %8829 = vmatmul.mubr.msk.bf16.gmra.mrb[28].mxu0 %vm2402_vm2, %v15136_v13  ;;  %5245 = vmatprep.mubr.bf16.mxu1 %v15132_v63  ;;  %v15144_v4 = vpack.c.bf16 %v11687_v0, %v11671_v8 }
 0x315   : > { %v4777_v19 = vmax.f32 %v4649_v46, 0.0  ;;  %v4650_v5 = vadd.f32 %v11714_v62, %v4515_v16  ;;  %8832 = vmatprep.mubr.msk.bf16.mxu0 %vm2402_vm2, %v15137_v18  ;;  %8845 = vmatpush3.bf16.msra.mxu0 %v9081_v53  ;;  %v15147_v16 = vmax.f32 %v11861_v30, 0.0 }
 0x316   : > { %v11993_v1 = vmax.f32 %v15138_v22, %v4779_v55  ;;  %v4780_v56 = vmax.f32 %v4652_v27, 0.0  ;;  %8846 = vmatprep.subr.bf16.mxu0 %v9082_v59  ;;  %v15149_v27 = vmax.f32 %v11865_v35, 0.0 }
 0x317   : > { %v11997_v3 = vmax.f32 %v15139_v15, %v4777_v19  ;;  %v4778_v57 = vmax.f32 %v4650_v5, 0.0  ;;  %v8718_v61 = vpop.f32.mrb[180].mxu0 }
 0x318   : > { %v12001_v42 = vmax.f32 %v15141_v17, %v4780_v56  ;;  %v4520_v6 = vmul.f32 %v8718_v61, %v11698_v39  ;;  %v4084_v54 = vpop.f32.mrb[181].mxu0  ;;  %v12004_v7 = vpack.c.bf16 %v4780_v56, %v4779_v55  ;;  %v15153_v61 = vpack.c.bf16 %v11753_v10, %v11733_v40 }
 0x319   : > { %15140 = vst [vmem:[#allocation40_spill] sm:$0xff] %v11997_v3  ;;  %v12008_v53 = vmax.f32 %v15142_v2, %v4778_v57  ;;  %v4518_v41 = vmul.f32 %v11698_v39, %v4084_v54  ;;  %v8719_v28 = vpop.f32.mrb[182].mxu0  ;;  %8847 = vmatpush3.bf16.msra.mxu0 %v9082_v59  ;;  %v12011_v47 = vpack.c.bf16 %v4778_v57, %v4777_v19  ;;  %v15155_v54 = vld [vmem:[#allocation30_spill] sm:$0xff] }
 0x31a   : > { %v4655_v20 = vadd.f32 %v11714_v62, %v4520_v6  ;;  %v4521_v9 = vmul.f32 %v8719_v28, %v11698_v39  ;;  %v4087_v11 = vpop.f32.mrb[183].mxu0  ;;  %v15145_v59 = vpack.c.bf16 %v11768_v21, %v11748_v43  ;;  %v15154_v6 = vld [vmem:[#allocation32_spill] sm:$0xff] }
 0x31b   : > { %15143 = vst [vmem:[#allocation41_spill] sm:$0xff] %v12008_v53  ;;  %v4653_v33 = vadd.f32 %v11714_v62, %v4518_v41  ;;  %v4519_v45 = vmul.f32 %v11698_v39, %v4087_v11  ;;  %5246 = vmatmul.mubr.bf16.gmra.mrb[128].mxu1 %v11891_v48  ;;  %v15156_v2 = vpack.c.bf16 %v15154_v6, %v15155_v54 }
 0x31c   : > { %v4783_v26 = vmax.f32 %v4655_v20, 0.0  ;;  %v4656_v38 = vadd.f32 %v11714_v62, %v4521_v9  ;;  %8833 = vmatmul.mubr.msk.bf16.gmra.mrb[32].mxu0 %vm2402_vm2, %v15144_v4  ;;  %5255 = vmatprep.mubr.bf16.mxu1 %v15132_v63 }
 0x31d   : > { %v4781_v51 = vmax.f32 %v4653_v33, 0.0  ;;  %v4654_v50 = vadd.f32 %v11714_v62, %v4519_v45  ;;  %8836 = vmatprep.mubr.msk.bf16.mxu0 %vm2402_vm2, %v15145_v59 }
 0x31e   : > { %v12031_v48 = vmax.f32 %v4767_v14, %v4783_v26  ;;  %v4784_v46 = vmax.f32 %v4656_v38, 0.0 }
 0x31f   : > { %v12035_v8 = vmax.f32 %v15147_v16, %v4781_v51  ;;  %v4782_v0 = vmax.f32 %v4654_v50, 0.0  ;;  %v8722_v55 = vpop.f32.mrb[184].mxu0  ;;  %v15157_v16 = vld [vmem:[#allocation31_spill] sm:$0xff] }
 0x320   : > { %15146 = vst [vmem:[#allocation21_spill] sm:$0xff] %v12031_v48  ;;  %v12039_v13 = vmax.f32 %v15149_v27, %v4784_v46  ;;  %v4524_v19 = vmul.f32 %v8722_v55, %v11698_v39  ;;  %v4100_v43 = vpop.f32.mrb[185].mxu0  ;;  %v12042_v21 = vpack.c.bf16 %v4784_v46, %v4783_v26 }
 0x321   : > { %15148 = vst [vmem:[#allocation18_spill] sm:$0xff] %v12035_v8  ;;  %v12046_v14 = vmax.f32 %v15151_v32, %v4782_v0  ;;  %v4522_v5 = vmul.f32 %v11698_v39, %v4100_v43  ;;  %v8723_v30 = vpop.f32.mrb[186].mxu0  ;;  %v12049_v18 = vpack.c.bf16 %v4782_v0, %v4781_v51  ;;  %v15158_v0 = vld [vmem:[#allocation29_spill] sm:$0xff]  ;;  %v15161_v43 = vld [vmem:[#allocation34_spill] sm:$0xff] }
 0x322   : > { %15150 = vst [vmem:[#allocation27_spill] sm:$0xff] %v12039_v13  ;;  %v12052_v22 = vadd.f32 %v11714_v62, %v4524_v19  ;;  %v4525_v35 = vmul.f32 %v8723_v30, %v11698_v39  ;;  %v4103_v56 = vpop.f32.mrb[187].mxu0  ;;  %v15159_v55 = vpack.c.bf16 %v15157_v16, %v15158_v0  ;;  %v15160_v19 = vld [vmem:[#allocation36_spill] sm:$0xff]  ;;  %v15164_v16 = vld [vmem:[#allocation33_spill] sm:$0xff] }
 0x323   : > { %15152 = vst [vmem:[#allocation24_spill] sm:$0xff] %v12046_v14  ;;  %v12056_v15 = vadd.f32 %v11714_v62, %v4522_v5  ;;  %v4523_v57 = vmul.f32 %v11698_v39, %v4103_v56  ;;  %5256 = vmatmul.mubr.bf16.gmra.mrb[132].mxu1 %v11884_v36  ;;  %v15162_v32 = vpack.c.bf16 %v15160_v19, %v15161_v43  ;;  %v15166_v19 = vld [vmem:[#allocation15_spill] sm:$0xff]  ;;  %v15167_v43 = vld [vmem:[#allocation38_spill] sm:$0xff] }
 0x324   : > { %v12061_v49 = vadd.f32 %v11714_v62, %v4525_v35  ;;  %8837 = vmatmul.mubr.msk.bf16.gmra.mrb[36].mxu0 %vm2402_vm2, %v15153_v61  ;;  %5265 = vmatprep.mubr.bf16.mxu1 %v15132_v63  ;;  %v4787_v36 = vmax.f32 %v12052_v22, 0.0 }
 0x325   : > { %v12069_v17 = vadd.f32 %v11714_v62, %v4523_v57  ;;  %8848 = vmatprep.mubr.msk.bf16.mxu0 %vm2402_vm2, %v15156_v2  ;;  %v4785_v28 = vmax.f32 %v12056_v15, 0.0 }
 0x326   : > { %v14774_v41 = vmax.f32 %v12061_v49, 0.0 }
 0x327   : > { %v14769_v40 = vmax.f32 %v12069_v17, 0.0  ;;  %v8726_v10 = vpop.f32.mrb[188].mxu0 }
 0x328   : > { %v4528_v20 = vmul.f32 %v8726_v10, %v11698_v39  ;;  %v4116_v9 = vpop.f32.mrb[189].mxu0  ;;  %v12084_v11 = vpack.c.bf16 %v14774_v41, %v4787_v36  ;;  %v15176_v41 = vld [vmem:[#allocation10_spill] sm:$0xff] }
 0x329   : > { %v4526_v33 = vmul.f32 %v11698_v39, %v4116_v9  ;;  %v8727_v45 = vpop.f32.mrb[190].mxu0  ;;  %v12091_v26 = vpack.c.bf16 %v14769_v40, %v4785_v28 }
 0x32a   : > { %v12094_v38 = vadd.f32 %v11714_v62, %v4528_v20  ;;  %v4529_v4 = vmul.f32 %v8727_v45, %v11698_v39  ;;  %v4119_v51 = vpop.f32.mrb[191].mxu0 }
 0x32b   : > { %v12098_v50 = vadd.f32 %v11714_v62, %v4526_v33  ;;  %v4527_v59 = vmul.f32 %v11698_v39, %v4119_v51  ;;  %5266 = vmatmul.mubr.bf16.gmra.mrb[136].mxu1 %v11926_v60 }
 0x32c   : > { %v12103_v46 = vadd.f32 %v11714_v62, %v4529_v4  ;;  %8849 = vmatmul.mubr.msk.bf16.vlgmr.msra.gmra.mrb[24].mxu0 %vm2402_vm2, %v15159_v55  ;;  %5275 = vmatprep.mubr.bf16.mxu1 %v15132_v63  ;;  %v14768_v60 = vmax.f32 %v12094_v38, 0.0 }
 0x32d   : > { %v12111_v27 = vadd.f32 %v11714_v62, %v4527_v59  ;;  %8852 = vmatprep.mubr.msk.bf16.mxu0 %vm2402_vm2, %v15162_v32  ;;  %v14767_v30 = vmax.f32 %v12098_v50, 0.0  ;;  %v15163_v59 = vld [vmem:[#allocation35_spill] sm:$0xff]  ;;  %v15168_v32 = vpack.c.bf16 %v15166_v19, %v15167_v43  ;;  %v9084_v19 = vld [vmem:[%s14606_s15 + $0x8] sm:$0xff]  }
 0x32e   : > { %v14766_v5 = vmax.f32 %v12103_v46, 0.0  ;;  %v15165_v0 = vpack.c.bf16 %v15163_v59, %v15164_v16 }
 0x32f   : > { %v14765_v35 = vmax.f32 %v12111_v27, 0.0  ;;  %v8730_v56 = vpop.f32.mrb[192].mxu0 }
 0x330   : > { %v4532_v57 = vmul.f32 %v8730_v56, %v11698_v39  ;;  %v4132_v61 = vpop.f32.mrb[193].mxu0  ;;  %v12126_v6 = vpack.c.bf16 %v14766_v5, %v14768_v60 }
 0x331   : > { %v4530_v54 = vmul.f32 %v11698_v39, %v4132_v61  ;;  %v8731_v2 = vpop.f32.mrb[194].mxu0  ;;  %v12133_v10 = vpack.c.bf16 %v14765_v35, %v14767_v30 }
 0x332   : > { %v12136_v20 = vadd.f32 %v11714_v62, %v4532_v57  ;;  %v4533_v9 = vmul.f32 %v8731_v2, %v11698_v39  ;;  %v4135_v33 = vpop.f32.mrb[195].mxu0  ;;  %v9083_v2 = vld [vmem:[%s14606_s15] sm:$0xff]  }
 0x333   : > { %v12140_v45 = vadd.f32 %v11714_v62, %v4530_v54  ;;  %v4531_v4 = vmul.f32 %v11698_v39, %v4135_v33  ;;  %5276 = vmatmul.mubr.bf16.gmra.mrb[140].mxu1 %v11919_v52  ;;  %8864 = vmatprep.subr.bf16.mxu0 %v9083_v2 }
 0x334   : > { %v12145_v51 = vadd.f32 %v11714_v62, %v4533_v9  ;;  %8853 = vmatmul.mubr.msk.bf16.gmra.mrb[28].mxu0 %vm2402_vm2, %v15165_v0  ;;  %5285 = vmatprep.mubr.bf16.mxu1 %v15132_v63  ;;  %v14764_v52 = vmax.f32 %v12136_v20, 0.0 }
 0x335   : > { %v12153_v55 = vadd.f32 %v11714_v62, %v4531_v4  ;;  %8856 = vmatprep.mubr.msk.bf16.mxu0 %vm2402_vm2, %v15168_v32  ;;  %v14763_v57 = vmax.f32 %v12140_v45, 0.0  ;;  %8865 = vmatpush3.bf16.msra.mxu0 %v9083_v2 }
 0x336   : > { %v14761_v56 = vmax.f32 %v12145_v51, 0.0  ;;  %8866 = vmatprep.subr.bf16.mxu0 %v9084_v19 }
 0x337   : > { %v14762_v61 = vmax.f32 %v12153_v55, 0.0  ;;  %v8734_v54 = vpop.f32.mrb[196].mxu0 }
 0x338   : > { %v4536_v9 = vmul.f32 %v8734_v54, %v11698_v39  ;;  %v4148_v33 = vpop.f32.mrb[197].mxu0  ;;  %v12171_v4 = vpack.c.bf16 %v14761_v56, %v14764_v52  ;;  %v15170_v52 = vld [vmem:[#allocation37_spill] sm:$0xff] }
 0x339   : > { %v4534_v59 = vmul.f32 %v11698_v39, %v4148_v33  ;;  %v8735_v16 = vpop.f32.mrb[198].mxu0  ;;  %v12178_v0 = vpack.c.bf16 %v14762_v61, %v14763_v57  ;;  %v15169_v57 = vld [vmem:[#allocation9_spill] sm:$0xff]  ;;  %8867 = vmatpush3.bf16.msra.mxu0 %v9084_v19 }
 0x33a   : > { %v12184_v43 = vadd.f32 %v11714_v62, %v4536_v9  ;;  %v4537_v32 = vmul.f32 %v8735_v16, %v11698_v39  ;;  %v4151_v54 = vpop.f32.mrb[199].mxu0  ;;  %v15171_v35 = vpack.c.bf16 %v15169_v57, %v15170_v52  ;;  %v15172_v9 = vld [vmem:[#allocation26_spill] sm:$0xff] }
 0x33b   : > { %v12188_v33 = vadd.f32 %v11714_v62, %v4534_v59  ;;  %v4535_v56 = vmul.f32 %v11698_v39, %v4151_v54  ;;  %5286 = vmatmul.mubr.bf16.gmra.mrb[144].mxu1 %v11970_v37  ;;  %v15173_v59 = vld [vmem:[#allocation16_spill] sm:$0xff] }
 0x33c   : > { %v12193_v61 = vadd.f32 %v11714_v62, %v4537_v32  ;;  %8857 = vmatmul.mubr.msk.bf16.gmra.mrb[32].mxu0 %vm2402_vm2, %v15171_v35  ;;  %5295 = vmatprep.mubr.bf16.mxu1 %v15132_v63  ;;  %v15174_v16 = vpack.c.bf16 %v15172_v9, %v15173_v59  ;;  %v14771_v37 = vmax.f32 %v12184_v43, 0.0 }
 0x33d   : > { %v12201_v2 = vadd.f32 %v11714_v62, %v4535_v56  ;;  %v14773_v54 = vmax.f32 %v12188_v33, 0.0  ;;  %v9085_v56 = vld [vmem:[%s14606_s15 + $0x10] sm:$0xff]  }
 0x33e   : > { %8860 = vmatprep.mubr.msk.bf16.mxu0 %vm2402_vm2, %v15174_v16  ;;  %v14770_v32 = vmax.f32 %v12193_v61, 0.0  ;;  %8868 = vmatprep.subr.bf16.mxu0 %v9085_v56 }
 0x33f   : > { %v14772_v52 = vmax.f32 %v12201_v2, 0.0  ;;  %v8738_v35 = vpop.f32.mrb[200].mxu0  ;;  %8869 = vmatpush3.bf16.msra.mxu0 %v9085_v56 }
 0x340   : > { %v4540_v57 = vmul.f32 %v8738_v35, %v11698_v39  ;;  %v4164_v5 = vpop.f32.mrb[201].mxu0  ;;  %v12219_v9 = vpack.c.bf16 %v14770_v32, %v14771_v37 }
 0x341   : > { %v4538_v19 = vmul.f32 %v11698_v39, %v4164_v5  ;;  %v8739_v59 = vpop.f32.mrb[202].mxu0  ;;  %v12226_v16 = vpack.c.bf16 %v14772_v52, %v14773_v54  ;;  %v9086_v5 = vld [vmem:[%s14606_s15 + $0x18] sm:$0xff]   ;;  %v15175_v54 = vld [vmem:[#allocation25_spill] sm:$0xff] }
 0x342   : > { %v4675_v30 = vadd.f32 %v11714_v62, %v4540_v57  ;;  %v4541_v35 = vmul.f32 %v8739_v59, %v11698_v39  ;;  %v4167_v60 = vpop.f32.mrb[203].mxu0  ;;  %v15177_v57 = vpack.c.bf16 %v15175_v54, %v15176_v41  ;;  %8870 = vmatprep.subr.bf16.mxu0 %v9086_v5  ;;  %v9087_v54 = vld [vmem:[%s14606_s15 + $0x20] sm:$0xff]  }
 0x343   : > { %v4673_v40 = vadd.f32 %v11714_v62, %v4538_v19  ;;  %v4539_v32 = vmul.f32 %v11698_v39, %v4167_v60  ;;  %5296 = vmatmul.mubr.bf16.gmra.mrb[148].mxu1 %v11963_v29  ;;  %8871 = vmatpush3.bf16.msra.mxu0 %v9086_v5 }
 0x344   : > { %v4803_v37 = vmax.f32 %v4675_v30, 0.0  ;;  %v4676_v52 = vadd.f32 %v11714_v62, %v4541_v35  ;;  %8861 = vmatmul.mubr.msk.bf16.gmra.mrb[36].mxu0 %vm2402_vm2, %v15177_v57  ;;  %5305 = vmatprep.mubr.bf16.mxu1 %v15132_v63 }
 0x345   : > { %v4801_v56 = vmax.f32 %v4673_v40, 0.0  ;;  %v4674_v19 = vadd.f32 %v11714_v62, %v4539_v32  ;;  %v15178_v32 = vmax.f32 %v12061_v49, 0.0  ;;  %8872 = vmatprep.subr.bf16.mxu0 %v9087_v54 }
 0x346   : > { %v12245_v29 = vmax.f32 %v4787_v36, %v4803_v37  ;;  %v4804_v60 = vmax.f32 %v4676_v52, 0.0 }
 0x347   : > { %v12249_v30 = vmax.f32 %v4785_v28, %v4801_v56  ;;  %v4802_v59 = vmax.f32 %v4674_v19, 0.0  ;;  %v8742_v41 = vpop.f32.mrb[204].mxu0  ;;  %v15179_v28 = vmax.f32 %v12069_v17, 0.0  ;;  %8873 = vmatpush3.bf16.msra.mxu0 %v9087_v54 }
 0x348   : > { %v12258_v22 = vmax.f32 %v15178_v32, %v4804_v60  ;;  %v4544_v36 = vmul.f32 %v8742_v41, %v11698_v39  ;;  %v4180_v52 = vpop.f32.mrb[205].mxu0  ;;  %v12261_v35 = vpack.c.bf16 %v4804_v60, %v4803_v37 }
 0x349   : > { %v12267_v5 = vmax.f32 %v15179_v28, %v4802_v59  ;;  %v4542_v57 = vmul.f32 %v11698_v39, %v4180_v52  ;;  %v8743_v19 = vpop.f32.mrb[206].mxu0  ;;  %v12270_v40 = vpack.c.bf16 %v4802_v59, %v4801_v56  ;;  %v9088_v56 = vld [vmem:[%s14606_s15 + $0x28] sm:$0xff]  }
 0x34a   : > { %v4679_v41 = vadd.f32 %v11714_v62, %v4544_v36  ;;  %v4545_v37 = vmul.f32 %v8743_v19, %v11698_v39  ;;  %v4183_v60 = vpop.f32.mrb[207].mxu0  ;;  %8874 = vmatprep.subr.bf16.mxu0 %v9088_v56  ;;  %v15181_v19 = vmax.f32 %v12094_v38, 0.0 }
 0x34b   : > { %15180 = vst [vmem:[#allocation47_spill] sm:$0xff] %v12267_v5  ;;  %v4677_v32 = vadd.f32 %v11714_v62, %v4542_v57  ;;  %v4543_v52 = vmul.f32 %v11698_v39, %v4183_v60  ;;  %5306 = vmatmul.mubr.bf16.gmra.mrb[152].mxu1 %v12011_v47  ;;  %8875 = vmatpush3.bf16.msra.mxu0 %v9088_v56  ;;  %v15182_v47 = vmax.f32 %v12098_v50, 0.0 }
 0x34c   : > { %v4807_v59 = vmax.f32 %v4679_v41, 0.0  ;;  %v4680_v36 = vadd.f32 %v11714_v62, %v4545_v37  ;;  %5315 = vmatprep.mubr.bf16.mxu1 %v15132_v63  ;;  %v9089_v37 = vld [vmem:[%s14606_s15 + $0x30] sm:$0xff]  }
 0x34d   : > { %v4805_v28 = vmax.f32 %v4677_v32, 0.0  ;;  %v4678_v54 = vadd.f32 %v11714_v62, %v4543_v52  ;;  %v15184_v52 = vmax.f32 %v12103_v46, 0.0  ;;  %8876 = vmatprep.subr.bf16.mxu0 %v9089_v37 }
 0x34e   : > { %v12289_v57 = vmax.f32 %v15181_v19, %v4807_v59  ;;  %v4808_v60 = vmax.f32 %v4680_v36, 0.0 }
 0x34f   : > { %v12293_v17 = vmax.f32 %v15182_v47, %v4805_v28  ;;  %v4806_v15 = vmax.f32 %v4678_v54, 0.0  ;;  %v8746_v41 = vpop.f32.mrb[208].mxu0  ;;  %v15185_v54 = vmax.f32 %v12111_v27, 0.0  ;;  %8877 = vmatpush3.bf16.msra.mxu0 %v9089_v37 }
 0x350   : > { %v12302_v38 = vmax.f32 %v15184_v52, %v4808_v60  ;;  %v4548_v36 = vmul.f32 %v8746_v41, %v11698_v39  ;;  %v4196_v56 = vpop.f32.mrb[209].mxu0  ;;  %v12305_v19 = vpack.c.bf16 %v4808_v60, %v4807_v59 }
 0x351   : > { %15183 = vst [vmem:[#allocation22_spill] sm:$0xff] %v12293_v17  ;;  %v12311_v47 = vmax.f32 %v15185_v54, %v4806_v15  ;;  %v4546_v49 = vmul.f32 %v11698_v39, %v4196_v56  ;;  %v8747_v5 = vpop.f32.mrb[210].mxu0  ;;  %v12314_v32 = vpack.c.bf16 %v4806_v15, %v4805_v28  ;;  %v9090_v15 = vld [vmem:[%s14606_s15 + $0x38] sm:$0xff]   ;;  %v15187_v54 = vmax.f32 %v12136_v20, 0.0 }
 0x352   : > { %v4683_v41 = vadd.f32 %v11714_v62, %v4548_v36  ;;  %v4549_v59 = vmul.f32 %v8747_v5, %v11698_v39  ;;  %v4199_v60 = vpop.f32.mrb[211].mxu0  ;;  %8878 = vmatprep.subr.bf16.mxu0 %v9090_v15 }
 0x353   : > { %15186 = vst [vmem:[#allocation13_spill] sm:$0xff] %v12311_v47  ;;  %v4681_v52 = vadd.f32 %v11714_v62, %v4546_v49  ;;  %v4547_v56 = vmul.f32 %v11698_v39, %v4199_v60  ;;  %5316 = vmatmul.mubr.bf16.gmra.mrb[156].mxu1 %v12004_v7  ;;  %8879 = vmatpush3.bf16.msra.mxu0 %v9090_v15  ;;  %v15188_v7 = vmax.f32 %v12140_v45, 0.0  ;;  %v15191_v45 = vmax.f32 %v12153_v55, 0.0 }
 0x354   : > { %v4811_v28 = vmax.f32 %v4683_v41, 0.0  ;;  %v4684_v36 = vadd.f32 %v11714_v62, %v4549_v59  ;;  %5325 = vmatprep.mubr.bf16.mxu1 %v15132_v63 }
 0x355   : > { %v4809_v5 = vmax.f32 %v4681_v52, 0.0  ;;  %v4682_v37 = vadd.f32 %v11714_v62, %v4547_v56  ;;  %v15190_v52 = vmax.f32 %v12145_v51, 0.0 }
 0x356   : > { %v12333_v49 = vmax.f32 %v15187_v54, %v4811_v28  ;;  %v4812_v60 = vmax.f32 %v4684_v36, 0.0 }
 0x357   : > { %v12337_v27 = vmax.f32 %v15188_v7, %v4809_v5  ;;  %v4810_v50 = vmax.f32 %v4682_v37, 0.0  ;;  %v8750_v41 = vpop.f32.mrb[212].mxu0 }
 0x358   : > { %v12343_v46 = vmax.f32 %v15190_v52, %v4812_v60  ;;  %v4552_v56 = vmul.f32 %v8750_v41, %v11698_v39  ;;  %v4212_v20 = vpop.f32.mrb[213].mxu0  ;;  %v12346_v54 = vpack.c.bf16 %v4812_v60, %v4811_v28  ;;  %v15195_v52 = vmax.f32 %v12188_v33, 0.0 }
 0x359   : > { %15189 = vst [vmem:[#allocation48_spill] sm:$0xff] %v12337_v27  ;;  %v12352_v36 = vmax.f32 %v15191_v45, %v4810_v50  ;;  %v4550_v37 = vmul.f32 %v11698_v39, %v4212_v20  ;;  %v8751_v7 = vpop.f32.mrb[214].mxu0  ;;  %v12355_v59 = vpack.c.bf16 %v4810_v50, %v4809_v5  ;;  %v15200_v33 = vmax.f32 %v12201_v2, 0.0 }
 0x35a   : > { %v4687_v41 = vadd.f32 %v11714_v62, %v4552_v56  ;;  %v4553_v28 = vmul.f32 %v8751_v7, %v11698_v39  ;;  %v4215_v60 = vpop.f32.mrb[215].mxu0  ;;  %v15193_v7 = vmax.f32 %v12184_v43, 0.0 }
 0x35b   : > { %15192 = vst [vmem:[#allocation49_spill] sm:$0xff] %v12352_v36  ;;  %v4685_v55 = vadd.f32 %v11714_v62, %v4550_v37  ;;  %v4551_v45 = vmul.f32 %v11698_v39, %v4215_v60  ;;  %5326 = vmatmul.mubr.bf16.gmra.mrb[160].mxu1 %v12049_v18 }
 0x35c   : > { %v4815_v20 = vmax.f32 %v4687_v41, 0.0  ;;  %v4688_v50 = vadd.f32 %v11714_v62, %v4553_v28  ;;  %5335 = vmatprep.mubr.bf16.mxu1 %v15132_v63  ;;  %v15197_v41 = vmax.f32 %v12193_v61, 0.0 }
 0x35d   : > { %v4813_v5 = vmax.f32 %v4685_v55, 0.0  ;;  %v4686_v56 = vadd.f32 %v11714_v62, %v4551_v45 }
 0x35e   : > { %v12371_v15 = vmax.f32 %v15193_v7, %v4815_v20  ;;  %v4816_v51 = vmax.f32 %v4688_v50, 0.0 }
 0x35f   : > { %v12375_v37 = vmax.f32 %v15195_v52, %v4813_v5  ;;  %v4814_v60 = vmax.f32 %v4686_v56, 0.0  ;;  %v8754_v36 = vpop.f32.mrb[216].mxu0 }
 0x360   : > { %15194 = vst [vmem:[#allocation42_spill] sm:$0xff] %v12371_v15  ;;  %v12381_v28 = vmax.f32 %v15197_v41, %v4816_v51  ;;  %v4556_v55 = vmul.f32 %v8754_v36, %v11698_v39  ;;  %v4228_v45 = vpop.f32.mrb[217].mxu0  ;;  %v12384_v43 = vpack.c.bf16 %v4816_v51, %v4815_v20 }
 0x361   : > { %15196 = vst [vmem:[#allocation50_spill] sm:$0xff] %v12375_v37  ;;  %v12390_v52 = vmax.f32 %v15200_v33, %v4814_v60  ;;  %v4554_v56 = vmul.f32 %v11698_v39, %v4228_v45  ;;  %v8755_v7 = vpop.f32.mrb[218].mxu0  ;;  %v12393_v18 = vpack.c.bf16 %v4814_v60, %v4813_v5 }
 0x362   : > { %15198 = vst [vmem:[#allocation43_spill] sm:$0xff] %v12381_v28  ;;  %15199 = vst [vmem:[#allocation51_spill] sm:$0xff] %v12384_v43  ;;  %v12398_v36 = vadd.f32 %v11714_v62, %v4556_v55  ;;  %v4557_v51 = vmul.f32 %v8755_v7, %v11698_v39  ;;  %v4231_v20 = vpop.f32.mrb[219].mxu0 }
 0x363   : > { %15201 = vst [vmem:[#allocation28_spill] sm:$0xff] %v12390_v52  ;;  %v12404_v2 = vadd.f32 %v11714_v62, %v4554_v56  ;;  %v4555_v45 = vmul.f32 %v11698_v39, %v4231_v20  ;;  %5336 = vmatmul.mubr.bf16.gmra.mrb[164].mxu1 %v12042_v21 }
 0x364   : > { %v12409_v5 = vadd.f32 %v11714_v62, %v4557_v51  ;;  %5345 = vmatprep.mubr.bf16.mxu1 %v15132_v63  ;;  %v14783_v55 = vmax.f32 %v12398_v36, 0.0 }
 0x365   : > { %v12413_v60 = vadd.f32 %v11714_v62, %v4555_v45  ;;  %v14782_v7 = vmax.f32 %v12404_v2, 0.0 }
 0x366   : > { %v14780_v33 = vmax.f32 %v12409_v5, 0.0 }
 0x367   : > { %v14781_v56 = vmax.f32 %v12413_v60, 0.0  ;;  %v8758_v41 = vpop.f32.mrb[220].mxu0 }
 0x368   : > { %v4560_v20 = vmul.f32 %v8758_v41, %v11698_v39  ;;  %v4244_v21 = vpop.f32.mrb[221].mxu0  ;;  %v12424_v51 = vpack.c.bf16 %v14780_v33, %v14783_v55 }
 0x369   : > { %v4558_v45 = vmul.f32 %v11698_v39, %v4244_v21  ;;  %v8759_v50 = vpop.f32.mrb[222].mxu0  ;;  %v12431_v61 = vpack.c.bf16 %v14781_v56, %v14782_v7 }
 0x36a   : > { %15202 = vst [vmem:[#allocation19_spill] sm:$0xff] %v12424_v51  ;;  %v12434_v52 = vadd.f32 %v11714_v62, %v4560_v20  ;;  %v4561_v41 = vmul.f32 %v8759_v50, %v11698_v39  ;;  %v4247_v14 = vpop.f32.mrb[223].mxu0 }
 0x36b   : > { %15203 = vst [vmem:[#allocation44_spill] sm:$0xff] %v12431_v61  ;;  %v12438_v37 = vadd.f32 %v11714_v62, %v4558_v45  ;;  %v4559_v33 = vmul.f32 %v11698_v39, %v4247_v14  ;;  %5346 = vmatmul.mubr.bf16.gmra.mrb[168].mxu1 %v12091_v26 }
 0x36c   : > { %v12443_v21 = vadd.f32 %v11714_v62, %v4561_v41  ;;  %5355 = vmatprep.mubr.bf16.mxu1 %v15132_v63  ;;  %v14790_v20 = vmax.f32 %v12434_v52, 0.0 }
 0x36d   : > { %v12447_v56 = vadd.f32 %v11714_v62, %v4559_v33  ;;  %v14789_v7 = vmax.f32 %v12438_v37, 0.0 }
 0x36e   : > { %v14787_v50 = vmax.f32 %v12443_v21, 0.0 }
 0x36f   : > { %v14788_v45 = vmax.f32 %v12447_v56, 0.0  ;;  %v8762_v55 = vpop.f32.mrb[224].mxu0 }
 0x370   : > { %v4564_v14 = vmul.f32 %v8762_v55, %v11698_v39  ;;  %v4260_v26 = vpop.f32.mrb[225].mxu0  ;;  %v12458_v41 = vpack.c.bf16 %v14787_v50, %v14790_v20 }
 0x371   : > { %v4562_v33 = vmul.f32 %v11698_v39, %v4260_v26  ;;  %v8763_v51 = vpop.f32.mrb[226].mxu0  ;;  %v12465_v8 = vpack.c.bf16 %v14788_v45, %v14789_v7 }
 0x372   : > { %15204 = vst [vmem:[#allocation45_spill] sm:$0xff] %v12458_v41  ;;  %v12468_v61 = vadd.f32 %v11714_v62, %v4564_v14  ;;  %v4565_v55 = vmul.f32 %v8763_v51, %v11698_v39  ;;  %v4263_v53 = vpop.f32.mrb[227].mxu0 }
 0x373   : > { %15205 = vst [vmem:[#allocation11_spill] sm:$0xff] %v12465_v8  ;;  %v12472_v28 = vadd.f32 %v11714_v62, %v4562_v33  ;;  %v4563_v50 = vmul.f32 %v11698_v39, %v4263_v53  ;;  %5356 = vmatmul.mubr.bf16.gmra.mrb[172].mxu1 %v12084_v11 }
 0x374   : > { %v12477_v26 = vadd.f32 %v11714_v62, %v4565_v55  ;;  %5365 = vmatprep.mubr.bf16.mxu1 %v15132_v63  ;;  %v14793_v14 = vmax.f32 %v12468_v61, 0.0 }
 0x375   : > { %v12481_v45 = vadd.f32 %v11714_v62, %v4563_v50  ;;  %v14795_v7 = vmax.f32 %v12472_v28, 0.0 }
 0x376   : > { %v14792_v51 = vmax.f32 %v12477_v26, 0.0 }
 0x377   : > { %v14794_v33 = vmax.f32 %v12481_v45, 0.0  ;;  %v8766_v20 = vpop.f32.mrb[228].mxu0 }
 0x378   : > { %v4568_v53 = vmul.f32 %v8766_v20, %v11698_v39  ;;  %v4276_v11 = vpop.f32.mrb[229].mxu0  ;;  %v12492_v55 = vpack.c.bf16 %v14792_v51, %v14793_v14  ;;  %v12507_v20 = vld [vmem:[%s14599_s8] ss:$0 sm:$0xff] }
 0x379   : > { %v4566_v50 = vmul.f32 %v11698_v39, %v4276_v11  ;;  %v8767_v41 = vpop.f32.mrb[230].mxu0  ;;  %v12499_v8 = vpack.c.bf16 %v14794_v33, %v14795_v7 }
 0x37a   : > { %15206 = vst [vmem:[#allocation14_spill] sm:$0xff] %v12492_v55  ;;  %v12502_v13 = vadd.f32 %v11714_v62, %v4568_v53  ;;  %v4569_v51 = vmul.f32 %v12507_v20, %v8767_v41  ;;  %v4279_v14 = vpop.f32.mrb[231].mxu0  ;;  %v12522_v53 = vld [vmem:[%s14600_s9] ss:$0 sm:$0xff] }
 0x37b   : > { %15207 = vst [vmem:[#allocation17_spill] sm:$0xff] %v12499_v8  ;;  %v12511_v39 = vadd.f32 %v11714_v62, %v4566_v50  ;;  %v4567_v11 = vmul.f32 %v12507_v20, %v4279_v14  ;;  %5366 = vmatmul.mubr.bf16.gmra.mrb[176].mxu1 %v12133_v10 }
 0x37c   : > { %v12516_v33 = vadd.f32 %v11714_v62, %v4569_v51  ;;  %5375 = vmatprep.mubr.bf16.mxu1 %v15132_v63  ;;  %v14801_v50 = vmax.f32 %v12502_v13, 0.0 }
 0x37d   : > { %v12525_v41 = vadd.f32 %v12522_v53, %v4567_v11  ;;  %v14803_v14 = vmax.f32 %v12511_v39, 0.0 }
 0x37e   : > { %v14800_v7 = vmax.f32 %v12516_v33, 0.0 }
 0x37f   : > { %v14802_v10 = vmax.f32 %v12525_v41, 0.0  ;;  %v8770_v62 = vpop.f32.mrb[232].mxu0 }
 0x380   : > { %v12535_v51 = vpack.c.bf16 %v14800_v7, %v14801_v50  ;;  %v4572_v55 = vmul.f32 %v12507_v20, %v8770_v62  ;;  %v4292_v8 = vpop.f32.mrb[233].mxu0 }
 0x381   : > { %v12542_v11 = vpack.c.bf16 %v14802_v10, %v14803_v14  ;;  %v4570_v27 = vmul.f32 %v12507_v20, %v4292_v8  ;;  %v8771_v3 = vpop.f32.mrb[234].mxu0  ;;  %v15210_v14 = vmax.f32 %v12398_v36, 0.0  ;;  %v15214_v36 = vmax.f32 %v12413_v60, 0.0 }
 0x382   : > { %15208 = vst [vmem:[#allocation20_spill] sm:$0xff] %v12535_v51  ;;  %v4707_v15 = vadd.f32 %v12522_v53, %v4572_v55  ;;  %v4573_v48 = vmul.f32 %v12507_v20, %v8771_v3  ;;  %v4295_v43 = vpop.f32.mrb[235].mxu0 }
 0x383   : > { %15209 = vst [vmem:[#allocation52_spill] sm:$0xff] %v12542_v11  ;;  %v4705_v7 = vadd.f32 %v12522_v53, %v4570_v27  ;;  %v4571_v50 = vmul.f32 %v12507_v20, %v4295_v43  ;;  %5376 = vmatmul.mubr.bf16.gmra.mrb[180].mxu1 %v12126_v6  ;;  %v15211_v11 = vmax.f32 %v12404_v2, 0.0  ;;  %v15212_v6 = vmax.f32 %v12409_v5, 0.0 }
 0x384   : > { %v4835_v62 = vmax.f32 %v4707_v15, 0.0  ;;  %v4708_v51 = vadd.f32 %v12522_v53, %v4573_v48  ;;  %5385 = vmatprep.mubr.bf16.mxu1 %v15132_v63 }
 0x385   : > { %v4833_v10 = vmax.f32 %v4705_v7, 0.0  ;;  %v4706_v8 = vadd.f32 %v12522_v53, %v4571_v50 }
 0x386   : > { %v12555_v55 = vmax.f32 %v15210_v14, %v4835_v62  ;;  %v4836_v3 = vmax.f32 %v4708_v51, 0.0 }
 0x387   : > { %v12559_v27 = vmax.f32 %v15211_v11, %v4833_v10  ;;  %v4834_v43 = vmax.f32 %v4706_v8, 0.0  ;;  %v8774_v47 = vpop.f32.mrb[236].mxu0 }
 0x388   : > { %v12563_v15 = vmax.f32 %v15212_v6, %v4836_v3  ;;  %v12565_v48 = vpack.c.bf16 %v4836_v3, %v4835_v62  ;;  %v4576_v7 = vmul.f32 %v12507_v20, %v8774_v47  ;;  %v4308_v50 = vpop.f32.mrb[237].mxu0 }
 0x389   : > { %v12570_v14 = vmax.f32 %v15214_v36, %v4834_v43  ;;  %v12572_v51 = vpack.c.bf16 %v4834_v43, %v4833_v10  ;;  %v4574_v2 = vmul.f32 %v12507_v20, %v4308_v50  ;;  %v8775_v11 = vpop.f32.mrb[238].mxu0  ;;  %v15216_v50 = vmax.f32 %v12434_v52, 0.0 }
 0x38a   : > { %15213 = vst [vmem:[#allocation23_spill] sm:$0xff] %v12565_v48  ;;  %v4711_v8 = vadd.f32 %v12522_v53, %v4576_v7  ;;  %v4577_v5 = vmul.f32 %v12507_v20, %v8775_v11  ;;  %v4311_v6 = vpop.f32.mrb[239].mxu0  ;;  %v15217_v11 = vmax.f32 %v12438_v37, 0.0  ;;  %v15220_v52 = vmax.f32 %v12447_v56, 0.0 }
 0x38b   : > { %15215 = vst [vmem:[#allocation39_spill] sm:$0xff] %v12572_v51  ;;  %v4709_v62 = vadd.f32 %v12522_v53, %v4574_v2  ;;  %v4575_v3 = vmul.f32 %v12507_v20, %v4311_v6  ;;  %5386 = vmatmul.mubr.bf16.gmra.mrb[184].mxu1 %v12178_v0  ;;  %v15218_v0 = vmax.f32 %v12443_v21, 0.0 }
 0x38c   : > { %v4839_v47 = vmax.f32 %v4711_v8, 0.0  ;;  %v4712_v60 = vadd.f32 %v12522_v53, %v4577_v5  ;;  %5395 = vmatprep.mubr.bf16.mxu1 %v15132_v63 }
 0x38d   : > { %v4837_v10 = vmax.f32 %v4709_v62, 0.0  ;;  %v4710_v43 = vadd.f32 %v12522_v53, %v4575_v3 }
 0x38e   : > { %v12585_v7 = vmax.f32 %v15216_v50, %v4839_v47  ;;  %v4840_v36 = vmax.f32 %v4712_v60, 0.0 }
 0x38f   : > { %v12589_v2 = vmax.f32 %v15217_v11, %v4837_v10  ;;  %v4838_v6 = vmax.f32 %v4710_v43, 0.0  ;;  %v8778_v48 = vpop.f32.mrb[240].mxu0 }
 0x390   : > { %v12593_v8 = vmax.f32 %v15218_v0, %v4840_v36  ;;  %v12595_v5 = vpack.c.bf16 %v4840_v36, %v4839_v47  ;;  %v4580_v62 = vmul.f32 %v12507_v20, %v8778_v48  ;;  %v4324_v3 = vpop.f32.mrb[241].mxu0 }
 0x391   : > { %v12600_v50 = vmax.f32 %v15220_v52, %v4838_v6  ;;  %v12602_v60 = vpack.c.bf16 %v4838_v6, %v4837_v10  ;;  %v4578_v37 = vmul.f32 %v12507_v20, %v4324_v3  ;;  %v8779_v11 = vpop.f32.mrb[242].mxu0  ;;  %v15222_v3 = vmax.f32 %v12468_v61, 0.0 }
 0x392   : > { %15219 = vst [vmem:[#allocation46_spill] sm:$0xff] %v12595_v5  ;;  %v4715_v43 = vadd.f32 %v12522_v53, %v4580_v62  ;;  %v4581_v21 = vmul.f32 %v12507_v20, %v8779_v11  ;;  %v4327_v0 = vpop.f32.mrb[243].mxu0  ;;  %v15223_v11 = vmax.f32 %v12472_v28, 0.0  ;;  %v15226_v61 = vmax.f32 %v12481_v45, 0.0 }
 0x393   : > { %15221 = vst [vmem:[#allocation32_spill] sm:$0xff] %v12602_v60  ;;  %v4713_v47 = vadd.f32 %v12522_v53, %v4578_v37  ;;  %v4579_v36 = vmul.f32 %v12507_v20, %v4327_v0  ;;  %5396 = vmatmul.mubr.bf16.gmra.mrb[188].mxu1 %v12171_v4  ;;  %v15224_v4 = vmax.f32 %v12477_v26, 0.0 }
 0x394   : > { %v4843_v48 = vmax.f32 %v4715_v43, 0.0  ;;  %v4716_v56 = vadd.f32 %v12522_v53, %v4581_v21  ;;  %5405 = vmatprep.mubr.bf16.mxu1 %v15132_v63 }
 0x395   : > { %v4841_v10 = vmax.f32 %v4713_v47, 0.0  ;;  %v4714_v6 = vadd.f32 %v12522_v53, %v4579_v36 }
 0x396   : > { %v12615_v62 = vmax.f32 %v15222_v3, %v4843_v48  ;;  %v4844_v52 = vmax.f32 %v4716_v56, 0.0 }
 0x397   : > { %v12619_v37 = vmax.f32 %v15223_v11, %v4841_v10  ;;  %v4842_v0 = vmax.f32 %v4714_v6, 0.0  ;;  %v8782_v5 = vpop.f32.mrb[244].mxu0 }
 0x398   : > { %v12623_v43 = vmax.f32 %v15224_v4, %v4844_v52  ;;  %v12625_v21 = vpack.c.bf16 %v4844_v52, %v4843_v48  ;;  %v4584_v47 = vmul.f32 %v12507_v20, %v8782_v5  ;;  %v4340_v36 = vpop.f32.mrb[245].mxu0 }
 0x399   : > { %v12630_v3 = vmax.f32 %v15226_v61, %v4842_v0  ;;  %v12632_v56 = vpack.c.bf16 %v4842_v0, %v4841_v10  ;;  %v4582_v28 = vmul.f32 %v12507_v20, %v4340_v36  ;;  %v8783_v11 = vpop.f32.mrb[246].mxu0  ;;  %v15228_v36 = vmax.f32 %v12502_v13, 0.0 }
 0x39a   : > { %15225 = vst [vmem:[#allocation30_spill] sm:$0xff] %v12625_v21  ;;  %v4719_v6 = vadd.f32 %v12522_v53, %v4584_v47  ;;  %v4585_v26 = vmul.f32 %v12507_v20, %v8783_v11  ;;  %v4343_v4 = vpop.f32.mrb[247].mxu0  ;;  %v15230_v11 = vmax.f32 %v12511_v39, 0.0  ;;  %v15235_v13 = vmax.f32 %v12525_v41, 0.0 }
 0x39b   : > { %15227 = vst [vmem:[#allocation31_spill] sm:$0xff] %v12632_v56  ;;  %v4717_v48 = vadd.f32 %v12522_v53, %v4582_v28  ;;  %v4583_v52 = vmul.f32 %v12507_v20, %v4343_v4  ;;  %5406 = vmatmul.mubr.bf16.gmra.mrb[192].mxu1 %v12226_v16  ;;  %v15232_v16 = vmax.f32 %v12516_v33, 0.0 }
 0x39c   : > { %v4847_v5 = vmax.f32 %v4719_v6, 0.0  ;;  %v4720_v45 = vadd.f32 %v12522_v53, %v4585_v26  ;;  %5415 = vmatprep.mubr.bf16.mxu1 %v15132_v63 }
 0x39d   : > { %v4845_v10 = vmax.f32 %v4717_v48, 0.0  ;;  %v4718_v0 = vadd.f32 %v12522_v53, %v4583_v52 }
 0x39e   : > { %v12645_v47 = vmax.f32 %v15228_v36, %v4847_v5  ;;  %v4848_v61 = vmax.f32 %v4720_v45, 0.0 }
 0x39f   : > { %v12649_v28 = vmax.f32 %v15230_v11, %v4845_v10  ;;  %v4846_v4 = vmax.f32 %v4718_v0, 0.0  ;;  %v8786_v21 = vpop.f32.mrb[248].mxu0 }
 0x3a0   : > { %15229 = vst [vmem:[#allocation29_spill] sm:$0xff] %v12645_v47  ;;  %v12653_v6 = vmax.f32 %v15232_v16, %v4848_v61  ;;  %v12655_v26 = vpack.c.bf16 %v4848_v61, %v4847_v5  ;;  %v4588_v48 = vmul.f32 %v12507_v20, %v8786_v21  ;;  %v4356_v52 = vpop.f32.mrb[249].mxu0 }
 0x3a1   : > { %15231 = vst [vmem:[#allocation36_spill] sm:$0xff] %v12649_v28  ;;  %v12660_v36 = vmax.f32 %v15235_v13, %v4846_v4  ;;  %v12662_v45 = vpack.c.bf16 %v4846_v4, %v4845_v10  ;;  %v4586_v39 = vmul.f32 %v12507_v20, %v4356_v52  ;;  %v8787_v11 = vpop.f32.mrb[250].mxu0 }
 0x3a2   : > { %15233 = vst [vmem:[#allocation34_spill] sm:$0xff] %v12653_v6  ;;  %15234 = vst [vmem:[#allocation35_spill] sm:$0xff] %v12655_v26  ;;  %v12666_v0 = vadd.f32 %v12522_v53, %v4588_v48  ;;  %v4589_v33 = vmul.f32 %v12507_v20, %v8787_v11  ;;  %v4359_v16 = vpop.f32.mrb[251].mxu0 }
 0x3a3   : > { %15236 = vst [vmem:[#allocation33_spill] sm:$0xff] %v12660_v36  ;;  %15237 = vst [vmem:[#allocation15_spill] sm:$0xff] %v12662_v45  ;;  %v12670_v5 = vadd.f32 %v12522_v53, %v4586_v39  ;;  %v4587_v21 = vmul.f32 %v12507_v20, %v4359_v16  ;;  %5416 = vmatmul.mubr.bf16.gmra.mrb[196].mxu1 %v12219_v9 }
 0x3a4   : > { %v12675_v41 = vadd.f32 %v12522_v53, %v4589_v33  ;;  %5425 = vmatprep.mubr.bf16.mxu1 %v15132_v63  ;;  %v14806_v61 = vmax.f32 %v12666_v0, 0.0 }
 0x3a5   : > { %v12679_v10 = vadd.f32 %v12522_v53, %v4587_v21  ;;  %v14808_v48 = vmax.f32 %v12670_v5, 0.0 }
 0x3a6   : > { %v14805_v4 = vmax.f32 %v12675_v41, 0.0 }
 0x3a7   : > { %v14807_v52 = vmax.f32 %v12679_v10, 0.0  ;;  %v8790_v13 = vpop.f32.mrb[252].mxu0 }
 0x3a8   : > { %v12689_v9 = vpack.c.bf16 %v14805_v4, %v14806_v61  ;;  %v4592_v39 = vmul.f32 %v12507_v20, %v8790_v13  ;;  %v4372_v11 = vpop.f32.mrb[253].mxu0 }
 0x3a9   : > { %v12696_v33 = vpack.c.bf16 %v14807_v52, %v14808_v48  ;;  %v4590_v16 = vmul.f32 %v12507_v20, %v4372_v11  ;;  %v8791_v21 = vpop.f32.mrb[254].mxu0 }
 0x3aa   : > { %15238 = vst [vmem:[#allocation38_spill] sm:$0xff] %v12689_v9  ;;  %v12700_v26 = vadd.f32 %v12522_v53, %v4592_v39  ;;  %v4593_v45 = vmul.f32 %v12507_v20, %v8791_v21  ;;  %v4375_v56 = vpop.f32.mrb[255].mxu0 }
 0x3ab   : > { %15239 = vst [vmem:[#allocation9_spill] sm:$0xff] %v12696_v33  ;;  %v12704_v4 = vadd.f32 %v12522_v53, %v4590_v16  ;;  %v4591_v13 = vmul.f32 %v12507_v20, %v4375_v56  ;;  %5426 = vmatmul.mubr.bf16.gmra.mrb[200].mxu1 %v12270_v40 }
 0x3ac   : > { %v12709_v61 = vadd.f32 %v12522_v53, %v4593_v45  ;;  %5435 = vmatprep.mubr.bf16.mxu1 %v15132_v63  ;;  %v14810_v39 = vmax.f32 %v12700_v26, 0.0 }
 0x3ad   : > { %v12713_v11 = vadd.f32 %v12522_v53, %v4591_v13  ;;  %v14812_v52 = vmax.f32 %v12704_v4, 0.0 }
 0x3ae   : > { %v14809_v21 = vmax.f32 %v12709_v61, 0.0 }
 0x3af   : > { %v14811_v16 = vmax.f32 %v12713_v11, 0.0  ;;  %v8794_v48 = vpop.f32.mrb[0].mxu0 }
 0x3b0   : > { %v12723_v40 = vpack.c.bf16 %v14809_v21, %v14810_v39  ;;  %v4596_v56 = vmul.f32 %v12507_v20, %v8794_v48  ;;  %v4388_v45 = vpop.f32.mrb[1].mxu0 }
 0x3b1   : > { %v12730_v13 = vpack.c.bf16 %v14811_v16, %v14812_v52  ;;  %v4594_v9 = vmul.f32 %v12507_v20, %v4388_v45  ;;  %v8795_v33 = vpop.f32.mrb[2].mxu0 }
 0x3b2   : > { %15240 = vst [vmem:[#allocation37_spill] sm:$0xff] %v12723_v40  ;;  %v12734_v60 = vadd.f32 %v12522_v53, %v4596_v56  ;;  %v4597_v51 = vmul.f32 %v12507_v20, %v8795_v33  ;;  %v4391_v36 = vpop.f32.mrb[3].mxu0 }
 0x3b3   : > { %15241 = vst [vmem:[#allocation26_spill] sm:$0xff] %v12730_v13  ;;  %v12738_v21 = vadd.f32 %v12522_v53, %v4594_v9  ;;  %v4595_v48 = vmul.f32 %v12507_v20, %v4391_v36  ;;  %5436 = vmatmul.mubr.bf16.gmra.mrb[204].mxu1 %v12261_v35 }
 0x3b4   : > { %v12743_v39 = vadd.f32 %v12522_v53, %v4597_v51  ;;  %5445 = vmatprep.mubr.bf16.mxu1 %v15132_v63  ;;  %v14814_v56 = vmax.f32 %v12734_v60, 0.0 }
 0x3b5   : > { %v12747_v45 = vadd.f32 %v12522_v53, %v4595_v48  ;;  %v14816_v16 = vmax.f32 %v12738_v21, 0.0 }
 0x3b6   : > { %v14813_v33 = vmax.f32 %v12743_v39, 0.0 }
 0x3b7   : > { %v14815_v9 = vmax.f32 %v12747_v45, 0.0  ;;  %v8798_v52 = vpop.f32.mrb[4].mxu0 }
 0x3b8   : > { %v12757_v35 = vpack.c.bf16 %v14813_v33, %v14814_v56  ;;  %v4600_v51 = vmul.f32 %v12507_v20, %v8798_v52  ;;  %v4404_v36 = vpop.f32.mrb[5].mxu0 }
 0x3b9   : > { %v12764_v48 = vpack.c.bf16 %v14815_v9, %v14816_v16  ;;  %v4598_v40 = vmul.f32 %v12507_v20, %v4404_v36  ;;  %v8799_v13 = vpop.f32.mrb[6].mxu0 }
 0x3ba   : > { %15242 = vst [vmem:[#allocation16_spill] sm:$0xff] %v12757_v35  ;;  %v12768_v6 = vadd.f32 %v12522_v53, %v4600_v51  ;;  %v4601_v28 = vmul.f32 %v12507_v20, %v8799_v13  ;;  %v4407_v47 = vpop.f32.mrb[7].mxu0 }
 0x3bb   : > { %15243 = vst [vmem:[#allocation25_spill] sm:$0xff] %v12764_v48  ;;  %v12772_v33 = vadd.f32 %v12522_v53, %v4598_v40  ;;  %v4599_v52 = vmul.f32 %v12507_v20, %v4407_v47  ;;  %5446 = vmatmul.mubr.bf16.gmra.mrb[208].mxu1 %v12314_v32 }
 0x3bc   : > { %v12777_v56 = vadd.f32 %v12522_v53, %v4601_v28  ;;  %5455 = vmatprep.mubr.bf16.mxu1 %v15132_v63  ;;  %v14821_v51 = vmax.f32 %v12768_v6, 0.0 }
 0x3bd   : > { %15244 = vst [vmem:[#allocation10_spill] sm:$0xff] %v12772_v33  ;;  %v12781_v36 = vadd.f32 %v12522_v53, %v4599_v52  ;;  %v14823_v40 = vmax.f32 %v12772_v33, 0.0 }
 0x3be   : > { %15245 = vst [vmem:[#allocation53_spill] sm:$0xff] %v12777_v56  ;;  %v14820_v13 = vmax.f32 %v12777_v56, 0.0  ;;  %v12785_v9 = vpop.f32.mrb[104].mxu1 }
 0x3bf   : > { %15246 = vst [vmem:[#allocation54_spill] sm:$0xff] %v12781_v36  ;;  %15247 = vst [vmem:[#allocation55_spill] sm:$0xff] %v12785_v9  ;;  %v14822_v47 = vmax.f32 %v12781_v36, 0.0  ;;  %v8802_v16 = vpop.f32.mrb[8].mxu0  ;;  %v12789_v32 = vpop.f32.mrb[105].mxu1 }
 0x3c0   : > { %15248 = vst [vmem:[#allocation56_spill] sm:$0xff] %v12789_v32  ;;  %v12795_v28 = vpack.c.bf16 %v14820_v13, %v14821_v51  ;;  %v4604_v52 = vmul.f32 %v12507_v20, %v8802_v16  ;;  %v4420_v35 = vpop.f32.mrb[9].mxu0  ;;  %v12798_v48 = vpop.f32.mrb[106].mxu1 }
 0x3c1   : > { %15250 = vst [vmem:[#allocation58_spill] sm:$0xff] %v12798_v48  ;;  %v12804_v9 = vpack.c.bf16 %v14822_v47, %v14823_v40  ;;  %v4602_v31 = vmul.f32 %v12507_v20, %v4420_v35  ;;  %v8803_v32 = vpop.f32.mrb[10].mxu0  ;;  %v12807_v17 = vpop.f32.mrb[107].mxu1 }
 0x3c2   : > { %15249 = vst [vmem:[#allocation57_spill] sm:$0xff] %v12795_v28  ;;  %15252 = vst [vmem:[#allocation60_spill] sm:$0xff] %v12807_v17  ;;  %v4739_v56 = vadd.f32 %v12522_v53, %v4604_v52  ;;  %v4605_v13 = vmul.f32 %v12507_v20, %v8803_v32  ;;  %v4423_v51 = vpop.f32.mrb[11].mxu0 }
 0x3c3   : > { %15251 = vst [vmem:[#allocation59_spill] sm:$0xff] %v12804_v9  ;;  %v4737_v16 = vadd.f32 %v12522_v53, %v4602_v31  ;;  %v4603_v28 = vmul.f32 %v12507_v20, %v4423_v51  ;;  %5456 = vmatmul.mubr.bf16.gmra.mrb[212].mxu1 %v12305_v19  ;;  %v15253_v9 = vmax.f32 %v12666_v0, 0.0  ;;  %v15255_v31 = vmax.f32 %v12670_v5, 0.0 }
 0x3c4   : > { %v4867_v48 = vmax.f32 %v4739_v56, 0.0  ;;  %v4740_v47 = vadd.f32 %v12522_v53, %v4605_v13  ;;  %5465 = vmatprep.mubr.bf16.mxu1 %v15132_v63 }
 0x3c5   : > { %v4865_v35 = vmax.f32 %v4737_v16, 0.0  ;;  %v4738_v40 = vadd.f32 %v12522_v53, %v4603_v28  ;;  %v15257_v16 = vmax.f32 %v12675_v41, 0.0 }
 0x3c6   : > { %v4931_v52 = vmax.f32 %v15253_v9, %v4867_v48  ;;  %v4868_v17 = vmax.f32 %v4740_v47, 0.0  ;;  %v12819_v32 = vpop.f32.mrb[108].mxu1 }
 0x3c7   : > { %15254 = vst [vmem:[#allocation61_spill] sm:$0xff] %v12819_v32  ;;  %v12823_v36 = vmax.f32 %v15255_v31, %v4865_v35  ;;  %v4866_v51 = vmax.f32 %v4738_v40, 0.0  ;;  %v8806_v19 = vpop.f32.mrb[12].mxu0  ;;  %v12825_v56 = vpop.f32.mrb[109].mxu1  ;;  %v15259_v40 = vmax.f32 %v12679_v10, 0.0 }
 0x3c8   : > { %15256 = vst [vmem:[#allocation62_spill] sm:$0xff] %v12825_v56  ;;  %v4963_v13 = vmax.f32 %v12555_v55, %v4931_v52  ;;  %v4932_v33 = vmax.f32 %v15257_v16, %v4868_v17  ;;  %v12830_v28 = vpack.c.bf16 %v4868_v17, %v4867_v48  ;;  %v4608_v0 = vmul.f32 %v12507_v20, %v8806_v19  ;;  %v4436_v9 = vpop.f32.mrb[13].mxu0  ;;  %v12833_v47 = vpop.f32.mrb[110].mxu1 }
 0x3c9   : > { %v4961_v5 = vmax.f32 %v12559_v27, %v12823_v36  ;;  %v4930_v31 = vmax.f32 %v15259_v40, %v4866_v51  ;;  %v12839_v32 = vpack.c.bf16 %v4866_v51, %v4865_v35  ;;  %v8807_v56 = vpop.f32.mrb[14].mxu0  ;;  %v12841_v55 = vpop.f32.mrb[111].mxu1  ;;  %v15261_v17 = vmax.f32 %v11908_v12, %v12245_v29 }
 0x3ca   : > { %15258 = vst [vmem:[#allocation63_spill] sm:$0xff] %v12830_v28  ;;  %v4964_v48 = vmax.f32 %v12563_v15, %v4932_v33  ;;  %v4743_v52 = vadd.f32 %v12522_v53, %v4608_v0  ;;  %v4439_v19 = vpop.f32.mrb[15].mxu0  ;;  %v4606_v10 = vmul.f32 %v12507_v20, %v4436_v9  ;;  %v15262_v36 = vmax.f32 %v11916_v25, %v12258_v22 }
 0x3cb   : > { %15260 = vst [vmem:[#allocation64_spill] sm:$0xff] %v12839_v32  ;;  %v12846_v41 = vmax.f32 %v15261_v17, %v4963_v13  ;;  %v4962_v27 = vmax.f32 %v12570_v14, %v4930_v31  ;;  %5466 = vmatmul.mubr.bf16.gmra.mrb[216].mxu1 %v12355_v59  ;;  %v4609_v12 = vmul.f32 %v12507_v20, %v8807_v56  ;;  %v15263_v33 = vmax.f32 %v12700_v26, 0.0 }
 0x3cc   : > { %v12856_v35 = vmax.f32 %v15262_v36, %v4964_v48  ;;  %v4871_v51 = vmax.f32 %v4743_v52, 0.0  ;;  %5475 = vmatprep.mubr.bf16.mxu1 %v15132_v63  ;;  %v4741_v29 = vadd.f32 %v12522_v53, %v4606_v10  ;;  %v4607_v15 = vmul.f32 %v12507_v20, %v4439_v19 }
 0x3cd   : > { %v4744_v13 = vadd.f32 %v12522_v53, %v4609_v12  ;;  %v15264_v26 = vmax.f32 %v12704_v4, 0.0  ;;  %v15265_v36 = vmax.f32 %v11949_v23, %v12289_v57 }
 0x3ce   : > { %v7165_v14 = vpack.c.bf16 %v12856_v35, %v12846_v41  ;;  %v4935_v59 = vmax.f32 %v15263_v33, %v4871_v51  ;;  %v12867_v25 = vpop.f32.mrb[112].mxu1  ;;  %v4869_v22 = vmax.f32 %v4741_v29, 0.0  ;;  %v4742_v16 = vadd.f32 %v12522_v53, %v4607_v15 }
 0x3cf   : > { %v8810_v56 = vpop.f32.mrb[16].mxu0  ;;  %v12870_v0 = vpop.f32.mrb[113].mxu1  ;;  %v4872_v40 = vmax.f32 %v4744_v13, 0.0  ;;  %v15268_v33 = vmax.f32 %v12713_v11, 0.0 }
 0x3d0   : > { %v4967_v9 = vmax.f32 %v12585_v7, %v4935_v59  ;;  %v4612_v31 = vmul.f32 %v12507_v20, %v8810_v56  ;;  %v4452_v17 = vpop.f32.mrb[17].mxu0  ;;  %v12874_v41 = vpop.f32.mrb[114].mxu1  ;;  %v12878_v48 = vmax.f32 %v15264_v26, %v4869_v22  ;;  %v4870_v52 = vmax.f32 %v4742_v16, 0.0 }
 0x3d1   : > { %v8811_v19 = vpop.f32.mrb[18].mxu0  ;;  %v12880_v10 = vpop.f32.mrb[115].mxu1  ;;  %v15266_v7 = vmax.f32 %v12709_v61, 0.0  ;;  %v12889_v29 = vpack.c.bf16 %v4872_v40, %v4871_v51  ;;  %v4610_v57 = vmul.f32 %v12507_v20, %v4452_v17  ;;  %v15270_v51 = vmax.f32 %v11960_v58, %v12302_v38 }
 0x3d2   : > { %v12885_v35 = vmax.f32 %v15265_v36, %v4967_v9  ;;  %v4455_v15 = vpop.f32.mrb[19].mxu0  ;;  %v4965_v4 = vmax.f32 %v12589_v2, %v12878_v48  ;;  %v12895_v59 = vmax.f32 %v15268_v33, %v4870_v52  ;;  %v12897_v13 = vpack.c.bf16 %v4870_v52, %v4869_v22  ;;  %v15273_v48 = vld [vmem:[#allocation47_spill] sm:$0xff] }
 0x3d3   : > { %v4936_v12 = vmax.f32 %v15266_v7, %v4872_v40  ;;  %15267 = vst [vmem:[#allocation65_spill] sm:$0xff] %v12889_v29  ;;  %v4747_v16 = vadd.f32 %v12522_v53, %v4612_v31  ;;  %5476 = vmatmul.mubr.bf16.gmra.mrb[220].mxu1 %v12346_v54  ;;  %v4613_v11 = vmul.f32 %v12507_v20, %v8811_v19  ;;  %v15275_v33 = vmax.f32 %v12738_v21, 0.0 }
 0x3d4   : > { %15269 = vst [vmem:[#allocation66_spill] sm:$0xff] %v12897_v13  ;;  %5485 = vmatprep.mubr.bf16.mxu1 %v15132_v63  ;;  %v4966_v61 = vmax.f32 %v12600_v50, %v12895_v59  ;;  %v4745_v56 = vadd.f32 %v12522_v53, %v4610_v57  ;;  %v15272_v50 = vmax.f32 %v11912_v44, %v12249_v30  ;;  %v15277_v57 = vmax.f32 %v12743_v39, 0.0 }
 0x3d5   : > { %v4968_v23 = vmax.f32 %v12593_v8, %v4936_v12  ;;  %v4875_v2 = vmax.f32 %v4747_v16, 0.0  ;;  %v15271_v8 = vmax.f32 %v12734_v60, 0.0  ;;  %v4748_v40 = vadd.f32 %v12522_v53, %v4613_v11 }
 0x3d6   : > { %v12913_v54 = vpop.f32.mrb[116].mxu1  ;;  %v4977_v31 = vmax.f32 %v15272_v50, %v4961_v5  ;;  %v4873_v38 = vmax.f32 %v4745_v56, 0.0  ;;  %v15274_v52 = vmax.f32 %v11923_v34, %v15273_v48  ;;  %v4611_v44 = vmul.f32 %v12507_v20, %v4455_v15 }
 0x3d7   : > { %v12910_v22 = vmax.f32 %v15270_v51, %v4968_v23  ;;  %v4939_v9 = vmax.f32 %v15271_v8, %v4875_v2  ;;  %v8814_v17 = vpop.f32.mrb[20].mxu0  ;;  %v12921_v26 = vpop.f32.mrb[117].mxu1  ;;  %v4876_v12 = vmax.f32 %v4748_v40, 0.0  ;;  %v15276_v34 = vmax.f32 %v11993_v1, %v12333_v49 }
 0x3d8   : > { %v4978_v19 = vmax.f32 %v15274_v52, %v4962_v27  ;;  %v4468_v36 = vpop.f32.mrb[21].mxu0  ;;  %v12928_v60 = vpop.f32.mrb[118].mxu1  ;;  %v4937_v59 = vmax.f32 %v15275_v33, %v4873_v38  ;;  %v4746_v15 = vadd.f32 %v12522_v53, %v4611_v44  ;;  %v4616_v21 = vmul.f32 %v12507_v20, %v8814_v17 }
 0x3d9   : > { %v7167_v58 = vpack.c.bf16 %v12910_v22, %v12885_v35  ;;  %v4971_v7 = vmax.f32 %v12615_v62, %v4939_v9  ;;  %v8815_v30 = vpop.f32.mrb[22].mxu0  ;;  %v12932_v5 = vpop.f32.mrb[119].mxu1  ;;  %v4940_v11 = vmax.f32 %v15277_v57, %v4876_v12  ;;  %v12943_v62 = vpack.c.bf16 %v4876_v12, %v4875_v2  ;;  %v15313_v35 = vld [vmem:[#allocation44_spill] sm:$0xff]  ;;  %v15314_v22 = vld [vmem:[#allocation18_spill] sm:$0xff] }
 0x3da   : > { %v7164_v16 = vpack.c.bf16 %v4978_v19, %v4977_v31  ;;  %v4471_v23 = vpop.f32.mrb[23].mxu0  ;;  %v4969_v51 = vmax.f32 %v12619_v37, %v4937_v59  ;;  %v4874_v8 = vmax.f32 %v4746_v15, 0.0  ;;  %v4614_v1 = vmul.f32 %v12507_v20, %v4468_v36  ;;  %v15291_v15 = vld [vmem:[#allocation29_spill] sm:$0xff] }
 0x3db   : > { %v12939_v27 = vmax.f32 %v15276_v34, %v4971_v7  ;;  %15278 = vst [vmem:[#allocation47_spill] sm:$0xff] %v12943_v62  ;;  %5486 = vmatmul.mubr.bf16.gmra.mrb[224].mxu1 %v12393_v18  ;;  %v4972_v56 = vmax.f32 %v12623_v43, %v4940_v11  ;;  %v4751_v49 = vadd.f32 %v12522_v53, %v4616_v21  ;;  %v15280_v9 = vmax.f32 %v12747_v45, 0.0  ;;  %v15283_v7 = vld [vmem:[#allocation22_spill] sm:$0xff]  ;;  %v15288_v34 = vld [vmem:[#allocation13_spill] sm:$0xff]  ;;  %v15290_v11 = vld [vmem:[#allocation51_spill] sm:$0xff] }
 0x3dc   : > { %8880 = vmatprep.mubr.bf16.mxu0 %v7164_v16  ;;  %5495 = vmatprep.mubr.bf16.mxu1 %v15132_v63  ;;  %v4617_v39 = vmul.f32 %v12507_v20, %v8815_v30  ;;  %v15279_v18 = vmax.f32 %v12001_v42, %v12343_v46  ;;  %v12961_v43 = vpack.c.bf16 %v4874_v8, %v4873_v38  ;;  %v15282_v45 = vmax.f32 %v12768_v6, 0.0  ;;  %v15285_v30 = vld [vmem:[#allocation10_spill] sm:$0xff]  ;;  %v15287_v16 = vld [vmem:[#allocation12_spill] sm:$0xff]  ;;  %v15292_v6 = vld [vmem:[#allocation53_spill] sm:$0xff] }
 0x3dd   : > { %8881 = vmatmul.mubr.bf16.vlgmr.msra.gmra.mrb[24].mxu0 %v7165_v14  ;;  %v4938_v40 = vmax.f32 %v15280_v9, %v4874_v8  ;;  %v4749_v14 = vadd.f32 %v12522_v53, %v4614_v1  ;;  %v4879_v31 = vmax.f32 %v4751_v49, 0.0  ;;  %v15284_v12 = vmax.f32 %v11956_v24, %v15283_v7  ;;  %v15295_v24 = vld [vmem:[#allocation36_spill] sm:$0xff]  ;;  %v15303_v7 = vld [vmem:[#allocation27_spill] sm:$0xff] }
 0x3de   : > { %v12954_v2 = vpop.f32.mrb[120].mxu1  ;;  %v4988_v37 = vmax.f32 %v15279_v18, %v4972_v56  ;;  %15281 = vst [vmem:[#allocation67_spill] sm:$0xff] %v12961_v43  ;;  %v4752_v17 = vadd.f32 %v12522_v53, %v4617_v39  ;;  %v15286_v33 = vmax.f32 %v15285_v30, 0.0  ;;  %v15289_v57 = vmax.f32 %v15287_v16, %v15288_v34  ;;  %v15296_v18 = vld [vmem:[#allocation21_spill] sm:$0xff]  ;;  %v15367_v62 = vld [vmem:[#allocation35_spill] sm:$0xff] }
 0x3df   : > { %v12964_v50 = vpop.f32.mrb[121].mxu1  ;;  %v4970_v19 = vmax.f32 %v12630_v3, %v4938_v40  ;;  %v4877_v42 = vmax.f32 %v4749_v14, 0.0  ;;  %v4943_v38 = vmax.f32 %v15282_v45, %v4879_v31  ;;  %v4981_v44 = vmax.f32 %v15284_v12, %v4965_v4  ;;  %v15304_v12 = vld [vmem:[#allocation43_spill] sm:$0xff]  ;;  %v15306_v30 = vld [vmem:[#allocation41_spill] sm:$0xff] }
 0x3e0   : > { %v12967_v48 = vpop.f32.mrb[122].mxu1  ;;  %v7169_v52 = vpack.c.bf16 %v4988_v37, %v12939_v27  ;;  %v4880_v36 = vmax.f32 %v4752_v17, 0.0  ;;  %v4982_v27 = vmax.f32 %v15289_v57, %v4966_v61  ;;  %v4615_v3 = vmul.f32 %v12507_v20, %v4471_v23  ;;  %v15297_v61 = vld [vmem:[#allocation42_spill] sm:$0xff]  ;;  %v15300_v17 = vld [vmem:[#allocation40_spill] sm:$0xff] }
 0x3e1   : > { %v12971_v46 = vpop.f32.mrb[123].mxu1  ;;  %v4941_v59 = vmax.f32 %v15286_v33, %v4877_v42  ;;  %v4975_v21 = vmax.f32 %v15291_v15, %v4943_v38  ;;  %v15293_v56 = vmax.f32 %v15292_v6, 0.0  ;;  %v15298_v37 = vmax.f32 %v15296_v18, %v15297_v61  ;;  %v15299_v23 = vld [vmem:[#allocation34_spill] sm:$0xff]  ;;  %v15307_v33 = vld [vmem:[#allocation49_spill] sm:$0xff] }
 0x3e2   : > { %v12988_v1 = vpack.c.bf16 %v4880_v36, %v4879_v31  ;;  %v7166_v49 = vpack.c.bf16 %v4982_v27, %v4981_v44  ;;  %v4750_v39 = vadd.f32 %v12522_v53, %v4615_v3  ;;  %v15301_v31 = vld [vmem:[#allocation48_spill] sm:$0xff]  ;;  %v15305_v44 = vmax.f32 %v15303_v7, %v15304_v12  ;;  %v15309_v57 = vld [vmem:[#allocation54_spill] sm:$0xff]  ;;  %v6094_v12 = vld [vmem:[%s14603_s12] sm:$0x3] }
 0x3e3   : > { %5496 = vmatmul.mubr.bf16.gmra.mrb[228].mxu1 %v15290_v11  ;;  %v4944_v8 = vmax.f32 %v15293_v56, %v4880_v36  ;;  %v4973_v4 = vmax.f32 %v15295_v24, %v4941_v59  ;;  %v4991_v20 = vmax.f32 %v15298_v37, %v4975_v21  ;;  %v15302_v45 = vmax.f32 %v15300_v17, %v15301_v31  ;;  %v15312_v56 = vld [vmem:[#allocation33_spill] sm:$0xff] }
 0x3e4   : > { %15294 = vst [vmem:[#allocation22_spill] sm:$0xff] %v12988_v1  ;;  %5505 = vmatprep.mubr.bf16.mxu1 %v15132_v63  ;;  %8884 = vmatprep.mubr.bf16.mxu0 %v7166_v49  ;;  %v4878_v14 = vmax.f32 %v4750_v39, 0.0  ;;  %v15308_v59 = vmax.f32 %v15306_v30, %v15307_v33  ;;  %v15310_v27 = vmax.f32 %v15309_v57, 0.0  ;;  %v5828_v6 = vlaneseq  ;;  %v15317_v49 = vld [vmem:[#allocation24_spill] sm:$0xff]  ;;  %v5826_v31 = vld [vmem:[%s14602_s11] sm:$0x3] }
 0x3e5   : > { %v4976_v9 = vmax.f32 %v15299_v23, %v4944_v8  ;;  %v4985_v38 = vmax.f32 %v15302_v45, %v4969_v51  ;;  %8885 = vmatmul.mubr.bf16.gmra.mrb[28].mxu0 %v7167_v58  ;;  %v15315_v58 = vld [vmem:[#allocation50_spill] sm:$0xff]  ;;  %v15318_v39 = vld [vmem:[#allocation28_spill] sm:$0xff]  ;;  %v15321_v33 = vld [vmem:[#allocation55_spill] sm:$0xff] }
 0x3e6   : > { %v12997_v40 = vpop.f32.mrb[124].mxu1  ;;  %v4986_v16 = vmax.f32 %v15308_v59, %v4970_v19  ;;  %v4942_v3 = vmax.f32 %v15310_v27, %v4878_v14  ;;  %v13017_v51 = vpack.c.bf16 %v4878_v14, %v4877_v42  ;;  %v15316_v19 = vmax.f32 %v15314_v22, %v15315_v58  ;;  %v15322_v57 = vld [vmem:[#allocation11_spill] sm:$0xff]  ;;  %v15323_v27 = vld [vmem:[#allocation56_spill] sm:$0xff] }
 0x3e7   : > { %v13002_v36 = vpop.f32.mrb[125].mxu1  ;;  %v4992_v53 = vmax.f32 %v15305_v44, %v4976_v9  ;;  %v15319_v18 = vmax.f32 %v15317_v49, %v15318_v39  ;;  %v5829_v37 = vshrl.u32 %v5828_v6, 7  ;;  %v15324_v6 = vld [vmem:[#allocation58_spill] sm:$0xff] }
 0x3e8   : > { %v13013_v34 = vpop.f32.mrb[126].mxu1  ;;  %15311 = vst [vmem:[#allocation10_spill] sm:$0xff] %v13017_v51  ;;  %v7168_v21 = vpack.c.bf16 %v4986_v16, %v4985_v38  ;;  %v4974_v8 = vmax.f32 %v15312_v56, %v4942_v3  ;;  %v4989_v24 = vmax.f32 %v15316_v19, %v4973_v4  ;;  %v15320_v4 = vld [vmem:[#allocation19_spill] sm:$0xff]  ;;  %v15325_v56 = vld [vmem:[#allocation60_spill] sm:$0xff] }
 0x3e9   : > { %v13019_v11 = vpop.f32.mrb[127].mxu1  ;;  %v7171_v15 = vpack.c.bf16 %v4992_v53, %v4991_v20  ;;  %v5830_v17 = vsub.s32 0, %v5829_v37  ;;  %v5834_v45 = vsub.s32 1, %v5829_v37 }
 0x3ea   : > { %8888 = vmatprep.mubr.bf16.mxu0 %v7168_v21  ;;  %v4990_v61 = vmax.f32 %v15319_v18, %v4974_v8 }
 0x3eb   : > { %5506 = vmatmul.mubr.bf16.gmra.mrb[232].mxu1 %v15313_v35  ;;  %v13045_v7 = vrot.slane %v5826_v31, %v5830_v17  ;;  %v13052_v44 = vrot.slane %v5826_v31, %v5834_v45  ;;  %v13060_v16 = vrot.slane %v6094_v12, %v5830_v17  ;;  %v13065_v21 = vrot.slane %v6094_v12, %v5834_v45  ;;  %v15326_v12 = vld [vmem:[#allocation61_spill] sm:$0xff] }
 0x3ec   : > { %5515 = vmatprep.mubr.bf16.mxu1 %v15132_v63  ;;  %v7170_v20 = vpack.c.bf16 %v4990_v61, %v4989_v24 }
 0x3ed   : > { %8889 = vmatmul.mubr.bf16.gmra.mrb[32].mxu0 %v7169_v52  ;;  %v5838_v59 = vmul.f32 %v13045_v7, %v15321_v33  ;;  %v5839_v3 = vmul.f32 %v13052_v44, %v15323_v27  ;;  %v5841_v8 = vmul.f32 %v13052_v44, %v15325_v56  ;;  %v5842_v33 = vmul.f32 %v13045_v7, %v15326_v12  ;;  %v15327_v27 = vld [vmem:[#allocation45_spill] sm:$0xff] }
 0x3ee   : > { %v13030_v42 = vpop.f32.mrb[128].mxu1  ;;  %8892 = vmatprep.mubr.bf16.mxu0 %v7170_v20 }
 0x3ef   : > { %v13032_v23 = vpop.f32.mrb[129].mxu1  ;;  %v6106_v22 = vadd.f32 %v13060_v16, %v5838_v59  ;;  %v6107_v24 = vadd.f32 %v13065_v21, %v5839_v3  ;;  %v6109_v17 = vadd.f32 %v13065_v21, %v5841_v8 }
 0x3f0   : > { %v13034_v9 = vpop.f32.mrb[130].mxu1 }
 0x3f1   : > { %v13036_v14 = vpop.f32.mrb[131].mxu1  ;;  %v6362_v45 = vmax.f32 %v6106_v22, 0.0  ;;  %v6363_v3 = vmax.f32 %v6107_v24, 0.0  ;;  %v5844_v22 = vmul.f32 %v13045_v7, %v12833_v47 }
 0x3f3   : > { %5516 = vmatmul.mubr.bf16.gmra.mrb[236].mxu1 %v15320_v4 }
 0x3f4   : > { %5525 = vmatprep.mubr.bf16.mxu1 %v15132_v63 }
 0x3f5   : > { %8893 = vmatmul.mubr.bf16.gmra.mrb[36].mxu0 %v7171_v15  ;;  %v5840_v15 = vmul.f32 %v13045_v7, %v15324_v6  ;;  %v15328_v6 = vld [vmem:[#allocation62_spill] sm:$0xff] }
 0x3f6   : > { %v13043_v38 = vpop.f32.mrb[132].mxu1 }
 0x3f7   : > { %v13047_v52 = vpop.f32.mrb[133].mxu1  ;;  %v6108_v18 = vadd.f32 %v13060_v16, %v5840_v15  ;;  %v5843_v15 = vmul.f32 %v13052_v44, %v15328_v6 }
 0x3f8   : > { %v13054_v53 = vpop.f32.mrb[134].mxu1 }
 0x3f9   : > { %v13056_v30 = vpop.f32.mrb[135].mxu1  ;;  %v6111_v47 = vadd.f32 %v13065_v21, %v5843_v15  ;;  %v5846_v15 = vmul.f32 %v13045_v7, %v12867_v25 }
 0x3fb   : > { %5526 = vmatmul.mubr.bf16.gmra.mrb[240].mxu1 %v15322_v57 }
 0x3fc   : > { %5535 = vmatprep.mubr.bf16.mxu1 %v15132_v63 }
 0x3fe   : > { %v5267_v35 = vpop.f32.mrb[136].mxu1 }
 0x3ff   : > { %v5870_v58 = vmul.f32 %v13045_v7, %v5267_v35  ;;  %v5269_v19 = vpop.f32.mrb[137].mxu1  ;;  %v6364_v35 = vmax.f32 %v6108_v18, 0.0 }
 0x400   : > { %v5871_v49 = vmul.f32 %v13052_v44, %v5269_v19  ;;  %v5271_v39 = vpop.f32.mrb[138].mxu1 }
 0x401   : > { %v6138_v61 = vadd.f32 %v13060_v16, %v5870_v58  ;;  %v5872_v37 = vmul.f32 %v13045_v7, %v5271_v39  ;;  %v5273_v20 = vpop.f32.mrb[139].mxu1  ;;  %v5845_v39 = vmul.f32 %v13052_v44, %v12841_v55  ;;  %v6112_v55 = vadd.f32 %v13060_v16, %v5844_v22 }
 0x402   : > { %v6139_v4 = vadd.f32 %v13065_v21, %v5871_v49  ;;  %v5873_v31 = vmul.f32 %v13052_v44, %v5273_v20  ;;  %v6365_v49 = vmax.f32 %v6109_v17, 0.0  ;;  %v6110_v20 = vadd.f32 %v13060_v16, %v5842_v33 }
 0x403   : > { %v6394_v59 = vmax.f32 %v6138_v61, 0.0  ;;  %v6140_v57 = vadd.f32 %v13060_v16, %v5872_v37  ;;  %5536 = vmatmul.mubr.bf16.gmra.mrb[244].mxu1 %v15327_v27  ;;  %v6113_v33 = vadd.f32 %v13065_v21, %v5845_v39  ;;  %v6367_v22 = vmax.f32 %v6111_v47, 0.0 }
 0x404   : > { %v6395_v56 = vmax.f32 %v6139_v4, 0.0  ;;  %v6141_v8 = vadd.f32 %v13065_v21, %v5873_v31  ;;  %5545 = vmatprep.mubr.bf16.mxu1 %v15132_v63 }
 0x405   : > { %v13092_v58 = vmax.f32 %v6362_v45, %v6394_v59  ;;  %v6396_v19 = vmax.f32 %v6140_v57, 0.0 }
 0x406   : > { %v13096_v24 = vmax.f32 %v6363_v3, %v6395_v56  ;;  %v6397_v61 = vmax.f32 %v6141_v8, 0.0  ;;  %v5277_v37 = vpop.f32.mrb[140].mxu1  ;;  %v6366_v56 = vmax.f32 %v6110_v20, 0.0  ;;  %v5848_v20 = vmul.f32 %v13045_v7, %v12874_v41 }
 0x407   : > { %v13099_v4 = vmax.f32 %v6364_v35, %v6396_v19  ;;  %v5874_v18 = vmul.f32 %v13045_v7, %v5277_v37  ;;  %v5279_v31 = vpop.f32.mrb[141].mxu1  ;;  %v15329_v19 = vld [vmem:[#allocation17_spill] sm:$0xff]  ;;  %v6368_v37 = vmax.f32 %v6112_v55, 0.0 }
 0x408   : > { %v13103_v45 = vmax.f32 %v6365_v49, %v6397_v61  ;;  %v5875_v17 = vmul.f32 %v13052_v44, %v5279_v31  ;;  %v5281_v12 = vpop.f32.mrb[142].mxu1  ;;  %v5847_v49 = vmul.f32 %v13052_v44, %v12870_v0  ;;  %v6369_v31 = vmax.f32 %v6113_v33, 0.0 }
 0x409   : > { %v6142_v59 = vadd.f32 %v13060_v16, %v5874_v18  ;;  %v5876_v57 = vmul.f32 %v13045_v7, %v5281_v12  ;;  %v5283_v27 = vpop.f32.mrb[143].mxu1 }
 0x40a   : > { %v6143_v3 = vadd.f32 %v13065_v21, %v5875_v17  ;;  %v5877_v6 = vmul.f32 %v13052_v44, %v5283_v27  ;;  %v5849_v17 = vmul.f32 %v13052_v44, %v12880_v10  ;;  %v6115_v41 = vadd.f32 %v13065_v21, %v5847_v49 }
 0x40b   : > { %v6398_v8 = vmax.f32 %v6142_v59, 0.0  ;;  %v6144_v35 = vadd.f32 %v13060_v16, %v5876_v57  ;;  %5546 = vmatmul.mubr.bf16.gmra.mrb[248].mxu1 %v15329_v19  ;;  %v6114_v59 = vadd.f32 %v13060_v16, %v5846_v15  ;;  %v6116_v10 = vadd.f32 %v13060_v16, %v5848_v20 }
 0x40c   : > { %v6399_v61 = vmax.f32 %v6143_v3, 0.0  ;;  %v6145_v39 = vadd.f32 %v13065_v21, %v5877_v6  ;;  %5555 = vmatprep.mubr.bf16.mxu1 %v15132_v63  ;;  %v6117_v15 = vadd.f32 %v13065_v21, %v5849_v17  ;;  %v5850_v49 = vmul.f32 %v13045_v7, %v12913_v54 }
 0x40d   : > { %v13122_v18 = vmax.f32 %v6366_v56, %v6398_v8  ;;  %v6400_v25 = vmax.f32 %v6144_v35, 0.0  ;;  %v6371_v20 = vmax.f32 %v6115_v41, 0.0 }
 0x40e   : > { %v13126_v47 = vmax.f32 %v6367_v22, %v6399_v61  ;;  %v6401_v12 = vmax.f32 %v6145_v39, 0.0  ;;  %v5287_v0 = vpop.f32.mrb[144].mxu1  ;;  %v6370_v61 = vmax.f32 %v6114_v59, 0.0  ;;  %v5852_v59 = vmul.f32 %v13045_v7, %v12928_v60 }
 0x40f   : > { %v13129_v57 = vmax.f32 %v6368_v37, %v6400_v25  ;;  %v5878_v55 = vmul.f32 %v13045_v7, %v5287_v0  ;;  %v5289_v27 = vpop.f32.mrb[145].mxu1  ;;  %v15333_v25 = vld [vmem:[#allocation14_spill] sm:$0xff]  ;;  %v6372_v0 = vmax.f32 %v6116_v10, 0.0 }
 0x410   : > { %15330 = vst [vmem:[#allocation12_spill] sm:$0xff] %v13126_v47  ;;  %v13133_v3 = vmax.f32 %v6369_v31, %v6401_v12  ;;  %v5879_v33 = vmul.f32 %v13052_v44, %v5289_v27  ;;  %v5291_v6 = vpop.f32.mrb[146].mxu1  ;;  %v5851_v31 = vmul.f32 %v13052_v44, %v12921_v26  ;;  %v6373_v27 = vmax.f32 %v6117_v15, 0.0 }
 0x411   : > { %15331 = vst [vmem:[#allocation13_spill] sm:$0xff] %v13129_v57  ;;  %v6146_v56 = vadd.f32 %v13060_v16, %v5878_v55  ;;  %v5880_v8 = vmul.f32 %v13045_v7, %v5291_v6  ;;  %v5293_v35 = vpop.f32.mrb[147].mxu1 }
 0x412   : > { %15332 = vst [vmem:[#allocation51_spill] sm:$0xff] %v13133_v3  ;;  %v6147_v19 = vadd.f32 %v13065_v21, %v5879_v33  ;;  %v5881_v22 = vmul.f32 %v13052_v44, %v5293_v35  ;;  %v5853_v33 = vmul.f32 %v13052_v44, %v12932_v5  ;;  %v6119_v60 = vadd.f32 %v13065_v21, %v5851_v31 }
 0x413   : > { %v6402_v39 = vmax.f32 %v6146_v56, 0.0  ;;  %v6148_v37 = vadd.f32 %v13060_v16, %v5880_v8  ;;  %5556 = vmatmul.mubr.bf16.gmra.mrb[252].mxu1 %v15333_v25  ;;  %v6118_v56 = vadd.f32 %v13060_v16, %v5850_v49  ;;  %v6120_v5 = vadd.f32 %v13060_v16, %v5852_v59 }
 0x414   : > { %v6403_v12 = vmax.f32 %v6147_v19, 0.0  ;;  %v6149_v17 = vadd.f32 %v13065_v21, %v5881_v22  ;;  %5565 = vmatprep.mubr.bf16.mxu1 %v15132_v63  ;;  %v6121_v49 = vadd.f32 %v13065_v21, %v5853_v33  ;;  %v5854_v31 = vmul.f32 %v13045_v7, %v12954_v2 }
 0x415   : > { %v13152_v55 = vmax.f32 %v6370_v61, %v6402_v39  ;;  %v6404_v54 = vmax.f32 %v6148_v37, 0.0  ;;  %v6375_v59 = vmax.f32 %v6119_v60, 0.0 }
 0x416   : > { %v13156_v41 = vmax.f32 %v6371_v20, %v6403_v12  ;;  %v6405_v6 = vmax.f32 %v6149_v17, 0.0  ;;  %v5297_v26 = vpop.f32.mrb[148].mxu1  ;;  %v6374_v12 = vmax.f32 %v6118_v56, 0.0  ;;  %v5856_v56 = vmul.f32 %v13045_v7, %v12967_v48 }
 0x417   : > { %15334 = vst [vmem:[#allocation29_spill] sm:$0xff] %v13152_v55  ;;  %v13159_v8 = vmax.f32 %v6372_v0, %v6404_v54  ;;  %v5882_v10 = vmul.f32 %v13045_v7, %v5297_v26  ;;  %v5299_v35 = vpop.f32.mrb[149].mxu1  ;;  %v15338_v54 = vld [vmem:[#allocation52_spill] sm:$0xff]  ;;  %v6376_v26 = vmax.f32 %v6120_v5, 0.0 }
 0x418   : > { %15335 = vst [vmem:[#allocation53_spill] sm:$0xff] %v13156_v41  ;;  %v13163_v19 = vmax.f32 %v6373_v27, %v6405_v6  ;;  %v5883_v15 = vmul.f32 %v13052_v44, %v5299_v35  ;;  %v5301_v22 = vpop.f32.mrb[150].mxu1  ;;  %v5855_v27 = vmul.f32 %v13052_v44, %v12964_v50  ;;  %v6377_v35 = vmax.f32 %v6121_v49, 0.0 }
 0x419   : > { %15336 = vst [vmem:[#allocation36_spill] sm:$0xff] %v13159_v8  ;;  %v6150_v61 = vadd.f32 %v13060_v16, %v5882_v10  ;;  %v5884_v39 = vmul.f32 %v13045_v7, %v5301_v22  ;;  %v5303_v37 = vpop.f32.mrb[151].mxu1 }
 0x41a   : > { %15337 = vst [vmem:[#allocation21_spill] sm:$0xff] %v13163_v19  ;;  %v6151_v25 = vadd.f32 %v13065_v21, %v5883_v15  ;;  %v5885_v20 = vmul.f32 %v13052_v44, %v5303_v37  ;;  %v5857_v15 = vmul.f32 %v13052_v44, %v12971_v46  ;;  %v6123_v48 = vadd.f32 %v13065_v21, %v5855_v27 }
 0x41b   : > { %v6406_v17 = vmax.f32 %v6150_v61, 0.0  ;;  %v6152_v0 = vadd.f32 %v13060_v16, %v5884_v39  ;;  %5566 = vmatmul.mubr.bf16.gmra.mrb[0].mxu1 %v15338_v54  ;;  %v6122_v61 = vadd.f32 %v13060_v16, %v5854_v31  ;;  %v6124_v46 = vadd.f32 %v13060_v16, %v5856_v56 }
 0x41c   : > { %v6407_v6 = vmax.f32 %v6151_v25, 0.0  ;;  %v6153_v33 = vadd.f32 %v13065_v21, %v5885_v20  ;;  %5575 = vmatprep.mubr.bf16.mxu1 %v15132_v63  ;;  %v6125_v31 = vadd.f32 %v13065_v21, %v5857_v15  ;;  %v5858_v27 = vmul.f32 %v13045_v7, %v12997_v40 }
 0x41d   : > { %v13182_v10 = vmax.f32 %v6374_v12, %v6406_v17  ;;  %v6408_v2 = vmax.f32 %v6152_v0, 0.0  ;;  %v6379_v56 = vmax.f32 %v6123_v48, 0.0 }
 0x41e   : > { %v13186_v60 = vmax.f32 %v6375_v59, %v6407_v6  ;;  %v6409_v22 = vmax.f32 %v6153_v33, 0.0  ;;  %v5307_v50 = vpop.f32.mrb[152].mxu1  ;;  %v6378_v6 = vmax.f32 %v6122_v61, 0.0  ;;  %v5860_v61 = vmul.f32 %v13045_v7, %v13013_v34 }
 0x41f   : > { %15339 = vst [vmem:[#allocation42_spill] sm:$0xff] %v13182_v10  ;;  %v13189_v39 = vmax.f32 %v6376_v26, %v6408_v2  ;;  %v5886_v5 = vmul.f32 %v13045_v7, %v5307_v50  ;;  %v5309_v37 = vpop.f32.mrb[153].mxu1  ;;  %v15343_v2 = vld [vmem:[#allocation20_spill] sm:$0xff]  ;;  %v6380_v50 = vmax.f32 %v6124_v46, 0.0 }
 0x420   : > { %15340 = vst [vmem:[#allocation34_spill] sm:$0xff] %v13186_v60  ;;  %v13193_v25 = vmax.f32 %v6377_v35, %v6409_v22  ;;  %v5887_v49 = vmul.f32 %v13052_v44, %v5309_v37  ;;  %v5311_v20 = vpop.f32.mrb[154].mxu1  ;;  %v5859_v35 = vmul.f32 %v13052_v44, %v13002_v36  ;;  %v6381_v37 = vmax.f32 %v6125_v31, 0.0 }
 0x421   : > { %15341 = vst [vmem:[#allocation40_spill] sm:$0xff] %v13189_v39  ;;  %v6154_v12 = vadd.f32 %v13060_v16, %v5886_v5  ;;  %v5888_v17 = vmul.f32 %v13045_v7, %v5311_v20  ;;  %v5313_v0 = vpop.f32.mrb[155].mxu1  ;;  %v9093_v39 = vld [vmem:[%s14607_s16 + $0x48] sm:$0xff]  }
 0x422   : > { %15342 = vst [vmem:[#allocation48_spill] sm:$0xff] %v13193_v25  ;;  %v6155_v54 = vadd.f32 %v13065_v21, %v5887_v49  ;;  %v5889_v59 = vmul.f32 %v13052_v44, %v5313_v0  ;;  %v5861_v49 = vmul.f32 %v13052_v44, %v13019_v11  ;;  %v6127_v34 = vadd.f32 %v13065_v21, %v5859_v35 }
 0x423   : > { %v6410_v33 = vmax.f32 %v6154_v12, 0.0  ;;  %v6156_v26 = vadd.f32 %v13060_v16, %v5888_v17  ;;  %5576 = vmatmul.mubr.bf16.gmra.mrb[4].mxu1 %v15343_v2  ;;  %v6126_v12 = vadd.f32 %v13060_v16, %v5858_v27  ;;  %v6128_v11 = vadd.f32 %v13060_v16, %v5860_v61 }
 0x424   : > { %v6411_v22 = vmax.f32 %v6155_v54, 0.0  ;;  %v6157_v15 = vadd.f32 %v13065_v21, %v5889_v59  ;;  %5585 = vmatprep.mubr.bf16.mxu1 %v15132_v63  ;;  %v6129_v27 = vadd.f32 %v13065_v21, %v5861_v49  ;;  %v5862_v35 = vmul.f32 %v13045_v7, %v13030_v42 }
 0x425   : > { %v13212_v5 = vmax.f32 %v6378_v6, %v6410_v33  ;;  %v6412_v40 = vmax.f32 %v6156_v26, 0.0  ;;  %v6383_v61 = vmax.f32 %v6127_v34, 0.0 }
 0x426   : > { %v13216_v48 = vmax.f32 %v6379_v56, %v6411_v22  ;;  %v6413_v20 = vmax.f32 %v6157_v15, 0.0  ;;  %v5317_v36 = vpop.f32.mrb[156].mxu1  ;;  %v6382_v22 = vmax.f32 %v6126_v12, 0.0  ;;  %v5864_v12 = vmul.f32 %v13045_v7, %v13034_v9 }
 0x427   : > { %15344 = vst [vmem:[#allocation27_spill] sm:$0xff] %v13212_v5  ;;  %v13219_v17 = vmax.f32 %v6380_v50, %v6412_v40  ;;  %v5890_v46 = vmul.f32 %v13045_v7, %v5317_v36  ;;  %v5319_v0 = vpop.f32.mrb[157].mxu1  ;;  %v15348_v40 = vld [vmem:[#allocation39_spill] sm:$0xff]  ;;  %v6384_v36 = vmax.f32 %v6128_v11, 0.0 }
 0x428   : > { %15345 = vst [vmem:[#allocation43_spill] sm:$0xff] %v13216_v48  ;;  %v13223_v54 = vmax.f32 %v6381_v37, %v6413_v20  ;;  %v5891_v31 = vmul.f32 %v13052_v44, %v5319_v0  ;;  %v5321_v59 = vpop.f32.mrb[158].mxu1  ;;  %v5863_v37 = vmul.f32 %v13052_v44, %v13032_v23  ;;  %v6385_v0 = vmax.f32 %v6129_v27, 0.0 }
 0x429   : > { %15346 = vst [vmem:[#allocation41_spill] sm:$0xff] %v13219_v17  ;;  %v6158_v6 = vadd.f32 %v13060_v16, %v5890_v46  ;;  %v5892_v33 = vmul.f32 %v13045_v7, %v5321_v59  ;;  %v5323_v26 = vpop.f32.mrb[159].mxu1 }
 0x42a   : > { %15347 = vst [vmem:[#allocation49_spill] sm:$0xff] %v13223_v54  ;;  %v6159_v2 = vadd.f32 %v13065_v21, %v5891_v31  ;;  %v5893_v56 = vmul.f32 %v13052_v44, %v5323_v26  ;;  %v5865_v31 = vmul.f32 %v13052_v44, %v13036_v14  ;;  %v6131_v9 = vadd.f32 %v13065_v21, %v5863_v37 }
 0x42b   : > { %v6414_v15 = vmax.f32 %v6158_v6, 0.0  ;;  %v6160_v50 = vadd.f32 %v13060_v16, %v5892_v33  ;;  %5586 = vmatmul.mubr.bf16.gmra.mrb[8].mxu1 %v15348_v40  ;;  %v6130_v6 = vadd.f32 %v13060_v16, %v5862_v35  ;;  %v6132_v14 = vadd.f32 %v13060_v16, %v5864_v12 }
 0x42c   : > { %v6415_v20 = vmax.f32 %v6159_v2, 0.0  ;;  %v6161_v49 = vadd.f32 %v13065_v21, %v5893_v56  ;;  %5595 = vmatprep.mubr.bf16.mxu1 %v15132_v63  ;;  %v6133_v35 = vadd.f32 %v13065_v21, %v5865_v31  ;;  %v5866_v37 = vmul.f32 %v13045_v7, %v13043_v38 }
 0x42d   : > { %v13242_v46 = vmax.f32 %v6382_v22, %v6414_v15  ;;  %v6416_v42 = vmax.f32 %v6160_v50, 0.0  ;;  %v6387_v12 = vmax.f32 %v6131_v9, 0.0 }
 0x42e   : > { %v13246_v34 = vmax.f32 %v6383_v61, %v6415_v20  ;;  %v6417_v59 = vmax.f32 %v6161_v49, 0.0  ;;  %v5327_v23 = vpop.f32.mrb[160].mxu1  ;;  %v6386_v20 = vmax.f32 %v6130_v6, 0.0  ;;  %v5868_v6 = vmul.f32 %v13045_v7, %v13054_v53 }
 0x42f   : > { %15349 = vst [vmem:[#allocation54_spill] sm:$0xff] %v13242_v46  ;;  %v13249_v33 = vmax.f32 %v6384_v36, %v6416_v42  ;;  %v5894_v11 = vmul.f32 %v13045_v7, %v5327_v23  ;;  %v5329_v26 = vpop.f32.mrb[161].mxu1  ;;  %v15353_v42 = vld [vmem:[#allocation23_spill] sm:$0xff]  ;;  %v6388_v23 = vmax.f32 %v6132_v14, 0.0 }
 0x430   : > { %15350 = vst [vmem:[#allocation33_spill] sm:$0xff] %v13246_v34  ;;  %v13253_v2 = vmax.f32 %v6385_v0, %v6417_v59  ;;  %v5895_v27 = vmul.f32 %v13052_v44, %v5329_v26  ;;  %v5331_v56 = vpop.f32.mrb[162].mxu1  ;;  %v5867_v0 = vmul.f32 %v13052_v44, %v13047_v52  ;;  %v6389_v26 = vmax.f32 %v6133_v35, 0.0 }
 0x431   : > { %15351 = vst [vmem:[#allocation44_spill] sm:$0xff] %v13249_v33  ;;  %v6162_v22 = vadd.f32 %v13060_v16, %v5894_v11  ;;  %v5896_v15 = vmul.f32 %v13045_v7, %v5331_v56  ;;  %v5333_v50 = vpop.f32.mrb[163].mxu1 }
 0x432   : > { %15352 = vst [vmem:[#allocation18_spill] sm:$0xff] %v13253_v2  ;;  %v6163_v40 = vadd.f32 %v13065_v21, %v5895_v27  ;;  %v5897_v61 = vmul.f32 %v13052_v44, %v5333_v50  ;;  %v5869_v27 = vmul.f32 %v13052_v44, %v13056_v30  ;;  %v6135_v53 = vadd.f32 %v13065_v21, %v5867_v0  ;;  %v15378_v2 = vld [vmem:[#allocation26_spill] sm:$0xff] }
 0x433   : > { %v6418_v49 = vmax.f32 %v6162_v22, 0.0  ;;  %v6164_v36 = vadd.f32 %v13060_v16, %v5896_v15  ;;  %5596 = vmatmul.mubr.bf16.gmra.mrb[12].mxu1 %v15353_v42  ;;  %v6134_v22 = vadd.f32 %v13060_v16, %v5866_v37  ;;  %v6136_v30 = vadd.f32 %v13060_v16, %v5868_v6 }
 0x434   : > { %v6419_v59 = vmax.f32 %v6163_v40, 0.0  ;;  %v6165_v31 = vadd.f32 %v13065_v21, %v5897_v61  ;;  %5605 = vmatprep.mubr.bf16.mxu1 %v15132_v63  ;;  %v6137_v37 = vadd.f32 %v13065_v21, %v5869_v27 }
 0x435   : > { %v13272_v11 = vmax.f32 %v6386_v20, %v6418_v49  ;;  %v6420_v38 = vmax.f32 %v6164_v36, 0.0 }
 0x436   : > { %v13276_v9 = vmax.f32 %v6387_v12, %v6419_v59  ;;  %v6421_v56 = vmax.f32 %v6165_v31, 0.0  ;;  %v5337_v52 = vpop.f32.mrb[164].mxu1  ;;  %v6390_v59 = vmax.f32 %v6134_v22, 0.0 }
 0x437   : > { %15354 = vst [vmem:[#allocation50_spill] sm:$0xff] %v13272_v11  ;;  %v13279_v15 = vmax.f32 %v6388_v23, %v6420_v38  ;;  %v5898_v14 = vmul.f32 %v13045_v7, %v5337_v52  ;;  %v5339_v50 = vpop.f32.mrb[165].mxu1  ;;  %v15358_v23 = vld [vmem:[#allocation32_spill] sm:$0xff]  ;;  %v6391_v38 = vmax.f32 %v6135_v53, 0.0 }
 0x438   : > { %15355 = vst [vmem:[#allocation24_spill] sm:$0xff] %v13276_v9  ;;  %v13283_v40 = vmax.f32 %v6389_v26, %v6421_v56  ;;  %v5899_v35 = vmul.f32 %v13052_v44, %v5339_v50  ;;  %v5341_v61 = vpop.f32.mrb[166].mxu1  ;;  %v6392_v56 = vmax.f32 %v6136_v30, 0.0 }
 0x439   : > { %15356 = vst [vmem:[#allocation28_spill] sm:$0xff] %v13279_v15  ;;  %v6166_v20 = vadd.f32 %v13060_v16, %v5898_v14  ;;  %v5900_v49 = vmul.f32 %v13045_v7, %v5341_v61  ;;  %v5343_v36 = vpop.f32.mrb[167].mxu1  ;;  %v6393_v14 = vmax.f32 %v6137_v37, 0.0 }
 0x43a   : > { %15357 = vst [vmem:[#allocation19_spill] sm:$0xff] %v13283_v40  ;;  %v6167_v42 = vadd.f32 %v13065_v21, %v5899_v35  ;;  %v5901_v12 = vmul.f32 %v13052_v44, %v5343_v36  ;;  %v15373_v40 = vld [vmem:[#allocation38_spill] sm:$0xff] }
 0x43b   : > { %v6422_v0 = vmax.f32 %v6166_v20, 0.0  ;;  %v6168_v31 = vadd.f32 %v13060_v16, %v5900_v49  ;;  %5606 = vmatmul.mubr.bf16.gmra.mrb[16].mxu1 %v15358_v23 }
 0x43c   : > { %v6423_v26 = vmax.f32 %v6167_v42, 0.0  ;;  %v6169_v6 = vadd.f32 %v13065_v21, %v5901_v12  ;;  %5615 = vmatprep.mubr.bf16.mxu1 %v15132_v63  ;;  %v15363_v42 = vld [vmem:[#allocation46_spill] sm:$0xff] }
 0x43d   : > { %v13296_v52 = vmax.f32 %v6390_v59, %v6422_v0  ;;  %v6424_v27 = vmax.f32 %v6168_v31, 0.0  ;;  %v15364_v0 = vld [vmem:[#allocation31_spill] sm:$0xff] }
 0x43e   : > { %v13298_v50 = vmax.f32 %v6391_v38, %v6423_v26  ;;  %v6425_v35 = vmax.f32 %v6169_v6, 0.0  ;;  %v5347_v22 = vpop.f32.mrb[168].mxu1  ;;  %v15365_v6 = vld [vmem:[#allocation30_spill] sm:$0xff] }
 0x43f   : > { %15359 = vst [vmem:[#allocation55_spill] sm:$0xff] %v13296_v52  ;;  %v13300_v61 = vmax.f32 %v6392_v56, %v6424_v27  ;;  %v5349_v20 = vpop.f32.mrb[169].mxu1  ;;  %v5902_v28 = vmul.f32 %v13045_v7, %v5347_v22 }
 0x440   : > { %15360 = vst [vmem:[#allocation11_spill] sm:$0xff] %v13298_v50  ;;  %v13302_v49 = vmax.f32 %v6393_v14, %v6425_v35  ;;  %v5351_v53 = vpop.f32.mrb[170].mxu1  ;;  %v5903_v33 = vmul.f32 %v13052_v44, %v5349_v20 }
 0x441   : > { %15361 = vst [vmem:[#allocation56_spill] sm:$0xff] %v13300_v61  ;;  %v5353_v36 = vpop.f32.mrb[171].mxu1  ;;  %v15368_v61 = vld [vmem:[#allocation9_spill] sm:$0xff] }
 0x442   : > { %15362 = vst [vmem:[#allocation58_spill] sm:$0xff] %v13302_v49  ;;  %v5905_v34 = vmul.f32 %v13052_v44, %v5353_v36 }
 0x443   : > { %5616 = vmatmul.mubr.bf16.gmra.mrb[20].mxu1 %v15363_v42  ;;  %v15366_v42 = vld [vmem:[#allocation15_spill] sm:$0xff] }
 0x444   : > { %5625 = vmatprep.mubr.bf16.mxu1 %v15132_v63  ;;  %v6173_v36 = vadd.f32 %v13065_v21, %v5905_v34 }
 0x446   : > { %v5357_v30 = vpop.f32.mrb[172].mxu1 }
 0x447   : > { %v13306_v12 = vpop.f32.mrb[173].mxu1  ;;  %v5906_v32 = vmul.f32 %v13045_v7, %v5357_v30 }
 0x448   : > { %v13308_v59 = vpop.f32.mrb[174].mxu1 }
 0x449   : > { %v13310_v37 = vpop.f32.mrb[175].mxu1 }
 0x44b   : > { %5626 = vmatmul.mubr.bf16.gmra.mrb[24].mxu1 %v15364_v0 }
 0x44c   : > { %5635 = vmatprep.mubr.bf16.mxu1 %v15132_v63 }
 0x44e   : > { %v13314_v31 = vpop.f32.mrb[176].mxu1 }
 0x44f   : > { %v13316_v23 = vpop.f32.mrb[177].mxu1 }
 0x450   : > { %v13318_v38 = vpop.f32.mrb[178].mxu1 }
 0x451   : > { %v13320_v26 = vpop.f32.mrb[179].mxu1 }
 0x453   : > { %5636 = vmatmul.mubr.bf16.gmra.mrb[28].mxu1 %v15365_v6 }
 0x454   : > { %5645 = vmatprep.mubr.bf16.mxu1 %v15132_v63 }
 0x456   : > { %v13324_v56 = vpop.f32.mrb[180].mxu1 }
 0x457   : > { %v13326_v27 = vpop.f32.mrb[181].mxu1 }
 0x458   : > { %v13328_v14 = vpop.f32.mrb[182].mxu1 }
 0x459   : > { %v13330_v35 = vpop.f32.mrb[183].mxu1 }
 0x45b   : > { %5646 = vmatmul.mubr.bf16.gmra.mrb[32].mxu1 %v15366_v42 }
 0x45c   : > { %5655 = vmatprep.mubr.bf16.mxu1 %v15132_v63 }
 0x45e   : > { %v13334_v0 = vpop.f32.mrb[184].mxu1 }
 0x45f   : > { %v13336_v1 = vpop.f32.mrb[185].mxu1 }
 0x460   : > { %v13338_v51 = vpop.f32.mrb[186].mxu1 }
 0x461   : > { %v13340_v6 = vpop.f32.mrb[187].mxu1 }
 0x463   : > { %5656 = vmatmul.mubr.bf16.gmra.mrb[36].mxu1 %v15367_v62 }
 0x464   : > { %5665 = vmatprep.mubr.bf16.mxu1 %v15132_v63 }
 0x466   : > { %v13344_v43 = vpop.f32.mrb[188].mxu1 }
 0x467   : > { %v13346_v29 = vpop.f32.mrb[189].mxu1 }
 0x468   : > { %v13348_v49 = vpop.f32.mrb[190].mxu1 }
 0x469   : > { %v13350_v42 = vpop.f32.mrb[191].mxu1 }
 0x46b   : > { %5666 = vmatmul.mubr.bf16.gmra.mrb[40].mxu1 %v15368_v61 }
 0x46c   : > { %5675 = vmatprep.mubr.bf16.mxu1 %v15132_v63 }
 0x46e   : > { %v13354_v50 = vpop.f32.mrb[192].mxu1 }
 0x46f   : > { %15369 = vst [vmem:[#allocation60_spill] sm:$0xff] %v13354_v50  ;;  %v13356_v52 = vpop.f32.mrb[193].mxu1  ;;  %v15379_v50 = vld [vmem:[#allocation37_spill] sm:$0xff] }
 0x470   : > { %15370 = vst [vmem:[#allocation61_spill] sm:$0xff] %v13356_v52  ;;  %v13358_v13 = vpop.f32.mrb[194].mxu1 }
 0x471   : > { %15371 = vst [vmem:[#allocation45_spill] sm:$0xff] %v13358_v13  ;;  %v13360_v62 = vpop.f32.mrb[195].mxu1 }
 0x472   : > { %15372 = vst [vmem:[#allocation62_spill] sm:$0xff] %v13360_v62 }
 0x473   : > { %5676 = vmatmul.mubr.bf16.gmra.mrb[44].mxu1 %v15373_v40  ;;  %v5904_v40 = vmul.f32 %v13045_v7, %v5351_v53 }
 0x474   : > { %5685 = vmatprep.mubr.bf16.mxu1 %v15132_v63 }
 0x476   : > { %v13364_v15 = vpop.f32.mrb[196].mxu1 }
 0x477   : > { %15374 = vst [vmem:[#allocation17_spill] sm:$0xff] %v13364_v15  ;;  %v13366_v9 = vpop.f32.mrb[197].mxu1  ;;  %v6170_v15 = vadd.f32 %v13060_v16, %v5902_v28 }
 0x478   : > { %15375 = vst [vmem:[#allocation14_spill] sm:$0xff] %v13366_v9  ;;  %v13368_v11 = vpop.f32.mrb[198].mxu1 }
 0x479   : > { %15376 = vst [vmem:[#allocation52_spill] sm:$0xff] %v13368_v11  ;;  %v13370_v61 = vpop.f32.mrb[199].mxu1 }
 0x47a   : > { %15377 = vst [vmem:[#allocation20_spill] sm:$0xff] %v13370_v61  ;;  %v6171_v61 = vadd.f32 %v13065_v21, %v5903_v33 }
 0x47b   : > { %5686 = vmatmul.mubr.bf16.gmra.mrb[48].mxu1 %v15378_v2  ;;  %v6172_v2 = vadd.f32 %v13060_v16, %v5904_v40 }
 0x47c   : > { %5695 = vmatprep.mubr.bf16.mxu1 %v15132_v63  ;;  %v6427_v40 = vmax.f32 %v6171_v61, 0.0 }
 0x47d   : > { %v6428_v34 = vmax.f32 %v6172_v2, 0.0 }
 0x47e   : > { %v5427_v46 = vpop.f32.mrb[200].mxu1 }
 0x47f   : > { %v5934_v9 = vmul.f32 %v13045_v7, %v5427_v46  ;;  %v5429_v11 = vpop.f32.mrb[201].mxu1  ;;  %v6426_v46 = vmax.f32 %v6170_v15, 0.0  ;;  %v5908_v15 = vmul.f32 %v13045_v7, %v13308_v59 }
 0x480   : > { %v5935_v22 = vmul.f32 %v13052_v44, %v5429_v11  ;;  %v5431_v62 = vpop.f32.mrb[202].mxu1 }
 0x481   : > { %v6202_v20 = vadd.f32 %v13060_v16, %v5934_v9  ;;  %v5936_v13 = vmul.f32 %v13045_v7, %v5431_v62  ;;  %v5433_v53 = vpop.f32.mrb[203].mxu1  ;;  %v5907_v9 = vmul.f32 %v13052_v44, %v13306_v12 }
 0x482   : > { %v6203_v52 = vadd.f32 %v13065_v21, %v5935_v22  ;;  %v5937_v28 = vmul.f32 %v13052_v44, %v5433_v53 }
 0x483   : > { %v6458_v33 = vmax.f32 %v6202_v20, 0.0  ;;  %v6204_v11 = vadd.f32 %v13060_v16, %v5936_v13  ;;  %5696 = vmatmul.mubr.bf16.gmra.mrb[52].mxu1 %v15379_v50  ;;  %v6429_v20 = vmax.f32 %v6173_v36, 0.0  ;;  %v5909_v13 = vmul.f32 %v13052_v44, %v13310_v37 }
 0x484   : > { %v6459_v62 = vmax.f32 %v6203_v52, 0.0  ;;  %v6205_v54 = vadd.f32 %v13065_v21, %v5937_v28  ;;  %5705 = vmatprep.mubr.bf16.mxu1 %v15132_v63  ;;  %v6174_v52 = vadd.f32 %v13060_v16, %v5906_v32  ;;  %v6176_v32 = vadd.f32 %v13060_v16, %v5908_v15 }
 0x485   : > { %v13397_v22 = vmax.f32 %v6426_v46, %v6458_v33  ;;  %v6460_v30 = vmax.f32 %v6204_v11, 0.0  ;;  %v6175_v46 = vadd.f32 %v13065_v21, %v5907_v9  ;;  %v6177_v9 = vadd.f32 %v13065_v21, %v5909_v13 }
 0x486   : > { %v13401_v50 = vmax.f32 %v6427_v40, %v6459_v62  ;;  %v6461_v61 = vmax.f32 %v6205_v54, 0.0  ;;  %v5437_v12 = vpop.f32.mrb[204].mxu1  ;;  %v5910_v15 = vmul.f32 %v13045_v7, %v13314_v31  ;;  %v5911_v13 = vmul.f32 %v13052_v44, %v13316_v23 }
 0x487   : > { %v13406_v2 = vmax.f32 %v6428_v34, %v6460_v30  ;;  %v5938_v59 = vmul.f32 %v13045_v7, %v5437_v12  ;;  %v5439_v28 = vpop.f32.mrb[205].mxu1  ;;  %v6430_v12 = vmax.f32 %v6174_v52, 0.0  ;;  %v5912_v52 = vmul.f32 %v13045_v7, %v13318_v38 }
 0x488   : > { %v13412_v37 = vmax.f32 %v6429_v20, %v6461_v61  ;;  %v5939_v54 = vmul.f32 %v13052_v44, %v5439_v28  ;;  %v5441_v33 = vpop.f32.mrb[206].mxu1 }
 0x489   : > { %v6206_v40 = vadd.f32 %v13060_v16, %v5938_v59  ;;  %v5940_v62 = vmul.f32 %v13045_v7, %v5441_v33  ;;  %v5443_v34 = vpop.f32.mrb[207].mxu1  ;;  %v15380_v59 = vld [vmem:[#allocation25_spill] sm:$0xff]  ;;  %v6431_v33 = vmax.f32 %v6175_v46, 0.0 }
 0x48a   : > { %v6207_v20 = vadd.f32 %v13065_v21, %v5939_v54  ;;  %v5941_v61 = vmul.f32 %v13052_v44, %v5443_v34  ;;  %v6432_v54 = vmax.f32 %v6176_v32, 0.0 }
 0x48b   : > { %v6462_v28 = vmax.f32 %v6206_v40, 0.0  ;;  %v6208_v11 = vadd.f32 %v13060_v16, %v5940_v62  ;;  %5706 = vmatmul.mubr.bf16.gmra.mrb[56].mxu1 %v15380_v59  ;;  %v6433_v40 = vmax.f32 %v6177_v9, 0.0  ;;  %v5913_v62 = vmul.f32 %v13052_v44, %v13320_v26 }
 0x48c   : > { %v6463_v36 = vmax.f32 %v6207_v20, 0.0  ;;  %v6209_v30 = vadd.f32 %v13065_v21, %v5941_v61  ;;  %5715 = vmatprep.mubr.bf16.mxu1 %v15132_v63  ;;  %v6178_v20 = vadd.f32 %v13060_v16, %v5910_v15  ;;  %v6180_v15 = vadd.f32 %v13060_v16, %v5912_v52 }
 0x48d   : > { %v13435_v34 = vmax.f32 %v6430_v12, %v6462_v28  ;;  %v6464_v31 = vmax.f32 %v6208_v11, 0.0  ;;  %v6179_v11 = vadd.f32 %v13065_v21, %v5911_v13  ;;  %v6181_v13 = vadd.f32 %v13065_v21, %v5913_v62 }
 0x48e   : > { %v13439_v46 = vmax.f32 %v6431_v33, %v6463_v36  ;;  %v6465_v59 = vmax.f32 %v6209_v30, 0.0  ;;  %v5447_v23 = vpop.f32.mrb[208].mxu1  ;;  %v5914_v52 = vmul.f32 %v13045_v7, %v13324_v56  ;;  %v5915_v62 = vmul.f32 %v13052_v44, %v13326_v27 }
 0x48f   : > { %v13444_v32 = vmax.f32 %v6432_v54, %v6464_v31  ;;  %v5942_v38 = vmul.f32 %v13045_v7, %v5447_v23  ;;  %v5449_v12 = vpop.f32.mrb[209].mxu1 }
 0x490   : > { %15381 = vst [vmem:[#allocation39_spill] sm:$0xff] %v13439_v46  ;;  %v13450_v26 = vmax.f32 %v6433_v40, %v6465_v59  ;;  %v5943_v36 = vmul.f32 %v13052_v44, %v5449_v12  ;;  %v5451_v30 = vpop.f32.mrb[210].mxu1  ;;  %v6434_v12 = vmax.f32 %v6178_v20, 0.0  ;;  %v5916_v20 = vmul.f32 %v13045_v7, %v13328_v14 }
 0x491   : > { %15382 = vst [vmem:[#allocation23_spill] sm:$0xff] %v13444_v32  ;;  %v6210_v33 = vadd.f32 %v13060_v16, %v5942_v38  ;;  %v5944_v54 = vmul.f32 %v13045_v7, %v5451_v30  ;;  %v5453_v31 = vpop.f32.mrb[211].mxu1  ;;  %v15384_v38 = vld [vmem:[#allocation16_spill] sm:$0xff]  ;;  %v6435_v30 = vmax.f32 %v6179_v11, 0.0 }
 0x492   : > { %15383 = vst [vmem:[#allocation32_spill] sm:$0xff] %v13450_v26  ;;  %v6211_v40 = vadd.f32 %v13065_v21, %v5943_v36  ;;  %v5945_v59 = vmul.f32 %v13052_v44, %v5453_v31  ;;  %v6436_v36 = vmax.f32 %v6180_v15, 0.0 }
 0x493   : > { %v6466_v9 = vmax.f32 %v6210_v33, 0.0  ;;  %v6212_v28 = vadd.f32 %v13060_v16, %v5944_v54  ;;  %5716 = vmatmul.mubr.bf16.gmra.mrb[60].mxu1 %v15384_v38  ;;  %v6437_v33 = vmax.f32 %v6181_v13, 0.0  ;;  %v5917_v54 = vmul.f32 %v13052_v44, %v13330_v35 }
 0x494   : > { %v6467_v61 = vmax.f32 %v6211_v40, 0.0  ;;  %v6213_v23 = vadd.f32 %v13065_v21, %v5945_v59  ;;  %5725 = vmatprep.mubr.bf16.mxu1 %v15132_v63  ;;  %v6182_v40 = vadd.f32 %v13060_v16, %v5914_v52 }
 0x495   : > { %v13473_v31 = vmax.f32 %v6434_v12, %v6466_v9  ;;  %v6468_v56 = vmax.f32 %v6212_v28, 0.0  ;;  %v6183_v28 = vadd.f32 %v13065_v21, %v5915_v62  ;;  %v6184_v12 = vadd.f32 %v13060_v16, %v5916_v20 }
 0x496   : > { %v13477_v11 = vmax.f32 %v6435_v30, %v6467_v61  ;;  %v6469_v38 = vmax.f32 %v6213_v23, 0.0  ;;  %v5457_v27 = vpop.f32.mrb[212].mxu1  ;;  %v6185_v62 = vadd.f32 %v13065_v21, %v5917_v54  ;;  %v5918_v20 = vmul.f32 %v13045_v7, %v13334_v0 }
 0x497   : > { %15385 = vst [vmem:[#allocation46_spill] sm:$0xff] %v13473_v31  ;;  %v13482_v15 = vmax.f32 %v6436_v36, %v6468_v56  ;;  %v5946_v14 = vmul.f32 %v13045_v7, %v5457_v27  ;;  %v5459_v9 = vpop.f32.mrb[213].mxu1  ;;  %v5919_v54 = vmul.f32 %v13052_v44, %v13336_v1  ;;  %v9098_v31 = vld [vmem:[%s14607_s16 + $0x18] sm:$0xff]  }
 0x498   : > { %15386 = vst [vmem:[#allocation31_spill] sm:$0xff] %v13477_v11  ;;  %v13488_v35 = vmax.f32 %v6437_v33, %v6469_v38  ;;  %v5947_v61 = vmul.f32 %v13052_v44, %v5459_v9  ;;  %v5461_v23 = vpop.f32.mrb[214].mxu1  ;;  %v6438_v9 = vmax.f32 %v6182_v40, 0.0  ;;  %v5920_v40 = vmul.f32 %v13045_v7, %v13338_v51  ;;  %v9096_v11 = vld [vmem:[%s14607_s16 + $0x10] sm:$0xff]  }
 0x499   : > { %15387 = vst [vmem:[#allocation30_spill] sm:$0xff] %v13482_v15  ;;  %v6214_v30 = vadd.f32 %v13060_v16, %v5946_v14  ;;  %v5948_v36 = vmul.f32 %v13045_v7, %v5461_v23  ;;  %v5463_v56 = vpop.f32.mrb[215].mxu1  ;;  %v15389_v14 = vld [vmem:[#allocation59_spill] sm:$0xff]  ;;  %v6439_v23 = vmax.f32 %v6183_v28, 0.0 }
 0x49a   : > { %15388 = vst [vmem:[#allocation15_spill] sm:$0xff] %v13488_v35  ;;  %v6215_v33 = vadd.f32 %v13065_v21, %v5947_v61  ;;  %v5949_v38 = vmul.f32 %v13052_v44, %v5463_v56  ;;  %v6440_v61 = vmax.f32 %v6184_v12, 0.0 }
 0x49b   : > { %v6470_v13 = vmax.f32 %v6214_v30, 0.0  ;;  %v6216_v52 = vadd.f32 %v13060_v16, %v5948_v36  ;;  %5726 = vmatmul.mubr.bf16.gmra.mrb[64].mxu1 %v15389_v14  ;;  %v6441_v30 = vmax.f32 %v6185_v62, 0.0  ;;  %v5921_v36 = vmul.f32 %v13052_v44, %v13340_v6 }
 0x49c   : > { %v6471_v59 = vmax.f32 %v6215_v33, 0.0  ;;  %v6217_v27 = vadd.f32 %v13065_v21, %v5949_v38  ;;  %5735 = vmatprep.mubr.bf16.mxu1 %v15132_v63  ;;  %v6186_v33 = vadd.f32 %v13060_v16, %v5918_v20 }
 0x49d   : > { %v13511_v56 = vmax.f32 %v6438_v9, %v6470_v13  ;;  %v6472_v0 = vmax.f32 %v6216_v52, 0.0  ;;  %v6187_v52 = vadd.f32 %v13065_v21, %v5919_v54  ;;  %v6188_v9 = vadd.f32 %v13060_v16, %v5920_v40 }
 0x49e   : > { %v13515_v28 = vmax.f32 %v6439_v23, %v6471_v59  ;;  %v6473_v14 = vmax.f32 %v6217_v27, 0.0  ;;  %v5467_v1 = vpop.f32.mrb[216].mxu1  ;;  %v6189_v54 = vadd.f32 %v13065_v21, %v5921_v36  ;;  %v5922_v40 = vmul.f32 %v13045_v7, %v13344_v43 }
 0x49f   : > { %15390 = vst [vmem:[#allocation35_spill] sm:$0xff] %v13511_v56  ;;  %v13520_v12 = vmax.f32 %v6440_v61, %v6472_v0  ;;  %v5950_v51 = vmul.f32 %v13045_v7, %v5467_v1  ;;  %v5469_v13 = vpop.f32.mrb[217].mxu1  ;;  %v5923_v36 = vmul.f32 %v13052_v44, %v13346_v29  ;;  %v9094_v56 = vld [vmem:[%s14607_s16 + $0x8] sm:$0xff]  }
 0x4a0   : > { %15391 = vst [vmem:[#allocation9_spill] sm:$0xff] %v13515_v28  ;;  %v13526_v6 = vmax.f32 %v6441_v30, %v6473_v14  ;;  %v5951_v59 = vmul.f32 %v13052_v44, %v5469_v13  ;;  %v5471_v27 = vpop.f32.mrb[218].mxu1  ;;  %v6442_v13 = vmax.f32 %v6186_v33, 0.0  ;;  %v5924_v33 = vmul.f32 %v13045_v7, %v13348_v49 }
 0x4a1   : > { %15392 = vst [vmem:[#allocation38_spill] sm:$0xff] %v13520_v12  ;;  %v6218_v23 = vadd.f32 %v13060_v16, %v5950_v51  ;;  %v5952_v61 = vmul.f32 %v13045_v7, %v5471_v27  ;;  %v5473_v0 = vpop.f32.mrb[219].mxu1  ;;  %v15394_v51 = vld [vmem:[#allocation57_spill] sm:$0xff]  ;;  %v6443_v27 = vmax.f32 %v6187_v52, 0.0 }
 0x4a2   : > { %15393 = vst [vmem:[#allocation26_spill] sm:$0xff] %v13526_v6  ;;  %v6219_v30 = vadd.f32 %v13065_v21, %v5951_v59  ;;  %v5953_v14 = vmul.f32 %v13052_v44, %v5473_v0  ;;  %v6444_v59 = vmax.f32 %v6188_v9, 0.0  ;;  %v9092_v12 = vld [vmem:[%s14607_s16] sm:$0xff]  }
 0x4a3   : > { %v6474_v62 = vmax.f32 %v6218_v23, 0.0  ;;  %v6220_v20 = vadd.f32 %v13060_v16, %v5952_v61  ;;  %5736 = vmatmul.mubr.bf16.gmra.mrb[68].mxu1 %v15394_v51  ;;  %v6445_v23 = vmax.f32 %v6189_v54, 0.0  ;;  %v5925_v61 = vmul.f32 %v13052_v44, %v13350_v42 }
 0x4a4   : > { %v6475_v38 = vmax.f32 %v6219_v30, 0.0  ;;  %v6221_v1 = vadd.f32 %v13065_v21, %v5953_v14  ;;  %5745 = vmatprep.mubr.bf16.mxu1 %v15132_v63  ;;  %v6190_v30 = vadd.f32 %v13060_v16, %v5922_v40  ;;  %v15400_v14 = vld [vmem:[#allocation60_spill] sm:$0xff] }
 0x4a5   : > { %v13549_v0 = vmax.f32 %v6442_v13, %v6474_v62  ;;  %v6476_v43 = vmax.f32 %v6220_v20, 0.0  ;;  %v6191_v20 = vadd.f32 %v13065_v21, %v5923_v36  ;;  %v6192_v13 = vadd.f32 %v13060_v16, %v5924_v33 }
 0x4a6   : > { %v13553_v52 = vmax.f32 %v6443_v27, %v6475_v38  ;;  %v6477_v51 = vmax.f32 %v6221_v1, 0.0  ;;  %v5477_v29 = vpop.f32.mrb[220].mxu1  ;;  %v6193_v36 = vadd.f32 %v13065_v21, %v5925_v61  ;;  %v5926_v33 = vmul.f32 %v13045_v7, %v15400_v14 }
 0x4a7   : > { %15395 = vst [vmem:[#allocation37_spill] sm:$0xff] %v13549_v0  ;;  %v13558_v9 = vmax.f32 %v6444_v59, %v6476_v43  ;;  %v5954_v49 = vmul.f32 %v13045_v7, %v5477_v29  ;;  %v5479_v62 = vpop.f32.mrb[221].mxu1 }
 0x4a8   : > { %15396 = vst [vmem:[#allocation25_spill] sm:$0xff] %v13553_v52  ;;  %v13564_v42 = vmax.f32 %v6445_v23, %v6477_v51  ;;  %v5955_v38 = vmul.f32 %v13052_v44, %v5479_v62  ;;  %v5481_v1 = vpop.f32.mrb[222].mxu1  ;;  %v6446_v62 = vmax.f32 %v6190_v30, 0.0 }
 0x4a9   : > { %15397 = vst [vmem:[#allocation16_spill] sm:$0xff] %v13558_v9  ;;  %v6222_v27 = vadd.f32 %v13060_v16, %v5954_v49  ;;  %v5956_v59 = vmul.f32 %v13045_v7, %v5481_v1  ;;  %v5483_v43 = vpop.f32.mrb[223].mxu1  ;;  %v15401_v49 = vld [vmem:[#allocation64_spill] sm:$0xff]  ;;  %v6447_v1 = vmax.f32 %v6191_v20, 0.0  ;;  %v15402_v9 = vld [vmem:[#allocation61_spill] sm:$0xff] }
 0x4aa   : > { %15398 = vst [vmem:[#allocation59_spill] sm:$0xff] %v13564_v42  ;;  %v6223_v23 = vadd.f32 %v13065_v21, %v5955_v38  ;;  %v5957_v51 = vmul.f32 %v13052_v44, %v5483_v43  ;;  %v5927_v61 = vmul.f32 %v13052_v44, %v15402_v9  ;;  %v6448_v38 = vmax.f32 %v6192_v13, 0.0  ;;  %v15403_v43 = vld [vmem:[#allocation45_spill] sm:$0xff] }
 0x4ab   : > { %v6478_v53 = vmax.f32 %v6222_v27, 0.0  ;;  %v6224_v40 = vadd.f32 %v13060_v16, %v5956_v59  ;;  %5746 = vmatmul.mubr.bf16.gmra.mrb[72].mxu1 %v15401_v49  ;;  %v5928_v30 = vmul.f32 %v13045_v7, %v15403_v43  ;;  %v6449_v27 = vmax.f32 %v6193_v36, 0.0  ;;  %v15405_v59 = vld [vmem:[#allocation62_spill] sm:$0xff] }
 0x4ac   : > { %v6479_v17 = vmax.f32 %v6223_v23, 0.0  ;;  %v6225_v54 = vadd.f32 %v13065_v21, %v5957_v51  ;;  %5755 = vmatprep.mubr.bf16.mxu1 %v15132_v63  ;;  %v5929_v49 = vmul.f32 %v13052_v44, %v15405_v59  ;;  %v6194_v23 = vadd.f32 %v13060_v16, %v5926_v33 }
 0x4ad   : > { %v13587_v42 = vmax.f32 %v6446_v62, %v6478_v53  ;;  %v6480_v14 = vmax.f32 %v6224_v40, 0.0  ;;  %v6195_v40 = vadd.f32 %v13065_v21, %v5927_v61  ;;  %v6196_v59 = vadd.f32 %v13060_v16, %v5928_v30 }
 0x4ae   : > { %v13591_v20 = vmax.f32 %v6447_v1, %v6479_v17  ;;  %v6481_v29 = vmax.f32 %v6225_v54, 0.0  ;;  %v5487_v9 = vpop.f32.mrb[224].mxu1 }
 0x4af   : > { %15404 = vst [vmem:[#allocation57_spill] sm:$0xff] %v13587_v42  ;;  %v13596_v13 = vmax.f32 %v6448_v38, %v6480_v14  ;;  %v5958_v43 = vmul.f32 %v13045_v7, %v5487_v9  ;;  %v5489_v53 = vpop.f32.mrb[225].mxu1  ;;  %v6197_v42 = vadd.f32 %v13065_v21, %v5929_v49  ;;  %v15418_v38 = vld [vmem:[#allocation63_spill] sm:$0xff]  ;;  %v6451_v49 = vmax.f32 %v6195_v40, 0.0 }
 0x4b0   : > { %15406 = vst [vmem:[#allocation60_spill] sm:$0xff] %v13591_v20  ;;  %v13600_v36 = vpop.f32.mrb[24].mxu0  ;;  %v13604_v1 = vmax.f32 %v6449_v27, %v6481_v29  ;;  %v5959_v54 = vmul.f32 %v13052_v44, %v5489_v53  ;;  %v5491_v33 = vpop.f32.mrb[226].mxu1  ;;  %v15416_v20 = vld [vmem:[#allocation17_spill] sm:$0xff] }
 0x4b1   : > { %15408 = vst [vmem:[#allocation64_spill] sm:$0xff] %v13596_v13  ;;  %15409 = vst [vmem:[#allocation61_spill] sm:$0xff] %v13600_v36  ;;  %v13608_v52 = vpop.f32.mrb[25].mxu0  ;;  %v6226_v9 = vadd.f32 %v13060_v16, %v5958_v43  ;;  %v5960_v61 = vmul.f32 %v13045_v7, %v5491_v33  ;;  %v5493_v36 = vpop.f32.mrb[227].mxu1  ;;  %v5930_v14 = vmul.f32 %v13045_v7, %v15416_v20 }
 0x4b2   : > { %15411 = vst [vmem:[#allocation45_spill] sm:$0xff] %v13604_v1  ;;  %15412 = vst [vmem:[#allocation62_spill] sm:$0xff] %v13608_v52  ;;  %v13615_v17 = vpop.f32.mrb[26].mxu0  ;;  %v6227_v53 = vadd.f32 %v13065_v21, %v5959_v54  ;;  %v5961_v30 = vmul.f32 %v13052_v44, %v5493_v36  ;;  %v6450_v52 = vmax.f32 %v6194_v23, 0.0  ;;  %v6452_v23 = vmax.f32 %v6196_v59, 0.0  ;;  %v15420_v36 = vld [vmem:[#allocation52_spill] sm:$0xff] }
 0x4b3   : > { %15414 = vst [vmem:[#allocation68_spill] sm:$0xff] %v13615_v17  ;;  %v13623_v13 = vpop.f32.mrb[27].mxu0  ;;  %v6482_v43 = vmax.f32 %v6226_v9, 0.0  ;;  %v6228_v33 = vadd.f32 %v13060_v16, %v5960_v61  ;;  %5756 = vmatmul.mubr.bf16.gmra.mrb[76].mxu1 %v15418_v38  ;;  %v15419_v17 = vld [vmem:[#allocation14_spill] sm:$0xff]  ;;  %v5932_v20 = vmul.f32 %v13045_v7, %v15420_v36  ;;  %v15422_v61 = vld [vmem:[#allocation20_spill] sm:$0xff] }
 0x4b4   : > { %15417 = vst [vmem:[#allocation17_spill] sm:$0xff] %v13623_v13  ;;  %v5931_v62 = vmul.f32 %v13052_v44, %v15419_v17  ;;  %v6483_v27 = vmax.f32 %v6227_v53, 0.0  ;;  %v6229_v54 = vadd.f32 %v13065_v21, %v5961_v30  ;;  %5765 = vmatprep.mubr.bf16.mxu1 %v15132_v63  ;;  %v6453_v13 = vmax.f32 %v6197_v42, 0.0 }
 0x4b5   : > { %v13633_v1 = vmax.f32 %v6450_v52, %v6482_v43  ;;  %v6484_v9 = vmax.f32 %v6228_v33, 0.0  ;;  %v5933_v38 = vmul.f32 %v13052_v44, %v15422_v61  ;;  %v6198_v53 = vadd.f32 %v13060_v16, %v5930_v14 }
 0x4b6   : > { %v13637_v40 = vmax.f32 %v6451_v49, %v6483_v27  ;;  %v6485_v29 = vmax.f32 %v6229_v54, 0.0  ;;  %v5497_v17 = vpop.f32.mrb[228].mxu1  ;;  %v6199_v43 = vadd.f32 %v13065_v21, %v5931_v62  ;;  %v6200_v14 = vadd.f32 %v13060_v16, %v5932_v20 }
 0x4b7   : > { %15421 = vst [vmem:[#allocation63_spill] sm:$0xff] %v13633_v1  ;;  %v13642_v59 = vmax.f32 %v6452_v23, %v6484_v9  ;;  %v5962_v36 = vmul.f32 %v13045_v7, %v5497_v17  ;;  %v5499_v52 = vpop.f32.mrb[229].mxu1  ;;  %v6201_v62 = vadd.f32 %v13065_v21, %v5933_v38 }
 0x4b8   : > { %15423 = vst [vmem:[#allocation14_spill] sm:$0xff] %v13637_v40  ;;  %v13648_v61 = vmax.f32 %v6453_v13, %v6485_v29  ;;  %v5963_v27 = vmul.f32 %v13052_v44, %v5499_v52  ;;  %v5501_v49 = vpop.f32.mrb[230].mxu1  ;;  %v6454_v52 = vmax.f32 %v6198_v53, 0.0  ;;  %v13661_v40 = vpop.f32.mrb[28].mxu0  ;;  %v6456_v33 = vmax.f32 %v6200_v14, 0.0 }
 0x4b9   : > { %15425 = vst [vmem:[#allocation52_spill] sm:$0xff] %v13642_v59  ;;  %v6230_v23 = vadd.f32 %v13060_v16, %v5962_v36  ;;  %v5964_v9 = vmul.f32 %v13045_v7, %v5501_v49  ;;  %v5503_v17 = vpop.f32.mrb[231].mxu1  ;;  %15430 = vst [vmem:[#allocation69_spill] sm:$0xff] %v13661_v40  ;;  %v15431_v59 = vld [vmem:[#allocation66_spill] sm:$0xff]  ;;  %v6455_v36 = vmax.f32 %v6199_v43, 0.0  ;;  %v13665_v49 = vpop.f32.mrb[29].mxu0 }
 0x4ba   : > { %15427 = vst [vmem:[#allocation20_spill] sm:$0xff] %v13648_v61  ;;  %v6231_v13 = vadd.f32 %v13065_v21, %v5963_v27  ;;  %v5965_v29 = vmul.f32 %v13052_v44, %v5503_v17  ;;  %15432 = vst [vmem:[#allocation66_spill] sm:$0xff] %v13665_v49  ;;  %v13669_v27 = vpop.f32.mrb[30].mxu0  ;;  %v6457_v40 = vmax.f32 %v6201_v62, 0.0  ;;  %v15455_v49 = vld [vmem:[#allocation22_spill] sm:$0xff] }
 0x4bb   : > { %v6486_v20 = vmax.f32 %v6230_v23, 0.0  ;;  %v6232_v51 = vadd.f32 %v13060_v16, %v5964_v9  ;;  %5766 = vmatmul.mubr.bf16.gmra.mrb[80].mxu1 %v15431_v59  ;;  %15433 = vst [vmem:[#allocation70_spill] sm:$0xff] %v13669_v27  ;;  %v13673_v23 = vpop.f32.mrb[31].mxu0 }
 0x4bc   : > { %v6487_v54 = vmax.f32 %v6231_v13, 0.0  ;;  %v6233_v38 = vadd.f32 %v13065_v21, %v5965_v29  ;;  %5775 = vmatprep.mubr.bf16.mxu1 %v15132_v63  ;;  %15435 = vst [vmem:[#allocation72_spill] sm:$0xff] %v13673_v23  ;;  %v15444_v23 = vld [vmem:[#allocation65_spill] sm:$0xff] }
 0x4bd   : > { %v13671_v17 = vmax.f32 %v6454_v52, %v6486_v20  ;;  %v6488_v53 = vmax.f32 %v6232_v51, 0.0  ;;  %v15453_v51 = vld [vmem:[#allocation47_spill] sm:$0xff] }
 0x4be   : > { %v13675_v9 = vmax.f32 %v6455_v36, %v6487_v54  ;;  %v6489_v59 = vmax.f32 %v6233_v38, 0.0  ;;  %v5507_v43 = vpop.f32.mrb[232].mxu1 }
 0x4bf   : > { %15434 = vst [vmem:[#allocation71_spill] sm:$0xff] %v13671_v17  ;;  %v13679_v61 = vmax.f32 %v6456_v33, %v6488_v53  ;;  %v5509_v29 = vpop.f32.mrb[233].mxu1  ;;  %v5966_v35 = vmul.f32 %v13045_v7, %v5507_v43 }
 0x4c0   : > { %15436 = vst [vmem:[#allocation73_spill] sm:$0xff] %v13675_v9  ;;  %v13683_v27 = vmax.f32 %v6457_v40, %v6489_v59  ;;  %v5511_v52 = vpop.f32.mrb[234].mxu1  ;;  %v13689_v38 = vpop.f32.mrb[32].mxu0  ;;  %v5967_v19 = vmul.f32 %v13052_v44, %v5509_v29 }
 0x4c1   : > { %15438 = vst [vmem:[#allocation74_spill] sm:$0xff] %v13679_v61  ;;  %v5513_v20 = vpop.f32.mrb[235].mxu1  ;;  %15443 = vst [vmem:[#allocation76_spill] sm:$0xff] %v13689_v38  ;;  %v13692_v33 = vpop.f32.mrb[33].mxu0  ;;  %v15449_v38 = vld [vmem:[#allocation67_spill] sm:$0xff]  ;;  %v5968_v15 = vmul.f32 %v13045_v7, %v5511_v52  ;;  %v6234_v43 = vadd.f32 %v13060_v16, %v5966_v35 }
 0x4c2   : > { %15440 = vst [vmem:[#allocation75_spill] sm:$0xff] %v13683_v27  ;;  %15445 = vst [vmem:[#allocation65_spill] sm:$0xff] %v13692_v33  ;;  %v13695_v53 = vpop.f32.mrb[34].mxu0  ;;  %v6235_v52 = vadd.f32 %v13065_v21, %v5967_v19 }
 0x4c3   : > { %5776 = vmatmul.mubr.bf16.gmra.mrb[84].mxu1 %v15444_v23  ;;  %15446 = vst [vmem:[#allocation77_spill] sm:$0xff] %v13695_v53  ;;  %v13697_v40 = vpop.f32.mrb[35].mxu0  ;;  %v6236_v55 = vadd.f32 %v13060_v16, %v5968_v15 }
 0x4c4   : > { %5785 = vmatprep.mubr.bf16.mxu1 %v15132_v63  ;;  %15447 = vst [vmem:[#allocation78_spill] sm:$0xff] %v13697_v40  ;;  %v6491_v15 = vmax.f32 %v6235_v52, 0.0 }
 0x4c6   : > { %v13699_v59 = vpop.f32.mrb[236].mxu1 }
 0x4c7   : > { %v13701_v1 = vpop.f32.mrb[237].mxu1 }
 0x4c8   : > { %v13703_v62 = vpop.f32.mrb[238].mxu1  ;;  %v13707_v36 = vpop.f32.mrb[36].mxu0 }
 0x4c9   : > { %v13705_v13 = vpop.f32.mrb[239].mxu1  ;;  %15448 = vst [vmem:[#allocation79_spill] sm:$0xff] %v13707_v36  ;;  %v13710_v23 = vpop.f32.mrb[37].mxu0 }
 0x4ca   : > { %15450 = vst [vmem:[#allocation67_spill] sm:$0xff] %v13710_v23  ;;  %v13713_v33 = vpop.f32.mrb[38].mxu0 }
 0x4cb   : > { %5786 = vmatmul.mubr.bf16.gmra.mrb[88].mxu1 %v15449_v38  ;;  %15451 = vst [vmem:[#allocation80_spill] sm:$0xff] %v13713_v33  ;;  %v13715_v53 = vpop.f32.mrb[39].mxu0 }
 0x4cc   : > { %5795 = vmatprep.mubr.bf16.mxu1 %v15132_v63  ;;  %15452 = vst [vmem:[#allocation81_spill] sm:$0xff] %v13715_v53  ;;  %v15454_v53 = vld [vmem:[#allocation10_spill] sm:$0xff] }
 0x4ce   : > { %v13717_v40 = vpop.f32.mrb[240].mxu1 }
 0x4cf   : > { %v13719_v27 = vpop.f32.mrb[241].mxu1 }
 0x4d0   : > { %v13721_v54 = vpop.f32.mrb[242].mxu1 }
 0x4d1   : > { %v13723_v61 = vpop.f32.mrb[243].mxu1 }
 0x4d3   : > { %5796 = vmatmul.mubr.bf16.gmra.mrb[92].mxu1 %v15453_v51 }
 0x4d4   : > { %5805 = vmatprep.mubr.bf16.mxu1 %v15132_v63 }
 0x4d6   : > { %v13727_v38 = vpop.f32.mrb[244].mxu1 }
 0x4d7   : > { %v13729_v36 = vpop.f32.mrb[245].mxu1 }
 0x4d8   : > { %v13731_v23 = vpop.f32.mrb[246].mxu1 }
 0x4d9   : > { %v13733_v33 = vpop.f32.mrb[247].mxu1 }
 0x4db   : > { %5806 = vmatmul.mubr.bf16.gmra.mrb[96].mxu1 %v15454_v53 }
 0x4dc   : > { %5815 = vmatprep.mubr.bf16.mxu1 %v15132_v63 }
 0x4de   : > { %v13737_v9 = vpop.f32.mrb[248].mxu1 }
 0x4df   : > { %v13739_v14 = vpop.f32.mrb[249].mxu1 }
 0x4e0   : > { %v13741_v17 = vpop.f32.mrb[250].mxu1 }
 0x4e1   : > { %v13743_v51 = vpop.f32.mrb[251].mxu1 }
 0x4e3   : > { %5816 = vmatmul.mubr.bf16.gmra.mrb[100].mxu1 %v15455_v49  ;;  %v9091_v49 = vld [vmem:[%s14607_s16 + $0x40] sm:$0xff]  }
 0x4e4   : > { %8350 = vmatprep.subr.bf16.mxu0 %v9091_v49  ;;  %v9095_v49 = vld [vmem:[%s14607_s16 + $0x50] sm:$0xff]  }
 0x4e5   : > { %8351 = vmatpush3.bf16.msra.mxu0 %v9092_v12  ;;  %v5969_v12 = vmul.f32 %v13052_v44, %v5513_v20 }
 0x4e6   : > { %v13746_v42 = vpop.f32.mrb[252].mxu1  ;;  %8352 = vmatprep.subr.bf16.mxu0 %v9093_v39  ;;  %v9097_v39 = vld [vmem:[%s14607_s16 + $0x58] sm:$0xff]  }
 0x4e7   : > { %v13748_v30 = vpop.f32.mrb[253].mxu1 }
 0x4e8   : > { %v13750_v48 = vpop.f32.mrb[254].mxu1 }
 0x4e9   : > { %v13752_v0 = vpop.f32.mrb[255].mxu1  ;;  %8353 = vmatpush3.bf16.msra.mxu0 %v9094_v56 }
 0x4ea   : > { %8354 = vmatprep.subr.bf16.mxu0 %v9095_v49 }
 0x4ed   : > { %8355 = vmatpush3.bf16.msra.mxu0 %v9096_v11  ;;  %v5970_v11 = vmul.f32 %v13045_v7, %v13699_v59 }
 0x4ee   : > { %v13754_v53 = vpop.f32.mrb[0].mxu1  ;;  %8356 = vmatprep.subr.bf16.mxu0 %v9097_v39 }
 0x4ef   : > { %v13756_v63 = vpop.f32.mrb[1].mxu1 }
 0x4f0   : > { %v13758_v5 = vpop.f32.mrb[2].mxu1 }
 0x4f1   : > { %v13760_v6 = vpop.f32.mrb[3].mxu1  ;;  %8357 = vmatpush3.bf16.msra.mxu0 %v9098_v31 }
 0x4f6   : > { %v13765_v25 = vpop.f32.mrb[4].mxu1 }
 0x4f7   : > { %v13773_v28 = vpop.f32.mrb[5].mxu1 }
 0x4f8   : > { %v13775_v60 = vpop.f32.mrb[6].mxu1 }
 0x4f9   : > { %v13780_v10 = vpop.f32.mrb[7].mxu1 }
 0x4fe   : > { %v5587_v8 = vpop.f32.mrb[8].mxu1 }
 0x4ff   : > { %v5998_v56 = vmul.f32 %v13045_v7, %v5587_v8  ;;  %v5589_v29 = vpop.f32.mrb[9].mxu1  ;;  %v6237_v8 = vadd.f32 %v13065_v21, %v5969_v12  ;;  %v6492_v12 = vmax.f32 %v6236_v55, 0.0 }
 0x500   : > { %v5999_v41 = vmul.f32 %v13052_v44, %v5589_v29  ;;  %v5591_v20 = vpop.f32.mrb[10].mxu1  ;;  %v6490_v29 = vmax.f32 %v6234_v43, 0.0 }
 0x501   : > { %v6266_v26 = vadd.f32 %v13060_v16, %v5998_v56  ;;  %v6000_v35 = vmul.f32 %v13045_v7, %v5591_v20  ;;  %v5593_v3 = vpop.f32.mrb[11].mxu1  ;;  %v5971_v56 = vmul.f32 %v13052_v44, %v13701_v1  ;;  %v6493_v46 = vmax.f32 %v6237_v8, 0.0 }
 0x502   : > { %v6267_v19 = vadd.f32 %v13065_v21, %v5999_v41  ;;  %v6001_v49 = vmul.f32 %v13052_v44, %v5593_v3  ;;  %v5972_v41 = vmul.f32 %v13045_v7, %v13703_v62  ;;  %v6238_v1 = vadd.f32 %v13060_v16, %v5970_v11 }
 0x503   : > { %v6522_v32 = vmax.f32 %v6266_v26, 0.0  ;;  %v6268_v57 = vadd.f32 %v13060_v16, %v6000_v35  ;;  %v5973_v26 = vmul.f32 %v13052_v44, %v13705_v13  ;;  %v6239_v62 = vadd.f32 %v13065_v21, %v5971_v56 }
 0x504   : > { %v6523_v20 = vmax.f32 %v6267_v19, 0.0  ;;  %v6269_v39 = vadd.f32 %v13065_v21, %v6001_v49  ;;  %v6240_v13 = vadd.f32 %v13060_v16, %v5972_v41  ;;  %v5975_v41 = vmul.f32 %v13052_v44, %v13719_v27  ;;  %v9101_v27 = vld [vmem:[%s14607_s16 + $0x68] sm:$0xff]  }
 0x505   : > { %v13816_v3 = vmax.f32 %v6490_v29, %v6522_v32  ;;  %v6524_v43 = vmax.f32 %v6268_v57, 0.0  ;;  %v6241_v11 = vadd.f32 %v13065_v21, %v5973_v26  ;;  %v5976_v26 = vmul.f32 %v13045_v7, %v13721_v54 }
 0x506   : > { %v13820_v59 = vmax.f32 %v6491_v15, %v6523_v20  ;;  %v6525_v52 = vmax.f32 %v6269_v39, 0.0  ;;  %v5597_v35 = vpop.f32.mrb[12].mxu1 }
 0x507   : > { %v13823_v19 = vmax.f32 %v6492_v12, %v6524_v43  ;;  %v6002_v55 = vmul.f32 %v13045_v7, %v5597_v35  ;;  %v5599_v31 = vpop.f32.mrb[13].mxu1  ;;  %v6494_v12 = vmax.f32 %v6238_v1, 0.0 }
 0x508   : > { %v13827_v32 = vmax.f32 %v6493_v46, %v6525_v52  ;;  %v6003_v57 = vmul.f32 %v13052_v44, %v5599_v31  ;;  %v5601_v8 = vpop.f32.mrb[14].mxu1  ;;  %v5974_v46 = vmul.f32 %v13045_v7, %v13717_v40  ;;  %v6495_v52 = vmax.f32 %v6239_v62, 0.0  ;;  %v9099_v40 = vld [vmem:[%s14607_s16 + $0x60] sm:$0xff]  }
 0x509   : > { %v6270_v49 = vadd.f32 %v13060_v16, %v6002_v55  ;;  %v6004_v29 = vmul.f32 %v13045_v7, %v5601_v8  ;;  %v5603_v15 = vpop.f32.mrb[15].mxu1  ;;  %v6496_v31 = vmax.f32 %v6240_v13, 0.0  ;;  %v9100_v62 = vld [vmem:[%s14607_s16 + $0x20] sm:$0xff]   ;;  %v6497_v8 = vmax.f32 %v6241_v11, 0.0  ;;  %8358 = vmatprep.subr.bf16.mxu0 %v9099_v40 }
 0x50a   : > { %v6271_v20 = vadd.f32 %v13065_v21, %v6003_v57  ;;  %v6005_v39 = vmul.f32 %v13052_v44, %v5603_v15  ;;  %v5977_v13 = vmul.f32 %v13052_v44, %v13723_v61  ;;  %v6242_v15 = vadd.f32 %v13060_v16, %v5974_v46  ;;  %8359 = vmatpush3.bf16.msra.mxu0 %v9100_v62  ;;  %v9102_v61 = vld [vmem:[%s14607_s16 + $0x28] sm:$0xff]  }
 0x50b   : > { %v6526_v56 = vmax.f32 %v6270_v49, 0.0  ;;  %v6272_v43 = vadd.f32 %v13060_v16, %v6004_v29  ;;  %v6244_v46 = vadd.f32 %v13060_v16, %v5976_v26  ;;  %8360 = vmatprep.subr.bf16.mxu0 %v9101_v27  ;;  %v5978_v62 = vmul.f32 %v13045_v7, %v13727_v38  ;;  %v9103_v38 = vld [vmem:[%s14607_s16 + $0x70] sm:$0xff]  }
 0x50c   : > { %v6527_v35 = vmax.f32 %v6271_v20, 0.0  ;;  %v6273_v55 = vadd.f32 %v13065_v21, %v6005_v39  ;;  %v6498_v40 = vmax.f32 %v6242_v15, 0.0 }
 0x50d   : > { %v13844_v57 = vmax.f32 %v6494_v12, %v6526_v56  ;;  %v6528_v1 = vmax.f32 %v6272_v43, 0.0  ;;  %v6243_v56 = vadd.f32 %v13065_v21, %v5975_v41  ;;  %v6245_v41 = vadd.f32 %v13065_v21, %v5977_v13 }
 0x50e   : > { %v13857_v54 = vmax.f32 %v6495_v52, %v6527_v35  ;;  %v6529_v49 = vmax.f32 %v6273_v55, 0.0  ;;  %v5607_v29 = vpop.f32.mrb[16].mxu1  ;;  %8361 = vmatpush3.bf16.msra.mxu0 %v9102_v61  ;;  %v6500_v13 = vmax.f32 %v6244_v46, 0.0  ;;  %v5981_v61 = vmul.f32 %v13052_v44, %v13733_v33  ;;  %v9106_v33 = vld [vmem:[%s14607_s16 + $0x38] sm:$0xff]  }
 0x50f   : > { %v13860_v20 = vmax.f32 %v6496_v31, %v6528_v1  ;;  %v6006_v39 = vmul.f32 %v13045_v7, %v5607_v29  ;;  %v5609_v12 = vpop.f32.mrb[17].mxu1  ;;  %v6499_v26 = vmax.f32 %v6243_v56, 0.0  ;;  %v5979_v29 = vmul.f32 %v13052_v44, %v13729_v36  ;;  %v9104_v56 = vld [vmem:[%s14607_s16 + $0x30] sm:$0xff]   ;;  %v9105_v36 = vld [vmem:[%s14607_s16 + $0x78] sm:$0xff]   ;;  %8362 = vmatprep.subr.bf16.mxu0 %v9103_v38 }
 0x510   : > { %v13864_v43 = vmax.f32 %v6497_v8, %v6529_v49  ;;  %v6007_v11 = vmul.f32 %v13052_v44, %v5609_v12  ;;  %v5611_v47 = vpop.f32.mrb[18].mxu1 }
 0x511   : > { %v6274_v52 = vadd.f32 %v13060_v16, %v6006_v39  ;;  %v6008_v35 = vmul.f32 %v13045_v7, %v5611_v47  ;;  %v5613_v55 = vpop.f32.mrb[19].mxu1  ;;  %v5980_v39 = vmul.f32 %v13045_v7, %v13731_v23 }
 0x512   : > { %v6275_v31 = vadd.f32 %v13065_v21, %v6007_v11  ;;  %v6009_v1 = vmul.f32 %v13052_v44, %v5613_v55  ;;  %v6501_v11 = vmax.f32 %v6245_v41, 0.0  ;;  %8363 = vmatpush3.bf16.msra.mxu0 %v9104_v56  ;;  %v5982_v56 = vmul.f32 %v13045_v7, %v13737_v9 }
 0x513   : > { %v6530_v8 = vmax.f32 %v6274_v52, 0.0  ;;  %v6276_v49 = vadd.f32 %v13060_v16, %v6008_v35  ;;  %v6246_v35 = vadd.f32 %v13060_v16, %v5978_v62  ;;  %v6248_v62 = vadd.f32 %v13060_v16, %v5980_v39  ;;  %8364 = vmatprep.subr.bf16.mxu0 %v9105_v36 }
 0x514   : > { %v6531_v47 = vmax.f32 %v6275_v31, 0.0  ;;  %v6277_v27 = vadd.f32 %v13065_v21, %v6009_v1  ;;  %v5985_v9 = vmul.f32 %v13052_v44, %v13743_v51 }
 0x515   : > { %v13884_v12 = vmax.f32 %v6498_v40, %v6530_v8  ;;  %v6532_v15 = vmax.f32 %v6276_v49, 0.0  ;;  %v6247_v40 = vadd.f32 %v13065_v21, %v5979_v29  ;;  %v6249_v29 = vadd.f32 %v13065_v21, %v5981_v61 }
 0x516   : > { %v13897_v23 = vmax.f32 %v6499_v26, %v6531_v47  ;;  %v6533_v46 = vmax.f32 %v6277_v27, 0.0  ;;  %v5617_v52 = vpop.f32.mrb[20].mxu1  ;;  %v6502_v38 = vmax.f32 %v6246_v35, 0.0  ;;  %8365 = vmatpush3.bf16.msra.mxu0 %v9106_v33  ;;  %v6504_v61 = vmax.f32 %v6248_v62, 0.0 }
 0x517   : > { %v13900_v55 = vmax.f32 %v6500_v13, %v6532_v15  ;;  %v6010_v31 = vmul.f32 %v13045_v7, %v5617_v52  ;;  %v5619_v1 = vpop.f32.mrb[21].mxu1  ;;  %v6503_v39 = vmax.f32 %v6247_v40, 0.0  ;;  %v5983_v52 = vmul.f32 %v13052_v44, %v13739_v14 }
 0x518   : > { %v13904_v8 = vmax.f32 %v6501_v11, %v6533_v46  ;;  %v6011_v41 = vmul.f32 %v13052_v44, %v5619_v1  ;;  %v5621_v49 = vpop.f32.mrb[22].mxu1  ;;  %v5984_v1 = vmul.f32 %v13045_v7, %v13741_v17  ;;  %v6250_v14 = vadd.f32 %v13060_v16, %v5982_v56 }
 0x519   : > { %v6278_v26 = vadd.f32 %v13060_v16, %v6010_v31  ;;  %v6012_v47 = vmul.f32 %v13045_v7, %v5621_v49  ;;  %v5623_v27 = vpop.f32.mrb[23].mxu1  ;;  %v6505_v49 = vmax.f32 %v6249_v29, 0.0  ;;  %v6251_v17 = vadd.f32 %v13065_v21, %v5983_v52 }
 0x51a   : > { %15456 = vst [vmem:[#allocation47_spill] sm:$0xff] %v13904_v8  ;;  %v6279_v13 = vadd.f32 %v13065_v21, %v6011_v41  ;;  %v6013_v15 = vmul.f32 %v13052_v44, %v5623_v27  ;;  %v6252_v51 = vadd.f32 %v13060_v16, %v5984_v1  ;;  %v6253_v56 = vadd.f32 %v13065_v21, %v5985_v9 }
 0x51b   : > { %v6534_v11 = vmax.f32 %v6278_v26, 0.0  ;;  %v6280_v46 = vadd.f32 %v13060_v16, %v6012_v47  ;;  %v5986_v52 = vmul.f32 %v13045_v7, %v13746_v42  ;;  %v5987_v1 = vmul.f32 %v13052_v44, %v13748_v30 }
 0x51c   : > { %v6535_v31 = vmax.f32 %v6279_v13, 0.0  ;;  %v6281_v36 = vadd.f32 %v13065_v21, %v6013_v15  ;;  %v5988_v9 = vmul.f32 %v13045_v7, %v13750_v48  ;;  %v5989_v42 = vmul.f32 %v13052_v44, %v13752_v0 }
 0x51d   : > { %v13924_v41 = vmax.f32 %v6502_v38, %v6534_v11  ;;  %v6536_v35 = vmax.f32 %v6280_v46, 0.0  ;;  %v6254_v30 = vadd.f32 %v13060_v16, %v5986_v52  ;;  %v6255_v48 = vadd.f32 %v13065_v21, %v5987_v1 }
 0x51e   : > { %v13928_v26 = vmax.f32 %v6503_v39, %v6535_v31  ;;  %v6537_v40 = vmax.f32 %v6281_v36, 0.0  ;;  %v5627_v47 = vpop.f32.mrb[24].mxu1  ;;  %v6506_v36 = vmax.f32 %v6250_v14, 0.0  ;;  %v6256_v0 = vadd.f32 %v13060_v16, %v5988_v9 }
 0x51f   : > { %15457 = vst [vmem:[#allocation10_spill] sm:$0xff] %v13924_v41  ;;  %v13931_v27 = vmax.f32 %v6504_v61, %v6536_v35  ;;  %v6014_v33 = vmul.f32 %v13045_v7, %v5627_v47  ;;  %v5629_v62 = vpop.f32.mrb[25].mxu1  ;;  %v6257_v52 = vadd.f32 %v13065_v21, %v5989_v42  ;;  %v5990_v1 = vmul.f32 %v13045_v7, %v13754_v53 }
 0x520   : > { %15458 = vst [vmem:[#allocation22_spill] sm:$0xff] %v13928_v26  ;;  %v13935_v13 = vmax.f32 %v6505_v49, %v6537_v40  ;;  %v6015_v29 = vmul.f32 %v13052_v44, %v5629_v62  ;;  %v5631_v15 = vpop.f32.mrb[26].mxu1  ;;  %v6507_v49 = vmax.f32 %v6251_v17, 0.0  ;;  %v5991_v9 = vmul.f32 %v13052_v44, %v13756_v63 }
 0x521   : > { %15459 = vst [vmem:[#allocation82_spill] sm:$0xff] %v13931_v27  ;;  %v6282_v38 = vadd.f32 %v13060_v16, %v6014_v33  ;;  %v6016_v11 = vmul.f32 %v13045_v7, %v5631_v15  ;;  %v5633_v46 = vpop.f32.mrb[27].mxu1  ;;  %v6508_v33 = vmax.f32 %v6252_v51, 0.0  ;;  %v5992_v42 = vmul.f32 %v13045_v7, %v13758_v5 }
 0x522   : > { %15460 = vst [vmem:[#allocation83_spill] sm:$0xff] %v13935_v13  ;;  %v6283_v39 = vadd.f32 %v13065_v21, %v6015_v29  ;;  %v6017_v31 = vmul.f32 %v13052_v44, %v5633_v46  ;;  %v6509_v29 = vmax.f32 %v6253_v56, 0.0  ;;  %v5993_v53 = vmul.f32 %v13052_v44, %v13760_v6 }
 0x523   : > { %v6538_v61 = vmax.f32 %v6282_v38, 0.0  ;;  %v6284_v35 = vadd.f32 %v13060_v16, %v6016_v11  ;;  %v6258_v63 = vadd.f32 %v13060_v16, %v5990_v1  ;;  %v6259_v5 = vadd.f32 %v13065_v21, %v5991_v9 }
 0x524   : > { %v6539_v40 = vmax.f32 %v6283_v39, 0.0  ;;  %v6285_v47 = vadd.f32 %v13065_v21, %v6017_v31  ;;  %v6260_v6 = vadd.f32 %v13060_v16, %v5992_v42  ;;  %v6261_v1 = vadd.f32 %v13065_v21, %v5993_v53 }
 0x525   : > { %v13952_v62 = vmax.f32 %v6506_v36, %v6538_v61  ;;  %v6540_v14 = vmax.f32 %v6284_v35, 0.0  ;;  %v5994_v9 = vmul.f32 %v13045_v7, %v13765_v25  ;;  %v5995_v42 = vmul.f32 %v13052_v44, %v13773_v28 }
 0x526   : > { %v13956_v15 = vmax.f32 %v6507_v49, %v6539_v40  ;;  %v6541_v17 = vmax.f32 %v6285_v47, 0.0  ;;  %v5637_v38 = vpop.f32.mrb[28].mxu1  ;;  %v6510_v47 = vmax.f32 %v6254_v30, 0.0  ;;  %v5996_v53 = vmul.f32 %v13045_v7, %v13775_v60 }
 0x527   : > { %15461 = vst [vmem:[#allocation84_spill] sm:$0xff] %v13952_v62  ;;  %v13959_v11 = vmax.f32 %v6508_v33, %v6540_v14  ;;  %v6018_v51 = vmul.f32 %v13045_v7, %v5637_v38  ;;  %v5639_v46 = vpop.f32.mrb[29].mxu1  ;;  %v5997_v25 = vmul.f32 %v13052_v44, %v13780_v10  ;;  %v6262_v28 = vadd.f32 %v13060_v16, %v5994_v9 }
 0x528   : > { %15462 = vst [vmem:[#allocation85_spill] sm:$0xff] %v13956_v15  ;;  %v13963_v39 = vmax.f32 %v6509_v29, %v6541_v17  ;;  %v6019_v56 = vmul.f32 %v13052_v44, %v5639_v46  ;;  %v5641_v31 = vpop.f32.mrb[30].mxu1  ;;  %v6511_v29 = vmax.f32 %v6255_v48, 0.0  ;;  %v6263_v60 = vadd.f32 %v13065_v21, %v5995_v42 }
 0x529   : > { %15463 = vst [vmem:[#allocation86_spill] sm:$0xff] %v13959_v11  ;;  %v6286_v36 = vadd.f32 %v13060_v16, %v6018_v51  ;;  %v6020_v61 = vmul.f32 %v13045_v7, %v5641_v31  ;;  %v5643_v35 = vpop.f32.mrb[31].mxu1  ;;  %v6512_v51 = vmax.f32 %v6256_v0, 0.0  ;;  %v6264_v10 = vadd.f32 %v13060_v16, %v5996_v53 }
 0x52a   : > { %15464 = vst [vmem:[#allocation87_spill] sm:$0xff] %v13963_v39  ;;  %v6287_v49 = vadd.f32 %v13065_v21, %v6019_v56  ;;  %v6021_v40 = vmul.f32 %v13052_v44, %v5643_v35  ;;  %v6513_v56 = vmax.f32 %v6257_v52, 0.0  ;;  %v6265_v9 = vadd.f32 %v13065_v21, %v5997_v25 }
 0x52b   : > { %v6542_v33 = vmax.f32 %v6286_v36, 0.0  ;;  %v6288_v14 = vadd.f32 %v13060_v16, %v6020_v61  ;;  %v6520_v53 = vmax.f32 %v6264_v10, 0.0 }
 0x52c   : > { %v6543_v17 = vmax.f32 %v6287_v49, 0.0  ;;  %v6289_v38 = vadd.f32 %v13065_v21, %v6021_v40 }
 0x52d   : > { %v13980_v46 = vmax.f32 %v6510_v47, %v6542_v33  ;;  %v6544_v30 = vmax.f32 %v6288_v14, 0.0 }
 0x52e   : > { %v13984_v31 = vmax.f32 %v6511_v29, %v6543_v17  ;;  %v6545_v48 = vmax.f32 %v6289_v38, 0.0  ;;  %v5647_v36 = vpop.f32.mrb[32].mxu1  ;;  %v6514_v38 = vmax.f32 %v6258_v63, 0.0 }
 0x52f   : > { %15465 = vst [vmem:[#allocation88_spill] sm:$0xff] %v13980_v46  ;;  %v13987_v61 = vmax.f32 %v6512_v51, %v6544_v30  ;;  %v6022_v0 = vmul.f32 %v13045_v7, %v5647_v36  ;;  %v5649_v35 = vpop.f32.mrb[33].mxu1 }
 0x530   : > { %15466 = vst [vmem:[#allocation89_spill] sm:$0xff] %v13984_v31  ;;  %v13991_v49 = vmax.f32 %v6513_v56, %v6545_v48  ;;  %v6023_v52 = vmul.f32 %v13052_v44, %v5649_v35  ;;  %v5651_v40 = vpop.f32.mrb[34].mxu1  ;;  %v6515_v56 = vmax.f32 %v6259_v5, 0.0 }
 0x531   : > { %15467 = vst [vmem:[#allocation90_spill] sm:$0xff] %v13987_v61  ;;  %v6290_v47 = vadd.f32 %v13060_v16, %v6022_v0  ;;  %v6024_v33 = vmul.f32 %v13045_v7, %v5651_v40  ;;  %v5653_v14 = vpop.f32.mrb[35].mxu1  ;;  %v6516_v0 = vmax.f32 %v6260_v6, 0.0 }
 0x532   : > { %15468 = vst [vmem:[#allocation91_spill] sm:$0xff] %v13991_v49  ;;  %v6291_v29 = vadd.f32 %v13065_v21, %v6023_v52  ;;  %v6025_v17 = vmul.f32 %v13052_v44, %v5653_v14  ;;  %v6517_v52 = vmax.f32 %v6261_v1, 0.0 }
 0x533   : > { %v6546_v51 = vmax.f32 %v6290_v47, 0.0  ;;  %v6292_v30 = vadd.f32 %v13060_v16, %v6024_v33 }
 0x534   : > { %v6547_v48 = vmax.f32 %v6291_v29, 0.0  ;;  %v6293_v36 = vadd.f32 %v13065_v21, %v6025_v17 }
 0x535   : > { %v14008_v35 = vmax.f32 %v6514_v38, %v6546_v51  ;;  %v6548_v63 = vmax.f32 %v6292_v30, 0.0 }
 0x536   : > { %v14012_v40 = vmax.f32 %v6515_v56, %v6547_v48  ;;  %v6549_v5 = vmax.f32 %v6293_v36, 0.0  ;;  %v5657_v47 = vpop.f32.mrb[36].mxu1  ;;  %v6518_v36 = vmax.f32 %v6262_v28, 0.0 }
 0x537   : > { %15469 = vst [vmem:[#allocation92_spill] sm:$0xff] %v14008_v35  ;;  %v14015_v33 = vmax.f32 %v6516_v0, %v6548_v63  ;;  %v6026_v6 = vmul.f32 %v13045_v7, %v5657_v47  ;;  %v5659_v14 = vpop.f32.mrb[37].mxu1  ;;  %v6519_v63 = vmax.f32 %v6263_v60, 0.0 }
 0x538   : > { %15470 = vst [vmem:[#allocation93_spill] sm:$0xff] %v14012_v40  ;;  %v14019_v29 = vmax.f32 %v6517_v52, %v6549_v5  ;;  %v6027_v1 = vmul.f32 %v13052_v44, %v5659_v14  ;;  %v5661_v17 = vpop.f32.mrb[38].mxu1  ;;  %v6521_v14 = vmax.f32 %v6265_v9, 0.0 }
 0x539   : > { %15471 = vst [vmem:[#allocation94_spill] sm:$0xff] %v14015_v33  ;;  %v6294_v38 = vadd.f32 %v13060_v16, %v6026_v6  ;;  %v6028_v51 = vmul.f32 %v13045_v7, %v5661_v17  ;;  %v5663_v30 = vpop.f32.mrb[39].mxu1 }
 0x53a   : > { %15472 = vst [vmem:[#allocation95_spill] sm:$0xff] %v14019_v29  ;;  %v6295_v56 = vadd.f32 %v13065_v21, %v6027_v1  ;;  %v6029_v48 = vmul.f32 %v13052_v44, %v5663_v30 }
 0x53b   : > { %v6550_v42 = vmax.f32 %v6294_v38, 0.0  ;;  %v6296_v0 = vadd.f32 %v13060_v16, %v6028_v51 }
 0x53c   : > { %v6551_v52 = vmax.f32 %v6295_v56, 0.0  ;;  %v6297_v5 = vadd.f32 %v13065_v21, %v6029_v48 }
 0x53d   : > { %v14030_v47 = vmax.f32 %v6518_v36, %v6550_v42  ;;  %v6552_v6 = vmax.f32 %v6296_v0, 0.0 }
 0x53e   : > { %v14032_v17 = vmax.f32 %v6519_v63, %v6551_v52  ;;  %v6553_v25 = vmax.f32 %v6297_v5, 0.0  ;;  %v5667_v29 = vpop.f32.mrb[40].mxu1 }
 0x53f   : > { %15473 = vst [vmem:[#allocation96_spill] sm:$0xff] %v14030_v47  ;;  %v14034_v1 = vmax.f32 %v6520_v53, %v6552_v6  ;;  %v5669_v30 = vpop.f32.mrb[41].mxu1  ;;  %v6030_v31 = vmul.f32 %v13045_v7, %v5667_v29 }
 0x540   : > { %15474 = vst [vmem:[#allocation97_spill] sm:$0xff] %v14032_v17  ;;  %v14036_v28 = vmax.f32 %v6521_v14, %v6553_v25  ;;  %v5671_v38 = vpop.f32.mrb[42].mxu1  ;;  %v6031_v46 = vmul.f32 %v13052_v44, %v5669_v30 }
 0x541   : > { %15475 = vst [vmem:[#allocation98_spill] sm:$0xff] %v14034_v1  ;;  %v5673_v51 = vpop.f32.mrb[43].mxu1  ;;  %v6032_v39 = vmul.f32 %v13045_v7, %v5671_v38 }
 0x542   : > { %15476 = vst [vmem:[#allocation99_spill] sm:$0xff] %v14036_v28  ;;  %v6033_v11 = vmul.f32 %v13052_v44, %v5673_v51  ;;  %v6299_v38 = vadd.f32 %v13065_v21, %v6031_v46 }
 0x546   : > { %v5677_v60 = vpop.f32.mrb[44].mxu1 }
 0x547   : > { %v5679_v56 = vpop.f32.mrb[45].mxu1  ;;  %v6034_v15 = vmul.f32 %v13045_v7, %v5677_v60 }
 0x548   : > { %v5681_v33 = vpop.f32.mrb[46].mxu1  ;;  %v6035_v62 = vmul.f32 %v13052_v44, %v5679_v56 }
 0x549   : > { %v5683_v48 = vpop.f32.mrb[47].mxu1  ;;  %v6036_v13 = vmul.f32 %v13045_v7, %v5681_v33  ;;  %v14083_v33 = vadd.f32 %v13060_v16, %v6032_v39 }
 0x54a   : > { %v6037_v27 = vmul.f32 %v13052_v44, %v5683_v48  ;;  %v14086_v48 = vadd.f32 %v13065_v21, %v6033_v11 }
 0x54b   : > { %v14097_v46 = vadd.f32 %v13060_v16, %v6036_v13 }
 0x54e   : > { %v5687_v10 = vpop.f32.mrb[48].mxu1 }
 0x54f   : > { %v5689_v36 = vpop.f32.mrb[49].mxu1  ;;  %v6038_v29 = vmul.f32 %v13045_v7, %v5687_v10  ;;  %v14091_v10 = vadd.f32 %v13060_v16, %v6034_v15  ;;  %v6555_v15 = vmax.f32 %v6299_v38, 0.0 }
 0x550   : > { %v5691_v42 = vpop.f32.mrb[50].mxu1  ;;  %v6039_v30 = vmul.f32 %v13052_v44, %v5689_v36  ;;  %v14094_v36 = vadd.f32 %v13065_v21, %v6035_v62 }
 0x551   : > { %v5693_v0 = vpop.f32.mrb[51].mxu1  ;;  %v6040_v51 = vmul.f32 %v13045_v7, %v5691_v42  ;;  %v14100_v42 = vadd.f32 %v13065_v21, %v6037_v27  ;;  %v14103_v39 = vadd.f32 %v13060_v16, %v6038_v29  ;;  %v6556_v27 = vmax.f32 %v14083_v33, 0.0 }
 0x552   : > { %v6041_v60 = vmul.f32 %v13052_v44, %v5693_v0  ;;  %v14106_v11 = vadd.f32 %v13065_v21, %v6039_v30 }
 0x554   : > { %v14113_v62 = vadd.f32 %v13065_v21, %v6041_v60 }
 0x556   : > { %v5697_v9 = vpop.f32.mrb[52].mxu1 }
 0x557   : > { %v5699_v63 = vpop.f32.mrb[53].mxu1 }
 0x558   : > { %v5701_v52 = vpop.f32.mrb[54].mxu1  ;;  %v6043_v13 = vmul.f32 %v13052_v44, %v5699_v63 }
 0x559   : > { %v5703_v5 = vpop.f32.mrb[55].mxu1  ;;  %v6044_v29 = vmul.f32 %v13045_v7, %v5701_v52 }
 0x55a   : > { %v6045_v30 = vmul.f32 %v13052_v44, %v5703_v5 }
 0x55c   : > { %v14140_v63 = vadd.f32 %v13065_v21, %v6045_v30 }
 0x55e   : > { %v14038_v17 = vpop.f32.mrb[56].mxu1 }
 0x55f   : > { %v14040_v53 = vpop.f32.mrb[57].mxu1 }
 0x560   : > { %v14042_v6 = vpop.f32.mrb[58].mxu1 }
 0x561   : > { %v14044_v14 = vpop.f32.mrb[59].mxu1  ;;  %v6048_v30 = vmul.f32 %v13045_v7, %v14042_v6 }
 0x566   : > { %v14046_v25 = vpop.f32.mrb[60].mxu1 }
 0x567   : > { %v14048_v28 = vpop.f32.mrb[61].mxu1 }
 0x568   : > { %v14050_v1 = vpop.f32.mrb[62].mxu1 }
 0x569   : > { %v14052_v47 = vpop.f32.mrb[63].mxu1 }
 0x56e   : > { %v14054_v40 = vpop.f32.mrb[64].mxu1 }
 0x56f   : > { %15477 = vst [vmem:[#allocation100_spill] sm:$0xff] %v14054_v40  ;;  %v14056_v35 = vpop.f32.mrb[65].mxu1 }
 0x570   : > { %15478 = vst [vmem:[#allocation101_spill] sm:$0xff] %v14056_v35  ;;  %v14058_v49 = vpop.f32.mrb[66].mxu1 }
 0x571   : > { %15479 = vst [vmem:[#allocation102_spill] sm:$0xff] %v14058_v49  ;;  %v14060_v61 = vpop.f32.mrb[67].mxu1 }
 0x572   : > { %15480 = vst [vmem:[#allocation103_spill] sm:$0xff] %v14060_v61  ;;  %v6298_v61 = vadd.f32 %v13060_v16, %v6030_v31 }
 0x574   : > { %v6554_v0 = vmax.f32 %v6298_v61, 0.0  ;;  %v6557_v61 = vmax.f32 %v14086_v48, 0.0 }
 0x576   : > { %v14070_v26 = vpop.f32.mrb[68].mxu1 }
 0x577   : > { %15481 = vst [vmem:[#allocation104_spill] sm:$0xff] %v14070_v26  ;;  %v14075_v49 = vpop.f32.mrb[69].mxu1  ;;  %v14137_v26 = vadd.f32 %v13060_v16, %v6044_v29 }
 0x578   : > { %15482 = vst [vmem:[#allocation105_spill] sm:$0xff] %v14075_v49  ;;  %v14080_v56 = vpop.f32.mrb[70].mxu1  ;;  %v6046_v49 = vmul.f32 %v13045_v7, %v14038_v17  ;;  %v6049_v17 = vmul.f32 %v13052_v44, %v14044_v14  ;;  %v14167_v14 = vadd.f32 %v13060_v16, %v6048_v30 }
 0x579   : > { %15483 = vst [vmem:[#allocation106_spill] sm:$0xff] %v14080_v56  ;;  %v14088_v31 = vpop.f32.mrb[71].mxu1  ;;  %v14110_v56 = vadd.f32 %v13060_v16, %v6040_v51 }
 0x57a   : > { %15484 = vst [vmem:[#allocation107_spill] sm:$0xff] %v14088_v31  ;;  %v6042_v31 = vmul.f32 %v13045_v7, %v5697_v9  ;;  %v14133_v9 = vadd.f32 %v13065_v21, %v6043_v13  ;;  %v6047_v13 = vmul.f32 %v13052_v44, %v14040_v53 }
 0x57c   : > { %v14127_v33 = vadd.f32 %v13060_v16, %v6042_v31  ;;  %v14164_v6 = vadd.f32 %v13065_v21, %v6047_v13 }
 0x57e   : > { %v5747_v60 = vpop.f32.mrb[72].mxu1  ;;  %15485 = vst [vmem:[#allocation108_spill] sm:$0xff] %v14127_v33  ;;  %v14161_v33 = vadd.f32 %v13060_v16, %v6046_v49 }
 0x57f   : > { %v6062_v52 = vmul.f32 %v13045_v7, %v5747_v60  ;;  %v5749_v48 = vpop.f32.mrb[73].mxu1 }
 0x580   : > { %v6063_v51 = vmul.f32 %v13052_v44, %v5749_v48  ;;  %v5751_v38 = vpop.f32.mrb[74].mxu1 }
 0x581   : > { %v6330_v31 = vadd.f32 %v13060_v16, %v6062_v52  ;;  %v6064_v60 = vmul.f32 %v13045_v7, %v5751_v38  ;;  %v5753_v35 = vpop.f32.mrb[75].mxu1 }
 0x582   : > { %v6331_v48 = vadd.f32 %v13065_v21, %v6063_v51  ;;  %v6065_v5 = vmul.f32 %v13052_v44, %v5753_v35 }
 0x583   : > { %v6586_v41 = vmax.f32 %v6330_v31, 0.0  ;;  %v6332_v52 = vadd.f32 %v13060_v16, %v6064_v60 }
 0x584   : > { %v6587_v40 = vmax.f32 %v6331_v48, 0.0  ;;  %v6333_v53 = vadd.f32 %v13065_v21, %v6065_v5 }
 0x585   : > { %v6714_v8 = vmax.f32 %v6554_v0, %v6586_v41  ;;  %v6588_v29 = vmax.f32 %v6332_v52, 0.0  ;;  %v14172_v41 = vadd.f32 %v13065_v21, %v6049_v17 }
 0x586   : > { %v6715_v31 = vmax.f32 %v6555_v15, %v6587_v40  ;;  %v6589_v60 = vmax.f32 %v6333_v53, 0.0  ;;  %v5757_v38 = vpop.f32.mrb[76].mxu1  ;;  %v15486_v15 = vmax.f32 %v13092_v58, %v13397_v22  ;;  %v6570_v58 = vmax.f32 %v14161_v33, 0.0 }
 0x587   : > { %v6778_v5 = vmax.f32 %v13816_v3, %v6714_v8  ;;  %v6716_v48 = vmax.f32 %v6556_v27, %v6588_v29  ;;  %v6066_v51 = vmul.f32 %v13045_v7, %v5757_v38  ;;  %v5759_v35 = vpop.f32.mrb[77].mxu1  ;;  %v15488_v22 = vmax.f32 %v13099_v4, %v13406_v2 }
 0x588   : > { %v6779_v49 = vmax.f32 %v13820_v59, %v6715_v31  ;;  %v6717_v0 = vmax.f32 %v6557_v61, %v6589_v60  ;;  %v6067_v13 = vmul.f32 %v13052_v44, %v5759_v35  ;;  %v5761_v40 = vpop.f32.mrb[78].mxu1  ;;  %v15487_v61 = vmax.f32 %v13096_v24, %v13401_v50 }
 0x589   : > { %v6810_v30 = vmax.f32 %v15486_v15, %v6778_v5  ;;  %v6780_v52 = vmax.f32 %v13823_v19, %v6716_v48  ;;  %v6334_v3 = vadd.f32 %v13060_v16, %v6066_v51  ;;  %v6068_v8 = vmul.f32 %v13045_v7, %v5761_v40  ;;  %v5763_v27 = vpop.f32.mrb[79].mxu1 }
 0x58a   : > { %v6781_v29 = vmax.f32 %v13827_v32, %v6717_v0  ;;  %v6335_v38 = vadd.f32 %v13065_v21, %v6067_v13  ;;  %v6069_v59 = vmul.f32 %v13052_v44, %v5763_v27  ;;  %v6811_v17 = vmax.f32 %v15487_v61, %v6779_v49 }
 0x58b   : > { %v6812_v19 = vmax.f32 %v15488_v22, %v6780_v52  ;;  %v6590_v53 = vmax.f32 %v6334_v3, 0.0  ;;  %v6336_v51 = vadd.f32 %v13060_v16, %v6068_v8  ;;  %v6571_v35 = vmax.f32 %v14164_v6, 0.0 }
 0x58c   : > { %v6591_v32 = vmax.f32 %v6335_v38, 0.0  ;;  %v6337_v31 = vadd.f32 %v13065_v21, %v6069_v59  ;;  %v15489_v60 = vmax.f32 %v13103_v45, %v13412_v37  ;;  %v6572_v24 = vmax.f32 %v14167_v14, 0.0 }
 0x58d   : > { %v7349_v50 = vpack.c.bf16 %v6812_v19, %v6810_v30  ;;  %v15490_v48 = vmax.f32 %v14091_v10, 0.0  ;;  %v6592_v4 = vmax.f32 %v6336_v51, 0.0  ;;  %v6573_v2 = vmax.f32 %v14172_v41, 0.0  ;;  %v15496_v51 = vld [vmem:[#allocation39_spill] sm:$0xff] }
 0x58e   : > { %v6813_v5 = vmax.f32 %v15489_v60, %v6781_v29  ;;  %v15491_v0 = vmax.f32 %v14094_v36, 0.0  ;;  %v6593_v40 = vmax.f32 %v6337_v31, 0.0  ;;  %v5767_v15 = vpop.f32.mrb[80].mxu1  ;;  %v6050_v3 = vmul.f32 %v13045_v7, %v14046_v25 }
 0x58f   : > { %v6718_v49 = vmax.f32 %v15490_v48, %v6590_v53  ;;  %v15492_v37 = vmax.f32 %v14097_v46, 0.0  ;;  %v6070_v10 = vmul.f32 %v13045_v7, %v5767_v15  ;;  %v5769_v8 = vpop.f32.mrb[81].mxu1  ;;  %v6051_v27 = vmul.f32 %v13052_v44, %v14048_v28  ;;  %v15495_v53 = vld [vmem:[#allocation12_spill] sm:$0xff] }
 0x590   : > { %v6719_v13 = vmax.f32 %v15491_v0, %v6591_v32  ;;  %v7350_v52 = vpack.c.bf16 %v6813_v5, %v6811_v17  ;;  %v15493_v29 = vmax.f32 %v14100_v42, 0.0  ;;  %v6071_v59 = vmul.f32 %v13052_v44, %v5769_v8  ;;  %v5771_v61 = vpop.f32.mrb[82].mxu1  ;;  %v15501_v0 = vld [vmem:[#allocation51_spill] sm:$0xff] }
 0x591   : > { %v6782_v45 = vmax.f32 %v13844_v57, %v6718_v49  ;;  %v6720_v30 = vmax.f32 %v15492_v37, %v6592_v4  ;;  %v15494_v57 = vmax.f32 %v13122_v18, %v13435_v34  ;;  %v6338_v17 = vadd.f32 %v13060_v16, %v6070_v10  ;;  %v5773_v28 = vpop.f32.mrb[83].mxu1  ;;  %v15498_v34 = vld [vmem:[#allocation13_spill] sm:$0xff] }
 0x592   : > { %v6783_v36 = vmax.f32 %v13857_v54, %v6719_v13  ;;  %v6721_v38 = vmax.f32 %v15493_v29, %v6593_v40  ;;  %7525 = vmatprep.mubr.bf16.mxu0 %v7350_v52  ;;  %v6072_v22 = vmul.f32 %v13045_v7, %v5771_v61  ;;  %v6339_v42 = vadd.f32 %v13065_v21, %v6071_v59  ;;  %v15502_v13 = vld [vmem:[#allocation32_spill] sm:$0xff] }
 0x593   : > { %v6814_v25 = vmax.f32 %v15494_v57, %v6782_v45  ;;  %v6784_v46 = vmax.f32 %v13860_v20, %v6720_v30  ;;  %7526 = vmatmul.mubr.bf16.vlgmr.msra.gmra.mrb[40].mxu0 %v7349_v50  ;;  %v6073_v19 = vmul.f32 %v13052_v44, %v5773_v28  ;;  %v15497_v32 = vmax.f32 %v15495_v53, %v15496_v51  ;;  %v15499_v20 = vld [vmem:[#allocation23_spill] sm:$0xff] }
 0x594   : > { %v6785_v54 = vmax.f32 %v13864_v43, %v6721_v38  ;;  %v6052_v18 = vmul.f32 %v13045_v7, %v14050_v1  ;;  %v15500_v60 = vmax.f32 %v15498_v34, %v15499_v20  ;;  %v6594_v48 = vmax.f32 %v6338_v17, 0.0  ;;  %v15512_v34 = vld [vmem:[#allocation53_spill] sm:$0xff]  ;;  %v15513_v20 = vld [vmem:[#allocation31_spill] sm:$0xff] }
 0x595   : > { %v6815_v31 = vmax.f32 %v15497_v32, %v6783_v36  ;;  %v6340_v50 = vadd.f32 %v13060_v16, %v6072_v22  ;;  %v6053_v43 = vmul.f32 %v13052_v44, %v14052_v47  ;;  %v6595_v49 = vmax.f32 %v6339_v42, 0.0 }
 0x596   : > { %v6816_v5 = vmax.f32 %v15500_v60, %v6784_v46  ;;  %v6341_v4 = vadd.f32 %v13065_v21, %v6073_v19  ;;  %v15503_v40 = vmax.f32 %v15501_v0, %v15502_v13  ;;  %v14241_v52 = vadd.f32 %v13060_v16, %v6050_v3  ;;  %v5777_v29 = vpop.f32.mrb[84].mxu1 }
 0x597   : > { %v15504_v45 = vmax.f32 %v14103_v39, 0.0  ;;  %v6596_v30 = vmax.f32 %v6340_v50, 0.0  ;;  %v14246_v10 = vadd.f32 %v13065_v21, %v6051_v27  ;;  %v15505_v47 = vmax.f32 %v14106_v11, 0.0  ;;  %v15515_v50 = vld [vmem:[#allocation36_spill] sm:$0xff] }
 0x598   : > { %v6817_v15 = vmax.f32 %v15503_v40, %v6785_v54  ;;  %v7351_v1 = vpack.c.bf16 %v6816_v5, %v6814_v25  ;;  %v6597_v36 = vmax.f32 %v6341_v4, 0.0  ;;  %v14251_v59 = vadd.f32 %v13060_v16, %v6052_v18  ;;  %v5779_v25 = vpop.f32.mrb[85].mxu1  ;;  %v15508_v54 = vld [vmem:[#allocation29_spill] sm:$0xff] }
 0x599   : > { %v6722_v37 = vmax.f32 %v15504_v45, %v6594_v48  ;;  %v6723_v8 = vmax.f32 %v15505_v47, %v6595_v49  ;;  %v15506_v61 = vmax.f32 %v14110_v56, 0.0  ;;  %v6074_v39 = vmul.f32 %v13045_v7, %v5777_v29  ;;  %v5781_v28 = vpop.f32.mrb[86].mxu1  ;;  %v15519_v45 = vld [vmem:[#allocation15_spill] sm:$0xff] }
 0x59a   : > { %v7352_v38 = vpack.c.bf16 %v6817_v15, %v6815_v31  ;;  %v14258_v27 = vadd.f32 %v13065_v21, %v6053_v43  ;;  %v15507_v46 = vmax.f32 %v14113_v62, 0.0  ;;  %v6075_v22 = vmul.f32 %v13052_v44, %v5779_v25  ;;  %v5783_v32 = vpop.f32.mrb[87].mxu1 }
 0x59b   : > { %v6786_v3 = vmax.f32 %v13884_v12, %v6722_v37  ;;  %v6724_v57 = vmax.f32 %v15506_v61, %v6596_v30  ;;  %v6787_v11 = vmax.f32 %v13897_v23, %v6723_v8  ;;  %v15509_v12 = vld [vmem:[#allocation46_spill] sm:$0xff]  ;;  %v6342_v53 = vadd.f32 %v13060_v16, %v6074_v39  ;;  %v15511_v23 = vld [vmem:[#allocation47_spill] sm:$0xff] }
 0x59c   : > { %v6725_v17 = vmax.f32 %v15507_v46, %v6597_v36  ;;  %7533 = vmatprep.mubr.bf16.mxu0 %v7352_v38  ;;  %v15510_v42 = vmax.f32 %v15508_v54, %v15509_v12  ;;  %v6076_v51 = vmul.f32 %v13045_v7, %v5781_v28  ;;  %v6343_v62 = vadd.f32 %v13065_v21, %v6075_v22  ;;  %v15521_v36 = vld [vmem:[#allocation108_spill] sm:$0xff]  ;;  %v15525_v28 = vld [vmem:[#allocation10_spill] sm:$0xff] }
 0x59d   : > { %v6788_v19 = vmax.f32 %v13900_v55, %v6724_v57  ;;  %7534 = vmatmul.mubr.bf16.gmra.mrb[44].mxu0 %v7351_v1  ;;  %v6077_v18 = vmul.f32 %v13052_v44, %v5783_v32  ;;  %v15514_v60 = vmax.f32 %v15512_v34, %v15513_v20  ;;  %v6574_v48 = vmax.f32 %v14241_v52, 0.0  ;;  %v15516_v55 = vld [vmem:[#allocation30_spill] sm:$0xff]  ;;  %v15518_v1 = vld [vmem:[#allocation21_spill] sm:$0xff]  ;;  %v15531_v20 = vld [vmem:[#allocation35_spill] sm:$0xff] }
 0x59e   : > { %v6818_v56 = vmax.f32 %v15510_v42, %v6786_v3  ;;  %v6789_v31 = vmax.f32 %v15511_v23, %v6725_v17  ;;  %v15517_v43 = vmax.f32 %v15515_v50, %v15516_v55  ;;  %v6598_v4 = vmax.f32 %v6342_v53, 0.0  ;;  %v15524_v17 = vld [vmem:[#allocation100_spill] sm:$0xff]  ;;  %v15527_v53 = vld [vmem:[#allocation101_spill] sm:$0xff]  ;;  %v15528_v32 = vld [vmem:[#allocation22_spill] sm:$0xff] }
 0x59f   : > { %v6819_v5 = vmax.f32 %v15514_v60, %v6787_v11  ;;  %v6344_v0 = vadd.f32 %v13060_v16, %v6076_v51  ;;  %v6575_v13 = vmax.f32 %v14246_v10, 0.0  ;;  %v6599_v40 = vmax.f32 %v6343_v62, 0.0  ;;  %v5787_v11 = vpop.f32.mrb[88].mxu1  ;;  %v15530_v34 = vld [vmem:[#allocation42_spill] sm:$0xff] }
 0x5a0   : > { %v6820_v49 = vmax.f32 %v15517_v43, %v6788_v19  ;;  %v6345_v15 = vadd.f32 %v13065_v21, %v6077_v18  ;;  %v15520_v37 = vmax.f32 %v15518_v1, %v15519_v45  ;;  %v6576_v47 = vmax.f32 %v14251_v59, 0.0  ;;  %v5789_v19 = vpop.f32.mrb[89].mxu1  ;;  %v15536_v1 = vld [vmem:[#allocation9_spill] sm:$0xff] }
 0x5a1   : > { %v15522_v29 = vmax.f32 %v15521_v36, 0.0  ;;  %v6600_v3 = vmax.f32 %v6344_v0, 0.0  ;;  %v6577_v61 = vmax.f32 %v14258_v27, 0.0  ;;  %v15523_v57 = vmax.f32 %v14133_v9, 0.0  ;;  %v5791_v18 = vpop.f32.mrb[90].mxu1 }
 0x5a2   : > { %v6821_v30 = vmax.f32 %v15520_v37, %v6789_v31  ;;  %v7353_v8 = vpack.c.bf16 %v6820_v49, %v6818_v56  ;;  %v6601_v25 = vmax.f32 %v6345_v15, 0.0  ;;  %v6054_v22 = vmul.f32 %v13045_v7, %v15524_v17  ;;  %v5793_v49 = vpop.f32.mrb[91].mxu1  ;;  %v15535_v15 = vld [vmem:[#allocation34_spill] sm:$0xff] }
 0x5a3   : > { %v6726_v38 = vmax.f32 %v15522_v29, %v6598_v4  ;;  %v6727_v39 = vmax.f32 %v15523_v57, %v6599_v40  ;;  %v15526_v12 = vmax.f32 %v14137_v26, 0.0  ;;  %v6078_v56 = vmul.f32 %v13045_v7, %v5787_v11  ;;  %v15534_v4 = vld [vmem:[#allocation83_spill] sm:$0xff]  ;;  %v15539_v29 = vld [vmem:[#allocation40_spill] sm:$0xff] }
 0x5a4   : > { %v7354_v46 = vpack.c.bf16 %v6821_v30, %v6819_v5  ;;  %v6055_v51 = vmul.f32 %v13052_v44, %v15527_v53  ;;  %v15529_v23 = vmax.f32 %v14140_v63, 0.0  ;;  %v6079_v62 = vmul.f32 %v13052_v44, %v5789_v19  ;;  %v15533_v5 = vld [vmem:[#allocation82_spill] sm:$0xff] }
 0x5a5   : > { %v6790_v54 = vmax.f32 %v15525_v28, %v6726_v38  ;;  %v6728_v42 = vmax.f32 %v15526_v12, %v6600_v3  ;;  %v6791_v9 = vmax.f32 %v15528_v32, %v6727_v39  ;;  %v15532_v60 = vmax.f32 %v15530_v34, %v15531_v20  ;;  %v15538_v30 = vld [vmem:[#allocation102_spill] sm:$0xff]  ;;  %v15543_v28 = vld [vmem:[#allocation48_spill] sm:$0xff] }
 0x5a6   : > { %v6729_v31 = vmax.f32 %v15529_v23, %v6601_v25  ;;  %7541 = vmatprep.mubr.bf16.mxu0 %v7354_v46  ;;  %v6346_v55 = vadd.f32 %v13060_v16, %v6078_v56  ;;  %v6080_v43 = vmul.f32 %v13045_v7, %v5791_v18  ;;  %v6347_v63 = vadd.f32 %v13065_v21, %v6079_v62  ;;  %v15540_v38 = vld [vmem:[#allocation38_spill] sm:$0xff]  ;;  %v15542_v25 = vld [vmem:[#allocation103_spill] sm:$0xff]  ;;  %v5797_v62 = vpop.f32.mrb[92].mxu1  ;;  %v15546_v20 = vld [vmem:[#allocation84_spill] sm:$0xff] }
 0x5a7   : > { %v6822_v26 = vmax.f32 %v15532_v60, %v6790_v54  ;;  %v6792_v50 = vmax.f32 %v15533_v5, %v6728_v42  ;;  %7542 = vmatmul.mubr.bf16.gmra.mrb[48].mxu0 %v7353_v8  ;;  %v6081_v40 = vmul.f32 %v13052_v44, %v5793_v49  ;;  %v15537_v45 = vmax.f32 %v15535_v15, %v15536_v1  ;;  %v15544_v54 = vld [vmem:[#allocation26_spill] sm:$0xff]  ;;  %v15552_v15 = vld [vmem:[#allocation87_spill] sm:$0xff] }
 0x5a8   : > { %v6793_v0 = vmax.f32 %v15534_v4, %v6729_v31  ;;  %v6056_v36 = vmul.f32 %v13045_v7, %v15538_v30  ;;  %v15541_v3 = vmax.f32 %v15539_v29, %v15540_v38  ;;  %v6602_v39 = vmax.f32 %v6346_v55, 0.0  ;;  %v15548_v55 = vld [vmem:[#allocation27_spill] sm:$0xff]  ;;  %v15556_v38 = vld [vmem:[#allocation41_spill] sm:$0xff] }
 0x5a9   : > { %v6823_v37 = vmax.f32 %v15537_v45, %v6791_v9  ;;  %v6348_v8 = vadd.f32 %v13060_v16, %v6080_v43  ;;  %v6057_v11 = vmul.f32 %v13052_v44, %v15542_v25  ;;  %v6603_v46 = vmax.f32 %v6347_v63, 0.0  ;;  %v15549_v43 = vld [vmem:[#allocation37_spill] sm:$0xff]  ;;  %v15553_v45 = vld [vmem:[#allocation43_spill] sm:$0xff] }
 0x5aa   : > { %v6824_v57 = vmax.f32 %v15541_v3, %v6792_v50  ;;  %v6349_v17 = vadd.f32 %v13065_v21, %v6081_v40  ;;  %v15545_v12 = vmax.f32 %v15543_v28, %v15544_v54  ;;  %v14329_v56 = vadd.f32 %v13060_v16, %v6054_v22  ;;  %v15557_v3 = vld [vmem:[#allocation16_spill] sm:$0xff]  ;;  %v15559_v28 = vld [vmem:[#allocation49_spill] sm:$0xff]  ;;  %v15560_v54 = vld [vmem:[#allocation59_spill] sm:$0xff] }
 0x5ab   : > { %v6730_v53 = vmax.f32 %v6570_v58, %v6602_v39  ;;  %v6604_v32 = vmax.f32 %v6348_v8, 0.0  ;;  %v14334_v9 = vadd.f32 %v13065_v21, %v6055_v51  ;;  %v6731_v23 = vmax.f32 %v6571_v35, %v6603_v46  ;;  %v5799_v58 = vpop.f32.mrb[93].mxu1 }
 0x5ac   : > { %v6825_v42 = vmax.f32 %v15545_v12, %v6793_v0  ;;  %v7355_v19 = vpack.c.bf16 %v6824_v57, %v6822_v26  ;;  %v6605_v31 = vmax.f32 %v6349_v17, 0.0  ;;  %v14339_v34 = vadd.f32 %v13060_v16, %v6056_v36  ;;  %v15547_v26 = vld [vmem:[#allocation85_spill] sm:$0xff]  ;;  %v5801_v50 = vpop.f32.mrb[94].mxu1 }
 0x5ad   : > { %v6794_v22 = vmax.f32 %v15546_v20, %v6730_v53  ;;  %v6732_v60 = vmax.f32 %v6572_v24, %v6604_v32  ;;  %v6082_v33 = vmul.f32 %v13045_v7, %v5797_v62  ;;  %v14346_v51 = vadd.f32 %v13065_v21, %v6057_v11  ;;  %v15551_v24 = vld [vmem:[#allocation86_spill] sm:$0xff]  ;;  %v5803_v40 = vpop.f32.mrb[95].mxu1  ;;  %v15562_v20 = vld [vmem:[#allocation104_spill] sm:$0xff] }
 0x5ae   : > { %v7356_v18 = vpack.c.bf16 %v6825_v42, %v6823_v37  ;;  %v6795_v6 = vmax.f32 %v15547_v26, %v6731_v23  ;;  %v6733_v35 = vmax.f32 %v6573_v2, %v6605_v31  ;;  %v6083_v5 = vmul.f32 %v13052_v44, %v5799_v58  ;;  %v15554_v37 = vld [vmem:[#allocation25_spill] sm:$0xff]  ;;  %v5807_v62 = vpop.f32.mrb[96].mxu1 }
 0x5af   : > { %v15550_v49 = vmax.f32 %v15548_v55, %v15549_v43  ;;  %v6796_v4 = vmax.f32 %v15551_v24, %v6732_v60  ;;  %v6350_v0 = vadd.f32 %v13060_v16, %v6082_v33  ;;  %v6084_v63 = vmul.f32 %v13045_v7, %v5801_v50  ;;  %v15563_v60 = vld [vmem:[#allocation88_spill] sm:$0xff]  ;;  %v15564_v58 = vld [vmem:[#allocation105_spill] sm:$0xff] }
 0x5b0   : > { %7549 = vmatprep.mubr.bf16.mxu0 %v7356_v18  ;;  %v6797_v1 = vmax.f32 %v15552_v15, %v6733_v35  ;;  %v6351_v41 = vadd.f32 %v13065_v21, %v6083_v5  ;;  %v6085_v2 = vmul.f32 %v13052_v44, %v5803_v40  ;;  %v15555_v30 = vmax.f32 %v15553_v45, %v15554_v37  ;;  %v15565_v26 = vld [vmem:[#allocation89_spill] sm:$0xff]  ;;  %v15566_v5 = vld [vmem:[#allocation54_spill] sm:$0xff]  ;;  %v15572_v40 = vld [vmem:[#allocation60_spill] sm:$0xff] }
 0x5b1   : > { %v6826_v14 = vmax.f32 %v15550_v49, %v6794_v22  ;;  %7550 = vmatmul.mubr.bf16.gmra.mrb[52].mxu0 %v7355_v19  ;;  %v6578_v29 = vmax.f32 %v14329_v56, 0.0  ;;  %v15558_v57 = vmax.f32 %v15556_v38, %v15557_v3  ;;  %v6606_v8 = vmax.f32 %v6350_v0, 0.0  ;;  %v15567_v50 = vld [vmem:[#allocation57_spill] sm:$0xff]  ;;  %v15575_v45 = vld [vmem:[#allocation44_spill] sm:$0xff] }
 0x5b2   : > { %v6827_v36 = vmax.f32 %v15555_v30, %v6795_v6  ;;  %v6352_v25 = vadd.f32 %v13060_v16, %v6084_v63  ;;  %v6579_v11 = vmax.f32 %v14334_v9, 0.0  ;;  %v6607_v46 = vmax.f32 %v6351_v41, 0.0  ;;  %v15571_v63 = vld [vmem:[#allocation33_spill] sm:$0xff]  ;;  %v15574_v41 = vld [vmem:[#allocation106_spill] sm:$0xff]  ;;  %v15576_v37 = vld [vmem:[#allocation64_spill] sm:$0xff] }
 0x5b3   : > { %v6828_v39 = vmax.f32 %v15558_v57, %v6796_v4  ;;  %v6353_v17 = vadd.f32 %v13065_v21, %v6085_v2  ;;  %v15561_v12 = vmax.f32 %v15559_v28, %v15560_v54  ;;  %v6580_v19 = vmax.f32 %v14339_v34, 0.0  ;;  %v15570_v4 = vld [vmem:[#allocation91_spill] sm:$0xff] }
 0x5b4   : > { %v6734_v56 = vmax.f32 %v6574_v48, %v6606_v8  ;;  %v6608_v32 = vmax.f32 %v6352_v25, 0.0  ;;  %v6581_v23 = vmax.f32 %v14346_v51, 0.0  ;;  %v6735_v31 = vmax.f32 %v6575_v13, %v6607_v46  ;;  %v5809_v48 = vpop.f32.mrb[97].mxu1  ;;  %v15578_v57 = vld [vmem:[#allocation107_spill] sm:$0xff]  ;;  %v15579_v46 = vld [vmem:[#allocation18_spill] sm:$0xff] }
 0x5b5   : > { %v6829_v42 = vmax.f32 %v15561_v12, %v6797_v1  ;;  %v7357_v53 = vpack.c.bf16 %v6828_v39, %v6826_v14  ;;  %v6609_v9 = vmax.f32 %v6353_v17, 0.0  ;;  %v6058_v22 = vmul.f32 %v13045_v7, %v15562_v20  ;;  %v5811_v35 = vpop.f32.mrb[98].mxu1  ;;  %v15580_v17 = vld [vmem:[#allocation45_spill] sm:$0xff] }
 0x5b6   : > { %v6798_v33 = vmax.f32 %v15563_v60, %v6734_v56  ;;  %v6736_v34 = vmax.f32 %v6576_v47, %v6608_v32  ;;  %v6086_v52 = vmul.f32 %v13045_v7, %v5807_v62  ;;  %v6059_v51 = vmul.f32 %v13052_v44, %v15564_v58  ;;  %v15569_v47 = vld [vmem:[#allocation90_spill] sm:$0xff]  ;;  %v5813_v24 = vpop.f32.mrb[99].mxu1  ;;  %v15582_v60 = vld [vmem:[#allocation92_spill] sm:$0xff] }
 0x5b7   : > { %v7358_v18 = vpack.c.bf16 %v6829_v42, %v6827_v36  ;;  %v6799_v10 = vmax.f32 %v15565_v26, %v6735_v31  ;;  %v6737_v13 = vmax.f32 %v6577_v61, %v6609_v9  ;;  %v6087_v6 = vmul.f32 %v13052_v44, %v5809_v48  ;;  %v5817_v62 = vpop.f32.mrb[100].mxu1 }
 0x5b8   : > { %v15568_v55 = vmax.f32 %v15566_v5, %v15567_v50  ;;  %v6800_v43 = vmax.f32 %v15569_v47, %v6736_v34  ;;  %v6354_v49 = vadd.f32 %v13060_v16, %v6086_v52  ;;  %v6088_v14 = vmul.f32 %v13045_v7, %v5811_v35  ;;  %v5819_v48 = vpop.f32.mrb[101].mxu1  ;;  %v15587_v5 = vld [vmem:[#allocation94_spill] sm:$0xff]  ;;  %v15588_v47 = vld [vmem:[#allocation95_spill] sm:$0xff] }
 0x5b9   : > { %7557 = vmatprep.mubr.bf16.mxu0 %v7358_v18  ;;  %v6801_v0 = vmax.f32 %v15570_v4, %v6737_v13  ;;  %v6355_v27 = vadd.f32 %v13065_v21, %v6087_v6  ;;  %v6089_v61 = vmul.f32 %v13052_v44, %v5813_v24  ;;  %v15573_v15 = vmax.f32 %v15571_v63, %v15572_v40  ;;  %v15585_v13 = vld [vmem:[#allocation63_spill] sm:$0xff]  ;;  %v15590_v24 = vld [vmem:[#allocation14_spill] sm:$0xff]  ;;  %v15593_v63 = vld [vmem:[#allocation52_spill] sm:$0xff] }
 0x5ba   : > { %v6830_v59 = vmax.f32 %v15568_v55, %v6798_v33  ;;  %7558 = vmatmul.mubr.bf16.gmra.mrb[56].mxu0 %v7357_v53  ;;  %v6060_v2 = vmul.f32 %v13045_v7, %v15574_v41  ;;  %v15577_v30 = vmax.f32 %v15575_v45, %v15576_v37  ;;  %v6610_v38 = vmax.f32 %v6354_v49, 0.0  ;;  %v15595_v37 = vld [vmem:[#allocation19_spill] sm:$0xff] }
 0x5bb   : > { %v6831_v1 = vmax.f32 %v15573_v15, %v6799_v10  ;;  %v6356_v3 = vadd.f32 %v13060_v16, %v6088_v14  ;;  %v6061_v39 = vmul.f32 %v13052_v44, %v15578_v57  ;;  %v6611_v8 = vmax.f32 %v6355_v27, 0.0  ;;  %v15589_v14 = vld [vmem:[#allocation24_spill] sm:$0xff] }
 0x5bc   : > { %v6832_v36 = vmax.f32 %v15577_v30, %v6800_v43  ;;  %v6357_v25 = vadd.f32 %v13065_v21, %v6089_v61  ;;  %v15581_v28 = vmax.f32 %v15579_v46, %v15580_v17  ;;  %v6326_v12 = vadd.f32 %v13060_v16, %v6058_v22  ;;  %v15583_v22 = vld [vmem:[#allocation93_spill] sm:$0xff]  ;;  %v15592_v61 = vld [vmem:[#allocation28_spill] sm:$0xff] }
 0x5bd   : > { %v6738_v53 = vmax.f32 %v6578_v29, %v6610_v38  ;;  %v6612_v56 = vmax.f32 %v6356_v3, 0.0  ;;  %v6327_v32 = vadd.f32 %v13065_v21, %v6059_v51  ;;  %v6739_v31 = vmax.f32 %v6579_v11, %v6611_v8  ;;  %v5821_v51 = vpop.f32.mrb[102].mxu1  ;;  %v15584_v11 = vld [vmem:[#allocation50_spill] sm:$0xff]  ;;  %v15596_v30 = vld [vmem:[#allocation20_spill] sm:$0xff] }
 0x5be   : > { %v6833_v54 = vmax.f32 %v15581_v28, %v6801_v0  ;;  %v7359_v42 = vpack.c.bf16 %v6832_v36, %v6830_v59  ;;  %v6613_v9 = vmax.f32 %v6357_v25, 0.0  ;;  %v6328_v20 = vadd.f32 %v13060_v16, %v6060_v2  ;;  %v5823_v59 = vpop.f32.mrb[103].mxu1  ;;  %v15598_v28 = vld [vmem:[#allocation96_spill] sm:$0xff] }
 0x5bf   : > { %v6802_v33 = vmax.f32 %v15582_v60, %v6738_v53  ;;  %v6740_v34 = vmax.f32 %v6580_v19, %v6612_v56  ;;  %v6090_v52 = vmul.f32 %v13045_v7, %v5817_v62  ;;  %v6329_v58 = vadd.f32 %v13065_v21, %v6061_v39  ;;  %v15601_v56 = vld [vmem:[#allocation71_spill] sm:$0xff] }
 0x5c0   : > { %v7360_v18 = vpack.c.bf16 %v6833_v54, %v6831_v1  ;;  %v6803_v26 = vmax.f32 %v15583_v22, %v6739_v31  ;;  %v6741_v29 = vmax.f32 %v6581_v23, %v6613_v9  ;;  %v6091_v10 = vmul.f32 %v13052_v44, %v5819_v48  ;;  %v15603_v9 = vld [vmem:[#allocation98_spill] sm:$0xff]  ;;  %v15605_v60 = vld [vmem:[#allocation11_spill] sm:$0xff]  ;;  %v15608_v48 = vld [vmem:[#allocation56_spill] sm:$0xff] }
 0x5c1   : > { %v15586_v6 = vmax.f32 %v15584_v11, %v15585_v13  ;;  %v6804_v50 = vmax.f32 %v15587_v5, %v6740_v34  ;;  %v6358_v19 = vadd.f32 %v13060_v16, %v6090_v52  ;;  %v6092_v55 = vmul.f32 %v13045_v7, %v5821_v51 }
 0x5c2   : > { %7565 = vmatprep.mubr.bf16.mxu0 %v7360_v18  ;;  %v6805_v43 = vmax.f32 %v15588_v47, %v6741_v29  ;;  %v6359_v23 = vadd.f32 %v13065_v21, %v6091_v10  ;;  %v6093_v49 = vmul.f32 %v13052_v44, %v5823_v59  ;;  %v15591_v4 = vmax.f32 %v15589_v14, %v15590_v24  ;;  %v15604_v18 = vld [vmem:[#allocation99_spill] sm:$0xff]  ;;  %v15611_v29 = vld [vmem:[#allocation58_spill] sm:$0xff]  ;;  %v15615_v24 = vld [vmem:[#allocation17_spill] sm:$0xff] }
 0x5c3   : > { %v6834_v35 = vmax.f32 %v15586_v6, %v6802_v33  ;;  %7566 = vmatmul.mubr.bf16.gmra.mrb[60].mxu0 %v7359_v42  ;;  %v6582_v27 = vmax.f32 %v6326_v12, 0.0  ;;  %v15594_v40 = vmax.f32 %v15592_v61, %v15593_v63  ;;  %v6614_v1 = vmax.f32 %v6358_v19, 0.0  ;;  %v15606_v33 = vld [vmem:[#allocation73_spill] sm:$0xff]  ;;  %v15612_v10 = vld [vmem:[#allocation75_spill] sm:$0xff]  ;;  %v15614_v47 = vld [vmem:[#allocation62_spill] sm:$0xff] }
 0x5c4   : > { %v6835_v0 = vmax.f32 %v15591_v4, %v6803_v26  ;;  %v6360_v7 = vadd.f32 %v13060_v16, %v6092_v55  ;;  %v6583_v41 = vmax.f32 %v6327_v32, 0.0  ;;  %v6615_v2 = vmax.f32 %v6359_v23, 0.0  ;;  %v15599_v16 = vld [vmem:[#allocation97_spill] sm:$0xff] }
 0x5c5   : > { %v6836_v15 = vmax.f32 %v15594_v40, %v6804_v50  ;;  %v6361_v45 = vadd.f32 %v13065_v21, %v6093_v49  ;;  %v15597_v36 = vmax.f32 %v15595_v37, %v15596_v30  ;;  %v6584_v38 = vmax.f32 %v6328_v20, 0.0  ;;  %v15600_v21 = vld [vmem:[#allocation55_spill] sm:$0xff]  ;;  %v14464_v55 = vld [vmem:[%s14608_s17] ss:$0 sm:$0xff] }
 0x5c6   : > { %v6742_v57 = vmax.f32 %v6582_v27, %v6614_v1  ;;  %v6616_v39 = vmax.f32 %v6360_v7, 0.0  ;;  %v6585_v8 = vmax.f32 %v6329_v58, 0.0  ;;  %v6743_v25 = vmax.f32 %v6583_v41, %v6615_v2  ;;  %v15609_v58 = vld [vmem:[#allocation74_spill] sm:$0xff]  ;;  %v14470_v49 = vld [vmem:[%s14609_s18] ss:$0 sm:$0xff] }
 0x5c7   : > { %v6837_v44 = vmax.f32 %v15597_v36, %v6805_v43  ;;  %v7361_v3 = vpack.c.bf16 %v6836_v15, %v6834_v35  ;;  %v6617_v46 = vmax.f32 %v6361_v45, 0.0  ;;  %v15602_v32 = vmax.f32 %v15600_v21, %v15601_v56  ;;  %v15616_v45 = vld [vmem:[#allocation61_spill] sm:$0xff]  ;;  %v15619_v56 = vld [vmem:[#allocation72_spill] sm:$0xff] }
 0x5c8   : > { %v6806_v54 = vmax.f32 %v15598_v28, %v6742_v57  ;;  %v6744_v12 = vmax.f32 %v6584_v38, %v6616_v39  ;;  %v6807_v42 = vmax.f32 %v15599_v16, %v6743_v25  ;;  %v15607_v34 = vmax.f32 %v15605_v60, %v15606_v33  ;;  %v15618_v16 = vld [vmem:[#allocation66_spill] sm:$0xff] }
 0x5c9   : > { %v7362_v17 = vpack.c.bf16 %v6837_v44, %v6835_v0  ;;  %v6745_v53 = vmax.f32 %v6585_v8, %v6617_v46  ;;  %v15610_v22 = vmax.f32 %v15608_v48, %v15609_v58  ;;  %v15613_v51 = vmax.f32 %v15611_v29, %v15612_v10  ;;  %v15617_v44 = vld [vmem:[#allocation68_spill] sm:$0xff]  ;;  %v15620_v58 = vld [vmem:[#allocation69_spill] sm:$0xff]  ;;  %v15621_v10 = vld [vmem:[#allocation70_spill] sm:$0xff] }
 0x5ca   : > { %v6838_v31 = vmax.f32 %v15602_v32, %v6806_v54  ;;  %v6808_v62 = vmax.f32 %v15603_v9, %v6744_v12  ;;  %v6839_v52 = vmax.f32 %v15607_v34, %v6807_v42 }
 0x5cb   : > { %7573 = vmatprep.mubr.bf16.mxu0 %v7362_v17  ;;  %v6809_v20 = vmax.f32 %v15604_v18, %v6745_v53 }
 0x5cc   : > { %7574 = vmatmul.mubr.bf16.gmra.mrb[64].mxu0 %v7361_v3  ;;  %v6840_v26 = vmax.f32 %v15610_v22, %v6808_v62 }
 0x5cd   : > { %v6841_v11 = vmax.f32 %v15613_v51, %v6809_v20 }
 0x5ce   : > { %v7363_v13 = vpack.c.bf16 %v6840_v26, %v6838_v31 }
 0x5cf   : > { %v7364_v6 = vpack.c.bf16 %v6841_v11, %v6839_v52 }
 0x5d1   : > { %7581 = vmatprep.mubr.bf16.mxu0 %v7364_v6 }
 0x5d4   : > { %7582 = vmatmul.mubr.bf16.gmra.mrb[68].mxu0 %v7363_v13 }
 0x666   : > { %v8366_v35 = vpop.f32.mrb[40].mxu0 }
 0x667   : > { %v8367_v5 = vpop.f32.mrb[41].mxu0 }
 0x668   : > { %v8368_v50 = vadd.f32 %v8367_v5, %v8366_v35  ;;  %v8369_v19 = vpop.f32.mrb[42].mxu0 }
 0x669   : > { %v8370_v59 = vpop.f32.mrb[43].mxu0 }
 0x66a   : > { %v7590_v43 = vadd.f32 %v8368_v50, %v15614_v47  ;;  %v8371_v23 = vadd.f32 %v8370_v59, %v8369_v19 }
 0x66c   : > { %v7613_v14 = vmul.f32 %v14464_v55, %v7590_v43  ;;  %v7591_v4 = vadd.f32 %v8371_v23, %v15615_v24  ;;  %v15622_v23 = vld [vmem:[#allocation65_spill] sm:$0xff] }
 0x66e   : > { %v7636_v0 = vadd.f32 %v14470_v49, %v7613_v14  ;;  %v7614_v27 = vmul.f32 %v14464_v55, %v7591_v4 }
 0x670   : > { %v8372_v61 = vpop.f32.mrb[44].mxu0  ;;  %v7652_v40 = vmax.f32 %v7636_v0, 0.0  ;;  %v7637_v15 = vadd.f32 %v14470_v49, %v7614_v27  ;;  %v15623_v0 = vld [vmem:[#allocation78_spill] sm:$0xff] }
 0x671   : > { %v8373_v63 = vpop.f32.mrb[45].mxu0 }
 0x672   : > { %v8374_v1 = vadd.f32 %v8373_v63, %v8372_v61  ;;  %v8375_v7 = vpop.f32.mrb[46].mxu0  ;;  %7668 = vst [vmem:[%s14479_s28] sm:$0xff] %v7652_v40  ;;  %v7653_v2 = vmax.f32 %v7637_v15, 0.0 }
 0x673   : > { %v8376_v41 = vpop.f32.mrb[47].mxu0 }
 0x674   : > { %v7592_v37 = vadd.f32 %v15616_v45, %v8374_v1  ;;  %v8377_v30 = vadd.f32 %v8376_v41, %v8375_v7  ;;  %7669 = vst [vmem:[%s14479_s28 + $0x8] sm:$0xff] %v7653_v2 }
 0x676   : > { %v7615_v36 = vmul.f32 %v14464_v55, %v7592_v37  ;;  %v7593_v38 = vadd.f32 %v15617_v44, %v8377_v30  ;;  %v15624_v30 = vld [vmem:[#allocation76_spill] sm:$0xff] }
 0x678   : > { %v7638_v3 = vadd.f32 %v14470_v49, %v7615_v36  ;;  %v7616_v57 = vmul.f32 %v14464_v55, %v7593_v38 }
 0x67a   : > { %v8378_v39 = vpop.f32.mrb[48].mxu0  ;;  %v7654_v25 = vmax.f32 %v7638_v3, 0.0  ;;  %v7639_v46 = vadd.f32 %v14470_v49, %v7616_v57  ;;  %v15625_v3 = vld [vmem:[#allocation77_spill] sm:$0xff] }
 0x67b   : > { %v8379_v8 = vpop.f32.mrb[49].mxu0 }
 0x67c   : > { %v8380_v17 = vadd.f32 %v8379_v8, %v8378_v39  ;;  %v8381_v28 = vpop.f32.mrb[50].mxu0  ;;  %7670 = vst [vmem:[%s14479_s28 + $0x10] sm:$0xff] %v7654_v25  ;;  %v7655_v12 = vmax.f32 %v7639_v46, 0.0 }
 0x67d   : > { %v8382_v54 = vpop.f32.mrb[51].mxu0 }
 0x67e   : > { %v7594_v42 = vadd.f32 %v8380_v17, %v15618_v16  ;;  %v8383_v53 = vadd.f32 %v8382_v54, %v8381_v28  ;;  %7671 = vst [vmem:[%s14479_s28 + $0x18] sm:$0xff] %v7655_v12 }
 0x680   : > { %v7617_v21 = vmul.f32 %v14464_v55, %v7594_v42  ;;  %v7595_v32 = vadd.f32 %v8383_v53, %v15619_v56  ;;  %v15626_v53 = vld [vmem:[#allocation67_spill] sm:$0xff] }
 0x682   : > { %v7640_v31 = vadd.f32 %v14470_v49, %v7617_v21  ;;  %v7618_v9 = vmul.f32 %v14464_v55, %v7595_v32 }
 0x684   : > { %v8384_v62 = vpop.f32.mrb[52].mxu0  ;;  %v7656_v20 = vmax.f32 %v7640_v31, 0.0  ;;  %v7641_v60 = vadd.f32 %v14470_v49, %v7618_v9  ;;  %v15627_v31 = vld [vmem:[#allocation81_spill] sm:$0xff] }
 0x685   : > { %v8385_v18 = vpop.f32.mrb[53].mxu0 }
 0x686   : > { %v8386_v33 = vadd.f32 %v8385_v18, %v8384_v62  ;;  %v8387_v34 = vpop.f32.mrb[54].mxu0  ;;  %7672 = vst [vmem:[%s14479_s28 + $0x20] sm:$0xff] %v7656_v20  ;;  %v7657_v48 = vmax.f32 %v7641_v60, 0.0 }
 0x687   : > { %v8388_v52 = vpop.f32.mrb[55].mxu0 }
 0x688   : > { %v7596_v22 = vadd.f32 %v15620_v58, %v8386_v33  ;;  %v8389_v26 = vadd.f32 %v8388_v52, %v8387_v34  ;;  %7673 = vst [vmem:[%s14479_s28 + $0x28] sm:$0xff] %v7657_v48 }
 0x68a   : > { %v7619_v29 = vmul.f32 %v14464_v55, %v7596_v22  ;;  %v7597_v51 = vadd.f32 %v15621_v10, %v8389_v26  ;;  %v15628_v26 = vld [vmem:[#allocation79_spill] sm:$0xff] }
 0x68c   : > { %v7642_v11 = vadd.f32 %v14470_v49, %v7619_v29  ;;  %v7620_v13 = vmul.f32 %v14464_v55, %v7597_v51 }
 0x68d   : > { %v8390_v6 = vpop.f32.mrb[56].mxu0 }
 0x68e   : > { %v8391_v35 = vpop.f32.mrb[57].mxu0  ;;  %v7658_v5 = vmax.f32 %v7642_v11, 0.0  ;;  %v7643_v50 = vadd.f32 %v14470_v49, %v7620_v13  ;;  %v15629_v11 = vld [vmem:[#allocation80_spill] sm:$0xff] }
 0x68f   : > { %v8392_v19 = vadd.f32 %v8391_v35, %v8390_v6  ;;  %v8393_v59 = vpop.f32.mrb[58].mxu0 }
 0x690   : > { %v8394_v47 = vpop.f32.mrb[59].mxu0  ;;  %7674 = vst [vmem:[%s14479_s28 + $0x30] sm:$0xff] %v7658_v5  ;;  %v7659_v43 = vmax.f32 %v7643_v50, 0.0 }
 0x691   : > { %v7598_v14 = vadd.f32 %v8392_v19, %v15622_v23  ;;  %v8395_v24 = vadd.f32 %v8394_v47, %v8393_v59 }
 0x692   : > { %7675 = vst [vmem:[%s14479_s28 + $0x38] sm:$0xff] %v7659_v43 }
 0x693   : > { %v7621_v4 = vmul.f32 %v14464_v55, %v7598_v14  ;;  %v7599_v27 = vadd.f32 %v8395_v24, %v15623_v0 }
 0x695   : > { %v7644_v61 = vadd.f32 %v14470_v49, %v7621_v4  ;;  %v7622_v63 = vmul.f32 %v14464_v55, %v7599_v27 }
 0x696   : > { %v8396_v40 = vpop.f32.mrb[60].mxu0 }
 0x697   : > { %v8397_v15 = vpop.f32.mrb[61].mxu0  ;;  %v7660_v1 = vmax.f32 %v7644_v61, 0.0  ;;  %v7645_v7 = vadd.f32 %v14470_v49, %v7622_v63 }
 0x698   : > { %v8398_v41 = vadd.f32 %v8397_v15, %v8396_v40  ;;  %v8399_v2 = vpop.f32.mrb[62].mxu0 }
 0x699   : > { %v8400_v45 = vpop.f32.mrb[63].mxu0  ;;  %7676 = vst [vmem:[%s14479_s28 + $0x40] sm:$0xff] %v7660_v1  ;;  %v7661_v37 = vmax.f32 %v7645_v7, 0.0 }
 0x69a   : > { %v7600_v36 = vadd.f32 %v15624_v30, %v8398_v41  ;;  %v8401_v44 = vadd.f32 %v8400_v45, %v8399_v2 }
 0x69b   : > { %7677 = vst [vmem:[%s14479_s28 + $0x48] sm:$0xff] %v7661_v37 }
 0x69c   : > { %v7623_v38 = vmul.f32 %v14464_v55, %v7600_v36  ;;  %v7601_v57 = vadd.f32 %v15625_v3, %v8401_v44 }
 0x69e   : > { %v7646_v39 = vadd.f32 %v14470_v49, %v7623_v38  ;;  %v7624_v8 = vmul.f32 %v14464_v55, %v7601_v57 }
 0x69f   : > { %v8402_v25 = vpop.f32.mrb[64].mxu0 }
 0x6a0   : > { %v8403_v46 = vpop.f32.mrb[65].mxu0  ;;  %v7662_v17 = vmax.f32 %v7646_v39, 0.0  ;;  %v7647_v28 = vadd.f32 %v14470_v49, %v7624_v8 }
 0x6a1   : > { %v8404_v54 = vadd.f32 %v8403_v46, %v8402_v25  ;;  %v8405_v12 = vpop.f32.mrb[66].mxu0 }
 0x6a2   : > { %v8406_v16 = vpop.f32.mrb[67].mxu0  ;;  %7678 = vst [vmem:[%s14479_s28 + $0x50] sm:$0xff] %v7662_v17  ;;  %v7663_v42 = vmax.f32 %v7647_v28, 0.0 }
 0x6a3   : > { %v7602_v21 = vadd.f32 %v8404_v54, %v15626_v53  ;;  %v8407_v56 = vadd.f32 %v8406_v16, %v8405_v12 }
 0x6a4   : > { %7679 = vst [vmem:[%s14479_s28 + $0x58] sm:$0xff] %v7663_v42 }
 0x6a5   : > { %v7625_v32 = vmul.f32 %v14464_v55, %v7602_v21  ;;  %v7603_v9 = vadd.f32 %v8407_v56, %v15627_v31 }
 0x6a7   : > { %v7648_v62 = vadd.f32 %v14470_v49, %v7625_v32  ;;  %v7626_v18 = vmul.f32 %v14464_v55, %v7603_v9  ;;  %v8408_v20 = vpop.f32.mrb[68].mxu0 }
 0x6a8   : > { %v8409_v60 = vpop.f32.mrb[69].mxu0 }
 0x6a9   : > { %v7664_v33 = vmax.f32 %v7648_v62, 0.0  ;;  %v7649_v34 = vadd.f32 %v14470_v49, %v7626_v18  ;;  %v8410_v52 = vadd.f32 %v8409_v60, %v8408_v20  ;;  %v8411_v48 = vpop.f32.mrb[70].mxu0 }
 0x6aa   : > { %v8412_v58 = vpop.f32.mrb[71].mxu0 }
 0x6ab   : > { %7680 = vst [vmem:[%s14479_s28 + $0x60] sm:$0xff] %v7664_v33  ;;  %v7665_v22 = vmax.f32 %v7649_v34, 0.0  ;;  %v7604_v29 = vadd.f32 %v15628_v26, %v8410_v52  ;;  %v8413_v10 = vadd.f32 %v8412_v58, %v8411_v48 }
 0x6ad   : > { %7681 = vst [vmem:[%s14479_s28 + $0x68] sm:$0xff] %v7665_v22  ;;  %v7627_v51 = vmul.f32 %v14464_v55, %v7604_v29  ;;  %v7605_v13 = vadd.f32 %v15629_v11, %v8413_v10 }
 0x6af   : > { %v7650_v6 = vadd.f32 %v14470_v49, %v7627_v51  ;;  %v7628_v35 = vmul.f32 %v14464_v55, %v7605_v13 }
 0x6b1   : > { %v7666_v5 = vmax.f32 %v7650_v6, 0.0  ;;  %v7651_v50 = vadd.f32 %v14470_v49, %v7628_v35 }
 0x6b3   : > { %7682 = vst [vmem:[%s14479_s28 + $0x70] sm:$0xff] %v7666_v5  ;;  %v7667_v19 = vmax.f32 %v7651_v50, 0.0 }
 0x6b5   : > { %7683 = vst [vmem:[%s14479_s28 + $0x78] sm:$0xff] %v7667_v19 }
 0x6b6   : > { %9126 = shalt.err (!%p9123_p3)
}
 0x6b7   : > { %s9127_s26 = scalar_lea.hbm %s14542_s25, 2048  ;;  %s9131_s4 = scalar_lea.hbm %s14610_s19, 4096 }
 0x6b8   : > { %p9128_p4 = scmp.ne.s32.totalorder %s14542_s25, %s9127_s26  ;;  %p9132_p9 = scmp.lt.u32.totalorder %s14542_s25, %s14610_s19 }
 0x6b9   : > { %p9133_p10 = scmp.lt.u32.totalorder %s9131_s4, %s9127_s26  ;;  %p9135_p12 = scmp.lt.u32.totalorder %s9127_s26, %s14542_s25 }
 0x6ba   : > { %p9129_p7 = pnand %p9128_p4, %p9319_p5 }
 0x6bb   : > { %p9134_p11 = por %p9133_p10, %p9132_p9 }
 0x6bc   : > { %p9130_p8 = pneg %p9129_p7 }
 0x6bd   : > { %p9136_p13 = por %p9135_p12, %p9134_p11 }
 0x6bf   : > { %p9137_p0 = pnand %p9136_p13, %p9130_p8 }
 0x6c1   : > { %9140 = shalt.err (!%p9137_p0)
}
 0x6c2   : > { %s9179_s1 = smov 128   ;;  %s9180_s29 = smov 8  }
 0x6c3   : > { %8937 = dma.vmem_to_hbm [thread:$0]  (%p9319_p5), %s14544_s24, 2048, %s14542_s25, %s14550_s22, %s9179_s1, %s9179_s1, %s9180_s29  }
 0x6c4 PF: > { %p8943_p1 = scmp.ge.s32.totalorder %s9175_s21, 2  ;;  %s7713_s5 = sand.u32 1, %s9163_s0  }
 0x6c5   : > { %s7714_s26 = scalar_lea.sflag [#allocation3], %s7713_s5 }
 0x6c6   : > { %p8940_p2 = pnand %p8943_p1, %p9323_p6 }
 0x6c8   : > { %9158 = dma.done.wait (!%p8940_p2), %s7714_s26, 2048  }
 0x6c9   : > { %9160 = vsyncadd (!%p8940_p2), %s7714_s26, 4294965248  ;;  %s15631_s21 = sld [smem:[#allocation6_spill]]  ;;  %s15632_s2 = sld [smem:[#allocation5_spill]] }
 0x6ca   : > { %s15633_s20 = sld [smem:[#allocation7_spill]]  ;;  %s15634_s0 = smov %s9167_s30 }
 0x6cf   : > { %p29_p3 = scmp.ge.s32.totalorder %s15631_s21, 4   ;;  %s15635_s30 = smov %s15632_s2 }
 0x6d1   :  { %31 = sbr.rel (!%p29_p3) target bundleno = 10 (0xa), region = 131 }
 0x6d8   :  { %7719 = vsyncpa [#allocation3], 1 }
 0x6d9   :  { %7721 = vsyncpa [#allocation3 + $0x1], 1 }

</bundles_post_ra>
